<compile_context>
chip_gen: v7x
topology: tpu7x:2x2x1
jax: 0.10.0
libtpu: 0.0.40
codegen_flags: <defaults>
</compile_context>

<pallas_src>
import numpy as np
import jax
import jax.numpy as jnp
from jax.experimental import pallas as pl
from jax.experimental.pallas import tpu as pltpu

# TODO(synk): in the reference, label_data == [] so len(classes) == 0 and the
# head would be nn.Linear(128, 0); a zero-width output is degenerate, so we use
# a synthetic class count of 10 here.
NUM_CLASSES = 10

# (name, spatial_in, cin, cout, stride) for each conv layer.
_LAYER_CFG = (
    ("conv1", 128, 1, 16, 2),   # -> 64x64x16, pool -> 32
    ("conv2", 32, 16, 16, 1),   # -> 32x32x16, pool -> 16
    ("conv3", 16, 16, 32, 1),   # -> 16x16x32, pool -> 8
    ("conv4", 8, 32, 32, 1),    # ->  8x 8x32, pool -> 4
    ("conv5", 4, 32, 32, 1),    # ->  4x 4x32, pool -> 2
)


# ---------------------------------------------------------------------------
# Load-time construction of the matmul constants (plain numpy, done once).
# ---------------------------------------------------------------------------
def _conv_matrices(wgt, bias, s_in, stride):
    """wgt: (cout, cin, 3, 3) torch layout.  Returns LH (3,s_out,s_in),
    R (3, s_in*cin, s_out*cout), bias row (1, s_out*cout)."""
    cout, cin, _, _ = wgt.shape
    s_out = (s_in + 2 - 3) // stride + 1
    LH = np.zeros((3, s_out, s_in), np.float32)
    R = np.zeros((3, s_in * cin, s_out * cout), np.float32)
    for kh in range(3):
        for h in range(s_out):
            i = stride * h + kh - 1
            if 0 <= i < s_in:
                LH[kh, h, i] = 1.0
        for kw in range(3):
            for w in range(s_out):
                u = stride * w + kw - 1
                if 0 <= u < s_in:
                    # R[(u, ci), (w, co)] = wgt[co, ci, kh, kw]
                    R[kh, u * cin:(u + 1) * cin, w * cout:(w + 1) * cout] = wgt[:, :, kh, kw].T
    brow = np.tile(np.asarray(bias, np.float32), s_out)[None, :]
    return LH, R, brow


def _pool_matrices(s, c):
    """2x2/2 max-pool helpers for an (s, s*c) activation."""
    so = s // 2
    SE = np.zeros((2, so, s), np.float32)
    T = np.zeros((2, s * c, so * c), np.float32)
    for d in range(2):
        for h in range(so):
            SE[d, h, 2 * h + d] = 1.0
        for w in range(so):
            for ci in range(c):
                T[d, (2 * w + d) * c + ci, w * c + ci] = 1.0
    return SE, T


def _fc_matrices(fcw, fcb):
    """fcw: (num_classes, 128) torch layout; flatten order is c*4 + h*2 + w."""
    ncls, nin = fcw.shape
    assert nin == 128
    G = np.zeros((2, 64, ncls), np.float32)
    for h in range(2):
        for w in range(2):
            for c in range(32):
                G[h, w * 32 + c, :] = fcw[:, c * 4 + h * 2 + w]
    return G, np.asarray(fcb, np.float32)[None, :]


def build_constants(params):
    """Bake conv/pool/fc into the matmul constants consumed by the kernel."""
    consts = []
    for (name, s_in, cin, cout, stride) in _LAYER_CFG:
        w, b = params[name]
        LH, R, brow = _conv_matrices(w, b, s_in, stride)
        s_out = (s_in + 2 - 3) // stride + 1
        SE, T = _pool_matrices(s_out, cout)
        consts += [
            jnp.asarray(LH, jnp.float32),      # small 0/1 row shift/stride
            jnp.asarray(R, jnp.bfloat16),      # big banded weights -> bf16
            jnp.asarray(brow, jnp.float32),
            jnp.asarray(SE, jnp.float32),      # small 0/1 row selection
            jnp.asarray(T, jnp.bfloat16),      # big 0/1 lane selection -> bf16
        ]
    fcw, fcb = params["fc"]
    G, fcb_row = _fc_matrices(fcw, fcb)
    EH = np.zeros((2, 1, 2), np.float32)
    EH[0, 0, 0] = 1.0
    EH[1, 0, 1] = 1.0
    consts += [
        jnp.asarray(EH, jnp.float32),
        jnp.asarray(G, jnp.bfloat16),
        jnp.asarray(fcb_row, jnp.float32),
    ]
    return tuple(consts)


# ---------------------------------------------------------------------------
# Parameters (deterministic, PyTorch-default-style uniform init, torch layout)
# ---------------------------------------------------------------------------
def init_params(key):
    def conv_init(k_, cin, cout, ksz=3):
        kw_, kb_ = jax.random.split(k_)
        bound = 1.0 / float(np.sqrt(cin * ksz * ksz))
        w = jax.random.uniform(kw_, (cout, cin, ksz, ksz), jnp.float32, -bound, bound)
        b = jax.random.uniform(kb_, (cout,), jnp.float32, -bound, bound)
        return np.asarray(w), np.asarray(b)

    keys = jax.random.split(key, 6)
    params = {
        "conv1": conv_init(keys[0], 1, 16),
        "conv2": conv_init(keys[1], 16, 16),
        "conv3": conv_init(keys[2], 16, 32),
        "conv4": conv_init(keys[3], 32, 32),
        "conv5": conv_init(keys[4], 32, 32),
    }
    kw_, kb_ = jax.random.split(keys[5])
    bound = 1.0 / float(np.sqrt(128))
    params["fc"] = (
        np.asarray(jax.random.uniform(kw_, (NUM_CLASSES, 128), jnp.float32, -bound, bound)),
        np.asarray(jax.random.uniform(kb_, (NUM_CLASSES,), jnp.float32, -bound, bound)),
    )
    return params


# ---------------------------------------------------------------------------
# The fused Pallas kernel (one grid step = one image)
# ---------------------------------------------------------------------------
def _model5_kernel(*refs):
    x_ref = refs[0]
    rest = refs[1:]
    layer_refs = [rest[5 * i: 5 * i + 5] for i in range(5)]
    eh_ref, g_ref, fcb_ref = rest[25], rest[26], rest[27]
    o_ref = rest[28]

    f32 = jnp.float32
    bf16 = jnp.bfloat16

    def conv_relu(act, l_ref, r_ref, b_ref):
        acc = None
        for kh in range(3):
            rows = jnp.dot(l_ref[kh], act, preferred_element_type=f32)
            term = jnp.dot(rows.astype(bf16), r_ref[kh], preferred_element_type=f32)
            acc = term if acc is None else acc + term
        return jnp.maximum(acc + b_ref[...], 0.0)

    def maxpool(act, se_ref, t_ref):
        hrow = jnp.maximum(
            jnp.dot(se_ref[0], act, preferred_element_type=f32),
            jnp.dot(se_ref[1], act, preferred_element_type=f32),
        ).astype(bf16)
        return jnp.maximum(
            jnp.dot(hrow, t_ref[0], preferred_element_type=f32),
            jnp.dot(hrow, t_ref[1], preferred_element_type=f32),
        )

    act = x_ref[0].astype(f32)                       # (128, 128) image
    for l_ref, r_ref, b_ref, se_ref, t_ref in layer_refs:
        act = maxpool(conv_relu(act, l_ref, r_ref, b_ref), se_ref, t_ref)

    # act: (2, 64), rows = h, lanes = w*32 + c.  fc in PyTorch flatten order.
    out = fcb_ref[...]
    for h in range(2):
        row = jnp.dot(eh_ref[h], act, preferred_element_type=f32)        # (1, 64)
        out = out + jnp.dot(row.astype(bf16), g_ref[h], preferred_element_type=f32)
    o_ref[0] = out.astype(o_ref.dtype)


def _const_index_map(ndim):
    return lambda i: (0,) * ndim


@jax.jit
def model5_forward(consts, x):
    x = x.astype(jnp.float32)
    n, h, w = x.shape
    in_specs = [pl.BlockSpec((1, h, w), lambda i: (i, 0, 0))]
    in_specs += [pl.BlockSpec(c.shape, _const_index_map(c.ndim)) for c in consts]
    out = pl.pallas_call(
        _model5_kernel,
        out_shape=jax.ShapeDtypeStruct((n, 1, NUM_CLASSES), jnp.float32),
        grid=(n,),
        in_specs=in_specs,
        out_specs=pl.BlockSpec((1, 1, NUM_CLASSES), lambda i: (i, 0, 0)),
        compiler_params=pltpu.CompilerParams(
            dimension_semantics=("parallel",),
            vmem_limit_bytes=32 * 1024 * 1024,
        ),
    )(x, *consts)
    return out[:, 0, :]


# ---------------------------------------------------------------------------
# Pure-JAX reference (mirrors Model5.forward) for a sanity check
# ---------------------------------------------------------------------------
def model5_reference(params, x):
    x = x.astype(jnp.float32)[:, None, :, :]          # NCHW

    def conv(y, w, b, stride):
        y = jax.lax.conv_general_dilated(
            y, jnp.asarray(w), (stride, stride), [(1, 1), (1, 1)],
            dimension_numbers=("NCHW", "OIHW", "NCHW"))
        return jnp.maximum(y + jnp.asarray(b)[None, :, None, None], 0.0)

    def pool(y):
        return jax.lax.reduce_window(
            y, -jnp.inf, jax.lax.max, (1, 1, 2, 2), (1, 1, 2, 2), "VALID")

    x = pool(conv(x, *params["conv1"], 2))
    x = pool(conv(x, *params["conv2"], 1))
    x = pool(conv(x, *params["conv3"], 1))
    x = pool(conv(x, *params["conv4"], 1))
    x = pool(conv(x, *params["conv5"], 1))
    x = x.reshape(x.shape[0], -1)                      # NCHW flatten order
    fcw, fcb = params["fc"]
    return x @ jnp.asarray(fcw).T + jnp.asarray(fcb)


if __name__ == "__main__":
    key = jax.random.PRNGKey(0)
    pkey, xkey = jax.random.split(key)
    params = init_params(pkey)
    consts = build_constants(params)

    # batch=2 grayscale 128x128 images (spatial size is fixed by the fc layer).
    x = jax.random.normal(xkey, (2, 128, 128), jnp.float32)

    out = jax.block_until_ready(model5_forward(consts, x))
    assert out.shape == (2, NUM_CLASSES), out.shape
    assert bool(jnp.all(jnp.isfinite(out)))

    # Sanity check against the plain-XLA reference (bf16 weights => loose tol).
    ref = jax.block_until_ready(model5_reference(params, x))
    err = float(jnp.max(jnp.abs(out - ref)))
    assert err < 5e-2, f"mismatch vs reference: max abs err {err}"

    print("KERNEL_OK")
</pallas_src>

<mosaic_0001>
module attributes {stable_mosaic.version = 11 : i64} {
  func.func @_model5_kernel(%arg0: i32, %arg1: memref<1x128x128xf32, #tpu.memory_space<vmem>>, %arg2: memref<3x64x128xf32, #tpu.memory_space<vmem>>, %arg3: memref<3x128x1024xbf16, #tpu.memory_space<vmem>>, %arg4: memref<1x1024xf32, #tpu.memory_space<vmem>>, %arg5: memref<2x32x64xf32, #tpu.memory_space<vmem>>, %arg6: memref<2x1024x512xbf16, #tpu.memory_space<vmem>>, %arg7: memref<3x32x32xf32, #tpu.memory_space<vmem>>, %arg8: memref<3x512x512xbf16, #tpu.memory_space<vmem>>, %arg9: memref<1x512xf32, #tpu.memory_space<vmem>>, %arg10: memref<2x16x32xf32, #tpu.memory_space<vmem>>, %arg11: memref<2x512x256xbf16, #tpu.memory_space<vmem>>, %arg12: memref<3x16x16xf32, #tpu.memory_space<vmem>>, %arg13: memref<3x256x512xbf16, #tpu.memory_space<vmem>>, %arg14: memref<1x512xf32, #tpu.memory_space<vmem>>, %arg15: memref<2x8x16xf32, #tpu.memory_space<vmem>>, %arg16: memref<2x512x256xbf16, #tpu.memory_space<vmem>>, %arg17: memref<3x8x8xf32, #tpu.memory_space<vmem>>, %arg18: memref<3x256x256xbf16, #tpu.memory_space<vmem>>, %arg19: memref<1x256xf32, #tpu.memory_space<vmem>>, %arg20: memref<2x4x8xf32, #tpu.memory_space<vmem>>, %arg21: memref<2x256x128xbf16, #tpu.memory_space<vmem>>, %arg22: memref<3x4x4xf32, #tpu.memory_space<vmem>>, %arg23: memref<3x128x128xbf16, #tpu.memory_space<vmem>>, %arg24: memref<1x128xf32, #tpu.memory_space<vmem>>, %arg25: memref<2x2x4xf32, #tpu.memory_space<vmem>>, %arg26: memref<2x128x64xbf16, #tpu.memory_space<vmem>>, %arg27: memref<2x1x2xf32, #tpu.memory_space<vmem>>, %arg28: memref<2x64x10xbf16, #tpu.memory_space<vmem>>, %arg29: memref<1x10xf32, #tpu.memory_space<vmem>>, %arg30: memref<1x1x10xf32, #tpu.memory_space<vmem>>) attributes {dimension_semantics = [#tpu.dimension_semantics<parallel>], iteration_bounds = array<i64: 2>, scalar_prefetch = 0 : i64, scratch_operands = 0 : i64, tpu.core_type = #tpu.core_type<tc>, window_params = [{transform_indices = @transform_0, window_bounds = array<i64: 1, 128, 128>}, {pipeline_mode = #tpu.pipeline_mode<synchronous>, transform_indices = @transform_1, window_bounds = array<i64: 3, 64, 128>}, {pipeline_mode = #tpu.pipeline_mode<synchronous>, transform_indices = @transform_2, window_bounds = array<i64: 3, 128, 1024>}, {pipeline_mode = #tpu.pipeline_mode<synchronous>, transform_indices = @transform_3, window_bounds = array<i64: 1, 1024>}, {pipeline_mode = #tpu.pipeline_mode<synchronous>, transform_indices = @transform_4, window_bounds = array<i64: 2, 32, 64>}, {pipeline_mode = #tpu.pipeline_mode<synchronous>, transform_indices = @transform_5, window_bounds = array<i64: 2, 1024, 512>}, {pipeline_mode = #tpu.pipeline_mode<synchronous>, transform_indices = @transform_6, window_bounds = array<i64: 3, 32, 32>}, {pipeline_mode = #tpu.pipeline_mode<synchronous>, transform_indices = @transform_7, window_bounds = array<i64: 3, 512, 512>}, {pipeline_mode = #tpu.pipeline_mode<synchronous>, transform_indices = @transform_8, window_bounds = array<i64: 1, 512>}, {pipeline_mode = #tpu.pipeline_mode<synchronous>, transform_indices = @transform_9, window_bounds = array<i64: 2, 16, 32>}, {pipeline_mode = #tpu.pipeline_mode<synchronous>, transform_indices = @transform_10, window_bounds = array<i64: 2, 512, 256>}, {pipeline_mode = #tpu.pipeline_mode<synchronous>, transform_indices = @transform_11, window_bounds = array<i64: 3, 16, 16>}, {pipeline_mode = #tpu.pipeline_mode<synchronous>, transform_indices = @transform_12, window_bounds = array<i64: 3, 256, 512>}, {pipeline_mode = #tpu.pipeline_mode<synchronous>, transform_indices = @transform_13, window_bounds = array<i64: 1, 512>}, {pipeline_mode = #tpu.pipeline_mode<synchronous>, transform_indices = @transform_14, window_bounds = array<i64: 2, 8, 16>}, {pipeline_mode = #tpu.pipeline_mode<synchronous>, transform_indices = @transform_15, window_bounds = array<i64: 2, 512, 256>}, {pipeline_mode = #tpu.pipeline_mode<synchronous>, transform_indices = @transform_16, window_bounds = array<i64: 3, 8, 8>}, {pipeline_mode = #tpu.pipeline_mode<synchronous>, transform_indices = @transform_17, window_bounds = array<i64: 3, 256, 256>}, {pipeline_mode = #tpu.pipeline_mode<synchronous>, transform_indices = @transform_18, window_bounds = array<i64: 1, 256>}, {pipeline_mode = #tpu.pipeline_mode<synchronous>, transform_indices = @transform_19, window_bounds = array<i64: 2, 4, 8>}, {pipeline_mode = #tpu.pipeline_mode<synchronous>, transform_indices = @transform_20, window_bounds = array<i64: 2, 256, 128>}, {pipeline_mode = #tpu.pipeline_mode<synchronous>, transform_indices = @transform_21, window_bounds = array<i64: 3, 4, 4>}, {pipeline_mode = #tpu.pipeline_mode<synchronous>, transform_indices = @transform_22, window_bounds = array<i64: 3, 128, 128>}, {pipeline_mode = #tpu.pipeline_mode<synchronous>, transform_indices = @transform_23, window_bounds = array<i64: 1, 128>}, {pipeline_mode = #tpu.pipeline_mode<synchronous>, transform_indices = @transform_24, window_bounds = array<i64: 2, 2, 4>}, {pipeline_mode = #tpu.pipeline_mode<synchronous>, transform_indices = @transform_25, window_bounds = array<i64: 2, 128, 64>}, {pipeline_mode = #tpu.pipeline_mode<synchronous>, transform_indices = @transform_26, window_bounds = array<i64: 2, 1, 2>}, {pipeline_mode = #tpu.pipeline_mode<synchronous>, transform_indices = @transform_27, window_bounds = array<i64: 2, 64, 10>}, {pipeline_mode = #tpu.pipeline_mode<synchronous>, transform_indices = @transform_28, window_bounds = array<i64: 1, 10>}, {transform_indices = @transform_29, window_bounds = array<i64: 1, 1, 10>}]} {
    %c0 = arith.constant 0 : index
    %c0_0 = arith.constant 0 : index
    %c0_1 = arith.constant 0 : index
    %0 = vector.load %arg1[%c0, %c0_0, %c0_1] : memref<1x128x128xf32, #tpu.memory_space<vmem>>, vector<1x128x128xf32>
    %1 = vector.shape_cast %0 : vector<1x128x128xf32> to vector<128x128xf32>
    %c0_2 = arith.constant 0 : index
    %c0_3 = arith.constant 0 : index
    %c0_4 = arith.constant 0 : index
    %2 = vector.load %arg2[%c0_2, %c0_3, %c0_4] : memref<3x64x128xf32, #tpu.memory_space<vmem>>, vector<1x64x128xf32>
    %3 = vector.shape_cast %2 : vector<1x64x128xf32> to vector<64x128xf32>
    %cst = arith.constant dense<0.000000e+00> : vector<64x128xf32>
    %4 = tpu.matmul %3, %1, %cst {dimension_numbers = #tpu.dot_dimension_numbers<[1], [0], [0], [1], [0, 0, 1, 1], [], []>} : vector<64x128xf32>, vector<128x128xf32>, vector<64x128xf32> -> vector<64x128xf32>
    %5 = arith.truncf %4 : vector<64x128xf32> to vector<64x128xbf16>
    %c0_5 = arith.constant 0 : index
    %c0_6 = arith.constant 0 : index
    %c0_7 = arith.constant 0 : index
    %6 = vector.load %arg3[%c0_5, %c0_6, %c0_7] : memref<3x128x1024xbf16, #tpu.memory_space<vmem>>, vector<1x128x1024xbf16>
    %7 = vector.shape_cast %6 : vector<1x128x1024xbf16> to vector<128x1024xbf16>
    %cst_8 = arith.constant dense<0.000000e+00> : vector<64x1024xf32>
    %8 = tpu.matmul %5, %7, %cst_8 {dimension_numbers = #tpu.dot_dimension_numbers<[1], [0], [0], [1], [0, 0, 1, 1], [], []>} : vector<64x128xbf16>, vector<128x1024xbf16>, vector<64x1024xf32> -> vector<64x1024xf32>
    %c1 = arith.constant 1 : index
    %c0_9 = arith.constant 0 : index
    %c0_10 = arith.constant 0 : index
    %9 = vector.load %arg2[%c1, %c0_9, %c0_10] : memref<3x64x128xf32, #tpu.memory_space<vmem>>, vector<1x64x128xf32>
    %10 = vector.shape_cast %9 : vector<1x64x128xf32> to vector<64x128xf32>
    %cst_11 = arith.constant dense<0.000000e+00> : vector<64x128xf32>
    %11 = tpu.matmul %10, %1, %cst_11 {dimension_numbers = #tpu.dot_dimension_numbers<[1], [0], [0], [1], [0, 0, 1, 1], [], []>} : vector<64x128xf32>, vector<128x128xf32>, vector<64x128xf32> -> vector<64x128xf32>
    %12 = arith.truncf %11 : vector<64x128xf32> to vector<64x128xbf16>
    %c1_12 = arith.constant 1 : index
    %c0_13 = arith.constant 0 : index
    %c0_14 = arith.constant 0 : index
    %13 = vector.load %arg3[%c1_12, %c0_13, %c0_14] : memref<3x128x1024xbf16, #tpu.memory_space<vmem>>, vector<1x128x1024xbf16>
    %14 = vector.shape_cast %13 : vector<1x128x1024xbf16> to vector<128x1024xbf16>
    %cst_15 = arith.constant dense<0.000000e+00> : vector<64x1024xf32>
    %15 = tpu.matmul %12, %14, %cst_15 {dimension_numbers = #tpu.dot_dimension_numbers<[1], [0], [0], [1], [0, 0, 1, 1], [], []>} : vector<64x128xbf16>, vector<128x1024xbf16>, vector<64x1024xf32> -> vector<64x1024xf32>
    %16 = arith.addf %8, %15 : vector<64x1024xf32>
    %c2 = arith.constant 2 : index
    %c0_16 = arith.constant 0 : index
    %c0_17 = arith.constant 0 : index
    %17 = vector.load %arg2[%c2, %c0_16, %c0_17] : memref<3x64x128xf32, #tpu.memory_space<vmem>>, vector<1x64x128xf32>
    %18 = vector.shape_cast %17 : vector<1x64x128xf32> to vector<64x128xf32>
    %cst_18 = arith.constant dense<0.000000e+00> : vector<64x128xf32>
    %19 = tpu.matmul %18, %1, %cst_18 {dimension_numbers = #tpu.dot_dimension_numbers<[1], [0], [0], [1], [0, 0, 1, 1], [], []>} : vector<64x128xf32>, vector<128x128xf32>, vector<64x128xf32> -> vector<64x128xf32>
    %20 = arith.truncf %19 : vector<64x128xf32> to vector<64x128xbf16>
    %c2_19 = arith.constant 2 : index
    %c0_20 = arith.constant 0 : index
    %c0_21 = arith.constant 0 : index
    %21 = vector.load %arg3[%c2_19, %c0_20, %c0_21] : memref<3x128x1024xbf16, #tpu.memory_space<vmem>>, vector<1x128x1024xbf16>
    %22 = vector.shape_cast %21 : vector<1x128x1024xbf16> to vector<128x1024xbf16>
    %cst_22 = arith.constant dense<0.000000e+00> : vector<64x1024xf32>
    %23 = tpu.matmul %20, %22, %cst_22 {dimension_numbers = #tpu.dot_dimension_numbers<[1], [0], [0], [1], [0, 0, 1, 1], [], []>} : vector<64x128xbf16>, vector<128x1024xbf16>, vector<64x1024xf32> -> vector<64x1024xf32>
    %24 = arith.addf %16, %23 : vector<64x1024xf32>
    %c0_23 = arith.constant 0 : index
    %c0_24 = arith.constant 0 : index
    %25 = vector.load %arg4[%c0_23, %c0_24] : memref<1x1024xf32, #tpu.memory_space<vmem>>, vector<1x1024xf32>
    %26 = vector.broadcast %25 : vector<1x1024xf32> to vector<64x1024xf32>
    %27 = arith.addf %24, %26 : vector<64x1024xf32>
    %cst_25 = arith.constant 0.000000e+00 : f32
    %28 = vector.broadcast %cst_25 : f32 to vector<64x1024xf32>
    %29 = arith.maximumf %27, %28 : vector<64x1024xf32>
    %c0_26 = arith.constant 0 : index
    %c0_27 = arith.constant 0 : index
    %c0_28 = arith.constant 0 : index
    %30 = vector.load %arg5[%c0_26, %c0_27, %c0_28] : memref<2x32x64xf32, #tpu.memory_space<vmem>>, vector<1x32x64xf32>
    %31 = vector.shape_cast %30 : vector<1x32x64xf32> to vector<32x64xf32>
    %cst_29 = arith.constant dense<0.000000e+00> : vector<32x1024xf32>
    %32 = tpu.matmul %31, %29, %cst_29 {dimension_numbers = #tpu.dot_dimension_numbers<[1], [0], [0], [1], [0, 0, 1, 1], [], []>} : vector<32x64xf32>, vector<64x1024xf32>, vector<32x1024xf32> -> vector<32x1024xf32>
    %c1_30 = arith.constant 1 : index
    %c0_31 = arith.constant 0 : index
    %c0_32 = arith.constant 0 : index
    %33 = vector.load %arg5[%c1_30, %c0_31, %c0_32] : memref<2x32x64xf32, #tpu.memory_space<vmem>>, vector<1x32x64xf32>
    %34 = vector.shape_cast %33 : vector<1x32x64xf32> to vector<32x64xf32>
    %cst_33 = arith.constant dense<0.000000e+00> : vector<32x1024xf32>
    %35 = tpu.matmul %34, %29, %cst_33 {dimension_numbers = #tpu.dot_dimension_numbers<[1], [0], [0], [1], [0, 0, 1, 1], [], []>} : vector<32x64xf32>, vector<64x1024xf32>, vector<32x1024xf32> -> vector<32x1024xf32>
    %36 = arith.maximumf %32, %35 : vector<32x1024xf32>
    %37 = arith.truncf %36 : vector<32x1024xf32> to vector<32x1024xbf16>
    %c0_34 = arith.constant 0 : index
    %c0_35 = arith.constant 0 : index
    %c0_36 = arith.constant 0 : index
    %38 = vector.load %arg6[%c0_34, %c0_35, %c0_36] : memref<2x1024x512xbf16, #tpu.memory_space<vmem>>, vector<1x1024x512xbf16>
    %39 = vector.shape_cast %38 : vector<1x1024x512xbf16> to vector<1024x512xbf16>
    %cst_37 = arith.constant dense<0.000000e+00> : vector<32x512xf32>
    %40 = tpu.matmul %37, %39, %cst_37 {dimension_numbers = #tpu.dot_dimension_numbers<[1], [0], [0], [1], [0, 0, 1, 1], [], []>} : vector<32x1024xbf16>, vector<1024x512xbf16>, vector<32x512xf32> -> vector<32x512xf32>
    %c1_38 = arith.constant 1 : index
    %c0_39 = arith.constant 0 : index
    %c0_40 = arith.constant 0 : index
    %41 = vector.load %arg6[%c1_38, %c0_39, %c0_40] : memref<2x1024x512xbf16, #tpu.memory_space<vmem>>, vector<1x1024x512xbf16>
    %42 = vector.shape_cast %41 : vector<1x1024x512xbf16> to vector<1024x512xbf16>
    %cst_41 = arith.constant dense<0.000000e+00> : vector<32x512xf32>
    %43 = tpu.matmul %37, %42, %cst_41 {dimension_numbers = #tpu.dot_dimension_numbers<[1], [0], [0], [1], [0, 0, 1, 1], [], []>} : vector<32x1024xbf16>, vector<1024x512xbf16>, vector<32x512xf32> -> vector<32x512xf32>
    %44 = arith.maximumf %40, %43 : vector<32x512xf32>
    %c0_42 = arith.constant 0 : index
    %c0_43 = arith.constant 0 : index
    %c0_44 = arith.constant 0 : index
    %45 = vector.load %arg7[%c0_42, %c0_43, %c0_44] : memref<3x32x32xf32, #tpu.memory_space<vmem>>, vector<1x32x32xf32>
    %46 = vector.shape_cast %45 : vector<1x32x32xf32> to vector<32x32xf32>
    %cst_45 = arith.constant dense<0.000000e+00> : vector<32x512xf32>
    %47 = tpu.matmul %46, %44, %cst_45 {dimension_numbers = #tpu.dot_dimension_numbers<[1], [0], [0], [1], [0, 0, 1, 1], [], []>} : vector<32x32xf32>, vector<32x512xf32>, vector<32x512xf32> -> vector<32x512xf32>
    %48 = arith.truncf %47 : vector<32x512xf32> to vector<32x512xbf16>
    %c0_46 = arith.constant 0 : index
    %c0_47 = arith.constant 0 : index
    %c0_48 = arith.constant 0 : index
    %49 = vector.load %arg8[%c0_46, %c0_47, %c0_48] : memref<3x512x512xbf16, #tpu.memory_space<vmem>>, vector<1x512x512xbf16>
    %50 = vector.shape_cast %49 : vector<1x512x512xbf16> to vector<512x512xbf16>
    %cst_49 = arith.constant dense<0.000000e+00> : vector<32x512xf32>
    %51 = tpu.matmul %48, %50, %cst_49 {dimension_numbers = #tpu.dot_dimension_numbers<[1], [0], [0], [1], [0, 0, 1, 1], [], []>} : vector<32x512xbf16>, vector<512x512xbf16>, vector<32x512xf32> -> vector<32x512xf32>
    %c1_50 = arith.constant 1 : index
    %c0_51 = arith.constant 0 : index
    %c0_52 = arith.constant 0 : index
    %52 = vector.load %arg7[%c1_50, %c0_51, %c0_52] : memref<3x32x32xf32, #tpu.memory_space<vmem>>, vector<1x32x32xf32>
    %53 = vector.shape_cast %52 : vector<1x32x32xf32> to vector<32x32xf32>
    %cst_53 = arith.constant dense<0.000000e+00> : vector<32x512xf32>
    %54 = tpu.matmul %53, %44, %cst_53 {dimension_numbers = #tpu.dot_dimension_numbers<[1], [0], [0], [1], [0, 0, 1, 1], [], []>} : vector<32x32xf32>, vector<32x512xf32>, vector<32x512xf32> -> vector<32x512xf32>
    %55 = arith.truncf %54 : vector<32x512xf32> to vector<32x512xbf16>
    %c1_54 = arith.constant 1 : index
    %c0_55 = arith.constant 0 : index
    %c0_56 = arith.constant 0 : index
    %56 = vector.load %arg8[%c1_54, %c0_55, %c0_56] : memref<3x512x512xbf16, #tpu.memory_space<vmem>>, vector<1x512x512xbf16>
    %57 = vector.shape_cast %56 : vector<1x512x512xbf16> to vector<512x512xbf16>
    %cst_57 = arith.constant dense<0.000000e+00> : vector<32x512xf32>
    %58 = tpu.matmul %55, %57, %cst_57 {dimension_numbers = #tpu.dot_dimension_numbers<[1], [0], [0], [1], [0, 0, 1, 1], [], []>} : vector<32x512xbf16>, vector<512x512xbf16>, vector<32x512xf32> -> vector<32x512xf32>
    %59 = arith.addf %51, %58 : vector<32x512xf32>
    %c2_58 = arith.constant 2 : index
    %c0_59 = arith.constant 0 : index
    %c0_60 = arith.constant 0 : index
    %60 = vector.load %arg7[%c2_58, %c0_59, %c0_60] : memref<3x32x32xf32, #tpu.memory_space<vmem>>, vector<1x32x32xf32>
    %61 = vector.shape_cast %60 : vector<1x32x32xf32> to vector<32x32xf32>
    %cst_61 = arith.constant dense<0.000000e+00> : vector<32x512xf32>
    %62 = tpu.matmul %61, %44, %cst_61 {dimension_numbers = #tpu.dot_dimension_numbers<[1], [0], [0], [1], [0, 0, 1, 1], [], []>} : vector<32x32xf32>, vector<32x512xf32>, vector<32x512xf32> -> vector<32x512xf32>
    %63 = arith.truncf %62 : vector<32x512xf32> to vector<32x512xbf16>
    %c2_62 = arith.constant 2 : index
    %c0_63 = arith.constant 0 : index
    %c0_64 = arith.constant 0 : index
    %64 = vector.load %arg8[%c2_62, %c0_63, %c0_64] : memref<3x512x512xbf16, #tpu.memory_space<vmem>>, vector<1x512x512xbf16>
    %65 = vector.shape_cast %64 : vector<1x512x512xbf16> to vector<512x512xbf16>
    %cst_65 = arith.constant dense<0.000000e+00> : vector<32x512xf32>
    %66 = tpu.matmul %63, %65, %cst_65 {dimension_numbers = #tpu.dot_dimension_numbers<[1], [0], [0], [1], [0, 0, 1, 1], [], []>} : vector<32x512xbf16>, vector<512x512xbf16>, vector<32x512xf32> -> vector<32x512xf32>
    %67 = arith.addf %59, %66 : vector<32x512xf32>
    %c0_66 = arith.constant 0 : index
    %c0_67 = arith.constant 0 : index
    %68 = vector.load %arg9[%c0_66, %c0_67] : memref<1x512xf32, #tpu.memory_space<vmem>>, vector<1x512xf32>
    %69 = vector.broadcast %68 : vector<1x512xf32> to vector<32x512xf32>
    %70 = arith.addf %67, %69 : vector<32x512xf32>
    %cst_68 = arith.constant 0.000000e+00 : f32
    %71 = vector.broadcast %cst_68 : f32 to vector<32x512xf32>
    %72 = arith.maximumf %70, %71 : vector<32x512xf32>
    %c0_69 = arith.constant 0 : index
    %c0_70 = arith.constant 0 : index
    %c0_71 = arith.constant 0 : index
    %73 = vector.load %arg10[%c0_69, %c0_70, %c0_71] : memref<2x16x32xf32, #tpu.memory_space<vmem>>, vector<1x16x32xf32>
    %74 = vector.shape_cast %73 : vector<1x16x32xf32> to vector<16x32xf32>
    %cst_72 = arith.constant dense<0.000000e+00> : vector<16x512xf32>
    %75 = tpu.matmul %74, %72, %cst_72 {dimension_numbers = #tpu.dot_dimension_numbers<[1], [0], [0], [1], [0, 0, 1, 1], [], []>} : vector<16x32xf32>, vector<32x512xf32>, vector<16x512xf32> -> vector<16x512xf32>
    %c1_73 = arith.constant 1 : index
    %c0_74 = arith.constant 0 : index
    %c0_75 = arith.constant 0 : index
    %76 = vector.load %arg10[%c1_73, %c0_74, %c0_75] : memref<2x16x32xf32, #tpu.memory_space<vmem>>, vector<1x16x32xf32>
    %77 = vector.shape_cast %76 : vector<1x16x32xf32> to vector<16x32xf32>
    %cst_76 = arith.constant dense<0.000000e+00> : vector<16x512xf32>
    %78 = tpu.matmul %77, %72, %cst_76 {dimension_numbers = #tpu.dot_dimension_numbers<[1], [0], [0], [1], [0, 0, 1, 1], [], []>} : vector<16x32xf32>, vector<32x512xf32>, vector<16x512xf32> -> vector<16x512xf32>
    %79 = arith.maximumf %75, %78 : vector<16x512xf32>
    %80 = arith.truncf %79 : vector<16x512xf32> to vector<16x512xbf16>
    %c0_77 = arith.constant 0 : index
    %c0_78 = arith.constant 0 : index
    %c0_79 = arith.constant 0 : index
    %81 = vector.load %arg11[%c0_77, %c0_78, %c0_79] : memref<2x512x256xbf16, #tpu.memory_space<vmem>>, vector<1x512x256xbf16>
    %82 = vector.shape_cast %81 : vector<1x512x256xbf16> to vector<512x256xbf16>
    %cst_80 = arith.constant dense<0.000000e+00> : vector<16x256xf32>
    %83 = tpu.matmul %80, %82, %cst_80 {dimension_numbers = #tpu.dot_dimension_numbers<[1], [0], [0], [1], [0, 0, 1, 1], [], []>} : vector<16x512xbf16>, vector<512x256xbf16>, vector<16x256xf32> -> vector<16x256xf32>
    %c1_81 = arith.constant 1 : index
    %c0_82 = arith.constant 0 : index
    %c0_83 = arith.constant 0 : index
    %84 = vector.load %arg11[%c1_81, %c0_82, %c0_83] : memref<2x512x256xbf16, #tpu.memory_space<vmem>>, vector<1x512x256xbf16>
    %85 = vector.shape_cast %84 : vector<1x512x256xbf16> to vector<512x256xbf16>
    %cst_84 = arith.constant dense<0.000000e+00> : vector<16x256xf32>
    %86 = tpu.matmul %80, %85, %cst_84 {dimension_numbers = #tpu.dot_dimension_numbers<[1], [0], [0], [1], [0, 0, 1, 1], [], []>} : vector<16x512xbf16>, vector<512x256xbf16>, vector<16x256xf32> -> vector<16x256xf32>
    %87 = arith.maximumf %83, %86 : vector<16x256xf32>
    %c0_85 = arith.constant 0 : index
    %c0_86 = arith.constant 0 : index
    %c0_87 = arith.constant 0 : index
    %88 = vector.load %arg12[%c0_85, %c0_86, %c0_87] : memref<3x16x16xf32, #tpu.memory_space<vmem>>, vector<1x16x16xf32>
    %89 = vector.shape_cast %88 : vector<1x16x16xf32> to vector<16x16xf32>
    %cst_88 = arith.constant dense<0.000000e+00> : vector<16x256xf32>
    %90 = tpu.matmul %89, %87, %cst_88 {dimension_numbers = #tpu.dot_dimension_numbers<[1], [0], [0], [1], [0, 0, 1, 1], [], []>} : vector<16x16xf32>, vector<16x256xf32>, vector<16x256xf32> -> vector<16x256xf32>
    %91 = arith.truncf %90 : vector<16x256xf32> to vector<16x256xbf16>
    %c0_89 = arith.constant 0 : index
    %c0_90 = arith.constant 0 : index
    %c0_91 = arith.constant 0 : index
    %92 = vector.load %arg13[%c0_89, %c0_90, %c0_91] : memref<3x256x512xbf16, #tpu.memory_space<vmem>>, vector<1x256x512xbf16>
    %93 = vector.shape_cast %92 : vector<1x256x512xbf16> to vector<256x512xbf16>
    %cst_92 = arith.constant dense<0.000000e+00> : vector<16x512xf32>
    %94 = tpu.matmul %91, %93, %cst_92 {dimension_numbers = #tpu.dot_dimension_numbers<[1], [0], [0], [1], [0, 0, 1, 1], [], []>} : vector<16x256xbf16>, vector<256x512xbf16>, vector<16x512xf32> -> vector<16x512xf32>
    %c1_93 = arith.constant 1 : index
    %c0_94 = arith.constant 0 : index
    %c0_95 = arith.constant 0 : index
    %95 = vector.load %arg12[%c1_93, %c0_94, %c0_95] : memref<3x16x16xf32, #tpu.memory_space<vmem>>, vector<1x16x16xf32>
    %96 = vector.shape_cast %95 : vector<1x16x16xf32> to vector<16x16xf32>
    %cst_96 = arith.constant dense<0.000000e+00> : vector<16x256xf32>
    %97 = tpu.matmul %96, %87, %cst_96 {dimension_numbers = #tpu.dot_dimension_numbers<[1], [0], [0], [1], [0, 0, 1, 1], [], []>} : vector<16x16xf32>, vector<16x256xf32>, vector<16x256xf32> -> vector<16x256xf32>
    %98 = arith.truncf %97 : vector<16x256xf32> to vector<16x256xbf16>
    %c1_97 = arith.constant 1 : index
    %c0_98 = arith.constant 0 : index
    %c0_99 = arith.constant 0 : index
    %99 = vector.load %arg13[%c1_97, %c0_98, %c0_99] : memref<3x256x512xbf16, #tpu.memory_space<vmem>>, vector<1x256x512xbf16>
    %100 = vector.shape_cast %99 : vector<1x256x512xbf16> to vector<256x512xbf16>
    %cst_100 = arith.constant dense<0.000000e+00> : vector<16x512xf32>
    %101 = tpu.matmul %98, %100, %cst_100 {dimension_numbers = #tpu.dot_dimension_numbers<[1], [0], [0], [1], [0, 0, 1, 1], [], []>} : vector<16x256xbf16>, vector<256x512xbf16>, vector<16x512xf32> -> vector<16x512xf32>
    %102 = arith.addf %94, %101 : vector<16x512xf32>
    %c2_101 = arith.constant 2 : index
    %c0_102 = arith.constant 0 : index
    %c0_103 = arith.constant 0 : index
    %103 = vector.load %arg12[%c2_101, %c0_102, %c0_103] : memref<3x16x16xf32, #tpu.memory_space<vmem>>, vector<1x16x16xf32>
    %104 = vector.shape_cast %103 : vector<1x16x16xf32> to vector<16x16xf32>
    %cst_104 = arith.constant dense<0.000000e+00> : vector<16x256xf32>
    %105 = tpu.matmul %104, %87, %cst_104 {dimension_numbers = #tpu.dot_dimension_numbers<[1], [0], [0], [1], [0, 0, 1, 1], [], []>} : vector<16x16xf32>, vector<16x256xf32>, vector<16x256xf32> -> vector<16x256xf32>
    %106 = arith.truncf %105 : vector<16x256xf32> to vector<16x256xbf16>
    %c2_105 = arith.constant 2 : index
    %c0_106 = arith.constant 0 : index
    %c0_107 = arith.constant 0 : index
    %107 = vector.load %arg13[%c2_105, %c0_106, %c0_107] : memref<3x256x512xbf16, #tpu.memory_space<vmem>>, vector<1x256x512xbf16>
    %108 = vector.shape_cast %107 : vector<1x256x512xbf16> to vector<256x512xbf16>
    %cst_108 = arith.constant dense<0.000000e+00> : vector<16x512xf32>
    %109 = tpu.matmul %106, %108, %cst_108 {dimension_numbers = #tpu.dot_dimension_numbers<[1], [0], [0], [1], [0, 0, 1, 1], [], []>} : vector<16x256xbf16>, vector<256x512xbf16>, vector<16x512xf32> -> vector<16x512xf32>
    %110 = arith.addf %102, %109 : vector<16x512xf32>
    %c0_109 = arith.constant 0 : index
    %c0_110 = arith.constant 0 : index
    %111 = vector.load %arg14[%c0_109, %c0_110] : memref<1x512xf32, #tpu.memory_space<vmem>>, vector<1x512xf32>
    %112 = vector.broadcast %111 : vector<1x512xf32> to vector<16x512xf32>
    %113 = arith.addf %110, %112 : vector<16x512xf32>
    %cst_111 = arith.constant 0.000000e+00 : f32
    %114 = vector.broadcast %cst_111 : f32 to vector<16x512xf32>
    %115 = arith.maximumf %113, %114 : vector<16x512xf32>
    %c0_112 = arith.constant 0 : index
    %c0_113 = arith.constant 0 : index
    %c0_114 = arith.constant 0 : index
    %116 = vector.load %arg15[%c0_112, %c0_113, %c0_114] : memref<2x8x16xf32, #tpu.memory_space<vmem>>, vector<1x8x16xf32>
    %117 = vector.shape_cast %116 : vector<1x8x16xf32> to vector<8x16xf32>
    %cst_115 = arith.constant dense<0.000000e+00> : vector<8x512xf32>
    %118 = tpu.matmul %117, %115, %cst_115 {dimension_numbers = #tpu.dot_dimension_numbers<[1], [0], [0], [1], [0, 0, 1, 1], [], []>} : vector<8x16xf32>, vector<16x512xf32>, vector<8x512xf32> -> vector<8x512xf32>
    %c1_116 = arith.constant 1 : index
    %c0_117 = arith.constant 0 : index
    %c0_118 = arith.constant 0 : index
    %119 = vector.load %arg15[%c1_116, %c0_117, %c0_118] : memref<2x8x16xf32, #tpu.memory_space<vmem>>, vector<1x8x16xf32>
    %120 = vector.shape_cast %119 : vector<1x8x16xf32> to vector<8x16xf32>
    %cst_119 = arith.constant dense<0.000000e+00> : vector<8x512xf32>
    %121 = tpu.matmul %120, %115, %cst_119 {dimension_numbers = #tpu.dot_dimension_numbers<[1], [0], [0], [1], [0, 0, 1, 1], [], []>} : vector<8x16xf32>, vector<16x512xf32>, vector<8x512xf32> -> vector<8x512xf32>
    %122 = arith.maximumf %118, %121 : vector<8x512xf32>
    %123 = arith.truncf %122 : vector<8x512xf32> to vector<8x512xbf16>
    %c0_120 = arith.constant 0 : index
    %c0_121 = arith.constant 0 : index
    %c0_122 = arith.constant 0 : index
    %124 = vector.load %arg16[%c0_120, %c0_121, %c0_122] : memref<2x512x256xbf16, #tpu.memory_space<vmem>>, vector<1x512x256xbf16>
    %125 = vector.shape_cast %124 : vector<1x512x256xbf16> to vector<512x256xbf16>
    %cst_123 = arith.constant dense<0.000000e+00> : vector<8x256xf32>
    %126 = tpu.matmul %123, %125, %cst_123 {dimension_numbers = #tpu.dot_dimension_numbers<[1], [0], [0], [1], [0, 0, 1, 1], [], []>} : vector<8x512xbf16>, vector<512x256xbf16>, vector<8x256xf32> -> vector<8x256xf32>
    %c1_124 = arith.constant 1 : index
    %c0_125 = arith.constant 0 : index
    %c0_126 = arith.constant 0 : index
    %127 = vector.load %arg16[%c1_124, %c0_125, %c0_126] : memref<2x512x256xbf16, #tpu.memory_space<vmem>>, vector<1x512x256xbf16>
    %128 = vector.shape_cast %127 : vector<1x512x256xbf16> to vector<512x256xbf16>
    %cst_127 = arith.constant dense<0.000000e+00> : vector<8x256xf32>
    %129 = tpu.matmul %123, %128, %cst_127 {dimension_numbers = #tpu.dot_dimension_numbers<[1], [0], [0], [1], [0, 0, 1, 1], [], []>} : vector<8x512xbf16>, vector<512x256xbf16>, vector<8x256xf32> -> vector<8x256xf32>
    %130 = arith.maximumf %126, %129 : vector<8x256xf32>
    %c0_128 = arith.constant 0 : index
    %c0_129 = arith.constant 0 : index
    %c0_130 = arith.constant 0 : index
    %131 = vector.load %arg17[%c0_128, %c0_129, %c0_130] : memref<3x8x8xf32, #tpu.memory_space<vmem>>, vector<1x8x8xf32>
    %132 = vector.shape_cast %131 : vector<1x8x8xf32> to vector<8x8xf32>
    %cst_131 = arith.constant dense<0.000000e+00> : vector<8x256xf32>
    %133 = tpu.matmul %132, %130, %cst_131 {dimension_numbers = #tpu.dot_dimension_numbers<[1], [0], [0], [1], [0, 0, 1, 1], [], []>} : vector<8x8xf32>, vector<8x256xf32>, vector<8x256xf32> -> vector<8x256xf32>
    %134 = arith.truncf %133 : vector<8x256xf32> to vector<8x256xbf16>
    %c0_132 = arith.constant 0 : index
    %c0_133 = arith.constant 0 : index
    %c0_134 = arith.constant 0 : index
    %135 = vector.load %arg18[%c0_132, %c0_133, %c0_134] : memref<3x256x256xbf16, #tpu.memory_space<vmem>>, vector<1x256x256xbf16>
    %136 = vector.shape_cast %135 : vector<1x256x256xbf16> to vector<256x256xbf16>
    %cst_135 = arith.constant dense<0.000000e+00> : vector<8x256xf32>
    %137 = tpu.matmul %134, %136, %cst_135 {dimension_numbers = #tpu.dot_dimension_numbers<[1], [0], [0], [1], [0, 0, 1, 1], [], []>} : vector<8x256xbf16>, vector<256x256xbf16>, vector<8x256xf32> -> vector<8x256xf32>
    %c1_136 = arith.constant 1 : index
    %c0_137 = arith.constant 0 : index
    %c0_138 = arith.constant 0 : index
    %138 = vector.load %arg17[%c1_136, %c0_137, %c0_138] : memref<3x8x8xf32, #tpu.memory_space<vmem>>, vector<1x8x8xf32>
    %139 = vector.shape_cast %138 : vector<1x8x8xf32> to vector<8x8xf32>
    %cst_139 = arith.constant dense<0.000000e+00> : vector<8x256xf32>
    %140 = tpu.matmul %139, %130, %cst_139 {dimension_numbers = #tpu.dot_dimension_numbers<[1], [0], [0], [1], [0, 0, 1, 1], [], []>} : vector<8x8xf32>, vector<8x256xf32>, vector<8x256xf32> -> vector<8x256xf32>
    %141 = arith.truncf %140 : vector<8x256xf32> to vector<8x256xbf16>
    %c1_140 = arith.constant 1 : index
    %c0_141 = arith.constant 0 : index
    %c0_142 = arith.constant 0 : index
    %142 = vector.load %arg18[%c1_140, %c0_141, %c0_142] : memref<3x256x256xbf16, #tpu.memory_space<vmem>>, vector<1x256x256xbf16>
    %143 = vector.shape_cast %142 : vector<1x256x256xbf16> to vector<256x256xbf16>
    %cst_143 = arith.constant dense<0.000000e+00> : vector<8x256xf32>
    %144 = tpu.matmul %141, %143, %cst_143 {dimension_numbers = #tpu.dot_dimension_numbers<[1], [0], [0], [1], [0, 0, 1, 1], [], []>} : vector<8x256xbf16>, vector<256x256xbf16>, vector<8x256xf32> -> vector<8x256xf32>
    %145 = arith.addf %137, %144 : vector<8x256xf32>
    %c2_144 = arith.constant 2 : index
    %c0_145 = arith.constant 0 : index
    %c0_146 = arith.constant 0 : index
    %146 = vector.load %arg17[%c2_144, %c0_145, %c0_146] : memref<3x8x8xf32, #tpu.memory_space<vmem>>, vector<1x8x8xf32>
    %147 = vector.shape_cast %146 : vector<1x8x8xf32> to vector<8x8xf32>
    %cst_147 = arith.constant dense<0.000000e+00> : vector<8x256xf32>
    %148 = tpu.matmul %147, %130, %cst_147 {dimension_numbers = #tpu.dot_dimension_numbers<[1], [0], [0], [1], [0, 0, 1, 1], [], []>} : vector<8x8xf32>, vector<8x256xf32>, vector<8x256xf32> -> vector<8x256xf32>
    %149 = arith.truncf %148 : vector<8x256xf32> to vector<8x256xbf16>
    %c2_148 = arith.constant 2 : index
    %c0_149 = arith.constant 0 : index
    %c0_150 = arith.constant 0 : index
    %150 = vector.load %arg18[%c2_148, %c0_149, %c0_150] : memref<3x256x256xbf16, #tpu.memory_space<vmem>>, vector<1x256x256xbf16>
    %151 = vector.shape_cast %150 : vector<1x256x256xbf16> to vector<256x256xbf16>
    %cst_151 = arith.constant dense<0.000000e+00> : vector<8x256xf32>
    %152 = tpu.matmul %149, %151, %cst_151 {dimension_numbers = #tpu.dot_dimension_numbers<[1], [0], [0], [1], [0, 0, 1, 1], [], []>} : vector<8x256xbf16>, vector<256x256xbf16>, vector<8x256xf32> -> vector<8x256xf32>
    %153 = arith.addf %145, %152 : vector<8x256xf32>
    %c0_152 = arith.constant 0 : index
    %c0_153 = arith.constant 0 : index
    %154 = vector.load %arg19[%c0_152, %c0_153] : memref<1x256xf32, #tpu.memory_space<vmem>>, vector<1x256xf32>
    %155 = vector.broadcast %154 : vector<1x256xf32> to vector<8x256xf32>
    %156 = arith.addf %153, %155 : vector<8x256xf32>
    %cst_154 = arith.constant 0.000000e+00 : f32
    %157 = vector.broadcast %cst_154 : f32 to vector<8x256xf32>
    %158 = arith.maximumf %156, %157 : vector<8x256xf32>
    %c0_155 = arith.constant 0 : index
    %c0_156 = arith.constant 0 : index
    %c0_157 = arith.constant 0 : index
    %159 = vector.load %arg20[%c0_155, %c0_156, %c0_157] : memref<2x4x8xf32, #tpu.memory_space<vmem>>, vector<1x4x8xf32>
    %160 = vector.shape_cast %159 : vector<1x4x8xf32> to vector<4x8xf32>
    %cst_158 = arith.constant dense<0.000000e+00> : vector<4x256xf32>
    %161 = tpu.matmul %160, %158, %cst_158 {dimension_numbers = #tpu.dot_dimension_numbers<[1], [0], [0], [1], [0, 0, 1, 1], [], []>} : vector<4x8xf32>, vector<8x256xf32>, vector<4x256xf32> -> vector<4x256xf32>
    %c1_159 = arith.constant 1 : index
    %c0_160 = arith.constant 0 : index
    %c0_161 = arith.constant 0 : index
    %162 = vector.load %arg20[%c1_159, %c0_160, %c0_161] : memref<2x4x8xf32, #tpu.memory_space<vmem>>, vector<1x4x8xf32>
    %163 = vector.shape_cast %162 : vector<1x4x8xf32> to vector<4x8xf32>
    %cst_162 = arith.constant dense<0.000000e+00> : vector<4x256xf32>
    %164 = tpu.matmul %163, %158, %cst_162 {dimension_numbers = #tpu.dot_dimension_numbers<[1], [0], [0], [1], [0, 0, 1, 1], [], []>} : vector<4x8xf32>, vector<8x256xf32>, vector<4x256xf32> -> vector<4x256xf32>
    %165 = arith.maximumf %161, %164 : vector<4x256xf32>
    %166 = arith.truncf %165 : vector<4x256xf32> to vector<4x256xbf16>
    %c0_163 = arith.constant 0 : index
    %c0_164 = arith.constant 0 : index
    %c0_165 = arith.constant 0 : index
    %167 = vector.load %arg21[%c0_163, %c0_164, %c0_165] : memref<2x256x128xbf16, #tpu.memory_space<vmem>>, vector<1x256x128xbf16>
    %168 = vector.shape_cast %167 : vector<1x256x128xbf16> to vector<256x128xbf16>
    %cst_166 = arith.constant dense<0.000000e+00> : vector<4x128xf32>
    %169 = tpu.matmul %166, %168, %cst_166 {dimension_numbers = #tpu.dot_dimension_numbers<[1], [0], [0], [1], [0, 0, 1, 1], [], []>} : vector<4x256xbf16>, vector<256x128xbf16>, vector<4x128xf32> -> vector<4x128xf32>
    %c1_167 = arith.constant 1 : index
    %c0_168 = arith.constant 0 : index
    %c0_169 = arith.constant 0 : index
    %170 = vector.load %arg21[%c1_167, %c0_168, %c0_169] : memref<2x256x128xbf16, #tpu.memory_space<vmem>>, vector<1x256x128xbf16>
    %171 = vector.shape_cast %170 : vector<1x256x128xbf16> to vector<256x128xbf16>
    %cst_170 = arith.constant dense<0.000000e+00> : vector<4x128xf32>
    %172 = tpu.matmul %166, %171, %cst_170 {dimension_numbers = #tpu.dot_dimension_numbers<[1], [0], [0], [1], [0, 0, 1, 1], [], []>} : vector<4x256xbf16>, vector<256x128xbf16>, vector<4x128xf32> -> vector<4x128xf32>
    %173 = arith.maximumf %169, %172 : vector<4x128xf32>
    %c0_171 = arith.constant 0 : index
    %c0_172 = arith.constant 0 : index
    %c0_173 = arith.constant 0 : index
    %174 = vector.load %arg22[%c0_171, %c0_172, %c0_173] : memref<3x4x4xf32, #tpu.memory_space<vmem>>, vector<1x4x4xf32>
    %175 = vector.shape_cast %174 : vector<1x4x4xf32> to vector<4x4xf32>
    %cst_174 = arith.constant dense<0.000000e+00> : vector<4x128xf32>
    %176 = tpu.matmul %175, %173, %cst_174 {dimension_numbers = #tpu.dot_dimension_numbers<[1], [0], [0], [1], [0, 0, 1, 1], [], []>} : vector<4x4xf32>, vector<4x128xf32>, vector<4x128xf32> -> vector<4x128xf32>
    %177 = arith.truncf %176 : vector<4x128xf32> to vector<4x128xbf16>
    %c0_175 = arith.constant 0 : index
    %c0_176 = arith.constant 0 : index
    %c0_177 = arith.constant 0 : index
    %178 = vector.load %arg23[%c0_175, %c0_176, %c0_177] : memref<3x128x128xbf16, #tpu.memory_space<vmem>>, vector<1x128x128xbf16>
    %179 = vector.shape_cast %178 : vector<1x128x128xbf16> to vector<128x128xbf16>
    %cst_178 = arith.constant dense<0.000000e+00> : vector<4x128xf32>
    %180 = tpu.matmul %177, %179, %cst_178 {dimension_numbers = #tpu.dot_dimension_numbers<[1], [0], [0], [1], [0, 0, 1, 1], [], []>} : vector<4x128xbf16>, vector<128x128xbf16>, vector<4x128xf32> -> vector<4x128xf32>
    %c1_179 = arith.constant 1 : index
    %c0_180 = arith.constant 0 : index
    %c0_181 = arith.constant 0 : index
    %181 = vector.load %arg22[%c1_179, %c0_180, %c0_181] : memref<3x4x4xf32, #tpu.memory_space<vmem>>, vector<1x4x4xf32>
    %182 = vector.shape_cast %181 : vector<1x4x4xf32> to vector<4x4xf32>
    %cst_182 = arith.constant dense<0.000000e+00> : vector<4x128xf32>
    %183 = tpu.matmul %182, %173, %cst_182 {dimension_numbers = #tpu.dot_dimension_numbers<[1], [0], [0], [1], [0, 0, 1, 1], [], []>} : vector<4x4xf32>, vector<4x128xf32>, vector<4x128xf32> -> vector<4x128xf32>
    %184 = arith.truncf %183 : vector<4x128xf32> to vector<4x128xbf16>
    %c1_183 = arith.constant 1 : index
    %c0_184 = arith.constant 0 : index
    %c0_185 = arith.constant 0 : index
    %185 = vector.load %arg23[%c1_183, %c0_184, %c0_185] : memref<3x128x128xbf16, #tpu.memory_space<vmem>>, vector<1x128x128xbf16>
    %186 = vector.shape_cast %185 : vector<1x128x128xbf16> to vector<128x128xbf16>
    %cst_186 = arith.constant dense<0.000000e+00> : vector<4x128xf32>
    %187 = tpu.matmul %184, %186, %cst_186 {dimension_numbers = #tpu.dot_dimension_numbers<[1], [0], [0], [1], [0, 0, 1, 1], [], []>} : vector<4x128xbf16>, vector<128x128xbf16>, vector<4x128xf32> -> vector<4x128xf32>
    %188 = arith.addf %180, %187 : vector<4x128xf32>
    %c2_187 = arith.constant 2 : index
    %c0_188 = arith.constant 0 : index
    %c0_189 = arith.constant 0 : index
    %189 = vector.load %arg22[%c2_187, %c0_188, %c0_189] : memref<3x4x4xf32, #tpu.memory_space<vmem>>, vector<1x4x4xf32>
    %190 = vector.shape_cast %189 : vector<1x4x4xf32> to vector<4x4xf32>
    %cst_190 = arith.constant dense<0.000000e+00> : vector<4x128xf32>
    %191 = tpu.matmul %190, %173, %cst_190 {dimension_numbers = #tpu.dot_dimension_numbers<[1], [0], [0], [1], [0, 0, 1, 1], [], []>} : vector<4x4xf32>, vector<4x128xf32>, vector<4x128xf32> -> vector<4x128xf32>
    %192 = arith.truncf %191 : vector<4x128xf32> to vector<4x128xbf16>
    %c2_191 = arith.constant 2 : index
    %c0_192 = arith.constant 0 : index
    %c0_193 = arith.constant 0 : index
    %193 = vector.load %arg23[%c2_191, %c0_192, %c0_193] : memref<3x128x128xbf16, #tpu.memory_space<vmem>>, vector<1x128x128xbf16>
    %194 = vector.shape_cast %193 : vector<1x128x128xbf16> to vector<128x128xbf16>
    %cst_194 = arith.constant dense<0.000000e+00> : vector<4x128xf32>
    %195 = tpu.matmul %192, %194, %cst_194 {dimension_numbers = #tpu.dot_dimension_numbers<[1], [0], [0], [1], [0, 0, 1, 1], [], []>} : vector<4x128xbf16>, vector<128x128xbf16>, vector<4x128xf32> -> vector<4x128xf32>
    %196 = arith.addf %188, %195 : vector<4x128xf32>
    %c0_195 = arith.constant 0 : index
    %c0_196 = arith.constant 0 : index
    %197 = vector.load %arg24[%c0_195, %c0_196] : memref<1x128xf32, #tpu.memory_space<vmem>>, vector<1x128xf32>
    %198 = vector.broadcast %197 : vector<1x128xf32> to vector<4x128xf32>
    %199 = arith.addf %196, %198 : vector<4x128xf32>
    %cst_197 = arith.constant 0.000000e+00 : f32
    %200 = vector.broadcast %cst_197 : f32 to vector<4x128xf32>
    %201 = arith.maximumf %199, %200 : vector<4x128xf32>
    %c0_198 = arith.constant 0 : index
    %c0_199 = arith.constant 0 : index
    %c0_200 = arith.constant 0 : index
    %202 = vector.load %arg25[%c0_198, %c0_199, %c0_200] : memref<2x2x4xf32, #tpu.memory_space<vmem>>, vector<1x2x4xf32>
    %203 = vector.shape_cast %202 : vector<1x2x4xf32> to vector<2x4xf32>
    %cst_201 = arith.constant dense<0.000000e+00> : vector<2x128xf32>
    %204 = tpu.matmul %203, %201, %cst_201 {dimension_numbers = #tpu.dot_dimension_numbers<[1], [0], [0], [1], [0, 0, 1, 1], [], []>} : vector<2x4xf32>, vector<4x128xf32>, vector<2x128xf32> -> vector<2x128xf32>
    %c1_202 = arith.constant 1 : index
    %c0_203 = arith.constant 0 : index
    %c0_204 = arith.constant 0 : index
    %205 = vector.load %arg25[%c1_202, %c0_203, %c0_204] : memref<2x2x4xf32, #tpu.memory_space<vmem>>, vector<1x2x4xf32>
    %206 = vector.shape_cast %205 : vector<1x2x4xf32> to vector<2x4xf32>
    %cst_205 = arith.constant dense<0.000000e+00> : vector<2x128xf32>
    %207 = tpu.matmul %206, %201, %cst_205 {dimension_numbers = #tpu.dot_dimension_numbers<[1], [0], [0], [1], [0, 0, 1, 1], [], []>} : vector<2x4xf32>, vector<4x128xf32>, vector<2x128xf32> -> vector<2x128xf32>
    %208 = arith.maximumf %204, %207 : vector<2x128xf32>
    %209 = arith.truncf %208 : vector<2x128xf32> to vector<2x128xbf16>
    %c0_206 = arith.constant 0 : index
    %c0_207 = arith.constant 0 : index
    %c0_208 = arith.constant 0 : index
    %210 = vector.load %arg26[%c0_206, %c0_207, %c0_208] : memref<2x128x64xbf16, #tpu.memory_space<vmem>>, vector<1x128x64xbf16>
    %211 = vector.shape_cast %210 : vector<1x128x64xbf16> to vector<128x64xbf16>
    %cst_209 = arith.constant dense<0.000000e+00> : vector<2x64xf32>
    %212 = tpu.matmul %209, %211, %cst_209 {dimension_numbers = #tpu.dot_dimension_numbers<[1], [0], [0], [1], [0, 0, 1, 1], [], []>} : vector<2x128xbf16>, vector<128x64xbf16>, vector<2x64xf32> -> vector<2x64xf32>
    %c1_210 = arith.constant 1 : index
    %c0_211 = arith.constant 0 : index
    %c0_212 = arith.constant 0 : index
    %213 = vector.load %arg26[%c1_210, %c0_211, %c0_212] : memref<2x128x64xbf16, #tpu.memory_space<vmem>>, vector<1x128x64xbf16>
    %214 = vector.shape_cast %213 : vector<1x128x64xbf16> to vector<128x64xbf16>
    %cst_213 = arith.constant dense<0.000000e+00> : vector<2x64xf32>
    %215 = tpu.matmul %209, %214, %cst_213 {dimension_numbers = #tpu.dot_dimension_numbers<[1], [0], [0], [1], [0, 0, 1, 1], [], []>} : vector<2x128xbf16>, vector<128x64xbf16>, vector<2x64xf32> -> vector<2x64xf32>
    %216 = arith.maximumf %212, %215 : vector<2x64xf32>
    %c0_214 = arith.constant 0 : index
    %c0_215 = arith.constant 0 : index
    %217 = vector.load %arg29[%c0_214, %c0_215] : memref<1x10xf32, #tpu.memory_space<vmem>>, vector<1x10xf32>
    %c0_216 = arith.constant 0 : index
    %c0_217 = arith.constant 0 : index
    %c0_218 = arith.constant 0 : index
    %218 = vector.load %arg27[%c0_216, %c0_217, %c0_218] : memref<2x1x2xf32, #tpu.memory_space<vmem>>, vector<1x1x2xf32>
    %219 = vector.shape_cast %218 : vector<1x1x2xf32> to vector<1x2xf32>
    %cst_219 = arith.constant dense<0.000000e+00> : vector<1x64xf32>
    %220 = tpu.matmul %219, %216, %cst_219 {dimension_numbers = #tpu.dot_dimension_numbers<[1], [0], [0], [1], [0, 0, 1, 1], [], []>} : vector<1x2xf32>, vector<2x64xf32>, vector<1x64xf32> -> vector<1x64xf32>
    %221 = arith.truncf %220 : vector<1x64xf32> to vector<1x64xbf16>
    %c0_220 = arith.constant 0 : index
    %c0_221 = arith.constant 0 : index
    %c0_222 = arith.constant 0 : index
    %222 = vector.load %arg28[%c0_220, %c0_221, %c0_222] : memref<2x64x10xbf16, #tpu.memory_space<vmem>>, vector<1x64x10xbf16>
    %223 = vector.shape_cast %222 : vector<1x64x10xbf16> to vector<64x10xbf16>
    %cst_223 = arith.constant dense<0.000000e+00> : vector<1x10xf32>
    %224 = tpu.matmul %221, %223, %cst_223 {dimension_numbers = #tpu.dot_dimension_numbers<[1], [0], [0], [1], [0, 0, 1, 1], [], []>} : vector<1x64xbf16>, vector<64x10xbf16>, vector<1x10xf32> -> vector<1x10xf32>
    %225 = arith.addf %217, %224 : vector<1x10xf32>
    %c1_224 = arith.constant 1 : index
    %c0_225 = arith.constant 0 : index
    %c0_226 = arith.constant 0 : index
    %226 = vector.load %arg27[%c1_224, %c0_225, %c0_226] : memref<2x1x2xf32, #tpu.memory_space<vmem>>, vector<1x1x2xf32>
    %227 = vector.shape_cast %226 : vector<1x1x2xf32> to vector<1x2xf32>
    %cst_227 = arith.constant dense<0.000000e+00> : vector<1x64xf32>
    %228 = tpu.matmul %227, %216, %cst_227 {dimension_numbers = #tpu.dot_dimension_numbers<[1], [0], [0], [1], [0, 0, 1, 1], [], []>} : vector<1x2xf32>, vector<2x64xf32>, vector<1x64xf32> -> vector<1x64xf32>
    %229 = arith.truncf %228 : vector<1x64xf32> to vector<1x64xbf16>
    %c1_228 = arith.constant 1 : index
    %c0_229 = arith.constant 0 : index
    %c0_230 = arith.constant 0 : index
    %230 = vector.load %arg28[%c1_228, %c0_229, %c0_230] : memref<2x64x10xbf16, #tpu.memory_space<vmem>>, vector<1x64x10xbf16>
    %231 = vector.shape_cast %230 : vector<1x64x10xbf16> to vector<64x10xbf16>
    %cst_231 = arith.constant dense<0.000000e+00> : vector<1x10xf32>
    %232 = tpu.matmul %229, %231, %cst_231 {dimension_numbers = #tpu.dot_dimension_numbers<[1], [0], [0], [1], [0, 0, 1, 1], [], []>} : vector<1x64xbf16>, vector<64x10xbf16>, vector<1x10xf32> -> vector<1x10xf32>
    %233 = arith.addf %225, %232 : vector<1x10xf32>
    %c0_232 = arith.constant 0 : index
    %c0_233 = arith.constant 0 : index
    %c0_234 = arith.constant 0 : index
    %234 = vector.load %arg30[%c0_232, %c0_233, %c0_234] : memref<1x1x10xf32, #tpu.memory_space<vmem>>, vector<1x1x10xf32>
    %235 = vector.shape_cast %234 : vector<1x1x10xf32> to vector<1x10xf32>
    %236 = vector.shape_cast %233 : vector<1x10xf32> to vector<1x1x10xf32>
    tpu.vector_store %arg30[%c0_232, %c0_233, %c0_234], %236 {strides = array<i32>} : memref<1x1x10xf32, #tpu.memory_space<vmem>>, vector<1x1x10xf32>,
    return
  }
  func.func @transform_0(%arg0: i32) -> (i32, i32, i32) {
    %c0_i32 = arith.constant 0 : i32
    %c0_i32_0 = arith.constant 0 : i32
    %c0_i32_1 = arith.constant 0 : i32
    return %arg0, %c0_i32, %c0_i32_0 : i32, i32, i32
  }
  func.func @transform_1(%arg0: i32) -> (i32, i32, i32) {
    %c0_i32 = arith.constant 0 : i32
    %c0_i32_0 = arith.constant 0 : i32
    %c0_i32_1 = arith.constant 0 : i32
    %c0_i32_2 = arith.constant 0 : i32
    return %c0_i32, %c0_i32_0, %c0_i32_1 : i32, i32, i32
  }
  func.func @transform_2(%arg0: i32) -> (i32, i32, i32) {
    %c0_i32 = arith.constant 0 : i32
    %c0_i32_0 = arith.constant 0 : i32
    %c0_i32_1 = arith.constant 0 : i32
    %c0_i32_2 = arith.constant 0 : i32
    return %c0_i32, %c0_i32_0, %c0_i32_1 : i32, i32, i32
  }
  func.func @transform_3(%arg0: i32) -> (i32, i32) {
    %c0_i32 = arith.constant 0 : i32
    %c0_i32_0 = arith.constant 0 : i32
    %c0_i32_1 = arith.constant 0 : i32
    return %c0_i32, %c0_i32_0 : i32, i32
  }
  func.func @transform_4(%arg0: i32) -> (i32, i32, i32) {
    %c0_i32 = arith.constant 0 : i32
    %c0_i32_0 = arith.constant 0 : i32
    %c0_i32_1 = arith.constant 0 : i32
    %c0_i32_2 = arith.constant 0 : i32
    return %c0_i32, %c0_i32_0, %c0_i32_1 : i32, i32, i32
  }
  func.func @transform_5(%arg0: i32) -> (i32, i32, i32) {
    %c0_i32 = arith.constant 0 : i32
    %c0_i32_0 = arith.constant 0 : i32
    %c0_i32_1 = arith.constant 0 : i32
    %c0_i32_2 = arith.constant 0 : i32
    return %c0_i32, %c0_i32_0, %c0_i32_1 : i32, i32, i32
  }
  func.func @transform_6(%arg0: i32) -> (i32, i32, i32) {
    %c0_i32 = arith.constant 0 : i32
    %c0_i32_0 = arith.constant 0 : i32
    %c0_i32_1 = arith.constant 0 : i32
    %c0_i32_2 = arith.constant 0 : i32
    return %c0_i32, %c0_i32_0, %c0_i32_1 : i32, i32, i32
  }
  func.func @transform_7(%arg0: i32) -> (i32, i32, i32) {
    %c0_i32 = arith.constant 0 : i32
    %c0_i32_0 = arith.constant 0 : i32
    %c0_i32_1 = arith.constant 0 : i32
    %c0_i32_2 = arith.constant 0 : i32
    return %c0_i32, %c0_i32_0, %c0_i32_1 : i32, i32, i32
  }
  func.func @transform_8(%arg0: i32) -> (i32, i32) {
    %c0_i32 = arith.constant 0 : i32
    %c0_i32_0 = arith.constant 0 : i32
    %c0_i32_1 = arith.constant 0 : i32
    return %c0_i32, %c0_i32_0 : i32, i32
  }
  func.func @transform_9(%arg0: i32) -> (i32, i32, i32) {
    %c0_i32 = arith.constant 0 : i32
    %c0_i32_0 = arith.constant 0 : i32
    %c0_i32_1 = arith.constant 0 : i32
    %c0_i32_2 = arith.constant 0 : i32
    return %c0_i32, %c0_i32_0, %c0_i32_1 : i32, i32, i32
  }
  func.func @transform_10(%arg0: i32) -> (i32, i32, i32) {
    %c0_i32 = arith.constant 0 : i32
    %c0_i32_0 = arith.constant 0 : i32
    %c0_i32_1 = arith.constant 0 : i32
    %c0_i32_2 = arith.constant 0 : i32
    return %c0_i32, %c0_i32_0, %c0_i32_1 : i32, i32, i32
  }
  func.func @transform_11(%arg0: i32) -> (i32, i32, i32) {
    %c0_i32 = arith.constant 0 : i32
    %c0_i32_0 = arith.constant 0 : i32
    %c0_i32_1 = arith.constant 0 : i32
    %c0_i32_2 = arith.constant 0 : i32
    return %c0_i32, %c0_i32_0, %c0_i32_1 : i32, i32, i32
  }
  func.func @transform_12(%arg0: i32) -> (i32, i32, i32) {
    %c0_i32 = arith.constant 0 : i32
    %c0_i32_0 = arith.constant 0 : i32
    %c0_i32_1 = arith.constant 0 : i32
    %c0_i32_2 = arith.constant 0 : i32
    return %c0_i32, %c0_i32_0, %c0_i32_1 : i32, i32, i32
  }
  func.func @transform_13(%arg0: i32) -> (i32, i32) {
    %c0_i32 = arith.constant 0 : i32
    %c0_i32_0 = arith.constant 0 : i32
    %c0_i32_1 = arith.constant 0 : i32
    return %c0_i32, %c0_i32_0 : i32, i32
  }
  func.func @transform_14(%arg0: i32) -> (i32, i32, i32) {
    %c0_i32 = arith.constant 0 : i32
    %c0_i32_0 = arith.constant 0 : i32
    %c0_i32_1 = arith.constant 0 : i32
    %c0_i32_2 = arith.constant 0 : i32
    return %c0_i32, %c0_i32_0, %c0_i32_1 : i32, i32, i32
  }
  func.func @transform_15(%arg0: i32) -> (i32, i32, i32) {
    %c0_i32 = arith.constant 0 : i32
    %c0_i32_0 = arith.constant 0 : i32
    %c0_i32_1 = arith.constant 0 : i32
    %c0_i32_2 = arith.constant 0 : i32
    return %c0_i32, %c0_i32_0, %c0_i32_1 : i32, i32, i32
  }
  func.func @transform_16(%arg0: i32) -> (i32, i32, i32) {
    %c0_i32 = arith.constant 0 : i32
    %c0_i32_0 = arith.constant 0 : i32
    %c0_i32_1 = arith.constant 0 : i32
    %c0_i32_2 = arith.constant 0 : i32
    return %c0_i32, %c0_i32_0, %c0_i32_1 : i32, i32, i32
  }
  func.func @transform_17(%arg0: i32) -> (i32, i32, i32) {
    %c0_i32 = arith.constant 0 : i32
    %c0_i32_0 = arith.constant 0 : i32
    %c0_i32_1 = arith.constant 0 : i32
    %c0_i32_2 = arith.constant 0 : i32
    return %c0_i32, %c0_i32_0, %c0_i32_1 : i32, i32, i32
  }
  func.func @transform_18(%arg0: i32) -> (i32, i32) {
    %c0_i32 = arith.constant 0 : i32
    %c0_i32_0 = arith.constant 0 : i32
    %c0_i32_1 = arith.constant 0 : i32
    return %c0_i32, %c0_i32_0 : i32, i32
  }
  func.func @transform_19(%arg0: i32) -> (i32, i32, i32) {
    %c0_i32 = arith.constant 0 : i32
    %c0_i32_0 = arith.constant 0 : i32
    %c0_i32_1 = arith.constant 0 : i32
    %c0_i32_2 = arith.constant 0 : i32
    return %c0_i32, %c0_i32_0, %c0_i32_1 : i32, i32, i32
  }
  func.func @transform_20(%arg0: i32) -> (i32, i32, i32) {
    %c0_i32 = arith.constant 0 : i32
    %c0_i32_0 = arith.constant 0 : i32
    %c0_i32_1 = arith.constant 0 : i32
    %c0_i32_2 = arith.constant 0 : i32
    return %c0_i32, %c0_i32_0, %c0_i32_1 : i32, i32, i32
  }
  func.func @transform_21(%arg0: i32) -> (i32, i32, i32) {
    %c0_i32 = arith.constant 0 : i32
    %c0_i32_0 = arith.constant 0 : i32
    %c0_i32_1 = arith.constant 0 : i32
    %c0_i32_2 = arith.constant 0 : i32
    return %c0_i32, %c0_i32_0, %c0_i32_1 : i32, i32, i32
  }
  func.func @transform_22(%arg0: i32) -> (i32, i32, i32) {
    %c0_i32 = arith.constant 0 : i32
    %c0_i32_0 = arith.constant 0 : i32
    %c0_i32_1 = arith.constant 0 : i32
    %c0_i32_2 = arith.constant 0 : i32
    return %c0_i32, %c0_i32_0, %c0_i32_1 : i32, i32, i32
  }
  func.func @transform_23(%arg0: i32) -> (i32, i32) {
    %c0_i32 = arith.constant 0 : i32
    %c0_i32_0 = arith.constant 0 : i32
    %c0_i32_1 = arith.constant 0 : i32
    return %c0_i32, %c0_i32_0 : i32, i32
  }
  func.func @transform_24(%arg0: i32) -> (i32, i32, i32) {
    %c0_i32 = arith.constant 0 : i32
    %c0_i32_0 = arith.constant 0 : i32
    %c0_i32_1 = arith.constant 0 : i32
    %c0_i32_2 = arith.constant 0 : i32
    return %c0_i32, %c0_i32_0, %c0_i32_1 : i32, i32, i32
  }
  func.func @transform_25(%arg0: i32) -> (i32, i32, i32) {
    %c0_i32 = arith.constant 0 : i32
    %c0_i32_0 = arith.constant 0 : i32
    %c0_i32_1 = arith.constant 0 : i32
    %c0_i32_2 = arith.constant 0 : i32
    return %c0_i32, %c0_i32_0, %c0_i32_1 : i32, i32, i32
  }
  func.func @transform_26(%arg0: i32) -> (i32, i32, i32) {
    %c0_i32 = arith.constant 0 : i32
    %c0_i32_0 = arith.constant 0 : i32
    %c0_i32_1 = arith.constant 0 : i32
    %c0_i32_2 = arith.constant 0 : i32
    return %c0_i32, %c0_i32_0, %c0_i32_1 : i32, i32, i32
  }
  func.func @transform_27(%arg0: i32) -> (i32, i32, i32) {
    %c0_i32 = arith.constant 0 : i32
    %c0_i32_0 = arith.constant 0 : i32
    %c0_i32_1 = arith.constant 0 : i32
    %c0_i32_2 = arith.constant 0 : i32
    return %c0_i32, %c0_i32_0, %c0_i32_1 : i32, i32, i32
  }
  func.func @transform_28(%arg0: i32) -> (i32, i32) {
    %c0_i32 = arith.constant 0 : i32
    %c0_i32_0 = arith.constant 0 : i32
    %c0_i32_1 = arith.constant 0 : i32
    return %c0_i32, %c0_i32_0 : i32, i32
  }
  func.func @transform_29(%arg0: i32) -> (i32, i32, i32) {
    %c0_i32 = arith.constant 0 : i32
    %c0_i32_0 = arith.constant 0 : i32
    %c0_i32_1 = arith.constant 0 : i32
    return %arg0, %c0_i32, %c0_i32_0 : i32, i32, i32
  }
}

</mosaic_0001>

<bundles_post_ra>
// kernel: model5_forward.1
= control target key start
LH: loop header
LB: loop body
LE: loop exit
PB: predicated region body
PF: predicated region fallthrough
CT: control target
= control target key end

     0   :  { %s26060_s6 = smov 1   ;;  %s26061_s10 = smov 2   ;;  %s27957_s0 = inlined_call_operand.smem [shape: u32[30], index: -1, kind: input, shape index: {}] }
   0x1   :  { %s26138_s5 = sld [smem:[%s27957_s0]]   ;;  %s26062_s14 = smov 3  }
   0x2   :  { %s26143_s9 = sld [smem:[%s27957_s0 + %s26060_s6]]   ;;  %s26063_s18 = smov 4  }
   0x3   :  { %s26148_s13 = sld [smem:[%s27957_s0 + %s26061_s10]]   ;;  %s26064_s22 = smov 5  }
   0x4   :  { %s26153_s17 = sld [smem:[%s27957_s0 + %s26062_s14]]   ;;  %s26065_s26 = smov 6  }
   0x5   :  { %s26158_s21 = sld [smem:[%s27957_s0 + %s26063_s18]]   ;;  %s26066_s30 = smov 7  }
   0x6   :  { %s26163_s25 = sld [smem:[%s27957_s0 + %s26064_s22]]   ;;  %s26067_s4 = smov 8  }
   0x7   :  { %28007 = sst [smem:[#allocation60_spill]] %s26138_s5  ;;  %s26068_s10 = smov 9  }
   0x8   :  { %28008 = sst [smem:[#allocation61_spill]] %s26143_s9  ;;  %s26069_s15 = smov 10  }
   0x9   :  { %28009 = sst [smem:[#allocation62_spill]] %s26148_s13  ;;  %s26070_s20 = smov 11  }
   0xa   :  { %28010 = sst [smem:[#allocation63_spill]] %s26153_s17  ;;  %s26072_s1 = smov 13  }
   0xb   :  { %s26168_s29 = sld [smem:[%s27957_s0 + %s26065_s26]]   ;;  %s26071_s26 = smov 12  }
   0xc   :  { %s26173_s3 = sld [smem:[%s27957_s0 + %s26066_s30]]   ;;  %s26073_s7 = smov 14  }
   0xd   :  { %s26178_s8 = sld [smem:[%s27957_s0 + %s26067_s4]]   ;;  %s26075_s22 = smov 16  }
   0xe   :  { %s26183_s14 = sld [smem:[%s27957_s0 + %s26068_s10]]   ;;  %s26076_s28 = smov 17  }
   0xf   :  { %s26188_s19 = sld [smem:[%s27957_s0 + %s26069_s15]]   ;;  %s26074_s15 = smov 15  }
  0x10   :  { %s26193_s24 = sld [smem:[%s27957_s0 + %s26070_s20]]  }
  0x11   :  { %28011 = sst [smem:[#allocation64_spill]] %s26168_s29 }
  0x12   :  { %28012 = sst [smem:[#allocation65_spill]] %s26173_s3 }
  0x13   :  { %28013 = sst [smem:[#allocation66_spill]] %s26178_s8 }
  0x14   :  { %28014 = sst [smem:[#allocation67_spill]] %s26183_s14 }
  0x15   :  { %28015 = sst [smem:[#allocation68_spill]] %s26188_s19 }
  0x16   :  { %s26198_s30 = sld [smem:[%s27957_s0 + %s26071_s26]]  }
  0x17   :  { %s26203_s6 = sld [smem:[%s27957_s0 + %s26072_s1]]  }
  0x18   :  { %s26208_s12 = sld [smem:[%s27957_s0 + %s26073_s7]]   ;;  %s26077_s7 = smov 18  }
  0x19   :  { %s26213_s20 = sld [smem:[%s27957_s0 + %s26074_s15]]   ;;  %s26078_s15 = smov 19  }
  0x1a   :  { %s26218_s27 = sld [smem:[%s27957_s0 + %s26075_s22]]   ;;  %s26079_s22 = smov 20  }
  0x1b   :  { %s26223_s4 = sld [smem:[%s27957_s0 + %s26076_s28]]   ;;  %s26080_s28 = smov 21  }
  0x1c   :  { %28016 = sst [smem:[#allocation69_spill]] %s26198_s30 }
  0x1d   :  { %28017 = sst [smem:[#allocation70_spill]] %s26203_s6 }
  0x1e   :  { %28018 = sst [smem:[#allocation71_spill]] %s26208_s12 }
  0x1f   :  { %28019 = sst [smem:[#allocation72_spill]] %s26213_s20 }
  0x20   :  { %28020 = sst [smem:[#allocation73_spill]] %s26218_s27 }
  0x21   :  { %28021 = sst [smem:[#allocation74_spill]] %s26223_s4 }
  0x22   :  { %s26228_s5 = sld [smem:[%s27957_s0 + %s26077_s7]]   ;;  %s26081_s7 = smov 22  }
  0x23   :  { %s26233_s12 = sld [smem:[%s27957_s0 + %s26078_s15]]   ;;  %s26082_s15 = smov 23  }
  0x24   :  { %s26238_s27 = sld [smem:[%s27957_s0 + %s26079_s22]]   ;;  %s26083_s22 = smov 24  }
  0x25   :  { %s26243_s30 = sld [smem:[%s27957_s0 + %s26080_s28]]   ;;  %s26084_s28 = smov 25  }
  0x26   :  { %s26253_s19 = sld [smem:[%s27957_s0 + %s26082_s15]]   ;;  %s26086_s15 = smov 27  }
  0x27   :  { %s26263_s8 = sld [smem:[%s27957_s0 + %s26084_s28]]   ;;  %s26088_s28 = smov 29  }
  0x28   :  { %28022 = sst [smem:[#allocation75_spill]] %s26228_s5 }
  0x29   :  { %28023 = sst [smem:[#allocation76_spill]] %s26233_s12 }
  0x2a   :  { %28024 = sst [smem:[#allocation77_spill]] %s26238_s27 }
  0x2b   :  { %s26248_s5 = sld [smem:[%s27957_s0 + %s26081_s7]]   ;;  %s26085_s7 = smov 26  }
  0x2c   :  { %28026 = sst [smem:[#allocation79_spill]] %s26253_s19 }
  0x2d   :  { %s26258_s27 = sld [smem:[%s27957_s0 + %s26083_s22]]   ;;  %s26087_s22 = smov 28  }
  0x2e   :  { %28028 = sst [smem:[#allocation81_spill]] %s26263_s8 }
  0x2f   :  { %s26273_s29 = sld [smem:[%s27957_s0 + %s26086_s15]]  }
  0x30   :  { %s26283_s8 = sld [smem:[%s27957_s0 + %s26088_s28]]  }
  0x31   :  { %28025 = sst [smem:[#allocation78_spill]] %s26248_s5 }
  0x32   :  { %s26268_s5 = sld [smem:[%s27957_s0 + %s26085_s7]]  }
  0x33   :  { %28027 = sst [smem:[#allocation80_spill]] %s26258_s27 }
  0x34   :  { %s26278_s27 = sld [smem:[%s27957_s0 + %s26087_s22]]  }
  0x35   :  { %28030 = sst [smem:[#allocation83_spill]] %s26273_s29 }
  0x36   :  { %28031 = sst [smem:[#allocation84_spill]] %s26283_s8 }
  0x38   :  { %28029 = sst [smem:[#allocation82_spill]] %s26268_s5 }
  0x39   :  { %64 = vsyncpa [#allocation3], 0 }
  0x3a   :  { %66 = vsyncpa [#allocation3 + $0x1], 0 }
  0x3b   :  { %67 = vsyncpa [#allocation6], 0 }
  0x3c   :  { %68 = vsyncpa [#allocation9], 0 }
  0x3d   :  { %69 = vsyncpa [#allocation12], 0 }
  0x3e   :  { %70 = vsyncpa [#allocation15], 0 }
  0x3f   :  { %71 = vsyncpa [#allocation18], 0 }
  0x40   :  { %72 = vsyncpa [#allocation21], 0 }
  0x41   :  { %73 = vsyncpa [#allocation24], 0 }
  0x42   :  { %74 = vsyncpa [#allocation27], 0 }
  0x43   :  { %75 = vsyncpa [#allocation30], 0 }
  0x44   :  { %76 = vsyncpa [#allocation33], 0 }
  0x45   :  { %77 = vsyncpa [#allocation36], 0 }
  0x46   :  { %78 = vsyncpa [#allocation39], 0 }
  0x47   :  { %79 = vsyncpa [#allocation42], 0 }
  0x48   :  { %80 = vsyncpa [#allocation4], 0 }
  0x49   :  { %82 = vsyncpa [#allocation4 + $0x1], 0  ;;  %s26285_s7 = smov 0   ;;  %s26287_s0 = smov 0  }
  0x4a   :  { %s26289_s10 = smov 0   ;;  %s26291_s11 = smov 0  }
  0x4b LB: > { %s28032_s20 = sld [smem:[#allocation72_spill]]  ;;  %s28033_s19 = sld [smem:[#allocation79_spill]]  ;;  %s26054_s10 = sphi %s26289_s10, %s28105_s10   ;;  %s26050_s0 = sphi %s26287_s0, %s28104_s0   ;;  %s26046_s7 = sphi %s26285_s7, %s28103_s7   ;;  %s26058_s11 = sphi %s26291_s11, %s28106_s11  }
  0x4c   : > { %s28034_s14 = sld [smem:[#allocation67_spill]]  ;;  %s28035_s13 = sld [smem:[#allocation62_spill]] }
  0x4d   : > { %s28036_s12 = sld [smem:[#allocation76_spill]]  ;;  %s28037_s6 = sld [smem:[#allocation70_spill]] }
  0x4e   : > { %s28038_s5 = sld [smem:[#allocation82_spill]]  ;;  %s28040_s3 = sld [smem:[#allocation65_spill]] }
  0x4f   : > { %s28039_s4 = sld [smem:[#allocation74_spill]]  ;;  %s28041_s17 = sld [smem:[#allocation63_spill]] }
  0x50   : > { %s28042_s9 = sld [smem:[#allocation61_spill]]  ;;  %s26089_s15 = smov [#allocation5]  }
  0x51   : > { %s745_s16 = sshll.u32 %s26089_s15, 4  ;;  %s26306_s18 = sadd.s32 4294967295, %s26058_s11   ;;  %s26311_s16 = int_to_ptr.vmem [resolvable:$true] %s745_s16 }
  0x52   : > { %p19545_p0 = scmp.ge.s32.totalorder %s26058_s11, 1  ;;  %p27971_p1 = scmp.eq.s32.totalorder %s26306_s18, 0 }
  0x53   : > { %p733_p2 = scmp.lt.s32.totalorder %s26058_s11, 3  ;;  %s26090_s23 = smov [#allocation8]  }
  0x54   : > { %s772_s26 = sshll.u32 %s26090_s23, 4  ;;  %s26091_s1 = smov [#allocation11]   ;;  %s26326_s26 = int_to_ptr.vmem [resolvable:$true] %s772_s26 }
  0x55   : > { %p26313_p3 = pnand %p19545_p0, %p733_p2  ;;  %s795_s2 = sshll.u32 %s26091_s1, 4  ;;  %s26328_s2 = int_to_ptr.vmem [resolvable:$true] %s795_s2 }
  0x56   : > { %s25182_s15 = scalar_lea.hbm %s28042_s9, 3072 }
  0x57   : > { %s28043_s22 = scalar_select %p26313_p3, 1, 0 }
  0x58   : > { %p22701_p5 = pneg %p26313_p3  ;;  %p25183_p7 = scmp.ne.s32.totalorder %s28042_s9, %s25182_s15 }
  0x59   : > { %p25189_p11 = scmp.lt.u32.totalorder %s25182_s15, %s28042_s9 }
  0x5a   : > { %p26322_p6 = pnand %p22701_p5, %p27971_p1 }
  0x5c   : > { %p26334_p8 = pneg %p26322_p6 }
  0x5e   : > { %p25185_p9 = pnand %p26334_p8, %p25183_p7 }
  0x60   : > { %p25186_p10 = pneg %p25185_p9 }
  0x62   : > { %p25191_p12 = pnand %p25189_p11, %p25186_p10 }
  0x64   : > { %25194 = shalt.err (!%p25191_p12)
}
  0x65   : > { %s25195_s23 = scalar_lea.vmem %s26311_s16, 3072  ;;  %p25203_p5 = scmp.lt.s32.totalorder %s26311_s16, %s26311_s16 }
  0x66   : > { %p25196_p13 = scmp.ne.s32.totalorder %s26311_s16, %s25195_s23  ;;  %p25204_p4 = scmp.lt.s32.totalorder %s25195_s23, %s25195_s23 }
  0x68   : > { %p25198_p0 = pnand %p25196_p13, %p26334_p8  ;;  %p25205_p1 = por %p25204_p4, %p25203_p5 }
  0x6a   : > { %p25199_p2 = pneg %p25198_p0 }
  0x6c   : > { %p25206_p3 = pnand %p25205_p1, %p25199_p2 }
  0x6e   : > { %25209 = shalt.err (!%p25206_p3)
}
  0x6f   : > { %s27974_s1 = smov 128   ;;  %s27976_s15 = smov 8  }
  0x70   : > { %22704 = dma.hbm_to_vmem [thread:$0]  (!%p26322_p6), %s28042_s9, 3072, %s26311_s16, [#allocation6], %s27974_s1, %s27974_s1, %s27976_s15  }
  0x71   : > { %s25210_s29 = scalar_lea.hbm %s28041_s17, 128 }
  0x72   : > { %p25211_p7 = scmp.ne.s32.totalorder %s28041_s17, %s25210_s29  ;;  %p25217_p3 = scmp.lt.u32.totalorder %s25210_s29, %s28041_s17 }
  0x74   : > { %p25213_p4 = pnand %p25211_p7, %p26334_p8 }
  0x76   : > { %p25214_p1 = pneg %p25213_p4 }
  0x78   : > { %p25219_p9 = pnand %p25217_p3, %p25214_p1 }
  0x7a   : > { %25222 = shalt.err (!%p25219_p9)
}
  0x7b   : > { %s25223_s23 = scalar_lea.vmem %s26326_s26, 128  ;;  %p25231_p13 = scmp.lt.s32.totalorder %s26326_s26, %s26326_s26 }
  0x7c   : > { %p25224_p10 = scmp.ne.s32.totalorder %s26326_s26, %s25223_s23  ;;  %p25232_p0 = scmp.lt.s32.totalorder %s25223_s23, %s25223_s23 }
  0x7e   : > { %p25226_p11 = pnand %p25224_p10, %p26334_p8  ;;  %p25233_p2 = por %p25232_p0, %p25231_p13 }
  0x80   : > { %p25227_p12 = pneg %p25226_p11 }
  0x82   : > { %p25234_p5 = pnand %p25233_p2, %p25227_p12 }
  0x84   : > { %25237 = shalt.err (!%p25234_p5)
}
  0x85   : > { %22710 = dma.hbm_to_vmem [thread:$0]  (!%p26322_p6), %s28041_s17, 128, %s26326_s26, [#allocation9]  }
  0x86   : > { %s25238_s29 = scalar_lea.hbm %s26163_s25, 65536 }
  0x87   : > { %p25239_p7 = scmp.ne.s32.totalorder %s26163_s25, %s25238_s29  ;;  %p25245_p3 = scmp.lt.u32.totalorder %s25238_s29, %s26163_s25 }
  0x89   : > { %p25241_p4 = pnand %p25239_p7, %p26334_p8 }
  0x8b   : > { %p25242_p1 = pneg %p25241_p4 }
  0x8d   : > { %p25247_p9 = pnand %p25245_p3, %p25242_p1 }
  0x8f   : > { %25250 = shalt.err (!%p25247_p9)
}
  0x90   : > { %s25251_s16 = scalar_lea.vmem %s26328_s2, 65536  ;;  %p25259_p13 = scmp.lt.s32.totalorder %s26328_s2, %s26328_s2 }
  0x91   : > { %p25252_p10 = scmp.ne.s32.totalorder %s26328_s2, %s25251_s16  ;;  %p25260_p0 = scmp.lt.s32.totalorder %s25251_s16, %s25251_s16 }
  0x93   : > { %p25254_p11 = pnand %p25252_p10, %p26334_p8  ;;  %p25261_p2 = por %p25260_p0, %p25259_p13 }
  0x95   : > { %p25255_p12 = pneg %p25254_p11 }
  0x97   : > { %p25262_p5 = pnand %p25261_p2, %p25255_p12 }
  0x99   : > { %25265 = shalt.err (!%p25262_p5)
}
  0x9a   : > { %s27980_s26 = smov 256   ;;  %s27981_s23 = smov 16  }
  0x9b   : > { %22716 = dma.hbm_to_vmem [thread:$0]  (!%p26322_p6), %s26163_s25, 65536, %s26328_s2, [#allocation12], %s27980_s26, %s27980_s26, %s27981_s23  }
  0x9c   : > { %s26096_s29 = smov [#allocation14]   ;;  %s26097_s16 = smov [#allocation17]  }
  0x9d   : > { %s821_s1 = sshll.u32 %s26096_s29, 4  ;;  %s845_s15 = sshll.u32 %s26097_s16, 4  ;;  %s822_s1 = int_to_ptr.vmem [resolvable:$true] %s821_s1  ;;  %s846_s15 = int_to_ptr.vmem [resolvable:$true] %s845_s15 }
  0x9e   : > { %s25266_s9 = scalar_lea.hbm %s28040_s3, 49152 }
  0x9f   : > { %p25267_p7 = scmp.ne.s32.totalorder %s28040_s3, %s25266_s9  ;;  %p25273_p3 = scmp.lt.u32.totalorder %s25266_s9, %s28040_s3 }
  0xa1   : > { %p25269_p4 = pnand %p25267_p7, %p26334_p8 }
  0xa3   : > { %p25270_p1 = pneg %p25269_p4 }
  0xa5   : > { %p25275_p9 = pnand %p25273_p3, %p25270_p1 }
  0xa7   : > { %25278 = shalt.err (!%p25275_p9)
}
  0xa8   : > { %s25279_s17 = scalar_lea.vmem %s822_s1, 49152  ;;  %p25287_p13 = scmp.lt.s32.totalorder %s822_s1, %s822_s1 }
  0xa9   : > { %p25280_p10 = scmp.ne.s32.totalorder %s822_s1, %s25279_s17  ;;  %p25288_p0 = scmp.lt.s32.totalorder %s25279_s17, %s25279_s17 }
  0xab   : > { %p25282_p11 = pnand %p25280_p10, %p26334_p8  ;;  %p25289_p2 = por %p25288_p0, %p25287_p13 }
  0xad   : > { %p25283_p12 = pneg %p25282_p11 }
  0xaf   : > { %p25290_p5 = pnand %p25289_p2, %p25283_p12 }
  0xb1   : > { %25293 = shalt.err (!%p25290_p5)
}
  0xb2   : > { %22722 = dma.hbm_to_vmem [thread:$0]  (!%p26322_p6), %s28040_s3, 49152, %s822_s1, [#allocation15], %s27980_s26, %s27980_s26, %s27981_s23  }
  0xb3   : > { %s25294_s9 = scalar_lea.hbm %s28034_s14, 512 }
  0xb4   : > { %p25295_p7 = scmp.ne.s32.totalorder %s28034_s14, %s25294_s9  ;;  %p25301_p3 = scmp.lt.u32.totalorder %s25294_s9, %s28034_s14 }
  0xb6   : > { %p25297_p4 = pnand %p25295_p7, %p26334_p8 }
  0xb8   : > { %p25298_p1 = pneg %p25297_p4 }
  0xba   : > { %p25303_p9 = pnand %p25301_p3, %p25298_p1 }
  0xbc   : > { %25306 = shalt.err (!%p25303_p9)
}
  0xbd   : > { %s25307_s17 = scalar_lea.vmem %s846_s15, 512  ;;  %p25315_p13 = scmp.lt.s32.totalorder %s846_s15, %s846_s15 }
  0xbe   : > { %p25308_p10 = scmp.ne.s32.totalorder %s846_s15, %s25307_s17  ;;  %p25316_p0 = scmp.lt.s32.totalorder %s25307_s17, %s25307_s17 }
  0xc0   : > { %p25310_p11 = pnand %p25308_p10, %p26334_p8  ;;  %p25317_p2 = por %p25316_p0, %p25315_p13 }
  0xc2   : > { %p25311_p12 = pneg %p25310_p11 }
  0xc4   : > { %p25318_p5 = pnand %p25317_p2, %p25311_p12 }
  0xc6   : > { %25321 = shalt.err (!%p25318_p5)
}
  0xc7   : > { %s28046_s2 = smov 8   ;;  %s28047_s1 = smov 128  }
  0xc8   : > { %22728 = dma.hbm_to_vmem [thread:$0]  (!%p26322_p6), %s28034_s14, 512, %s846_s15, [#allocation18], %s28047_s1, %s28047_s1, %s28046_s2  }
  0xc9   : > { %s26098_s29 = smov [#allocation20]   ;;  %s26099_s9 = smov [#allocation23]  }
  0xca   : > { %s871_s16 = sshll.u32 %s26098_s29, 4  ;;  %s898_s26 = sshll.u32 %s26099_s9, 4  ;;  %s872_s16 = int_to_ptr.vmem [resolvable:$true] %s871_s16  ;;  %s899_s26 = int_to_ptr.vmem [resolvable:$true] %s898_s26 }
  0xcb   : > { %s25322_s17 = scalar_lea.hbm %s26193_s24, 768 }
  0xcc   : > { %p25323_p7 = scmp.ne.s32.totalorder %s26193_s24, %s25322_s17  ;;  %p25329_p3 = scmp.lt.u32.totalorder %s25322_s17, %s26193_s24 }
  0xce   : > { %p25325_p4 = pnand %p25323_p7, %p26334_p8 }
  0xd0   : > { %p25326_p1 = pneg %p25325_p4 }
  0xd2   : > { %p25331_p9 = pnand %p25329_p3, %p25326_p1 }
  0xd4   : > { %25334 = shalt.err (!%p25331_p9)
}
  0xd5   : > { %s25335_s23 = scalar_lea.vmem %s872_s16, 768  ;;  %p25343_p13 = scmp.lt.s32.totalorder %s872_s16, %s872_s16 }
  0xd6   : > { %p25336_p10 = scmp.ne.s32.totalorder %s872_s16, %s25335_s23  ;;  %p25344_p0 = scmp.lt.s32.totalorder %s25335_s23, %s25335_s23 }
  0xd8   : > { %p25338_p11 = pnand %p25336_p10, %p26334_p8  ;;  %p25345_p2 = por %p25344_p0, %p25343_p13 }
  0xda   : > { %p25339_p12 = pneg %p25338_p11 }
  0xdc   : > { %p25346_p5 = pnand %p25345_p2, %p25339_p12 }
  0xde   : > { %25349 = shalt.err (!%p25346_p5)
}
  0xdf   : > { %22734 = dma.hbm_to_vmem [thread:$0]  (!%p26322_p6), %s26193_s24, 768, %s872_s16, [#allocation21], %s28047_s1, %s28047_s1, %s28046_s2  }
  0xe0   : > { %s25350_s15 = scalar_lea.hbm %s28037_s6, 64 }
  0xe1   : > { %p25351_p7 = scmp.ne.s32.totalorder %s28037_s6, %s25350_s15  ;;  %p25357_p3 = scmp.lt.u32.totalorder %s25350_s15, %s28037_s6 }
  0xe3   : > { %p25353_p4 = pnand %p25351_p7, %p26334_p8 }
  0xe5   : > { %p25354_p1 = pneg %p25353_p4 }
  0xe7   : > { %p25359_p9 = pnand %p25357_p3, %p25354_p1 }
  0xe9   : > { %25362 = shalt.err (!%p25359_p9)
}
  0xea   : > { %s25363_s23 = scalar_lea.vmem %s899_s26, 64  ;;  %p25371_p13 = scmp.lt.s32.totalorder %s899_s26, %s899_s26 }
  0xeb   : > { %p25364_p10 = scmp.ne.s32.totalorder %s899_s26, %s25363_s23  ;;  %p25372_p0 = scmp.lt.s32.totalorder %s25363_s23, %s25363_s23 }
  0xed   : > { %p25366_p11 = pnand %p25364_p10, %p26334_p8  ;;  %p25373_p2 = por %p25372_p0, %p25371_p13 }
  0xef   : > { %p25367_p12 = pneg %p25366_p11 }
  0xf1   : > { %p25374_p5 = pnand %p25373_p2, %p25367_p12 }
  0xf3   : > { %25377 = shalt.err (!%p25374_p5)
}
  0xf4   : > { %22740 = dma.hbm_to_vmem [thread:$0]  (!%p26322_p6), %s28037_s6, 64, %s899_s26, [#allocation24]  }
  0xf5   : > { %s26100_s29 = smov [#allocation26]   ;;  %s26101_s9 = smov [#allocation29]  }
  0xf6   : > { %s921_s16 = sshll.u32 %s26100_s29, 4  ;;  %s947_s17 = sshll.u32 %s26101_s9, 4  ;;  %s922_s16 = int_to_ptr.vmem [resolvable:$true] %s921_s16  ;;  %s948_s17 = int_to_ptr.vmem [resolvable:$true] %s947_s17 }
  0xf7   : > { %s25378_s15 = scalar_lea.hbm %s28032_s20, 16384 }
  0xf8   : > { %p25379_p7 = scmp.ne.s32.totalorder %s28032_s20, %s25378_s15  ;;  %p25385_p3 = scmp.lt.u32.totalorder %s25378_s15, %s28032_s20 }
  0xfa   : > { %p25381_p4 = pnand %p25379_p7, %p26334_p8 }
  0xfc   : > { %p25382_p1 = pneg %p25381_p4 }
  0xfe   : > { %p25387_p9 = pnand %p25385_p3, %p25382_p1 }
 0x100   : > { %25390 = shalt.err (!%p25387_p9)
}
 0x101   : > { %s25391_s23 = scalar_lea.vmem %s922_s16, 16384  ;;  %p25399_p13 = scmp.lt.s32.totalorder %s922_s16, %s922_s16 }
 0x102   : > { %p25392_p10 = scmp.ne.s32.totalorder %s922_s16, %s25391_s23  ;;  %p25400_p0 = scmp.lt.s32.totalorder %s25391_s23, %s25391_s23 }
 0x104   : > { %p25394_p11 = pnand %p25392_p10, %p26334_p8  ;;  %p25401_p2 = por %p25400_p0, %p25399_p13 }
 0x106   : > { %p25395_p12 = pneg %p25394_p11 }
 0x108   : > { %p25402_p5 = pnand %p25401_p2, %p25395_p12 }
 0x10a   : > { %25405 = shalt.err (!%p25402_p5)
}
 0x10b   : > { %22746 = dma.hbm_to_vmem [thread:$0]  (!%p26322_p6), %s28032_s20, 16384, %s922_s16, [#allocation27], %s28047_s1, %s28047_s1, %s28046_s2  }
 0x10c   : > { %s25406_s26 = scalar_lea.hbm %s28039_s4, 12288 }
 0x10d   : > { %p25407_p7 = scmp.ne.s32.totalorder %s28039_s4, %s25406_s26  ;;  %p25413_p3 = scmp.lt.u32.totalorder %s25406_s26, %s28039_s4 }
 0x10f   : > { %p25409_p4 = pnand %p25407_p7, %p26334_p8 }
 0x111   : > { %p25410_p1 = pneg %p25409_p4 }
 0x113   : > { %p25415_p9 = pnand %p25413_p3, %p25410_p1 }
 0x115   : > { %25418 = shalt.err (!%p25415_p9)
}
 0x116   : > { %s25419_s29 = scalar_lea.vmem %s948_s17, 12288  ;;  %p25427_p13 = scmp.lt.s32.totalorder %s948_s17, %s948_s17 }
 0x117   : > { %p25420_p10 = scmp.ne.s32.totalorder %s948_s17, %s25419_s29  ;;  %p25428_p0 = scmp.lt.s32.totalorder %s25419_s29, %s25419_s29 }
 0x119   : > { %p25422_p11 = pnand %p25420_p10, %p26334_p8  ;;  %p25429_p2 = por %p25428_p0, %p25427_p13 }
 0x11b   : > { %p25423_p12 = pneg %p25422_p11 }
 0x11d   : > { %p25430_p5 = pnand %p25429_p2, %p25423_p12 }
 0x11f   : > { %25433 = shalt.err (!%p25430_p5)
}
 0x120   : > { %22752 = dma.hbm_to_vmem [thread:$0]  (!%p26322_p6), %s28039_s4, 12288, %s948_s17, [#allocation30], %s28047_s1, %s28047_s1, %s28046_s2  }
 0x121   : > { %s26102_s16 = smov [#allocation32]   ;;  %s25434_s15 = scalar_lea.hbm %s28036_s12, 128 }
 0x122   : > { %s971_s9 = sshll.u32 %s26102_s16, 4  ;;  %p25435_p7 = scmp.ne.s32.totalorder %s28036_s12, %s25434_s15  ;;  %s972_s9 = int_to_ptr.vmem [resolvable:$true] %s971_s9 }
 0x123   : > { %p25441_p3 = scmp.lt.u32.totalorder %s25434_s15, %s28036_s12 }
 0x124   : > { %p25437_p4 = pnand %p25435_p7, %p26334_p8 }
 0x126   : > { %p25438_p1 = pneg %p25437_p4 }
 0x128   : > { %p25443_p9 = pnand %p25441_p3, %p25438_p1 }
 0x12a   : > { %25446 = shalt.err (!%p25443_p9)
}
 0x12b   : > { %s25447_s23 = scalar_lea.vmem %s972_s9, 128  ;;  %p25455_p13 = scmp.lt.s32.totalorder %s972_s9, %s972_s9 }
 0x12c   : > { %p25448_p10 = scmp.ne.s32.totalorder %s972_s9, %s25447_s23  ;;  %p25456_p0 = scmp.lt.s32.totalorder %s25447_s23, %s25447_s23 }
 0x12e   : > { %p25450_p11 = pnand %p25448_p10, %p26334_p8  ;;  %p25457_p2 = por %p25456_p0, %p25455_p13 }
 0x130   : > { %p25451_p12 = pneg %p25450_p11 }
 0x132   : > { %p25458_p5 = pnand %p25457_p2, %p25451_p12 }
 0x134   : > { %25461 = shalt.err (!%p25458_p5)
}
 0x135   : > { %s27985_s17 = smov 64   ;;  %s27987_s26 = smov 4  }
 0x136   : > { %22758 = dma.hbm_to_vmem [thread:$0]  (!%p26322_p6), %s28036_s12, 128, %s972_s9, [#allocation33], %s27985_s17, %s27985_s17, %s27987_s26  }
 0x137   : > { %s26105_s29 = smov [#allocation35]   ;;  %s26106_s15 = smov [#allocation38]  }
 0x138   : > { %s997_s16 = sshll.u32 %s26105_s29, 4  ;;  %s1024_s23 = sshll.u32 %s26106_s15, 4  ;;  %s998_s16 = int_to_ptr.vmem [resolvable:$true] %s997_s16  ;;  %s26475_s23 = int_to_ptr.vmem [resolvable:$true] %s1024_s23 }
 0x139   : > { %s25462_s3 = scalar_lea.hbm %s26243_s30, 192 }
 0x13a   : > { %p25463_p7 = scmp.ne.s32.totalorder %s26243_s30, %s25462_s3  ;;  %p25469_p3 = scmp.lt.u32.totalorder %s25462_s3, %s26243_s30 }
 0x13c   : > { %p25465_p4 = pnand %p25463_p7, %p26334_p8 }
 0x13e   : > { %p25466_p1 = pneg %p25465_p4 }
 0x140   : > { %p25471_p9 = pnand %p25469_p3, %p25466_p1 }
 0x142   : > { %25474 = shalt.err (!%p25471_p9)
}
 0x143   : > { %s25475_s4 = scalar_lea.vmem %s998_s16, 192  ;;  %p25483_p13 = scmp.lt.s32.totalorder %s998_s16, %s998_s16 }
 0x144   : > { %p25476_p10 = scmp.ne.s32.totalorder %s998_s16, %s25475_s4  ;;  %p25484_p0 = scmp.lt.s32.totalorder %s25475_s4, %s25475_s4 }
 0x146   : > { %p25478_p11 = pnand %p25476_p10, %p26334_p8  ;;  %p25485_p2 = por %p25484_p0, %p25483_p13 }
 0x148   : > { %p25479_p12 = pneg %p25478_p11 }
 0x14a   : > { %p25486_p5 = pnand %p25485_p2, %p25479_p12 }
 0x14c   : > { %25489 = shalt.err (!%p25486_p5)
}
 0x14d   : > { %22764 = dma.hbm_to_vmem [thread:$0]  (!%p26322_p6), %s26243_s30, 192, %s998_s16, [#allocation36], %s27985_s17, %s27985_s17, %s27987_s26  }
 0x14e   : > { %s25490_s3 = scalar_lea.hbm %s28033_s19, 16 }
 0x14f   : > { %p25491_p7 = scmp.ne.s32.totalorder %s28033_s19, %s25490_s3  ;;  %p25497_p3 = scmp.lt.u32.totalorder %s25490_s3, %s28033_s19 }
 0x151   : > { %p25493_p4 = pnand %p25491_p7, %p26334_p8 }
 0x153   : > { %p25494_p1 = pneg %p25493_p4 }
 0x155   : > { %p25499_p9 = pnand %p25497_p3, %p25494_p1 }
 0x157   : > { %25502 = shalt.err (!%p25499_p9)
}
 0x158   : > { %s25503_s4 = scalar_lea.vmem %s26475_s23, 16  ;;  %s25510_s9 = scalar_lea.vmem %s26475_s23, 32 }
 0x159   : > { %p25504_p10 = scmp.ne.s32.totalorder %s26475_s23, %s25503_s4  ;;  %p25511_p13 = scmp.lt.s32.totalorder %s26475_s23, %s26475_s23 }
 0x15a   : > { %p25512_p0 = scmp.lt.s32.totalorder %s25510_s9, %s25503_s4 }
 0x15b   : > { %p25506_p11 = pnand %p25504_p10, %p26334_p8 }
 0x15c   : > { %p25513_p2 = por %p25512_p0, %p25511_p13 }
 0x15d   : > { %p25507_p12 = pneg %p25506_p11 }
 0x15f   : > { %p25514_p5 = pnand %p25513_p2, %p25507_p12 }
 0x161   : > { %25517 = shalt.err (!%p25514_p5)
}
 0x162   : > { %22770 = dma.hbm_to_vmem [thread:$0]  (!%p26322_p6), %s28033_s19, 16, %s26475_s23, [#allocation39]  }
 0x163   : > { %s26107_s29 = smov [#allocation41]   ;;  %s26108_s15 = smov [#allocation7]  }
 0x164   : > { %s1050_s16 = sshll.u32 %s26107_s29, 4  ;;  %s758_s3 = sshll.u32 %s26108_s15, 4  ;;  %s1051_s16 = int_to_ptr.vmem [resolvable:$true] %s1050_s16  ;;  %s759_s3 = int_to_ptr.vmem [resolvable:$true] %s758_s3 }
 0x165   : > { %s25518_s17 = scalar_lea.hbm %s28038_s5, 32 }
 0x166   : > { %p25519_p7 = scmp.ne.s32.totalorder %s28038_s5, %s25518_s17  ;;  %p25525_p3 = scmp.lt.u32.totalorder %s25518_s17, %s28038_s5 }
 0x168   : > { %p25521_p4 = pnand %p25519_p7, %p26334_p8 }
 0x16a   : > { %p25522_p1 = pneg %p25521_p4 }
 0x16c   : > { %p25527_p9 = pnand %p25525_p3, %p25522_p1 }
 0x16e   : > { %25530 = shalt.err (!%p25527_p9)
}
 0x16f   : > { %s25531_s4 = scalar_lea.vmem %s1051_s16, 32  ;;  %p25539_p13 = scmp.lt.s32.totalorder %s1051_s16, %s1051_s16 }
 0x170   : > { %p25532_p10 = scmp.ne.s32.totalorder %s1051_s16, %s25531_s4  ;;  %p25540_p0 = scmp.lt.s32.totalorder %s25531_s4, %s25531_s4 }
 0x172   : > { %p25534_p11 = pnand %p25532_p10, %p26334_p8  ;;  %p25541_p2 = por %p25540_p0, %p25539_p13 }
 0x174   : > { %p25535_p12 = pneg %p25534_p11 }
 0x176   : > { %p25542_p5 = pnand %p25541_p2, %p25535_p12 }
 0x178   : > { %25545 = shalt.err (!%p25542_p5)
}
 0x179   : > { %s26109_s23 = smov 1   ;;  %s28048_s9 = smov 16  }
 0x17a   : > { %22776 = dma.hbm_to_vmem [thread:$0]  (!%p26322_p6), %s28038_s5, 32, %s1051_s16, [#allocation42], %s28048_s9, %s28048_s9, %s26109_s23  }
 0x17b   : > { %s25546_s17 = scalar_lea.hbm %s28035_s13, 24576 }
 0x17c   : > { %p25547_p7 = scmp.ne.s32.totalorder %s28035_s13, %s25546_s17  ;;  %p25553_p3 = scmp.lt.u32.totalorder %s25546_s17, %s28035_s13 }
 0x17e   : > { %p25549_p4 = pnand %p25547_p7, %p26334_p8 }
 0x180   : > { %p25550_p1 = pneg %p25549_p4 }
 0x182   : > { %p25555_p9 = pnand %p25553_p3, %p25550_p1 }
 0x184   : > { %25558 = shalt.err (!%p25555_p9)
}
 0x185   : > { %s25559_s29 = scalar_lea.vmem %s759_s3, 24576  ;;  %p25567_p13 = scmp.lt.s32.totalorder %s759_s3, %s759_s3 }
 0x186   : > { %p25560_p10 = scmp.ne.s32.totalorder %s759_s3, %s25559_s29  ;;  %p25568_p0 = scmp.lt.s32.totalorder %s25559_s29, %s25559_s29 }
 0x188   : > { %p25562_p11 = pnand %p25560_p10, %p26334_p8  ;;  %p25569_p2 = por %p25568_p0, %p25567_p13 }
 0x18a   : > { %p25563_p12 = pneg %p25562_p11 }
 0x18c   : > { %p25570_p5 = pnand %p25569_p2, %p25563_p12 }
 0x18e   : > { %25573 = shalt.err (!%p25570_p5)
}
 0x18f   : > { %s26110_s16 = smov 512   ;;  %s27990_s15 = smov 32  }
 0x190   : > { %22707 = dma.hbm_to_vmem [thread:$0]  (!%p26322_p6), %s28035_s13, 24576, %s759_s3, [#allocation6], %s26110_s16, %s26110_s16, %s27990_s15  }
 0x191   : > { %s26112_s4 = smov [#allocation10]   ;;  %s26113_s17 = smov [#allocation13]  }
 0x192   : > { %s782_s23 = sshll.u32 %s26112_s4, 4  ;;  %s808_s26 = sshll.u32 %s26113_s17, 4  ;;  %s783_s23 = int_to_ptr.vmem [resolvable:$true] %s782_s23  ;;  %s809_s26 = int_to_ptr.vmem [resolvable:$true] %s808_s26 }
 0x193   : > { %s25574_s29 = scalar_lea.hbm %s26158_s21, 1024 }
 0x194   : > { %p25575_p7 = scmp.ne.s32.totalorder %s26158_s21, %s25574_s29  ;;  %p25581_p3 = scmp.lt.u32.totalorder %s25574_s29, %s26158_s21 }
 0x196   : > { %p25577_p4 = pnand %p25575_p7, %p26334_p8 }
 0x198   : > { %p25578_p1 = pneg %p25577_p4 }
 0x19a   : > { %p25583_p9 = pnand %p25581_p3, %p25578_p1 }
 0x19c   : > { %25586 = shalt.err (!%p25583_p9)
}
 0x19d   : > { %s25587_s5 = scalar_lea.vmem %s783_s23, 1024  ;;  %p25595_p13 = scmp.lt.s32.totalorder %s783_s23, %s783_s23 }
 0x19e   : > { %p25588_p10 = scmp.ne.s32.totalorder %s783_s23, %s25587_s5  ;;  %p25596_p0 = scmp.lt.s32.totalorder %s25587_s5, %s25587_s5 }
 0x1a0   : > { %p25590_p11 = pnand %p25588_p10, %p26334_p8  ;;  %p25597_p2 = por %p25596_p0, %p25595_p13 }
 0x1a2   : > { %p25591_p12 = pneg %p25590_p11 }
 0x1a4   : > { %p25598_p5 = pnand %p25597_p2, %p25591_p12 }
 0x1a6   : > { %25601 = shalt.err (!%p25598_p5)
}
 0x1a7   : > { %s28049_s3 = sld [smem:[#allocation64_spill]] }
 0x1a8   : > { %22713 = dma.hbm_to_vmem [thread:$0]  (!%p26322_p6), %s26158_s21, 1024, %s783_s23, [#allocation9], %s28047_s1, %s28047_s1, %s28046_s2  }
 0x1ad   : > { %s25602_s16 = scalar_lea.hbm %s28049_s3, 1536 }
 0x1ae   : > { %p25603_p7 = scmp.ne.s32.totalorder %s28049_s3, %s25602_s16  ;;  %p25609_p3 = scmp.lt.u32.totalorder %s25602_s16, %s28049_s3 }
 0x1b0   : > { %p25605_p4 = pnand %p25603_p7, %p26334_p8 }
 0x1b2   : > { %p25606_p1 = pneg %p25605_p4 }
 0x1b4   : > { %p25611_p9 = pnand %p25609_p3, %p25606_p1 }
 0x1b6   : > { %25614 = shalt.err (!%p25611_p9)
}
 0x1b7   : > { %s25615_s5 = scalar_lea.vmem %s809_s26, 1536  ;;  %p25623_p13 = scmp.lt.s32.totalorder %s809_s26, %s809_s26 }
 0x1b8   : > { %p25616_p10 = scmp.ne.s32.totalorder %s809_s26, %s25615_s5  ;;  %p25624_p0 = scmp.lt.s32.totalorder %s25615_s5, %s25615_s5 }
 0x1ba   : > { %p25618_p11 = pnand %p25616_p10, %p26334_p8  ;;  %p25625_p2 = por %p25624_p0, %p25623_p13 }
 0x1bc   : > { %p25619_p12 = pneg %p25618_p11 }
 0x1be   : > { %p25626_p5 = pnand %p25625_p2, %p25619_p12 }
 0x1c0   : > { %25629 = shalt.err (!%p25626_p5)
}
 0x1c1   : > { %s28050_s4 = sld [smem:[#allocation66_spill]]  ;;  %s26114_s23 = smov [#allocation16]  }
 0x1c2   : > { %22719 = dma.hbm_to_vmem [thread:$0]  (!%p26322_p6), %s28049_s3, 1536, %s809_s26, [#allocation12], %s28047_s1, %s28047_s1, %s28046_s2  }
 0x1c3   : > { %s835_s17 = sshll.u32 %s26114_s23, 4  ;;  %s26115_s29 = smov [#allocation19]   ;;  %s836_s17 = int_to_ptr.vmem [resolvable:$true] %s835_s17 }
 0x1c4   : > { %s858_s16 = sshll.u32 %s26115_s29, 4  ;;  %s859_s16 = int_to_ptr.vmem [resolvable:$true] %s858_s16 }
 0x1c7   : > { %s25630_s5 = scalar_lea.hbm %s28050_s4, 64 }
 0x1c8   : > { %p25631_p7 = scmp.ne.s32.totalorder %s28050_s4, %s25630_s5  ;;  %p25637_p3 = scmp.lt.u32.totalorder %s25630_s5, %s28050_s4 }
 0x1ca   : > { %p25633_p4 = pnand %p25631_p7, %p26334_p8 }
 0x1cc   : > { %p25634_p1 = pneg %p25633_p4 }
 0x1ce   : > { %p25639_p9 = pnand %p25637_p3, %p25634_p1 }
 0x1d0   : > { %25642 = shalt.err (!%p25639_p9)
}
 0x1d1   : > { %s25643_s15 = scalar_lea.vmem %s836_s17, 64  ;;  %p25651_p13 = scmp.lt.s32.totalorder %s836_s17, %s836_s17 }
 0x1d2   : > { %p25644_p10 = scmp.ne.s32.totalorder %s836_s17, %s25643_s15  ;;  %p25652_p0 = scmp.lt.s32.totalorder %s25643_s15, %s25643_s15 }
 0x1d4   : > { %p25646_p11 = pnand %p25644_p10, %p26334_p8  ;;  %p25653_p2 = por %p25652_p0, %p25651_p13 }
 0x1d6   : > { %p25647_p12 = pneg %p25646_p11 }
 0x1d8   : > { %p25654_p5 = pnand %p25653_p2, %p25647_p12 }
 0x1da   : > { %25657 = shalt.err (!%p25654_p5)
}
 0x1db   : > { %s28051_s26 = sld [smem:[#allocation68_spill]] }
 0x1dc   : > { %22725 = dma.hbm_to_vmem [thread:$0]  (!%p26322_p6), %s28050_s4, 64, %s836_s17, [#allocation15]  }
 0x1e1   : > { %s25658_s23 = scalar_lea.hbm %s28051_s26, 16384 }
 0x1e2   : > { %p25659_p7 = scmp.ne.s32.totalorder %s28051_s26, %s25658_s23  ;;  %p25665_p3 = scmp.lt.u32.totalorder %s25658_s23, %s28051_s26 }
 0x1e4   : > { %p25661_p4 = pnand %p25659_p7, %p26334_p8 }
 0x1e6   : > { %p25662_p1 = pneg %p25661_p4 }
 0x1e8   : > { %p25667_p9 = pnand %p25665_p3, %p25662_p1 }
 0x1ea   : > { %25670 = shalt.err (!%p25667_p9)
}
 0x1eb   : > { %s25671_s15 = scalar_lea.vmem %s859_s16, 16384  ;;  %p25679_p13 = scmp.lt.s32.totalorder %s859_s16, %s859_s16 }
 0x1ec   : > { %p25672_p10 = scmp.ne.s32.totalorder %s859_s16, %s25671_s15  ;;  %p25680_p0 = scmp.lt.s32.totalorder %s25671_s15, %s25671_s15 }
 0x1ee   : > { %p25674_p11 = pnand %p25672_p10, %p26334_p8  ;;  %p25681_p2 = por %p25680_p0, %p25679_p13 }
 0x1f0   : > { %p25675_p12 = pneg %p25674_p11 }
 0x1f2   : > { %p25682_p5 = pnand %p25681_p2, %p25675_p12 }
 0x1f4   : > { %25685 = shalt.err (!%p25682_p5)
}
 0x1f5   : > { %s28052_s17 = sld [smem:[#allocation69_spill]]  ;;  %s26116_s29 = smov [#allocation22]  }
 0x1f6   : > { %22731 = dma.hbm_to_vmem [thread:$0]  (!%p26322_p6), %s28051_s26, 16384, %s859_s16, [#allocation18], %s28047_s1, %s28047_s1, %s28046_s2  }
 0x1f7   : > { %s884_s5 = sshll.u32 %s26116_s29, 4  ;;  %s26117_s23 = smov [#allocation25]   ;;  %s885_s5 = int_to_ptr.vmem [resolvable:$true] %s884_s5 }
 0x1f8   : > { %s908_s3 = sshll.u32 %s26117_s23, 4  ;;  %s909_s3 = int_to_ptr.vmem [resolvable:$true] %s908_s3 }
 0x1fb   : > { %s25686_s15 = scalar_lea.hbm %s28052_s17, 24576 }
 0x1fc   : > { %p25687_p7 = scmp.ne.s32.totalorder %s28052_s17, %s25686_s15  ;;  %p25693_p3 = scmp.lt.u32.totalorder %s25686_s15, %s28052_s17 }
 0x1fe   : > { %p25689_p4 = pnand %p25687_p7, %p26334_p8 }
 0x200   : > { %p25690_p1 = pneg %p25689_p4 }
 0x202   : > { %p25695_p9 = pnand %p25693_p3, %p25690_p1 }
 0x204   : > { %25698 = shalt.err (!%p25695_p9)
}
 0x205   : > { %s25699_s4 = scalar_lea.vmem %s885_s5, 24576  ;;  %p25707_p13 = scmp.lt.s32.totalorder %s885_s5, %s885_s5 }
 0x206   : > { %p25700_p10 = scmp.ne.s32.totalorder %s885_s5, %s25699_s4  ;;  %p25708_p0 = scmp.lt.s32.totalorder %s25699_s4, %s25699_s4 }
 0x208   : > { %p25702_p11 = pnand %p25700_p10, %p26334_p8  ;;  %p25709_p2 = por %p25708_p0, %p25707_p13 }
 0x20a   : > { %p25703_p12 = pneg %p25702_p11 }
 0x20c   : > { %p25710_p5 = pnand %p25709_p2, %p25703_p12 }
 0x20e   : > { %25713 = shalt.err (!%p25710_p5)
}
 0x20f   : > { %s28053_s16 = smov 256   ;;  %s28054_s29 = sld [smem:[#allocation71_spill]] }
 0x210   : > { %22737 = dma.hbm_to_vmem [thread:$0]  (!%p26322_p6), %s28052_s17, 24576, %s885_s5, [#allocation21], %s28053_s16, %s28053_s16, %s28048_s9  }
 0x215   : > { %s25714_s23 = scalar_lea.hbm %s28054_s29, 256 }
 0x216   : > { %p25715_p7 = scmp.ne.s32.totalorder %s28054_s29, %s25714_s23  ;;  %p25721_p3 = scmp.lt.u32.totalorder %s25714_s23, %s28054_s29 }
 0x218   : > { %p25717_p4 = pnand %p25715_p7, %p26334_p8 }
 0x21a   : > { %p25718_p1 = pneg %p25717_p4 }
 0x21c   : > { %p25723_p9 = pnand %p25721_p3, %p25718_p1 }
 0x21e   : > { %25726 = shalt.err (!%p25723_p9)
}
 0x21f   : > { %s25727_s4 = scalar_lea.vmem %s909_s3, 256  ;;  %p25735_p13 = scmp.lt.s32.totalorder %s909_s3, %s909_s3 }
 0x220   : > { %p25728_p10 = scmp.ne.s32.totalorder %s909_s3, %s25727_s4  ;;  %p25736_p0 = scmp.lt.s32.totalorder %s25727_s4, %s25727_s4 }
 0x222   : > { %p25730_p11 = pnand %p25728_p10, %p26334_p8  ;;  %p25737_p2 = por %p25736_p0, %p25735_p13 }
 0x224   : > { %p25731_p12 = pneg %p25730_p11 }
 0x226   : > { %p25738_p5 = pnand %p25737_p2, %p25731_p12 }
 0x228   : > { %25741 = shalt.err (!%p25738_p5)
}
 0x229   : > { %s28055_s9 = sld [smem:[#allocation73_spill]]  ;;  %s26118_s5 = smov [#allocation28]  }
 0x22a   : > { %22743 = dma.hbm_to_vmem [thread:$0]  (!%p26322_p6), %s28054_s29, 256, %s909_s3, [#allocation24], %s28047_s1, %s28047_s1, %s28046_s2  }
 0x22b   : > { %s934_s15 = sshll.u32 %s26118_s5, 4  ;;  %s26119_s16 = smov [#allocation31]   ;;  %s935_s15 = int_to_ptr.vmem [resolvable:$true] %s934_s15 }
 0x22c   : > { %s961_s23 = sshll.u32 %s26119_s16, 4  ;;  %s962_s23 = int_to_ptr.vmem [resolvable:$true] %s961_s23 }
 0x22f   : > { %s25742_s4 = scalar_lea.hbm %s28055_s9, 384 }
 0x230   : > { %p25743_p7 = scmp.ne.s32.totalorder %s28055_s9, %s25742_s4  ;;  %p25749_p3 = scmp.lt.u32.totalorder %s25742_s4, %s28055_s9 }
 0x232   : > { %p25745_p4 = pnand %p25743_p7, %p26334_p8 }
 0x234   : > { %p25746_p1 = pneg %p25745_p4 }
 0x236   : > { %p25751_p9 = pnand %p25749_p3, %p25746_p1 }
 0x238   : > { %25754 = shalt.err (!%p25751_p9)
}
 0x239   : > { %s25755_s6 = scalar_lea.vmem %s935_s15, 384  ;;  %p25763_p13 = scmp.lt.s32.totalorder %s935_s15, %s935_s15 }
 0x23a   : > { %p25756_p10 = scmp.ne.s32.totalorder %s935_s15, %s25755_s6  ;;  %p25764_p0 = scmp.lt.s32.totalorder %s25755_s6, %s25755_s6 }
 0x23c   : > { %p25758_p11 = pnand %p25756_p10, %p26334_p8  ;;  %p25765_p2 = por %p25764_p0, %p25763_p13 }
 0x23e   : > { %p25759_p12 = pneg %p25758_p11 }
 0x240   : > { %p25766_p5 = pnand %p25765_p2, %p25759_p12 }
 0x242   : > { %25769 = shalt.err (!%p25766_p5)
}
 0x243   : > { %s28056_s3 = sld [smem:[#allocation75_spill]] }
 0x244   : > { %22749 = dma.hbm_to_vmem [thread:$0]  (!%p26322_p6), %s28055_s9, 384, %s935_s15, [#allocation27], %s28047_s1, %s28047_s1, %s28046_s2  }
 0x249   : > { %s25770_s5 = scalar_lea.hbm %s28056_s3, 32 }
 0x24a   : > { %p25771_p7 = scmp.ne.s32.totalorder %s28056_s3, %s25770_s5  ;;  %p25777_p3 = scmp.lt.u32.totalorder %s25770_s5, %s28056_s3 }
 0x24c   : > { %p25773_p4 = pnand %p25771_p7, %p26334_p8 }
 0x24e   : > { %p25774_p1 = pneg %p25773_p4 }
 0x250   : > { %p25779_p9 = pnand %p25777_p3, %p25774_p1 }
 0x252   : > { %25782 = shalt.err (!%p25779_p9)
}
 0x253   : > { %s25783_s6 = scalar_lea.vmem %s962_s23, 32  ;;  %p25791_p13 = scmp.lt.s32.totalorder %s962_s23, %s962_s23 }
 0x254   : > { %p25784_p10 = scmp.ne.s32.totalorder %s962_s23, %s25783_s6  ;;  %p25792_p0 = scmp.lt.s32.totalorder %s25783_s6, %s25783_s6 }
 0x256   : > { %p25786_p11 = pnand %p25784_p10, %p26334_p8  ;;  %p25793_p2 = por %p25792_p0, %p25791_p13 }
 0x258   : > { %p25787_p12 = pneg %p25786_p11 }
 0x25a   : > { %p25794_p5 = pnand %p25793_p2, %p25787_p12 }
 0x25c   : > { %25797 = shalt.err (!%p25794_p5)
}
 0x25d   : > { %s28057_s15 = sld [smem:[#allocation77_spill]]  ;;  %s26120_s16 = smov [#allocation34]  }
 0x25e   : > { %22755 = dma.hbm_to_vmem [thread:$0]  (!%p26322_p6), %s28056_s3, 32, %s962_s23, [#allocation30]  }
 0x25f   : > { %s984_s4 = sshll.u32 %s26120_s16, 4  ;;  %s26121_s5 = smov [#allocation37]   ;;  %s985_s4 = int_to_ptr.vmem [resolvable:$true] %s984_s4 }
 0x260   : > { %s1010_s9 = sshll.u32 %s26121_s5, 4  ;;  %s1011_s9 = int_to_ptr.vmem [resolvable:$true] %s1010_s9 }
 0x263   : > { %s25798_s12 = scalar_lea.hbm %s28057_s15, 4096 }
 0x264   : > { %p25799_p7 = scmp.ne.s32.totalorder %s28057_s15, %s25798_s12  ;;  %p25805_p3 = scmp.lt.u32.totalorder %s25798_s12, %s28057_s15 }
 0x266   : > { %p25801_p4 = pnand %p25799_p7, %p26334_p8 }
 0x268   : > { %p25802_p1 = pneg %p25801_p4 }
 0x26a   : > { %p25807_p9 = pnand %p25805_p3, %p25802_p1 }
 0x26c   : > { %25810 = shalt.err (!%p25807_p9)
}
 0x26d   : > { %s25811_s6 = scalar_lea.vmem %s985_s4, 4096  ;;  %p25819_p13 = scmp.lt.s32.totalorder %s985_s4, %s985_s4 }
 0x26e   : > { %p25812_p10 = scmp.ne.s32.totalorder %s985_s4, %s25811_s6  ;;  %p25820_p0 = scmp.lt.s32.totalorder %s25811_s6, %s25811_s6 }
 0x270   : > { %p25814_p11 = pnand %p25812_p10, %p26334_p8  ;;  %p25821_p2 = por %p25820_p0, %p25819_p13 }
 0x272   : > { %p25815_p12 = pneg %p25814_p11 }
 0x274   : > { %p25822_p5 = pnand %p25821_p2, %p25815_p12 }
 0x276   : > { %25825 = shalt.err (!%p25822_p5)
}
 0x277   : > { %s28058_s23 = smov 4   ;;  %s28059_s16 = smov 64  }
 0x278   : > { %s28060_s12 = sld [smem:[#allocation78_spill]] }
 0x279   : > { %22761 = dma.hbm_to_vmem [thread:$0]  (!%p26322_p6), %s28057_s15, 4096, %s985_s4, [#allocation33], %s28059_s16, %s28059_s16, %s28058_s23  }
 0x27e   : > { %s25826_s5 = scalar_lea.hbm %s28060_s12, 3072 }
 0x27f   : > { %p25827_p7 = scmp.ne.s32.totalorder %s28060_s12, %s25826_s5  ;;  %p25833_p3 = scmp.lt.u32.totalorder %s25826_s5, %s28060_s12 }
 0x281   : > { %p25829_p4 = pnand %p25827_p7, %p26334_p8 }
 0x283   : > { %p25830_p1 = pneg %p25829_p4 }
 0x285   : > { %p25835_p9 = pnand %p25833_p3, %p25830_p1 }
 0x287   : > { %25838 = shalt.err (!%p25835_p9)
}
 0x288   : > { %s25839_s6 = scalar_lea.vmem %s1011_s9, 3072  ;;  %p25847_p13 = scmp.lt.s32.totalorder %s1011_s9, %s1011_s9 }
 0x289   : > { %p25840_p10 = scmp.ne.s32.totalorder %s1011_s9, %s25839_s6  ;;  %p25848_p0 = scmp.lt.s32.totalorder %s25839_s6, %s25839_s6 }
 0x28b   : > { %p25842_p11 = pnand %p25840_p10, %p26334_p8  ;;  %p25849_p2 = por %p25848_p0, %p25847_p13 }
 0x28d   : > { %p25843_p12 = pneg %p25842_p11 }
 0x28f   : > { %p25850_p5 = pnand %p25849_p2, %p25843_p12 }
 0x291   : > { %25853 = shalt.err (!%p25850_p5)
}
 0x292   : > { %s28061_s4 = sld [smem:[#allocation80_spill]]  ;;  %s26122_s5 = smov [#allocation40]  }
 0x293   : > { %22767 = dma.hbm_to_vmem [thread:$0]  (!%p26322_p6), %s28060_s12, 3072, %s1011_s9, [#allocation36], %s28059_s16, %s28059_s16, %s28058_s23  }
 0x294   : > { %s1034_s3 = sshll.u32 %s26122_s5, 4  ;;  %s1035_s3 = int_to_ptr.vmem [resolvable:$true] %s1034_s3 }
 0x298   : > { %s25854_s13 = scalar_lea.hbm %s28061_s4, 64 }
 0x299   : > { %p25855_p7 = scmp.ne.s32.totalorder %s28061_s4, %s25854_s13  ;;  %p25861_p3 = scmp.lt.u32.totalorder %s25854_s13, %s28061_s4 }
 0x29b   : > { %p25857_p4 = pnand %p25855_p7, %p26334_p8 }
 0x29d   : > { %p25858_p1 = pneg %p25857_p4 }
 0x29f   : > { %p25863_p9 = pnand %p25861_p3, %p25858_p1 }
 0x2a1   : > { %25866 = shalt.err (!%p25863_p9)
}
 0x2a2   : > { %s25867_s6 = scalar_lea.vmem %s1035_s3, 64  ;;  %p25875_p13 = scmp.lt.s32.totalorder %s1035_s3, %s1035_s3 }
 0x2a3   : > { %p25868_p10 = scmp.ne.s32.totalorder %s1035_s3, %s25867_s6  ;;  %p25876_p0 = scmp.lt.s32.totalorder %s25867_s6, %s25867_s6 }
 0x2a5   : > { %p25870_p11 = pnand %p25868_p10, %p26334_p8  ;;  %p25877_p2 = por %p25876_p0, %p25875_p13 }
 0x2a7   : > { %p25871_p12 = pneg %p25870_p11 }
 0x2a9   : > { %p25878_p5 = pnand %p25877_p2, %p25871_p12 }
 0x2ab   : > { %25881 = shalt.err (!%p25878_p5)
}
 0x2ac   : > { %s26123_s9 = smov 2   ;;  %s28062_s23 = smov 32  }
 0x2ad   : > { %22773 = dma.hbm_to_vmem [thread:$0]  (!%p26322_p6), %s28061_s4, 64, %s1035_s3, [#allocation39], %s28062_s23, %s28062_s23, %s26123_s9  }
 0x2ae   : > { %s26124_s13 = smov [#allocation43]   ;;  %s25882_s5 = scalar_lea.hbm %s26278_s27, 16 }
 0x2af   : > { %s1067_s16 = sshll.u32 %s26124_s13, 4  ;;  %p25883_p7 = scmp.ne.s32.totalorder %s26278_s27, %s25882_s5  ;;  %s1068_s16 = int_to_ptr.vmem [resolvable:$true] %s1067_s16 }
 0x2b0   : > { %p25889_p3 = scmp.lt.u32.totalorder %s25882_s5, %s26278_s27 }
 0x2b1   : > { %p25885_p4 = pnand %p25883_p7, %p26334_p8 }
 0x2b3   : > { %p25886_p1 = pneg %p25885_p4 }
 0x2b5   : > { %p25891_p9 = pnand %p25889_p3, %p25886_p1 }
 0x2b7   : > { %25894 = shalt.err (!%p25891_p9)
}
 0x2b8   : > { %s25895_s6 = scalar_lea.vmem %s1068_s16, 16  ;;  %s25902_s12 = scalar_lea.vmem %s1068_s16, 32 }
 0x2b9   : > { %p25896_p10 = scmp.ne.s32.totalorder %s1068_s16, %s25895_s6  ;;  %p25903_p13 = scmp.lt.s32.totalorder %s1068_s16, %s1068_s16 }
 0x2ba   : > { %p25904_p0 = scmp.lt.s32.totalorder %s25902_s12, %s25895_s6 }
 0x2bb   : > { %p25898_p11 = pnand %p25896_p10, %p26334_p8 }
 0x2bc   : > { %p25905_p2 = por %p25904_p0, %p25903_p13 }
 0x2bd   : > { %p25899_p12 = pneg %p25898_p11 }
 0x2bf   : > { %p25906_p5 = pnand %p25905_p2, %p25899_p12 }
 0x2c1   : > { %25909 = shalt.err (!%p25906_p5)
}
 0x2c2   : > { %22779 = dma.hbm_to_vmem [thread:$0]  (!%p26322_p6), %s26278_s27, 16, %s1068_s16, [#allocation42]  }
 0x2c3   : > { %s19544_s8 = sadd.s32 4294967294, %s26058_s11   ;;  %s26677_s3 = sadd.s32 1, %s26058_s11  }
 0x2c4   : > { %s92_s28 = ssub.s32 %s26058_s11, %s26677_s3  ;;  %s95_s12 = sadd.s32 1, %s26054_s10 }
 0x2c5   : > { %s28063_s9 = sld [smem:[#allocation60_spill]]  ;;  %p93_p8 = scmp.eq.s32.totalorder %s92_s28, 0 }
 0x2c6   : > { %p102_p7 = scmp.ne.s32.totalorder %s26054_s10, %s26050_s0  ;;  %p103_p4 = scmp.eq.s32.totalorder %s26058_s11, 0 }
 0x2c7   : > { %p108_p1 = scmp.ne.s32.totalorder %s26050_s0, %s26046_s7  ;;  %p28065_p9 = scmp.eq.s32.totalorder %s26306_s18, 0 }
 0x2c8   : > { %s26688_s23 = scalar_select %p93_p8, %s26054_s10, %s95_s12  }
 0x2c9   : > { %p26690_p3 = por %p103_p4, %p102_p7  ;;  %p26696_p6 = por %p28065_p9, %p108_p1 }
 0x2ca   : > { %p720_p10 = scmp.eq.s32.totalorder %s26306_s18, 1  ;;  %p726_p11 = scmp.eq.s32.totalorder %s19544_s8, 1 }
 0x2cb   : > { %s28066_s16 = scalar_select %p26696_p6, 1, 0 }
 0x2cc   : > { %p22814_p12 = scmp.lt.s32.totalorder %s26058_s11, 2  ;;  %s1078_s5 = sand.u32 1, %s26054_s10  }
 0x2cd   : > { %p26703_p13 = por %p720_p10, %p102_p7  ;;  %p26707_p0 = por %p726_p11, %p108_p1 }
 0x2ce   : > { %s19573_s12 = sshll.u32 %s1078_s5, 7  ;;  %s21439_s4 = sshll.u32 %s26058_s11, 11 }
 0x2cf   : > { %s28067_s6 = scalar_select %p26703_p13, 1, 0 }
 0x2d0   : > { %s28068_s28 = scalar_select %p26707_p0, 1, 0 }
 0x2d1   : > { %s26713_s14 = scalar_lea.hbm %s28063_s9, %s21439_s4  ;;  %s1082_s8 = scalar_lea.vmem [#allocation2], %s19573_s12 }
 0x2d2   : > { %s1089_s15 = sshll.u32 %s1082_s8, 4  ;;  %p26719_p2 = pnand %p22814_p12, %p26690_p3  ;;  %s26715_s15 = int_to_ptr.vmem [resolvable:$true] %s1089_s15 }
 0x2d3   : > { %s26723_s19 = scalar_lea.sflag [#allocation3], %s1078_s5  ;;  %s25910_s20 = scalar_lea.hbm %s26713_s14, 2048 }
 0x2d4   : > { %p25911_p5 = scmp.ne.s32.totalorder %s26713_s14, %s25910_s20  ;;  %p25912_p8 = pneg %p26719_p2 }
 0x2d5   : > { %s25915_s4 = scalar_lea.hbm %s28063_s9, 4096  ;;  %p25916_p1 = scmp.lt.u32.totalorder %s26713_s14, %s28063_s9 }
 0x2d6   : > { %p25913_p7 = pnand %p25912_p8, %p25911_p5  ;;  %p25917_p9 = scmp.lt.u32.totalorder %s25915_s4, %s25910_s20 }
 0x2d7   : > { %p25919_p3 = scmp.lt.u32.totalorder %s25910_s20, %s26713_s14 }
 0x2d8   : > { %p25914_p4 = pneg %p25913_p7  ;;  %p25918_p10 = por %p25917_p9, %p25916_p1 }
 0x2da   : > { %p25920_p11 = por %p25919_p3, %p25918_p10 }
 0x2dc   : > { %p25921_p12 = pnand %p25920_p11, %p25914_p4 }
 0x2de   : > { %25924 = shalt.err (!%p25921_p12)
}
 0x2df   : > { %s25925_s13 = scalar_lea.vmem %s26715_s15, 2048  ;;  %s26125_s5 = smov [#allocation2]  }
 0x2e0   : > { %p25926_p0 = scmp.ne.s32.totalorder %s26715_s15, %s25925_s13  ;;  %s25930_s12 = sshll.u32 %s26125_s5, 4  ;;  %s25931_s12 = int_to_ptr.vmem [resolvable:$false] %s25930_s12 }
 0x2e1   : > { %s25932_s8 = scalar_lea.vmem %s25931_s12, 4096  ;;  %p25933_p5 = scmp.lt.s32.totalorder %s26715_s15, %s25931_s12 }
 0x2e2   : > { %p25928_p13 = pnand %p25926_p0, %p25912_p8  ;;  %p25934_p7 = scmp.lt.s32.totalorder %s25932_s8, %s25925_s13 }
 0x2e4   : > { %p25929_p6 = pneg %p25928_p13  ;;  %p25935_p1 = por %p25934_p7, %p25933_p5 }
 0x2e6   : > { %p25936_p9 = pnand %p25935_p1, %p25929_p6 }
 0x2e8   : > { %25939 = shalt.err (!%p25936_p9)
}
 0x2e9   : > { %22783 = dma.hbm_to_vmem [thread:$0]  (!%p26719_p2), %s26713_s14, 2048, %s26715_s15, %s26723_s19, %s28047_s1, %s28047_s1, %s28046_s2  }
 0x2ea   : > { %p28070_p13 = scmp.ne.s32.totalorder %s28043_s22, 0 }
 0x2eb   : > { %s26753_s20 = sand.u32 (!%p28070_p13), 1, %s26050_s0   ;;  %p28071_p6 = scmp.ne.s32.totalorder (!%p28070_p13), %s28066_s16, 0 }
 0x2ec   : > { %1101 = sbr.rel (%p28070_p13) target bundleno = 7999 (0x1f3f), region = 136  ;;  %s19577_s4 = sshll.u32 (!%p28070_p13), %s26753_s20, 7 }
 0x2ed   : > { %s1104_s13 = scalar_lea.sflag (!%p28070_p13), [#allocation3], %s26753_s20  ;;  %s26757_s5 = scalar_lea.vmem (!%p28070_p13), [#allocation2], %s19577_s4 }
 0x2f3   : > { %25985 = dma.done.wait (%p28071_p6), %s1104_s13, 2048  }
 0x2f4   : > { %25987 = vsyncadd (%p28071_p6), %s1104_s13, 4294965248  ;;  %p28072_p0 = scmp.eq.s32.totalorder %s26306_s18, 0 }
 0x2f6   : > { %25989 = dma.done.wait (%p28072_p0), [#allocation6], 27648   ;;  %p28073_p2 = pmov %p28072_p0 }
 0x2f7   : > { %p28074_p8 = pmov %p28072_p0 }
 0x2f8   : > { %25991 = vsyncadd (%p28073_p2), [#allocation6], 4294939648 }
 0x2f9   : > { %25993 = dma.done.wait (%p28074_p8), [#allocation9], 1152   ;;  %p28075_p4 = pmov %p28072_p0 }
 0x2fa   : > { %p28076_p10 = pmov %p28072_p0 }
 0x2fb   : > { %25995 = vsyncadd (%p28075_p4), [#allocation9], 4294966144 }
 0x2fc   : > { %25997 = dma.done.wait (%p28076_p10), [#allocation12], 67072   ;;  %p28077_p3 = pmov %p28072_p0 }
 0x2fd   : > { %p28078_p11 = pmov %p28072_p0 }
 0x2fe   : > { %25999 = vsyncadd (%p28077_p3), [#allocation12], 4294900224 }
 0x2ff   : > { %26001 = dma.done.wait (%p28078_p11), [#allocation15], 49216   ;;  %p28079_p12 = pmov %p28072_p0 }
 0x300   : > { %p28080_p5 = pmov %p28072_p0 }
 0x301   : > { %26003 = vsyncadd (%p28079_p12), [#allocation15], 4294918080 }
 0x302   : > { %26005 = dma.done.wait (%p28080_p5), [#allocation18], 16896   ;;  %p28081_p7 = pmov %p28072_p0 }
 0x303   : > { %p28082_p1 = pmov %p28072_p0 }
 0x304   : > { %26007 = vsyncadd (%p28081_p7), [#allocation18], 4294950400 }
 0x305   : > { %26009 = dma.done.wait (%p28082_p1), [#allocation21], 25344   ;;  %p28083_p9 = pmov %p28072_p0 }
 0x306   : > { %p28084_p13 = pmov %p28072_p0 }
 0x307   : > { %26011 = vsyncadd (%p28083_p9), [#allocation21], 4294941952 }
 0x308   : > { %26013 = dma.done.wait (%p28084_p13), [#allocation24], 320   ;;  %p28085_p6 = pmov %p28072_p0 }
 0x30a   : > { %26015 = vsyncadd (%p28085_p6), [#allocation24], 4294966976 }
 0x30b   : > { %26017 = dma.done.wait (%p28072_p0), [#allocation27], 16768   ;;  %p28086_p2 = pmov %p28072_p0 }
 0x30c   : > { %p28087_p8 = pmov %p28072_p0 }
 0x30d   : > { %26019 = vsyncadd (%p28086_p2), [#allocation27], 4294950528 }
 0x30e   : > { %26021 = dma.done.wait (%p28087_p8), [#allocation30], 12320   ;;  %p28088_p4 = pmov %p28072_p0 }
 0x30f   : > { %p28089_p10 = pmov %p28072_p0 }
 0x310   : > { %26023 = vsyncadd (%p28088_p4), [#allocation30], 4294954976 }
 0x311   : > { %26025 = dma.done.wait (%p28089_p10), [#allocation33], 4224   ;;  %p28090_p3 = pmov %p28072_p0 }
 0x312   : > { %p28091_p11 = pmov %p28072_p0 }
 0x313   : > { %26027 = vsyncadd (%p28090_p3), [#allocation33], 4294963072 }
 0x314   : > { %26029 = dma.done.wait (%p28091_p11), [#allocation36], 3264   ;;  %p28092_p12 = pmov %p28072_p0 }
 0x315   : > { %p28093_p5 = pmov %p28072_p0 }
 0x316   : > { %26031 = vsyncadd (%p28092_p12), [#allocation36], 4294964032 }
 0x317   : > { %26033 = dma.done.wait (%p28093_p5), [#allocation39], 80   ;;  %p28094_p7 = pmov %p28072_p0 }
 0x318   : > { %p28095_p1 = pmov %p28072_p0 }
 0x319   : > { %26035 = vsyncadd (%p28094_p7), [#allocation39], 4294967216 }
 0x31a   : > { %26037 = dma.done.wait (%p28095_p1), [#allocation42], 48   ;;  %p28096_p9 = pmov %p28072_p0 }
 0x31b   : > { %v1286_v0 = vld [vmem:[%s26757_s5] sm:$0xff]  ;;  %v1287_v1 = vld [vmem:[%s26757_s5 + $0x8] sm:$0xff]  ;;  %v1288_v2 = vld [vmem:[%s26757_s5 + $0x10] sm:$0xff]  ;;  %vm3923_vm0 = vcmask 523264   ;;  %vm8654_vm1 = vcmask 261120   ;;  %vm13555_vm2 = vcmask 130048  }
 0x31c   : > { %26039 = vsyncadd (%p28096_p9), [#allocation42], 4294967248  ;;  %v26818_v3 = vpack.c.bf16 %v1287_v1, %v1286_v0  ;;  %v1289_v4 = vld [vmem:[%s26757_s5 + $0x18] sm:$0xff]  ;;  %v1290_v6 = vld [vmem:[%s26757_s5 + $0x20] sm:$0xff]  ;;  %vm16512_vm3 = vcmask 64512   ;;  %vm26128_vm4 = vmmov 0  }
 0x31d   : > { %v26821_v5 = vpack.c.bf16 %v1289_v4, %v1288_v2  ;;  %v1291_v7 = vld [vmem:[%s26757_s5 + $0x28] sm:$0xff]  ;;  %v1484_v9 = vld [vmem:[#allocation5 + $0x40] sm:$0xff]  ;;  %v1292_v10 = vld [vmem:[%s26757_s5 + $0x30] sm:$0xff]  ;;  %vm17962_vm5 = vcmask 1043456   ;;  %vm17958_vm6 = vcmask 31744   ;;  %s28097_s14 = sld [smem:[#allocation81_spill]] }
 0x31e   : > { %21949 = vmatprep.subr.bf16.mxu1 %v26818_v3  ;;  %21917 = vmatprep.subr.bf16.mxu0 %v26818_v3  ;;  %v26830_v8 = vpack.c.bf16 %v1291_v7, %v1290_v6  ;;  %v1293_v11 = vld [vmem:[%s26757_s5 + $0x38] sm:$0xff]  ;;  %v1302_v12 = vld [vmem:[#allocation5] sm:$0xff]  ;;  %v1295_v15 = vld [vmem:[%s26757_s5 + $0x48] sm:$0xff]  ;;  %s28098_s19 = sld [smem:[#allocation83_spill]]  ;;  %vm18883_vm7 = vcmask 1041408   ;;  %vm18879_vm8 = vcmask 15360  }
 0x31f   : > { %21951 = vmatpush3.bf16.msra.mxu1 %v26818_v3  ;;  %21919 = vmatpush3.bf16.msra.mxu0 %v26818_v3  ;;  %v26838_v13 = vpack.c.bf16 %v1293_v11, %v1292_v10  ;;  %v1294_v14 = vld [vmem:[%s26757_s5 + $0x40] sm:$0xff]  ;;  %v1296_v17 = vld [vmem:[%s26757_s5 + $0x50] sm:$0xff]  ;;  %v1297_v18 = vld [vmem:[%s26757_s5 + $0x58] sm:$0xff]  ;;  %s28099_s22 = sld [smem:[#allocation84_spill]]  ;;  %s21436_s2 = sshll.u32 %s26306_s18, 4  ;;  %vm19187_vm9 = vcmask 73728  }
 0x320   : > { %21953 = vmatprep.subr.bf16.mxu1 %v26821_v5  ;;  %21921 = vmatprep.subr.bf16.mxu0 %v26821_v5  ;;  %v26846_v16 = vpack.c.bf16 %v1295_v15, %v1294_v14  ;;  %v26854_v19 = vpack.c.bf16 %v1297_v18, %v1296_v17  ;;  %v1298_v20 = vld [vmem:[%s26757_s5 + $0x60] sm:$0xff]  ;;  %v1299_v21 = vld [vmem:[%s26757_s5 + $0x68] sm:$0xff]  ;;  %v1300_v22 = vld [vmem:[%s26757_s5 + $0x70] sm:$0xff]  ;;  %s1284_s1 = scalar_lea.vmem [#allocation44], %s26753_s20  ;;  %s19190_s16 = scalar_lea.sflag [#allocation4], %s26753_s20 }
 0x321   : > { %21701 = vmatprep.mubr.f32.mxu1 %v1484_v9  ;;  %21657 = vmatprep.mubr.f32.mxu0 %v1302_v12  ;;  %v1301_v23 = vld [vmem:[%s26757_s5 + $0x78] sm:$0xff]  ;;  %v26864_v24 = vpack.c.bf16 %v1299_v21, %v1298_v20  ;;  %v1602_v25 = vld [vmem:[#allocation7 + $0x200] sm:$0xff]  ;;  %v1603_v27 = vld [vmem:[#allocation7 + $0x208] sm:$0xff]  ;;  %s19202_s17 = sshll.u32 %s1284_s1, 4  ;;  %p28100_p6 = scmp.ne.s32.totalorder %s28067_s6, 0  ;;  %s27919_s17 = int_to_ptr.vmem [resolvable:$true] %s19202_s17 }
 0x322   : > { %v1606_v26 = vld [vmem:[#allocation7 + $0x220] sm:$0xff]  ;;  %v1607_v28 = vld [vmem:[#allocation7 + $0x228] sm:$0xff]  ;;  %v26870_v29 = vpack.c.bf16 %v1301_v23, %v1300_v22  ;;  %v1486_v38 = vld [vmem:[#allocation5 + $0x50] sm:$0xff]  ;;  %s25940_s12 = scalar_lea.vmem %s27919_s17, 16  ;;  %s26129_s18 = smov [#allocation44]  }
 0x323   : > { %21955 = vmatpush3.bf16.msra.mxu1 %v26821_v5  ;;  %21923 = vmatpush3.bf16.msra.mxu0 %v26821_v5  ;;  %v19605_v30 = vcombine.high %v1602_v25, %v1606_v26  ;;  %v19607_v31 = vcombine.high %v1603_v27, %v1607_v28  ;;  %v1610_v32 = vld [vmem:[#allocation7 + $0x240] sm:$0xff]  ;;  %v1611_v34 = vld [vmem:[#allocation7 + $0x248] sm:$0xff]  ;;  %v1304_v39 = vld [vmem:[#allocation5 + $0x10] sm:$0xff]  ;;  %v19604_v40 = vcombine.low %v1602_v25, %v1606_v26  ;;  %p25941_p13 = scmp.ne.s32.totalorder %s27919_s17, %s25940_s12  ;;  %s25944_s8 = sshll.u32 %s26129_s18, 4  ;;  %s25945_s8 = int_to_ptr.vmem [resolvable:$false] %s25944_s8 }
 0x324   : > { %21957 = vmatprep.subr.bf16.mxu1 %v26830_v8  ;;  %21925 = vmatprep.subr.bf16.mxu0 %v26830_v8  ;;  %v1614_v33 = vld [vmem:[#allocation7 + $0x260] sm:$0xff]  ;;  %v1615_v35 = vld [vmem:[#allocation7 + $0x268] sm:$0xff]  ;;  %v19606_v41 = vcombine.low %v1603_v27, %v1607_v28  ;;  %v1487_v46 = vld [vmem:[#allocation5 + $0x58] sm:$0xff]  ;;  %s25946_s4 = scalar_lea.vmem %s25945_s8, 32  ;;  %p25947_p8 = scmp.lt.s32.totalorder %s27919_s17, %s25945_s8 }
 0x325   : > { %v1485_v36 = vld [vmem:[#allocation5 + $0x48] sm:$0xff]  ;;  %v1618_v42 = vld [vmem:[#allocation7 + $0x280] sm:$0xff]  ;;  %v1305_v47 = vld [vmem:[#allocation5 + $0x18] sm:$0xff]  ;;  %v19613_v48 = vcombine.high %v1610_v32, %v1614_v33  ;;  %v19615_v49 = vcombine.high %v1611_v34, %v1615_v35  ;;  %v19612_v52 = vcombine.low %v1610_v32, %v1614_v33  ;;  %v19614_v53 = vcombine.low %v1611_v34, %v1615_v35  ;;  %s27917_s15 = scalar_lea.hbm %s28099_s22, %s21436_s2  ;;  %p25942_p0 = pnand %p25941_p13, %p28100_p6 }
 0x326   : > { %v1303_v37 = vld [vmem:[#allocation5 + $0x8] sm:$0xff]  ;;  %v1622_v43 = vld [vmem:[#allocation7 + $0x2a0] sm:$0xff]  ;;  %v1490_v62 = vld [vmem:[#allocation5 + $0x70] sm:$0xff]  ;;  %p25948_p4 = scmp.lt.s32.totalorder %s25946_s4, %s25940_s12 }
 0x327   : > { %21959 = vmatpush3.bf16.msra.mxu1 %v26830_v8  ;;  %21927 = vmatpush3.bf16.msra.mxu0 %v26830_v8  ;;  %v1619_v44 = vld [vmem:[#allocation7 + $0x288] sm:$0xff]  ;;  %v1488_v50 = vld [vmem:[#allocation5 + $0x60] sm:$0xff]  ;;  %v19621_v60 = vcombine.high %v1618_v42, %v1622_v43  ;;  %v1308_v63 = vld [vmem:[#allocation5 + $0x30] sm:$0xff]  ;;  %v19620_v0 = vcombine.low %v1618_v42, %v1622_v43  ;;  %p25943_p2 = pneg %p25942_p0 }
 0x328   : > { %21961 = vmatprep.subr.bf16.mxu1 %v26838_v13  ;;  %21929 = vmatprep.subr.bf16.mxu0 %v26838_v13  ;;  %v1623_v45 = vld [vmem:[#allocation7 + $0x2a8] sm:$0xff]  ;;  %v1306_v51 = vld [vmem:[#allocation5 + $0x20] sm:$0xff]  ;;  %v1491_v9 = vld [vmem:[#allocation5 + $0x78] sm:$0xff]  ;;  %p25949_p10 = por %p25948_p4, %p25947_p8 }
 0x329   : > { %v1626_v54 = vld [vmem:[#allocation7 + $0x2c0] sm:$0xff]  ;;  %v1627_v56 = vld [vmem:[#allocation7 + $0x2c8] sm:$0xff]  ;;  %v19623_v61 = vcombine.high %v1619_v44, %v1623_v45  ;;  %v19622_v1 = vcombine.low %v1619_v44, %v1623_v45  ;;  %v1309_v10 = vld [vmem:[#allocation5 + $0x38] sm:$0xff] }
 0x32a   : > { %v1630_v55 = vld [vmem:[#allocation7 + $0x2e0] sm:$0xff]  ;;  %v1631_v57 = vld [vmem:[#allocation7 + $0x2e8] sm:$0xff]  ;;  %p25950_p3 = pnand %p25949_p10, %p25943_p2 }
 0x32b   : > { %21963 = vmatpush3.bf16.msra.mxu1 %v26838_v13  ;;  %21931 = vmatpush3.bf16.msra.mxu0 %v26838_v13  ;;  %v1489_v58 = vld [vmem:[#allocation5 + $0x68] sm:$0xff]  ;;  %v1634_v2 = vld [vmem:[#allocation7 + $0x300] sm:$0xff]  ;;  %v19629_v11 = vcombine.high %v1626_v54, %v1630_v55  ;;  %v19631_v12 = vcombine.high %v1627_v56, %v1631_v57  ;;  %v19628_v14 = vcombine.low %v1626_v54, %v1630_v55 }
 0x32c   : > { %21965 = vmatprep.subr.bf16.mxu1 %v26846_v16  ;;  %21933 = vmatprep.subr.bf16.mxu0 %v26846_v16  ;;  %v1307_v59 = vld [vmem:[#allocation5 + $0x28] sm:$0xff]  ;;  %v1638_v4 = vld [vmem:[#allocation7 + $0x320] sm:$0xff]  ;;  %v19630_v15 = vcombine.low %v1627_v56, %v1631_v57  ;;  %v1612_v57 = vld [vmem:[#allocation7 + $0x250] sm:$0xff] }
 0x32d   : > { %v1635_v6 = vld [vmem:[#allocation7 + $0x308] sm:$0xff]  ;;  %v1642_v17 = vld [vmem:[#allocation7 + $0x340] sm:$0xff]  ;;  %v19637_v22 = vcombine.high %v1634_v2, %v1638_v4  ;;  %v19636_v25 = vcombine.low %v1634_v2, %v1638_v4  ;;  %v1621_v2 = vld [vmem:[#allocation7 + $0x298] sm:$0xff] }
 0x32e   : > { %v1639_v7 = vld [vmem:[#allocation7 + $0x328] sm:$0xff]  ;;  %v1646_v18 = vld [vmem:[#allocation7 + $0x360] sm:$0xff]  ;;  %v1625_v4 = vld [vmem:[#allocation7 + $0x2b8] sm:$0xff] }
 0x32f   : > { %21967 = vmatpush3.bf16.msra.mxu1 %v26846_v16  ;;  %21935 = vmatpush3.bf16.msra.mxu0 %v26846_v16  ;;  %v1643_v20 = vld [vmem:[#allocation7 + $0x348] sm:$0xff]  ;;  %v19639_v23 = vcombine.high %v1635_v6, %v1639_v7  ;;  %v19638_v26 = vcombine.low %v1635_v6, %v1639_v7  ;;  %v1650_v27 = vld [vmem:[#allocation7 + $0x380] sm:$0xff]  ;;  %v19645_v32 = vcombine.high %v1642_v17, %v1646_v18 }
 0x330   : > { %21969 = vmatprep.subr.bf16.mxu1 %v26854_v19  ;;  %21937 = vmatprep.subr.bf16.mxu0 %v26854_v19  ;;  %v1647_v21 = vld [vmem:[#allocation7 + $0x368] sm:$0xff]  ;;  %v1654_v28 = vld [vmem:[#allocation7 + $0x3a0] sm:$0xff]  ;;  %v19644_v34 = vcombine.low %v1642_v17, %v1646_v18 }
 0x331   : > { %v19647_v33 = vcombine.high %v1643_v20, %v1647_v21  ;;  %v19646_v35 = vcombine.low %v1643_v20, %v1647_v21  ;;  %v1659_v42 = vld [vmem:[#allocation7 + $0x3c8] sm:$0xff] }
 0x332   : > { %v1663_v44 = vld [vmem:[#allocation7 + $0x3e8] sm:$0xff] }
 0x333   : > { %21971 = vmatpush3.bf16.msra.mxu1 %v26854_v19  ;;  %21939 = vmatpush3.bf16.msra.mxu0 %v26854_v19 }
 0x334   : > { %21973 = vmatprep.subr.bf16.mxu1 %v26864_v24  ;;  %21941 = vmatprep.subr.bf16.mxu0 %v26864_v24 }
 0x337   : > { %21975 = vmatpush3.bf16.msra.mxu1 %v26864_v24  ;;  %21943 = vmatpush3.bf16.msra.mxu0 %v26864_v24 }
 0x338   : > { %21977 = vmatprep.subr.bf16.mxu1 %v26870_v29  ;;  %21945 = vmatprep.subr.bf16.mxu0 %v26870_v29 }
 0x33b   : > { %21979 = vmatpush3.bf16.msra.mxu1 %v26870_v29  ;;  %21947 = vmatpush3.bf16.msra.mxu0 %v26870_v29 }
 0x33c   : > { %1986 = vmatprep.subr.bf16.mxu0 %v19605_v30  ;;  %2059 = vmatprep.subr.bf16.mxu1 %v19607_v31  ;;  %v1651_v30 = vld [vmem:[#allocation7 + $0x388] sm:$0xff] }
 0x33d   : > { %v1655_v31 = vld [vmem:[#allocation7 + $0x3a8] sm:$0xff] }
 0x33e   : > { %21702 = vmatmul.mubr.f32.vlgmr.msra.gmra.mrb[0].mxu1 %v1485_v36  ;;  %21658 = vmatmul.mubr.f32.vlgmr.msra.gmra.mrb[0].mxu0 %v1303_v37  ;;  %v19653_v36 = vcombine.high %v1650_v27, %v1654_v28  ;;  %v19655_v37 = vcombine.high %v1651_v30, %v1655_v31 }
 0x33f   : > { %21704 = vmatprep.mubr.f32.mxu1 %v1486_v38  ;;  %21660 = vmatprep.mubr.f32.mxu0 %v1304_v39  ;;  %v19652_v38 = vcombine.low %v1650_v27, %v1654_v28  ;;  %v19654_v39 = vcombine.low %v1651_v30, %v1655_v31  ;;  %v19627_v28 = vcombine.high %v1621_v2, %v1625_v4 }
 0x340   : > { %1987 = vmatpush1.bf16.msra.mxu0 %v19604_v40  ;;  %2060 = vmatpush1.bf16.msra.mxu1 %v19606_v41  ;;  %v1658_v40 = vld [vmem:[#allocation7 + $0x3c0] sm:$0xff] }
 0x341   : > { %1988 = vmatprep.subr.bf16.mxu0 %v19613_v48  ;;  %2061 = vmatprep.subr.bf16.mxu1 %v19615_v49  ;;  %v1662_v41 = vld [vmem:[#allocation7 + $0x3e0] sm:$0xff]  ;;  %v1604_v48 = vld [vmem:[#allocation7 + $0x210] sm:$0xff] }
 0x342   : > { %21705 = vmatmul.mubr.f32.gmra.mrb[2].mxu1 %v1487_v46  ;;  %21661 = vmatmul.mubr.f32.gmra.mrb[2].mxu0 %v1305_v47  ;;  %v19661_v43 = vcombine.high %v1658_v40, %v1662_v41  ;;  %v19660_v45 = vcombine.low %v1658_v40, %v1662_v41  ;;  %v19662_v46 = vcombine.low %v1659_v42, %v1663_v44  ;;  %v1608_v49 = vld [vmem:[#allocation7 + $0x230] sm:$0xff]  ;;  %v1641_v40 = vld [vmem:[#allocation7 + $0x338] sm:$0xff] }
 0x343   : > { %21707 = vmatprep.mubr.f32.mxu1 %v1488_v50  ;;  %21663 = vmatprep.mubr.f32.mxu0 %v1306_v51  ;;  %v19663_v47 = vcombine.high %v1659_v42, %v1663_v44  ;;  %v1605_v50 = vld [vmem:[#allocation7 + $0x218] sm:$0xff]  ;;  %v19609_v51 = vcombine.high %v1604_v48, %v1608_v49  ;;  %v19608_v54 = vcombine.low %v1604_v48, %v1608_v49 }
 0x344   : > { %1989 = vmatpush1.bf16.msra.mxu0 %v19612_v52  ;;  %2062 = vmatpush1.bf16.msra.mxu1 %v19614_v53  ;;  %v1609_v52 = vld [vmem:[#allocation7 + $0x238] sm:$0xff]  ;;  %v26126_v53 = vmov 0  }
 0x345   : > { %1990 = vmatprep.subr.bf16.mxu0 %v19621_v60  ;;  %2063 = vmatprep.subr.bf16.mxu1 %v19623_v61  ;;  %v19610_v55 = vcombine.low %v1605_v50, %v1609_v52  ;;  %v19611_v56 = vcombine.high %v1605_v50, %v1609_v52  ;;  %v1617_v60 = vld [vmem:[#allocation7 + $0x278] sm:$0xff]  ;;  %v1648_v52 = vld [vmem:[#allocation7 + $0x370] sm:$0xff] }
 0x346   : > { %21708 = vmatmul.mubr.f32.gmra.mrb[4].mxu1 %v1489_v58  ;;  %21664 = vmatmul.mubr.f32.gmra.mrb[4].mxu0 %v1307_v59  ;;  %v1616_v58 = vld [vmem:[#allocation7 + $0x270] sm:$0xff]  ;;  %v1613_v59 = vld [vmem:[#allocation7 + $0x258] sm:$0xff] }
 0x347   : > { %21710 = vmatprep.mubr.f32.mxu1 %v1490_v62  ;;  %21666 = vmatprep.mubr.f32.mxu0 %v1308_v63  ;;  %v1620_v62 = vld [vmem:[#allocation7 + $0x290] sm:$0xff]  ;;  %v19616_v20 = vcombine.low %v1612_v57, %v1616_v58  ;;  %v19618_v21 = vcombine.low %v1613_v59, %v1617_v60 }
 0x348   : > { %1991 = vmatpush1.bf16.msra.mxu0 %v19620_v0  ;;  %2064 = vmatpush1.bf16.msra.mxu1 %v19622_v1  ;;  %v1624_v63 = vld [vmem:[#allocation7 + $0x2b0] sm:$0xff] }
 0x349   : > { %1992 = vmatprep.subr.bf16.mxu0 %v19629_v11  ;;  %2065 = vmatprep.subr.bf16.mxu1 %v19631_v12 }
 0x34a   : > { %21711 = vmatmul.mubr.f32.gmra.mrb[6].mxu1 %v1491_v9  ;;  %21667 = vmatmul.mubr.f32.gmra.mrb[6].mxu0 %v1309_v10  ;;  %v19617_v9 = vcombine.high %v1612_v57, %v1616_v58  ;;  %v19619_v10 = vcombine.high %v1613_v59, %v1617_v60 }
 0x34b   : > { %2018 = vmatprep.mubr.bf16.mxu0 %v26126_v53  ;;  %2091 = vmatprep.mubr.bf16.mxu1 %v26126_v53 }
 0x34c   : > { %1993 = vmatpush1.bf16.msra.mxu0 %v19628_v14  ;;  %2066 = vmatpush1.bf16.msra.mxu1 %v19630_v15  ;;  %v1628_v14 = vld [vmem:[#allocation7 + $0x2d0] sm:$0xff] }
 0x34d   : > { %1994 = vmatprep.subr.bf16.mxu0 %v19637_v22  ;;  %2067 = vmatprep.subr.bf16.mxu1 %v19639_v23  ;;  %v1632_v15 = vld [vmem:[#allocation7 + $0x2f0] sm:$0xff]  ;;  %v19625_v22 = vcombine.high %v1620_v62, %v1624_v63  ;;  %v1629_v23 = vld [vmem:[#allocation7 + $0x2d8] sm:$0xff] }
 0x350   : > { %1995 = vmatpush1.bf16.msra.mxu0 %v19636_v25  ;;  %2068 = vmatpush1.bf16.msra.mxu1 %v19638_v26  ;;  %v1633_v25 = vld [vmem:[#allocation7 + $0x2f8] sm:$0xff] }
 0x351   : > { %1996 = vmatprep.subr.bf16.mxu0 %v19645_v32  ;;  %2069 = vmatprep.subr.bf16.mxu1 %v19647_v33  ;;  %v1636_v32 = vld [vmem:[#allocation7 + $0x310] sm:$0xff]  ;;  %v19634_v48 = vcombine.low %v1629_v23, %v1633_v25 }
 0x352   : > { %v1640_v33 = vld [vmem:[#allocation7 + $0x330] sm:$0xff] }
 0x353   : > { %v19641_v49 = vcombine.high %v1636_v32, %v1640_v33  ;;  %v19640_v60 = vcombine.low %v1636_v32, %v1640_v33 }
 0x354   : > { %1997 = vmatpush1.bf16.msra.mxu0 %v19644_v34  ;;  %2070 = vmatpush1.bf16.msra.mxu1 %v19646_v35  ;;  %v19624_v35 = vcombine.low %v1620_v62, %v1624_v63 }
 0x355   : > { %1998 = vmatprep.subr.bf16.mxu0 %v19653_v36  ;;  %2071 = vmatprep.subr.bf16.mxu1 %v19655_v37  ;;  %v19626_v36 = vcombine.low %v1621_v2, %v1625_v4  ;;  %v1653_v2 = vld [vmem:[#allocation7 + $0x398] sm:$0xff] }
 0x356   : > { %v1657_v4 = vld [vmem:[#allocation7 + $0x3b8] sm:$0xff] }
 0x358   : > { %1999 = vmatpush1.bf16.msra.mxu0 %v19652_v38  ;;  %2072 = vmatpush1.bf16.msra.mxu1 %v19654_v39  ;;  %v19633_v38 = vcombine.high %v1628_v14, %v1632_v15  ;;  %v1637_v39 = vld [vmem:[#allocation7 + $0x318] sm:$0xff] }
 0x359   : > { %2000 = vmatprep.subr.bf16.mxu0 %v19661_v43  ;;  %2073 = vmatprep.subr.bf16.mxu1 %v19663_v47  ;;  %v19635_v43 = vcombine.high %v1629_v23, %v1633_v25  ;;  %v19632_v47 = vcombine.low %v1628_v14, %v1632_v15  ;;  %v19643_v57 = vcombine.high %v1637_v39, %v1641_v40  ;;  %v1660_v14 = vld [vmem:[#allocation7 + $0x3d0] sm:$0xff]  ;;  %v1423_v23 = vld [vmem:[#allocation7 + $0x20] sm:$0xff] }
 0x35a   : > { %v1664_v15 = vld [vmem:[#allocation7 + $0x3f0] sm:$0xff] }
 0x35b   : > { %v19665_v25 = vcombine.high %v1660_v14, %v1664_v15  ;;  %v19664_v32 = vcombine.low %v1660_v14, %v1664_v15  ;;  %v1460_v14 = vld [vmem:[#allocation7 + $0x148] sm:$0xff] }
 0x35c   : > { %2001 = vmatpush1.bf16.msra.mxu0 %v19660_v45  ;;  %2074 = vmatpush1.bf16.msra.mxu1 %v19662_v46  ;;  %v1464_v15 = vld [vmem:[#allocation7 + $0x168] sm:$0xff] }
 0x35d   : > { %2132 = vmatprep.subr.bf16.mxu0 %v19609_v51  ;;  %2205 = vmatprep.subr.bf16.mxu1 %v19611_v56  ;;  %v1644_v51 = vld [vmem:[#allocation7 + $0x350] sm:$0xff] }
 0x35e   : > { %v19649_v62 = vcombine.high %v1644_v51, %v1648_v52 }
 0x411   : > { %v21703_v61 = vpop.f32.mrb[0].mxu1  ;;  %v21659_v0 = vpop.f32.mrb[0].mxu0 }
 0x412   : > { %v1558_v1 = vpop.f32.mrb[1].mxu1  ;;  %v1376_v6 = vpop.f32.mrb[1].mxu0 }
 0x413   : > { %v26881_v7 = vpack.c.bf16 %v21703_v61, %v1558_v1  ;;  %v26883_v11 = vpack.c.bf16 %v21659_v0, %v1376_v6  ;;  %v19642_v61 = vcombine.low %v1637_v39, %v1641_v40  ;;  %v1652_v0 = vld [vmem:[#allocation7 + $0x390] sm:$0xff]  ;;  %v19648_v6 = vcombine.low %v1644_v51, %v1648_v52  ;;  %v1443_v52 = vld [vmem:[#allocation7 + $0xc0] sm:$0xff] }
 0x414   : > { %v1656_v1 = vld [vmem:[#allocation7 + $0x3b0] sm:$0xff] }
 0x415   : > { %2019 = vmatmul.mubr.bf16.vlgmr.msra.gmra.mrb[8].mxu0 %v26881_v7  ;;  %2092 = vmatmul.mubr.bf16.vlgmr.msra.gmra.mrb[8].mxu1 %v26881_v7  ;;  %v21706_v12 = vpop.f32.mrb[2].mxu1  ;;  %v21662_v17 = vpop.f32.mrb[2].mxu0 }
 0x416   : > { %2133 = vmatpush1.bf16.msra.mxu0 %v19608_v54  ;;  %2206 = vmatpush1.bf16.msra.mxu1 %v19610_v55  ;;  %v1568_v18 = vpop.f32.mrb[3].mxu1  ;;  %v1386_v26 = vpop.f32.mrb[3].mxu0  ;;  %v1645_v54 = vld [vmem:[#allocation7 + $0x358] sm:$0xff] }
 0x417   : > { %v26887_v27 = vpack.c.bf16 %v21706_v12, %v1568_v18  ;;  %2134 = vmatprep.subr.bf16.mxu0 %v19617_v9  ;;  %2207 = vmatprep.subr.bf16.mxu1 %v19619_v10  ;;  %v26889_v30 = vpack.c.bf16 %v21662_v17, %v1386_v26  ;;  %v1649_v55 = vld [vmem:[#allocation7 + $0x378] sm:$0xff]  ;;  %v19657_v10 = vcombine.high %v1652_v0, %v1656_v1 }
 0x418   : > { %2028 = vmatprep.mubr.bf16.mxu0 %v26126_v53  ;;  %2101 = vmatprep.mubr.bf16.mxu1 %v26126_v53  ;;  %v19651_v63 = vcombine.high %v1645_v54, %v1649_v55  ;;  %v19650_v9 = vcombine.low %v1645_v54, %v1649_v55  ;;  %v19659_v12 = vcombine.high %v1653_v2, %v1657_v4  ;;  %v1661_v17 = vld [vmem:[#allocation7 + $0x3d8] sm:$0xff]  ;;  %v1447_v54 = vld [vmem:[#allocation7 + $0xe0] sm:$0xff]  ;;  %v1444_v55 = vld [vmem:[#allocation7 + $0xc8] sm:$0xff] }
 0x419   : > { %v21709_v31 = vpop.f32.mrb[4].mxu1  ;;  %v21665_v34 = vpop.f32.mrb[4].mxu0  ;;  %v1665_v18 = vld [vmem:[#allocation7 + $0x3f8] sm:$0xff] }
 0x41a   : > { %2135 = vmatpush1.bf16.msra.mxu0 %v19616_v20  ;;  %2208 = vmatpush1.bf16.msra.mxu1 %v19618_v21  ;;  %v1578_v37 = vpop.f32.mrb[5].mxu1  ;;  %v1396_v41 = vpop.f32.mrb[5].mxu0  ;;  %v19656_v20 = vcombine.low %v1652_v0, %v1656_v1  ;;  %v19658_v21 = vcombine.low %v1653_v2, %v1657_v4  ;;  %v19667_v26 = vcombine.high %v1661_v17, %v1665_v18  ;;  %v1452_v0 = vld [vmem:[#allocation7 + $0x108] sm:$0xff] }
 0x41b   : > { %2136 = vmatprep.subr.bf16.mxu0 %v19625_v22  ;;  %2209 = vmatprep.subr.bf16.mxu1 %v19627_v28  ;;  %v26893_v42 = vpack.c.bf16 %v21709_v31, %v1578_v37  ;;  %v26895_v44 = vpack.c.bf16 %v21665_v34, %v1396_v41  ;;  %v1419_v22 = vld [vmem:[#allocation7] sm:$0xff]  ;;  %v1420_v28 = vld [vmem:[#allocation7 + $0x8] sm:$0xff]  ;;  %v19666_v33 = vcombine.low %v1661_v17, %v1665_v18 }
 0x41c   : > { %v1424_v31 = vld [vmem:[#allocation7 + $0x28] sm:$0xff]  ;;  %v1427_v34 = vld [vmem:[#allocation7 + $0x40] sm:$0xff]  ;;  %v19668_v40 = vcombine.low %v1419_v22, %v1423_v23  ;;  %v19693_v2 = vcombine.high %v1443_v52, %v1447_v54 }
 0x41d   : > { %2029 = vmatmul.mubr.bf16.gmra.mrb[12].mxu0 %v26887_v27  ;;  %2102 = vmatmul.mubr.bf16.gmra.mrb[12].mxu1 %v26887_v27  ;;  %v21712_v45 = vpop.f32.mrb[6].mxu1  ;;  %v21668_v46 = vpop.f32.mrb[6].mxu0  ;;  %v1432_v37 = vld [vmem:[#allocation7 + $0x68] sm:$0xff]  ;;  %v19671_v39 = vcombine.high %v1420_v28, %v1424_v31  ;;  %v19670_v41 = vcombine.low %v1420_v28, %v1424_v31  ;;  %v19711_v28 = vcombine.high %v1460_v14, %v1464_v15 }
 0x41e   : > { %2137 = vmatpush1.bf16.msra.mxu0 %v19624_v35  ;;  %2210 = vmatpush1.bf16.msra.mxu1 %v19626_v36  ;;  %v1588_v50 = vpop.f32.mrb[7].mxu1  ;;  %v1406_v56 = vpop.f32.mrb[7].mxu0  ;;  %v1431_v35 = vld [vmem:[#allocation7 + $0x60] sm:$0xff]  ;;  %v1428_v36 = vld [vmem:[#allocation7 + $0x48] sm:$0xff] }
 0x41f   : > { %2138 = vmatprep.subr.bf16.mxu0 %v19633_v38  ;;  %2211 = vmatprep.subr.bf16.mxu1 %v19635_v43  ;;  %v26899_v58 = vpack.c.bf16 %v21712_v45, %v1588_v50  ;;  %v26901_v59 = vpack.c.bf16 %v21668_v46, %v1406_v56  ;;  %v19669_v38 = vcombine.high %v1419_v22, %v1423_v23  ;;  %v1435_v43 = vld [vmem:[#allocation7 + $0x80] sm:$0xff]  ;;  %v1436_v46 = vld [vmem:[#allocation7 + $0x88] sm:$0xff] }
 0x420   : > { %2038 = vmatprep.mubr.bf16.mxu0 %v26126_v53  ;;  %2111 = vmatprep.mubr.bf16.mxu1 %v26126_v53  ;;  %v1439_v45 = vld [vmem:[#allocation7 + $0xa0] sm:$0xff]  ;;  %v19676_v50 = vcombine.low %v1427_v34, %v1431_v35  ;;  %v19678_v51 = vcombine.low %v1428_v36, %v1432_v37  ;;  %v1448_v56 = vld [vmem:[#allocation7 + $0xe8] sm:$0xff] }
 0x421   : > { %v1456_v1 = vld [vmem:[#allocation7 + $0x128] sm:$0xff]  ;;  %v19695_v4 = vcombine.high %v1444_v55, %v1448_v56  ;;  %v1471_v22 = vld [vmem:[#allocation7 + $0x1a0] sm:$0xff] }
 0x422   : > { %2139 = vmatpush1.bf16.msra.mxu0 %v19632_v47  ;;  %2212 = vmatpush1.bf16.msra.mxu1 %v19634_v48  ;;  %v1440_v47 = vld [vmem:[#allocation7 + $0xa8] sm:$0xff]  ;;  %v19677_v48 = vcombine.high %v1427_v34, %v1431_v35  ;;  %v19703_v18 = vcombine.high %v1452_v0, %v1456_v1  ;;  %v1479_v34 = vld [vmem:[#allocation7 + $0x1e0] sm:$0xff] }
 0x423   : > { %2140 = vmatprep.subr.bf16.mxu0 %v19641_v49  ;;  %2213 = vmatprep.subr.bf16.mxu1 %v19643_v57  ;;  %v19679_v49 = vcombine.high %v1428_v36, %v1432_v37  ;;  %v19685_v57 = vcombine.high %v1435_v43, %v1439_v45  ;;  %v1468_v23 = vld [vmem:[#allocation7 + $0x188] sm:$0xff] }
 0x424   : > { %v1476_v35 = vld [vmem:[#allocation7 + $0x1c8] sm:$0xff] }
 0x425   : > { %2039 = vmatmul.mubr.bf16.gmra.mrb[16].mxu0 %v26893_v42  ;;  %2112 = vmatmul.mubr.bf16.gmra.mrb[16].mxu1 %v26893_v42  ;;  %v1480_v36 = vld [vmem:[#allocation7 + $0x1e8] sm:$0xff] }
 0x426   : > { %2141 = vmatpush1.bf16.msra.mxu0 %v19640_v60  ;;  %2214 = vmatpush1.bf16.msra.mxu1 %v19642_v61  ;;  %v19687_v60 = vcombine.high %v1436_v46, %v1440_v47  ;;  %v19684_v61 = vcombine.low %v1435_v43, %v1439_v45  ;;  %v1422_v43 = vld [vmem:[#allocation7 + $0x18] sm:$0xff] }
 0x427   : > { %2142 = vmatprep.subr.bf16.mxu0 %v19649_v62  ;;  %2215 = vmatprep.subr.bf16.mxu1 %v19651_v63  ;;  %v1451_v62 = vld [vmem:[#allocation7 + $0x100] sm:$0xff]  ;;  %v1426_v45 = vld [vmem:[#allocation7 + $0x38] sm:$0xff] }
 0x428   : > { %2048 = vmatprep.mubr.bf16.mxu0 %v26126_v53  ;;  %2121 = vmatprep.mubr.bf16.mxu1 %v26126_v53  ;;  %v1455_v63 = vld [vmem:[#allocation7 + $0x120] sm:$0xff] }
 0x429   : > { %v19701_v17 = vcombine.high %v1451_v62, %v1455_v63 }
 0x42a   : > { %2143 = vmatpush1.bf16.msra.mxu0 %v19648_v6  ;;  %2216 = vmatpush1.bf16.msra.mxu1 %v19650_v9  ;;  %v19692_v6 = vcombine.low %v1443_v52, %v1447_v54  ;;  %v19694_v9 = vcombine.low %v1444_v55, %v1448_v56  ;;  %v1430_v52 = vld [vmem:[#allocation7 + $0x58] sm:$0xff]  ;;  %v19675_v56 = vcombine.high %v1422_v43, %v1426_v45 }
 0x42b   : > { %2144 = vmatprep.subr.bf16.mxu0 %v19657_v10  ;;  %2217 = vmatprep.subr.bf16.mxu1 %v19659_v12  ;;  %v1459_v10 = vld [vmem:[#allocation7 + $0x140] sm:$0xff]  ;;  %v1434_v54 = vld [vmem:[#allocation7 + $0x78] sm:$0xff] }
 0x42c   : > { %v1463_v12 = vld [vmem:[#allocation7 + $0x160] sm:$0xff] }
 0x42d   : > { %2049 = vmatmul.mubr.bf16.gmra.mrb[20].mxu0 %v26899_v58  ;;  %2122 = vmatmul.mubr.bf16.gmra.mrb[20].mxu1 %v26899_v58  ;;  %v19708_v31 = vcombine.low %v1459_v10, %v1463_v12 }
 0x42e   : > { %2145 = vmatpush1.bf16.msra.mxu0 %v19656_v20  ;;  %2218 = vmatpush1.bf16.msra.mxu1 %v19658_v21  ;;  %v19700_v20 = vcombine.low %v1451_v62, %v1455_v63  ;;  %v1467_v21 = vld [vmem:[#allocation7 + $0x180] sm:$0xff]  ;;  %v1442_v62 = vld [vmem:[#allocation7 + $0xb8] sm:$0xff] }
 0x42f   : > { %2146 = vmatprep.subr.bf16.mxu0 %v19665_v25  ;;  %2219 = vmatprep.subr.bf16.mxu1 %v19667_v26  ;;  %v1472_v25 = vld [vmem:[#allocation7 + $0x1a8] sm:$0xff]  ;;  %v19709_v26 = vcombine.high %v1459_v10, %v1463_v12  ;;  %v19717_v37 = vcombine.high %v1467_v21, %v1471_v22  ;;  %v1450_v10 = vld [vmem:[#allocation7 + $0xf8] sm:$0xff] }
 0x430   : > { %2164 = vmatprep.mubr.bf16.mxu0 %v26126_v53  ;;  %2237 = vmatprep.mubr.bf16.mxu1 %v26126_v53 }
 0x432   : > { %2147 = vmatpush1.bf16.msra.mxu0 %v19664_v32  ;;  %2220 = vmatpush1.bf16.msra.mxu1 %v19666_v33  ;;  %v19710_v32 = vcombine.low %v1460_v14, %v1464_v15  ;;  %v1475_v33 = vld [vmem:[#allocation7 + $0x1c0] sm:$0xff] }
 0x433   : > { %2598 = vmatprep.subr.bf16.mxu0 %v19669_v38  ;;  %2671 = vmatprep.subr.bf16.mxu1 %v19671_v39  ;;  %v19719_v38 = vcombine.high %v1468_v23, %v1472_v25  ;;  %v19716_v39 = vcombine.low %v1467_v21, %v1471_v22  ;;  %v1458_v21 = vld [vmem:[#allocation7 + $0x138] sm:$0xff] }
 0x435   : > { %2165 = vmatmul.mubr.bf16.vlgmr.msra.gmra.mrb[24].mxu0 %v26881_v7  ;;  %2238 = vmatmul.mubr.bf16.vlgmr.msra.gmra.mrb[24].mxu1 %v26881_v7  ;;  %v19686_v7 = vcombine.low %v1436_v46, %v1440_v47  ;;  %v19725_v46 = vcombine.high %v1475_v33, %v1479_v34  ;;  %v19727_v47 = vcombine.high %v1476_v35, %v1480_v36 }
 0x436   : > { %2599 = vmatpush1.bf16.msra.mxu0 %v19668_v40  ;;  %2672 = vmatpush1.bf16.msra.mxu1 %v19670_v41  ;;  %v1421_v40 = vld [vmem:[#allocation7 + $0x10] sm:$0xff] }
 0x437   : > { %2600 = vmatprep.subr.bf16.mxu0 %v19677_v48  ;;  %2673 = vmatprep.subr.bf16.mxu1 %v19679_v49  ;;  %v1425_v41 = vld [vmem:[#allocation7 + $0x30] sm:$0xff]  ;;  %v19724_v48 = vcombine.low %v1475_v33, %v1479_v34  ;;  %v19726_v49 = vcombine.low %v1476_v35, %v1480_v36  ;;  %v1466_v33 = vld [vmem:[#allocation7 + $0x178] sm:$0xff] }
 0x438   : > { %2174 = vmatprep.mubr.bf16.mxu0 %v26126_v53  ;;  %2247 = vmatprep.mubr.bf16.mxu1 %v26126_v53  ;;  %v19673_v55 = vcombine.high %v1421_v40, %v1425_v41 }
 0x43a   : > { %2601 = vmatpush1.bf16.msra.mxu0 %v19676_v50  ;;  %2674 = vmatpush1.bf16.msra.mxu1 %v19678_v51  ;;  %v1429_v50 = vld [vmem:[#allocation7 + $0x50] sm:$0xff] }
 0x43b   : > { %2602 = vmatprep.subr.bf16.mxu0 %v19685_v57  ;;  %2675 = vmatprep.subr.bf16.mxu1 %v19687_v60  ;;  %v1433_v51 = vld [vmem:[#allocation7 + $0x70] sm:$0xff]  ;;  %v19672_v57 = vcombine.low %v1421_v40, %v1425_v41  ;;  %v1474_v40 = vld [vmem:[#allocation7 + $0x1b8] sm:$0xff] }
 0x43c   : > { %v1437_v60 = vld [vmem:[#allocation7 + $0x90] sm:$0xff]  ;;  %v19681_v63 = vcombine.high %v1429_v50, %v1433_v51 }
 0x43d   : > { %2175 = vmatmul.mubr.bf16.gmra.mrb[28].mxu0 %v26887_v27  ;;  %2248 = vmatmul.mubr.bf16.gmra.mrb[28].mxu1 %v26887_v27  ;;  %v19702_v27 = vcombine.low %v1452_v0, %v1456_v1  ;;  %v19683_v0 = vcombine.high %v1430_v52, %v1434_v54  ;;  %v19680_v1 = vcombine.low %v1429_v50, %v1433_v51  ;;  %v1482_v50 = vld [vmem:[#allocation7 + $0x1f8] sm:$0xff] }
 0x43e   : > { %2603 = vmatpush1.bf16.msra.mxu0 %v19684_v61  ;;  %2676 = vmatpush1.bf16.msra.mxu1 %v19686_v7  ;;  %v1441_v61 = vld [vmem:[#allocation7 + $0xb0] sm:$0xff]  ;;  %v1438_v7 = vld [vmem:[#allocation7 + $0x98] sm:$0xff] }
 0x43f   : > { %2604 = vmatprep.subr.bf16.mxu0 %v19693_v2  ;;  %2677 = vmatprep.subr.bf16.mxu1 %v19695_v4  ;;  %v19682_v2 = vcombine.low %v1430_v52, %v1434_v54  ;;  %v1445_v4 = vld [vmem:[#allocation7 + $0xd0] sm:$0xff]  ;;  %v19689_v12 = vcombine.high %v1437_v60, %v1441_v61  ;;  %v19691_v14 = vcombine.high %v1438_v7, %v1442_v62 }
 0x440   : > { %2184 = vmatprep.mubr.bf16.mxu0 %v26126_v53  ;;  %2257 = vmatprep.mubr.bf16.mxu1 %v26126_v53  ;;  %v19688_v15 = vcombine.low %v1437_v60, %v1441_v61 }
 0x442   : > { %2605 = vmatpush1.bf16.msra.mxu0 %v19692_v6  ;;  %2678 = vmatpush1.bf16.msra.mxu1 %v19694_v9  ;;  %v1449_v6 = vld [vmem:[#allocation7 + $0xf0] sm:$0xff]  ;;  %v1446_v9 = vld [vmem:[#allocation7 + $0xd8] sm:$0xff] }
 0x443   : > { %2606 = vmatprep.subr.bf16.mxu0 %v19701_v17  ;;  %2679 = vmatprep.subr.bf16.mxu1 %v19703_v18  ;;  %v19690_v17 = vcombine.low %v1438_v7, %v1442_v62  ;;  %v1453_v18 = vld [vmem:[#allocation7 + $0x110] sm:$0xff]  ;;  %v19697_v22 = vcombine.high %v1445_v4, %v1449_v6 }
 0x445   : > { %2185 = vmatmul.mubr.bf16.gmra.mrb[32].mxu0 %v26893_v42  ;;  %2258 = vmatmul.mubr.bf16.gmra.mrb[32].mxu1 %v26893_v42  ;;  %v19718_v42 = vcombine.low %v1468_v23, %v1472_v25  ;;  %v19699_v23 = vcombine.high %v1446_v9, %v1450_v10  ;;  %v19696_v25 = vcombine.low %v1445_v4, %v1449_v6  ;;  %v3026_v4 = vld [vmem:[#allocation7 + $0x488] sm:$0xff] }
 0x446   : > { %2607 = vmatpush1.bf16.msra.mxu0 %v19700_v20  ;;  %2680 = vmatpush1.bf16.msra.mxu1 %v19702_v27  ;;  %v1457_v20 = vld [vmem:[#allocation7 + $0x130] sm:$0xff]  ;;  %v1454_v27 = vld [vmem:[#allocation7 + $0x118] sm:$0xff]  ;;  %v3030_v6 = vld [vmem:[#allocation7 + $0x4a8] sm:$0xff] }
 0x447   : > { %2608 = vmatprep.subr.bf16.mxu0 %v19709_v26  ;;  %2681 = vmatprep.subr.bf16.mxu1 %v19711_v28  ;;  %v19698_v26 = vcombine.low %v1446_v9, %v1450_v10  ;;  %v1461_v28 = vld [vmem:[#allocation7 + $0x150] sm:$0xff]  ;;  %v19705_v34 = vcombine.high %v1453_v18, %v1457_v20  ;;  %v19707_v35 = vcombine.high %v1454_v27, %v1458_v21  ;;  %v3034_v10 = vld [vmem:[#allocation7 + $0x4c8] sm:$0xff] }
 0x448   : > { %2194 = vmatprep.mubr.bf16.mxu0 %v26126_v53  ;;  %2267 = vmatprep.mubr.bf16.mxu1 %v26126_v53  ;;  %v19704_v36 = vcombine.low %v1453_v18, %v1457_v20  ;;  %v3054_v18 = vld [vmem:[#allocation7 + $0x568] sm:$0xff] }
 0x449   : > { %v3058_v20 = vld [vmem:[#allocation7 + $0x588] sm:$0xff] }
 0x44a   : > { %2609 = vmatpush1.bf16.msra.mxu0 %v19708_v31  ;;  %2682 = vmatpush1.bf16.msra.mxu1 %v19710_v32  ;;  %v1465_v31 = vld [vmem:[#allocation7 + $0x170] sm:$0xff]  ;;  %v1462_v32 = vld [vmem:[#allocation7 + $0x158] sm:$0xff] }
 0x44b   : > { %2610 = vmatprep.subr.bf16.mxu0 %v19717_v37  ;;  %2683 = vmatprep.subr.bf16.mxu1 %v19719_v38  ;;  %v19706_v37 = vcombine.low %v1454_v27, %v1458_v21  ;;  %v1469_v38 = vld [vmem:[#allocation7 + $0x190] sm:$0xff]  ;;  %v19713_v41 = vcombine.high %v1461_v28, %v1465_v31  ;;  %v3062_v27 = vld [vmem:[#allocation7 + $0x5a8] sm:$0xff]  ;;  %v2891_v21 = vld [vmem:[#allocation5 + $0x80] sm:$0xff] }
 0x44d   : > { %2195 = vmatmul.mubr.bf16.gmra.mrb[36].mxu0 %v26899_v58  ;;  %2268 = vmatmul.mubr.bf16.gmra.mrb[36].mxu1 %v26899_v58  ;;  %v19674_v58 = vcombine.low %v1422_v43, %v1426_v45  ;;  %v19715_v43 = vcombine.high %v1462_v32, %v1466_v33  ;;  %v19712_v45 = vcombine.low %v1461_v28, %v1465_v31  ;;  %v3021_v28 = vld [vmem:[#allocation7 + $0x460] sm:$0xff]  ;;  %v2892_v31 = vld [vmem:[#allocation5 + $0x88] sm:$0xff] }
 0x44e   : > { %2611 = vmatpush1.bf16.msra.mxu0 %v19716_v39  ;;  %2684 = vmatpush1.bf16.msra.mxu1 %v19718_v42  ;;  %v1473_v39 = vld [vmem:[#allocation7 + $0x1b0] sm:$0xff]  ;;  %v1470_v42 = vld [vmem:[#allocation7 + $0x198] sm:$0xff] }
 0x44f   : > { %2612 = vmatprep.subr.bf16.mxu0 %v19725_v46  ;;  %2685 = vmatprep.subr.bf16.mxu1 %v19727_v47  ;;  %v19714_v46 = vcombine.low %v1462_v32, %v1466_v33  ;;  %v1477_v47 = vld [vmem:[#allocation7 + $0x1d0] sm:$0xff]  ;;  %v19721_v51 = vcombine.high %v1469_v38, %v1473_v39  ;;  %v19723_v52 = vcombine.high %v1470_v42, %v1474_v40 }
 0x450   : > { %2630 = vmatprep.mubr.bf16.mxu0 %v26126_v53  ;;  %2703 = vmatprep.mubr.bf16.mxu1 %v26126_v53  ;;  %v19720_v54 = vcombine.low %v1469_v38, %v1473_v39  ;;  %v19782_v32 = vcombine.low %v3058_v20, %v3062_v27  ;;  %v2893_v33 = vld [vmem:[#allocation5 + $0x90] sm:$0xff]  ;;  %v3033_v39 = vld [vmem:[#allocation7 + $0x4c0] sm:$0xff] }
 0x452   : > { %2613 = vmatpush1.bf16.msra.mxu0 %v19724_v48  ;;  %2686 = vmatpush1.bf16.msra.mxu1 %v19726_v49  ;;  %v1481_v48 = vld [vmem:[#allocation7 + $0x1f0] sm:$0xff]  ;;  %v1478_v49 = vld [vmem:[#allocation7 + $0x1d8] sm:$0xff] }
 0x453   : > { %2744 = vmatprep.subr.bf16.mxu0 %v19673_v55  ;;  %2817 = vmatprep.subr.bf16.mxu1 %v19675_v56  ;;  %v19722_v55 = vcombine.low %v1470_v42, %v1474_v40  ;;  %v3010_v56 = vld [vmem:[#allocation7 + $0x408] sm:$0xff]  ;;  %v19731_v60 = vcombine.high %v1478_v49, %v1482_v50  ;;  %v19728_v61 = vcombine.low %v1477_v47, %v1481_v48  ;;  %v3037_v42 = vld [vmem:[#allocation7 + $0x4e0] sm:$0xff] }
 0x454   : > { %v19730_v7 = vcombine.low %v1478_v49, %v1482_v50  ;;  %v19756_v49 = vcombine.low %v3033_v39, %v3037_v42  ;;  %v3049_v50 = vld [vmem:[#allocation7 + $0x540] sm:$0xff] }
 0x455   : > { %2631 = vmatmul.mubr.bf16.vlgmr.msra.gmra.mrb[8].mxu0 %v26883_v11  ;;  %2704 = vmatmul.mubr.bf16.vlgmr.msra.gmra.mrb[8].mxu1 %v26883_v11 }
 0x456   : > { %2745 = vmatpush1.bf16.msra.mxu0 %v19672_v57  ;;  %2818 = vmatpush1.bf16.msra.mxu1 %v19674_v58  ;;  %v3014_v57 = vld [vmem:[#allocation7 + $0x428] sm:$0xff]  ;;  %v19729_v58 = vcombine.high %v1477_v47, %v1481_v48  ;;  %v19757_v47 = vcombine.high %v3033_v39, %v3037_v42  ;;  %v2898_v48 = vld [vmem:[#allocation5 + $0xb8] sm:$0xff] }
 0x457   : > { %2746 = vmatprep.subr.bf16.mxu0 %v19681_v63  ;;  %2819 = vmatprep.subr.bf16.mxu1 %v19683_v0  ;;  %v19735_v62 = vcombine.high %v3010_v56, %v3014_v57  ;;  %v3018_v63 = vld [vmem:[#allocation7 + $0x448] sm:$0xff] }
 0x458   : > { %2640 = vmatprep.mubr.bf16.mxu0 %v26126_v53  ;;  %2713 = vmatprep.mubr.bf16.mxu1 %v26126_v53  ;;  %v3022_v0 = vld [vmem:[#allocation7 + $0x468] sm:$0xff] }
 0x459   : > { %v19742_v9 = vcombine.low %v3018_v63, %v3022_v0 }
 0x45a   : > { %2747 = vmatpush1.bf16.msra.mxu0 %v19680_v1  ;;  %2820 = vmatpush1.bf16.msra.mxu1 %v19682_v2  ;;  %v19734_v1 = vcombine.low %v3010_v56, %v3014_v57  ;;  %v19743_v2 = vcombine.high %v3018_v63, %v3022_v0  ;;  %v3061_v56 = vld [vmem:[#allocation7 + $0x5a0] sm:$0xff]  ;;  %v3066_v63 = vld [vmem:[#allocation7 + $0x5c8] sm:$0xff] }
 0x45b   : > { %2748 = vmatprep.subr.bf16.mxu0 %v19689_v12  ;;  %2821 = vmatprep.subr.bf16.mxu1 %v19691_v14  ;;  %v3038_v12 = vld [vmem:[#allocation7 + $0x4e8] sm:$0xff] }
 0x45c   : > { %v19759_v14 = vcombine.high %v3034_v10, %v3038_v12 }
 0x45d   : > { %2641 = vmatmul.mubr.bf16.gmra.mrb[12].mxu0 %v26889_v30  ;;  %2714 = vmatmul.mubr.bf16.gmra.mrb[12].mxu1 %v26889_v30 }
 0x45e   : > { %2749 = vmatpush1.bf16.msra.mxu0 %v19688_v15  ;;  %2822 = vmatpush1.bf16.msra.mxu1 %v19690_v17  ;;  %v3046_v15 = vld [vmem:[#allocation7 + $0x528] sm:$0xff] }
 0x45f   : > { %2750 = vmatprep.subr.bf16.mxu0 %v19697_v22  ;;  %2823 = vmatprep.subr.bf16.mxu1 %v19699_v23  ;;  %v3050_v17 = vld [vmem:[#allocation7 + $0x548] sm:$0xff]  ;;  %v3013_v22 = vld [vmem:[#allocation7 + $0x420] sm:$0xff] }
 0x460   : > { %2650 = vmatprep.mubr.bf16.mxu0 %v26126_v53  ;;  %2723 = vmatprep.mubr.bf16.mxu1 %v26126_v53  ;;  %v19774_v23 = vcombine.low %v3050_v17, %v3054_v18 }
 0x462   : > { %2751 = vmatpush1.bf16.msra.mxu0 %v19696_v25  ;;  %2824 = vmatpush1.bf16.msra.mxu1 %v19698_v26  ;;  %v19783_v25 = vcombine.high %v3058_v20, %v3062_v27  ;;  %v3017_v26 = vld [vmem:[#allocation7 + $0x440] sm:$0xff]  ;;  %v3027_v27 = vld [vmem:[#allocation7 + $0x490] sm:$0xff] }
 0x463   : > { %2752 = vmatprep.subr.bf16.mxu0 %v19705_v34  ;;  %2825 = vmatprep.subr.bf16.mxu1 %v19707_v35  ;;  %v3025_v34 = vld [vmem:[#allocation7 + $0x480] sm:$0xff]  ;;  %v19740_v38 = vcombine.low %v3017_v26, %v3021_v28 }
 0x464   : > { %v3029_v35 = vld [vmem:[#allocation7 + $0x4a0] sm:$0xff] }
 0x465   : > { %2651 = vmatmul.mubr.bf16.gmra.mrb[16].mxu0 %v26895_v44  ;;  %2724 = vmatmul.mubr.bf16.gmra.mrb[16].mxu1 %v26895_v44  ;;  %v19749_v40 = vcombine.high %v3025_v34, %v3029_v35 }
 0x466   : > { %2753 = vmatpush1.bf16.msra.mxu0 %v19704_v36  ;;  %2826 = vmatpush1.bf16.msra.mxu1 %v19706_v37  ;;  %v2894_v36 = vld [vmem:[#allocation5 + $0x98] sm:$0xff]  ;;  %v2895_v37 = vld [vmem:[#allocation5 + $0xa0] sm:$0xff] }
 0x467   : > { %2754 = vmatprep.subr.bf16.mxu0 %v19713_v41  ;;  %2827 = vmatprep.subr.bf16.mxu1 %v19715_v43  ;;  %v2896_v41 = vld [vmem:[#allocation5 + $0xa8] sm:$0xff]  ;;  %v2897_v43 = vld [vmem:[#allocation5 + $0xb0] sm:$0xff] }
 0x468   : > { %2660 = vmatprep.mubr.bf16.mxu0 %v26126_v53  ;;  %2733 = vmatprep.mubr.bf16.mxu1 %v26126_v53 }
 0x46a   : > { %2755 = vmatpush1.bf16.msra.mxu0 %v19712_v45  ;;  %2828 = vmatpush1.bf16.msra.mxu1 %v19714_v46  ;;  %v3041_v45 = vld [vmem:[#allocation7 + $0x500] sm:$0xff] }
 0x46b   : > { %2756 = vmatprep.subr.bf16.mxu0 %v19721_v51  ;;  %2829 = vmatprep.subr.bf16.mxu1 %v19723_v52  ;;  %v3045_v46 = vld [vmem:[#allocation7 + $0x520] sm:$0xff] }
 0x46c   : > { %v3053_v51 = vld [vmem:[#allocation7 + $0x560] sm:$0xff]  ;;  %v19765_v52 = vcombine.high %v3041_v45, %v3045_v46 }
 0x46d   : > { %2661 = vmatmul.mubr.bf16.gmra.mrb[20].mxu0 %v26901_v59  ;;  %2734 = vmatmul.mubr.bf16.gmra.mrb[20].mxu1 %v26901_v59  ;;  %v19773_v57 = vcombine.high %v3049_v50, %v3053_v51 }
 0x46e   : > { %2757 = vmatpush1.bf16.msra.mxu0 %v19720_v54  ;;  %2830 = vmatpush1.bf16.msra.mxu1 %v19722_v55  ;;  %v19764_v54 = vcombine.low %v3041_v45, %v3045_v46  ;;  %v3057_v55 = vld [vmem:[#allocation7 + $0x580] sm:$0xff] }
 0x46f   : > { %2758 = vmatprep.subr.bf16.mxu0 %v19729_v58  ;;  %2831 = vmatprep.subr.bf16.mxu1 %v19731_v60  ;;  %v19772_v58 = vcombine.low %v3049_v50, %v3053_v51  ;;  %v19781_v60 = vcombine.high %v3057_v55, %v3061_v56 }
 0x470   : > { %2776 = vmatprep.mubr.bf16.mxu0 %v26126_v53  ;;  %2849 = vmatprep.mubr.bf16.mxu1 %v26126_v53 }
 0x472   : > { %2759 = vmatpush1.bf16.msra.mxu0 %v19728_v61  ;;  %2832 = vmatpush1.bf16.msra.mxu1 %v19730_v7  ;;  %v19780_v61 = vcombine.low %v3057_v55, %v3061_v56  ;;  %v3065_v7 = vld [vmem:[#allocation7 + $0x5c0] sm:$0xff]  ;;  %v3052_v55 = vld [vmem:[#allocation7 + $0x558] sm:$0xff] }
 0x473   : > { %21981 = vmatprep.subr.bf16.mxu0 %v26818_v3  ;;  %3466 = vmatprep.subr.bf16.mxu1 %v19735_v62  ;;  %v3069_v62 = vld [vmem:[#allocation7 + $0x5e0] sm:$0xff]  ;;  %v3056_v56 = vld [vmem:[#allocation7 + $0x578] sm:$0xff] }
 0x474   : > { %v19789_v0 = vcombine.high %v3065_v7, %v3069_v62 }
 0x475   : > { %2777 = vmatmul.mubr.bf16.vlgmr.msra.gmra.mrb[24].mxu0 %v26883_v11  ;;  %2850 = vmatmul.mubr.bf16.vlgmr.msra.gmra.mrb[24].mxu1 %v26883_v11  ;;  %v19751_v11 = vcombine.high %v3026_v4, %v3030_v6 }
 0x476   : > { %21983 = vmatpush3.bf16.msra.mxu0 %v26818_v3  ;;  %2786 = vmatprep.mubr.bf16.mxu0 %v26126_v53  ;;  %v19750_v3 = vcombine.low %v3026_v4, %v3030_v6 }
 0x477   : > { %21985 = vmatprep.subr.bf16.mxu0 %v26821_v5  ;;  %2859 = vmatprep.mubr.bf16.mxu1 %v26126_v53 }
 0x478   : > { %3467 = vmatpush1.bf16.msra.mxu1 %v19734_v1  ;;  %v3070_v1 = vld [vmem:[#allocation7 + $0x5e8] sm:$0xff] }
 0x479   : > { %3468 = vmatprep.subr.bf16.mxu1 %v19743_v2  ;;  %v19788_v2 = vcombine.low %v3065_v7, %v3069_v62  ;;  %v19790_v4 = vcombine.low %v3066_v63, %v3070_v1  ;;  %v19791_v6 = vcombine.high %v3066_v63, %v3070_v1  ;;  %v3059_v62 = vld [vmem:[#allocation7 + $0x590] sm:$0xff]  ;;  %v3064_v1 = vld [vmem:[#allocation7 + $0x5b8] sm:$0xff] }
 0x47a   : > { %21987 = vmatpush3.bf16.msra.mxu0 %v26821_v5  ;;  %v3042_v5 = vld [vmem:[#allocation7 + $0x508] sm:$0xff]  ;;  %v3063_v63 = vld [vmem:[#allocation7 + $0x5b0] sm:$0xff] }
 0x47b   : > { %21989 = vmatprep.subr.bf16.mxu0 %v26830_v8 }
 0x47c   : > { %3469 = vmatpush1.bf16.msra.mxu1 %v19742_v9  ;;  %v3011_v9 = vld [vmem:[#allocation7 + $0x410] sm:$0xff] }
 0x47d   : > { %2787 = vmatmul.mubr.bf16.gmra.mrb[28].mxu0 %v26889_v30  ;;  %2860 = vmatmul.mubr.bf16.gmra.mrb[28].mxu1 %v26889_v30  ;;  %v19758_v30 = vcombine.low %v3034_v10, %v3038_v12  ;;  %v3015_v10 = vld [vmem:[#allocation7 + $0x430] sm:$0xff]  ;;  %v3012_v12 = vld [vmem:[#allocation7 + $0x418] sm:$0xff] }
 0x47e   : > { %21991 = vmatpush3.bf16.msra.mxu0 %v26830_v8  ;;  %2796 = vmatprep.mubr.bf16.mxu0 %v26126_v53  ;;  %v19767_v8 = vcombine.high %v3042_v5, %v3046_v15 }
 0x47f   : > { %21993 = vmatprep.subr.bf16.mxu0 %v26838_v13  ;;  %2869 = vmatprep.mubr.bf16.mxu1 %v26126_v53 }
 0x480   : > { %3470 = vmatprep.subr.bf16.mxu1 %v19751_v11  ;;  %v19737_v11 = vcombine.high %v3011_v9, %v3015_v10 }
 0x481   : > { %3471 = vmatpush1.bf16.msra.mxu1 %v19750_v3  ;;  %v3016_v3 = vld [vmem:[#allocation7 + $0x438] sm:$0xff] }
 0x482   : > { %21995 = vmatpush3.bf16.msra.mxu0 %v26838_v13  ;;  %3472 = vmatprep.subr.bf16.mxu1 %v19759_v14  ;;  %v19766_v13 = vcombine.low %v3042_v5, %v3046_v15  ;;  %v19736_v14 = vcombine.low %v3011_v9, %v3015_v10  ;;  %v19738_v5 = vcombine.low %v3012_v12, %v3016_v3  ;;  %v3067_v10 = vld [vmem:[#allocation7 + $0x5d0] sm:$0xff] }
 0x483   : > { %21997 = vmatprep.subr.bf16.mxu0 %v26846_v16  ;;  %v19739_v15 = vcombine.high %v3012_v12, %v3016_v3  ;;  %v19778_v9 = vcombine.low %v3052_v55, %v3056_v56  ;;  %v3071_v12 = vld [vmem:[#allocation7 + $0x5f0] sm:$0xff]  ;;  %v3072_v3 = vld [vmem:[#allocation7 + $0x5f8] sm:$0xff] }
 0x485   : > { %2797 = vmatmul.mubr.bf16.gmra.mrb[32].mxu0 %v26895_v44  ;;  %2870 = vmatmul.mubr.bf16.gmra.mrb[32].mxu1 %v26895_v44  ;;  %v3009_v44 = vld [vmem:[#allocation7 + $0x400] sm:$0xff] }
 0x486   : > { %21999 = vmatpush3.bf16.msra.mxu0 %v26846_v16  ;;  %2806 = vmatprep.mubr.bf16.mxu0 %v26126_v53  ;;  %v19775_v16 = vcombine.high %v3050_v17, %v3054_v18  ;;  %v3020_v17 = vld [vmem:[#allocation7 + $0x458] sm:$0xff] }
 0x487   : > { %22001 = vmatprep.subr.bf16.mxu0 %v26854_v19  ;;  %2879 = vmatprep.mubr.bf16.mxu1 %v26126_v53  ;;  %v3024_v18 = vld [vmem:[#allocation7 + $0x478] sm:$0xff] }
 0x488   : > { %3473 = vmatpush1.bf16.msra.mxu1 %v19758_v30  ;;  %v3019_v30 = vld [vmem:[#allocation7 + $0x450] sm:$0xff] }
 0x489   : > { %3474 = vmatprep.subr.bf16.mxu1 %v19767_v8  ;;  %v3023_v8 = vld [vmem:[#allocation7 + $0x470] sm:$0xff] }
 0x48a   : > { %22003 = vmatpush3.bf16.msra.mxu0 %v26854_v19  ;;  %v19733_v19 = vcombine.high %v3009_v44, %v3013_v22 }
 0x48b   : > { %22005 = vmatprep.subr.bf16.mxu0 %v26864_v24 }
 0x48c   : > { %3475 = vmatpush1.bf16.msra.mxu1 %v19766_v13 }
 0x48d   : > { %2807 = vmatmul.mubr.bf16.gmra.mrb[36].mxu0 %v26901_v59  ;;  %2880 = vmatmul.mubr.bf16.gmra.mrb[36].mxu1 %v26901_v59  ;;  %v19732_v59 = vcombine.low %v3009_v44, %v3013_v22  ;;  %v3028_v44 = vld [vmem:[#allocation7 + $0x498] sm:$0xff] }
 0x48e   : > { %22007 = vmatpush3.bf16.msra.mxu0 %v26864_v24  ;;  %21745 = vmatprep.mubr.f32.mxu0 %v2891_v21  ;;  %v19741_v24 = vcombine.high %v3017_v26, %v3021_v28  ;;  %v3031_v21 = vld [vmem:[#allocation7 + $0x4b0] sm:$0xff]  ;;  %v3032_v22 = vld [vmem:[#allocation7 + $0x4b8] sm:$0xff] }
 0x48f   : > { %22009 = vmatprep.subr.bf16.mxu0 %v26870_v29  ;;  %3476 = vmatprep.subr.bf16.mxu1 %v19775_v16  ;;  %v19754_v39 = vcombine.low %v3028_v44, %v3032_v22 }
 0x490   : > { %3477 = vmatpush1.bf16.msra.mxu1 %v19774_v23  ;;  %3498 = vmatprep.mubr.bf16.mxu1 %v26126_v53  ;;  %v19745_v23 = vcombine.high %v3019_v30, %v3023_v8 }
 0x491   : > { %3478 = vmatprep.subr.bf16.mxu1 %v19783_v25  ;;  %v19747_v25 = vcombine.high %v3020_v17, %v3024_v18 }
 0x492   : > { %22011 = vmatpush3.bf16.msra.mxu0 %v26870_v29  ;;  %v19748_v29 = vcombine.low %v3025_v34, %v3029_v35  ;;  %v3040_v34 = vld [vmem:[#allocation7 + $0x4f8] sm:$0xff] }
 0x493   : > { %3393 = vmatprep.subr.bf16.mxu0 %v19733_v19  ;;  %v19744_v19 = vcombine.low %v3019_v30, %v3023_v8  ;;  %v19793_v8 = vcombine.high %v3067_v10, %v3071_v12 }
 0x494   : > { %3479 = vmatpush1.bf16.msra.mxu1 %v19782_v32  ;;  %v3035_v32 = vld [vmem:[#allocation7 + $0x4d0] sm:$0xff] }
 0x495   : > { %21746 = vmatmul.mubr.f32.vlgmr.msra.gmra.mrb[40].mxu0 %v2892_v31  ;;  %3480 = vmatprep.subr.bf16.mxu1 %v19791_v6  ;;  %v19746_v31 = vcombine.low %v3020_v17, %v3024_v18  ;;  %v19792_v18 = vcombine.low %v3067_v10, %v3071_v12 }
 0x496   : > { %21748 = vmatprep.mubr.f32.mxu0 %v2893_v33  ;;  %3394 = vmatpush1.bf16.msra.mxu0 %v19732_v59  ;;  %v3039_v33 = vld [vmem:[#allocation7 + $0x4f0] sm:$0xff]  ;;  %v3036_v59 = vld [vmem:[#allocation7 + $0x4d8] sm:$0xff] }
 0x497   : > { %3395 = vmatprep.subr.bf16.mxu0 %v19741_v24  ;;  %v19753_v24 = vcombine.high %v3027_v27, %v3031_v21  ;;  %v19761_v46 = vcombine.high %v3035_v32, %v3039_v33  ;;  %v19762_v50 = vcombine.low %v3036_v59, %v3040_v34 }
 0x498   : > { %3481 = vmatpush1.bf16.msra.mxu1 %v19790_v4  ;;  %v19779_v4 = vcombine.high %v3052_v55, %v3056_v56 }
 0x499   : > { %21749 = vmatmul.mubr.f32.gmra.mrb[42].mxu0 %v2894_v36  ;;  %3612 = vmatprep.subr.bf16.mxu1 %v19739_v15  ;;  %v19755_v36 = vcombine.high %v3028_v44, %v3032_v22  ;;  %v19784_v15 = vcombine.low %v3059_v62, %v3063_v63 }
 0x49a   : > { %21751 = vmatprep.mubr.f32.mxu0 %v2895_v37  ;;  %3396 = vmatpush1.bf16.msra.mxu0 %v19740_v38  ;;  %v19752_v38 = vcombine.low %v3027_v27, %v3031_v21  ;;  %v3751_v27 = vlaneseq }
 0x49b   : > { %3397 = vmatprep.subr.bf16.mxu0 %v19749_v40  ;;  %v3043_v40 = vld [vmem:[#allocation7 + $0x510] sm:$0xff] }
 0x49c   : > { %v27017_v21 = vshrl.u32 %v3751_v27, 7 }
 0x49d   : > { %21752 = vmatmul.mubr.f32.gmra.mrb[44].mxu0 %v2896_v41  ;;  %v3047_v41 = vld [vmem:[#allocation7 + $0x530] sm:$0xff] }
 0x49e   : > { %21754 = vmatprep.mubr.f32.mxu0 %v2897_v43  ;;  %3398 = vmatpush1.bf16.msra.mxu0 %v19748_v29  ;;  %v3044_v43 = vld [vmem:[#allocation7 + $0x518] sm:$0xff]  ;;  %v27020_v44 = vsub.s32 0, %v27017_v21  ;;  %v27023_v22 = vsub.s32 2, %v27017_v21 }
 0x49f   : > { %3399 = vmatprep.subr.bf16.mxu0 %v19757_v47  ;;  %v3048_v29 = vld [vmem:[#allocation7 + $0x538] sm:$0xff]  ;;  %v19763_v47 = vcombine.high %v3036_v59, %v3040_v34 }
 0x4a0   : > { %v19770_v7 = vcombine.low %v3044_v43, %v3048_v29 }
 0x4a1   : > { %21755 = vmatmul.mubr.f32.gmra.mrb[46].mxu0 %v2898_v48 }
 0x4a2   : > { %3400 = vmatpush1.bf16.msra.mxu0 %v19756_v49  ;;  %3425 = vmatprep.mubr.bf16.mxu0 %v26126_v53  ;;  %v19760_v49 = vcombine.low %v3035_v32, %v3039_v33 }
 0x4a3   : > { %3401 = vmatprep.subr.bf16.mxu0 %v19765_v52  ;;  %v3051_v52 = vld [vmem:[#allocation7 + $0x550] sm:$0xff] }
 0x4a6   : > { %3402 = vmatpush1.bf16.msra.mxu0 %v19764_v54  ;;  %v3055_v54 = vld [vmem:[#allocation7 + $0x570] sm:$0xff] }
 0x4a7   : > { %3403 = vmatprep.subr.bf16.mxu0 %v19773_v57  ;;  %v19769_v57 = vcombine.high %v3043_v40, %v3047_v41  ;;  %v19776_v6 = vcombine.low %v3051_v52, %v3055_v54 }
 0x4aa   : > { %3404 = vmatpush1.bf16.msra.mxu0 %v19772_v58  ;;  %v19771_v58 = vcombine.high %v3044_v43, %v3048_v29 }
 0x4ab   : > { %3405 = vmatprep.subr.bf16.mxu0 %v19781_v60 }
 0x4ae   : > { %3406 = vmatpush1.bf16.msra.mxu0 %v19780_v61  ;;  %v19768_v61 = vcombine.low %v3043_v40, %v3047_v41 }
 0x4af   : > { %3407 = vmatprep.subr.bf16.mxu0 %v19789_v0  ;;  %v3060_v0 = vld [vmem:[#allocation7 + $0x598] sm:$0xff] }
 0x4b0   : > { %v19786_v30 = vcombine.low %v3060_v0, %v3064_v1 }
 0x4b2   : > { %3408 = vmatpush1.bf16.msra.mxu0 %v19788_v2  ;;  %v19777_v2 = vcombine.high %v3051_v52, %v3055_v54 }
 0x4b3   : > { %3539 = vmatprep.subr.bf16.mxu0 %v19737_v11  ;;  %v3068_v11 = vld [vmem:[#allocation7 + $0x5d8] sm:$0xff] }
 0x4b4   : > { %v19795_v17 = vcombine.high %v3068_v11, %v3072_v3 }
 0x568   : > { %v21747_v13 = vpop.f32.mrb[40].mxu0 }
 0x569   : > { %v2965_v20 = vpop.f32.mrb[41].mxu0 }
 0x56a   : > { %v26977_v16 = vpack.c.bf16 %v21747_v13, %v2965_v20  ;;  %v19794_v13 = vcombine.low %v3068_v11, %v3072_v3  ;;  %v26127_v20 = vmov 0.0  }
 0x56c   : > { %3426 = vmatmul.mubr.bf16.vlgmr.msra.gmra.mrb[8].mxu0 %v26977_v16  ;;  %3499 = vmatmul.mubr.bf16.vlgmr.msra.gmra.mrb[8].mxu1 %v26977_v16  ;;  %v21750_v26 = vpop.f32.mrb[42].mxu0 }
 0x56d   : > { %3540 = vmatpush1.bf16.msra.mxu0 %v19736_v14  ;;  %3613 = vmatpush1.bf16.msra.mxu1 %v19738_v5  ;;  %v2975_v28 = vpop.f32.mrb[43].mxu0  ;;  %v19785_v14 = vcombine.high %v3059_v62, %v3063_v63  ;;  %v19787_v5 = vcombine.high %v3060_v0, %v3064_v1 }
 0x56e   : > { %v26981_v35 = vpack.c.bf16 %v21750_v26, %v2975_v28  ;;  %3541 = vmatprep.subr.bf16.mxu0 %v19745_v23  ;;  %3614 = vmatprep.subr.bf16.mxu1 %v19747_v25  ;;  %v27031_v23 = vsub.s32 3, %v27017_v21 }
 0x56f   : > { %3435 = vmatprep.mubr.bf16.mxu0 %v26126_v53  ;;  %3508 = vmatprep.mubr.bf16.mxu1 %v26126_v53 }
 0x570   : > { %v21753_v37 = vpop.f32.mrb[44].mxu0 }
 0x571   : > { %3542 = vmatpush1.bf16.msra.mxu0 %v19744_v19  ;;  %3615 = vmatpush1.bf16.msra.mxu1 %v19746_v31  ;;  %v2985_v42 = vpop.f32.mrb[45].mxu0 }
 0x572   : > { %3543 = vmatprep.subr.bf16.mxu0 %v19753_v24  ;;  %3616 = vmatprep.subr.bf16.mxu1 %v19755_v36  ;;  %v26985_v45 = vpack.c.bf16 %v21753_v37, %v2985_v42 }
 0x574   : > { %3436 = vmatmul.mubr.bf16.gmra.mrb[12].mxu0 %v26981_v35  ;;  %3509 = vmatmul.mubr.bf16.gmra.mrb[12].mxu1 %v26981_v35  ;;  %v21756_v48 = vpop.f32.mrb[46].mxu0 }
 0x575   : > { %3544 = vmatpush1.bf16.msra.mxu0 %v19752_v38  ;;  %3617 = vmatpush1.bf16.msra.mxu1 %v19754_v39  ;;  %v2995_v51 = vpop.f32.mrb[47].mxu0 }
 0x576   : > { %3545 = vmatprep.subr.bf16.mxu0 %v19761_v46  ;;  %3618 = vmatprep.subr.bf16.mxu1 %v19763_v47  ;;  %v26989_v60 = vpack.c.bf16 %v21756_v48, %v2995_v51 }
 0x577   : > { %3445 = vmatprep.mubr.bf16.mxu0 %v26126_v53  ;;  %3518 = vmatprep.mubr.bf16.mxu1 %v26126_v53 }
 0x579   : > { %3546 = vmatpush1.bf16.msra.mxu0 %v19760_v49  ;;  %3619 = vmatpush1.bf16.msra.mxu1 %v19762_v50 }
 0x57a   : > { %3547 = vmatprep.subr.bf16.mxu0 %v19769_v57  ;;  %3620 = vmatprep.subr.bf16.mxu1 %v19771_v58 }
 0x57c   : > { %3446 = vmatmul.mubr.bf16.gmra.mrb[16].mxu0 %v26985_v45  ;;  %3519 = vmatmul.mubr.bf16.gmra.mrb[16].mxu1 %v26985_v45 }
 0x57d   : > { %3548 = vmatpush1.bf16.msra.mxu0 %v19768_v61  ;;  %3621 = vmatpush1.bf16.msra.mxu1 %v19770_v7 }
 0x57e   : > { %3549 = vmatprep.subr.bf16.mxu0 %v19777_v2  ;;  %3622 = vmatprep.subr.bf16.mxu1 %v19779_v4 }
 0x57f   : > { %3455 = vmatprep.mubr.bf16.mxu0 %v26126_v53  ;;  %3528 = vmatprep.mubr.bf16.mxu1 %v26126_v53 }
 0x581   : > { %3550 = vmatpush1.bf16.msra.mxu0 %v19776_v6  ;;  %3623 = vmatpush1.bf16.msra.mxu1 %v19778_v9 }
 0x582   : > { %3551 = vmatprep.subr.bf16.mxu0 %v19785_v14  ;;  %3624 = vmatprep.subr.bf16.mxu1 %v19787_v5 }
 0x584   : > { %3456 = vmatmul.mubr.bf16.gmra.mrb[20].mxu0 %v26989_v60  ;;  %3529 = vmatmul.mubr.bf16.gmra.mrb[20].mxu1 %v26989_v60 }
 0x585   : > { %3552 = vmatpush1.bf16.msra.mxu0 %v19784_v15  ;;  %3625 = vmatpush1.bf16.msra.mxu1 %v19786_v30 }
 0x586   : > { %3553 = vmatprep.subr.bf16.mxu0 %v19793_v8  ;;  %3626 = vmatprep.subr.bf16.mxu1 %v19795_v17 }
 0x587   : > { %3571 = vmatprep.mubr.bf16.mxu0 %v26126_v53  ;;  %3644 = vmatprep.mubr.bf16.mxu1 %v26126_v53 }
 0x589   : > { %3554 = vmatpush1.bf16.msra.mxu0 %v19792_v18  ;;  %3627 = vmatpush1.bf16.msra.mxu1 %v19794_v13 }
 0x58c   : > { %3572 = vmatmul.mubr.bf16.vlgmr.msra.gmra.mrb[24].mxu0 %v26977_v16  ;;  %3645 = vmatmul.mubr.bf16.vlgmr.msra.gmra.mrb[24].mxu1 %v26977_v16  ;;  %v27025_v16 = vld [vmem:[#allocation8] sm:$0xff] }
 0x58d   : > { %3581 = vmatprep.mubr.bf16.mxu0 %v26126_v53  ;;  %3654 = vmatprep.mubr.bf16.mxu1 %v26126_v53  ;;  %v27035_v25 = vrot.slane %v27025_v16, %v27020_v44  ;;  %v27039_v26 = vrot.slane %v27025_v16, %v27023_v22  ;;  %v27047_v19 = vrot.slane %v27025_v16, %v27031_v23 }
 0x594   : > { %3582 = vmatmul.mubr.bf16.gmra.mrb[28].mxu0 %v26981_v35  ;;  %3655 = vmatmul.mubr.bf16.gmra.mrb[28].mxu1 %v26981_v35 }
 0x595   : > { %3591 = vmatprep.mubr.bf16.mxu0 %v26126_v53  ;;  %3664 = vmatprep.mubr.bf16.mxu1 %v26126_v53 }
 0x59c   : > { %3592 = vmatmul.mubr.bf16.gmra.mrb[32].mxu0 %v26985_v45  ;;  %3665 = vmatmul.mubr.bf16.gmra.mrb[32].mxu1 %v26985_v45 }
 0x59d   : > { %3601 = vmatprep.mubr.bf16.mxu0 %v26126_v53  ;;  %3674 = vmatprep.mubr.bf16.mxu1 %v26126_v53  ;;  %v27028_v53 = vsub.s32 1, %v27017_v21 }
 0x59f   : > { %v27043_v28 = vrot.slane %v27025_v16, %v27028_v53 }
 0x5a4   : > { %3602 = vmatmul.mubr.bf16.gmra.mrb[36].mxu0 %v26989_v60  ;;  %3675 = vmatmul.mubr.bf16.gmra.mrb[36].mxu1 %v26989_v60 }
 0x5a5   : > { %4000 = vmatprep.mubr.f32.mxu1 %v26127_v20  ;;  %4178 = vmatprep.mubr.f32.mxu0 %v26127_v20 }
 0x63f   : > { %v3427_v31 = vpop.f32.mrb[8].mxu0  ;;  %v3500_v32 = vpop.f32.mrb[8].mxu1 }
 0x640   : > { %v3791_v33 = vadd.f32 %v27035_v25, %v3427_v31  ;;  %v3793_v59 = vadd.f32 %v27039_v26, %v3500_v32  ;;  %v3429_v34 = vpop.f32.mrb[9].mxu0  ;;  %v3502_v35 = vpop.f32.mrb[9].mxu1 }
 0x641   : > { %v3792_v24 = vadd.f32 %v27043_v28, %v3429_v34  ;;  %v3794_v36 = vadd.f32 %v27047_v19, %v3502_v35  ;;  %v3431_v37 = vpop.f32.mrb[10].mxu0  ;;  %v3504_v38 = vpop.f32.mrb[10].mxu1 }
 0x642   : > { %v3799_v39 = vadd.f32 %v27035_v25, %v3431_v37  ;;  %v3801_v42 = vadd.f32 %v27039_v26, %v3504_v38  ;;  %v3433_v40 = vpop.f32.mrb[11].mxu0  ;;  %v3506_v41 = vpop.f32.mrb[11].mxu1  ;;  %v3855_v45 = vmax.f32 %v3791_v33, 0.0  ;;  %v3857_v46 = vmax.f32 %v3793_v59, 0.0 }
 0x643   : > { %v3800_v43 = vadd.f32 %v27043_v28, %v3433_v40  ;;  %v3802_v29 = vadd.f32 %v27047_v19, %v3506_v41  ;;  %v3856_v49 = vmax.f32 %v3792_v24, 0.0  ;;  %v3858_v50 = vmax.f32 %v3794_v36, 0.0 }
 0x644   : > { %v3863_v47 = vmax.f32 %v3799_v39, 0.0  ;;  %v3865_v48 = vmax.f32 %v3801_v42, 0.0 }
 0x645   : > { %v3864_v51 = vmax.f32 %v3800_v43, 0.0  ;;  %v3866_v52 = vmax.f32 %v3802_v29, 0.0 }
 0x646   : > { %v27057_v54 = vpack.c.bf16 %v3863_v47, %v3855_v45  ;;  %v27059_v55 = vpack.c.bf16 %v3865_v48, %v3857_v46 }
 0x647   : > { %v27061_v56 = vpack.c.bf16 %v3864_v51, %v3856_v49  ;;  %v27063_v57 = vpack.c.bf16 %v3866_v52, %v3858_v50  ;;  %v3437_v58 = vpop.f32.mrb[12].mxu0  ;;  %v3510_v60 = vpop.f32.mrb[12].mxu1 }
 0x648   : > { %v3807_v61 = vadd.f32 %v27035_v25, %v3437_v58  ;;  %v3809_v7 = vadd.f32 %v27039_v26, %v3510_v60  ;;  %v3439_v62 = vpop.f32.mrb[13].mxu0  ;;  %v3512_v63 = vpop.f32.mrb[13].mxu1 }
 0x649   : > { %v3808_v0 = vadd.f32 %v27043_v28, %v3439_v62  ;;  %v3810_v1 = vadd.f32 %v27047_v19, %v3512_v63  ;;  %v3441_v2 = vpop.f32.mrb[14].mxu0  ;;  %v3514_v4 = vpop.f32.mrb[14].mxu1  ;;  %22013 = vmatprep.subr.bf16.mxu1 %v27061_v56  ;;  %v3769_v63 = vsub.s32 4, %v27017_v21 }
 0x64a   : > { %v3815_v6 = vadd.f32 %v27035_v25, %v3441_v2  ;;  %v3817_v9 = vadd.f32 %v27039_v26, %v3514_v4  ;;  %v3443_v10 = vpop.f32.mrb[15].mxu0  ;;  %v3516_v12 = vpop.f32.mrb[15].mxu1  ;;  %22015 = vmatpush1.bf16.msra.mxu1 %v27057_v54  ;;  %v3871_v14 = vmax.f32 %v3807_v61, 0.0  ;;  %v3873_v5 = vmax.f32 %v3809_v7, 0.0 }
 0x64b   : > { %v3816_v11 = vadd.f32 %v27043_v28, %v3443_v10  ;;  %v3818_v3 = vadd.f32 %v27047_v19, %v3516_v12  ;;  %v3872_v8 = vmax.f32 %v3808_v0, 0.0  ;;  %v3874_v17 = vmax.f32 %v3810_v1, 0.0 }
 0x64c   : > { %v3879_v15 = vmax.f32 %v3815_v6, 0.0  ;;  %v3881_v30 = vmax.f32 %v3817_v9, 0.0  ;;  %v3777_v0 = vsub.s32 6, %v27017_v21  ;;  %v3773_v9 = vsub.s32 5, %v27017_v21 }
 0x64d   : > { %v3880_v18 = vmax.f32 %v3816_v11, 0.0  ;;  %v3882_v13 = vmax.f32 %v3818_v3, 0.0  ;;  %v3781_v10 = vsub.s32 7, %v27017_v21 }
 0x64e   : > { %v27075_v27 = vpack.c.bf16 %v3879_v15, %v3871_v14  ;;  %v27077_v31 = vpack.c.bf16 %v3881_v30, %v3873_v5 }
 0x64f   : > { %v27079_v32 = vpack.c.bf16 %v3880_v18, %v3872_v8  ;;  %v27081_v33 = vpack.c.bf16 %v3882_v13, %v3874_v17  ;;  %v3447_v59 = vpop.f32.mrb[16].mxu0  ;;  %v3520_v34 = vpop.f32.mrb[16].mxu1 }
 0x650   : > { %v3823_v35 = vadd.f32 %v27035_v25, %v3447_v59  ;;  %v3825_v24 = vadd.f32 %v27039_v26, %v3520_v34  ;;  %v3449_v36 = vpop.f32.mrb[17].mxu0  ;;  %v3522_v37 = vpop.f32.mrb[17].mxu1  ;;  %v27114_v59 = vrot.slane %v27025_v16, %v3769_v63  ;;  %v27117_v34 = vrot.slane %v27025_v16, %v3777_v0 }
 0x651   : > { %v3824_v38 = vadd.f32 %v27043_v28, %v3449_v36  ;;  %v3826_v39 = vadd.f32 %v27047_v19, %v3522_v37  ;;  %v3451_v42 = vpop.f32.mrb[18].mxu0  ;;  %v3524_v40 = vpop.f32.mrb[18].mxu1  ;;  %22017 = vmatprep.subr.bf16.mxu1 %v27079_v32  ;;  %v27122_v36 = vrot.slane %v27025_v16, %v3773_v9 }
 0x652   : > { %v3831_v41 = vadd.f32 %v27035_v25, %v3451_v42  ;;  %v3833_v43 = vadd.f32 %v27039_v26, %v3524_v40  ;;  %v3453_v29 = vpop.f32.mrb[19].mxu0  ;;  %v3526_v45 = vpop.f32.mrb[19].mxu1  ;;  %22019 = vmatpush1.bf16.msra.mxu1 %v27075_v27  ;;  %v3887_v48 = vmax.f32 %v3823_v35, 0.0  ;;  %v3889_v49 = vmax.f32 %v3825_v24, 0.0 }
 0x653   : > { %v3832_v46 = vadd.f32 %v27043_v28, %v3453_v29  ;;  %v3834_v47 = vadd.f32 %v27047_v19, %v3526_v45  ;;  %v3888_v52 = vmax.f32 %v3824_v38, 0.0  ;;  %v3890_v58 = vmax.f32 %v3826_v39, 0.0 }
 0x654   : > { %v3895_v50 = vmax.f32 %v3831_v41, 0.0  ;;  %v3897_v51 = vmax.f32 %v3833_v43, 0.0 }
 0x655   : > { %v3896_v60 = vmax.f32 %v3832_v46, 0.0  ;;  %v3898_v61 = vmax.f32 %v3834_v47, 0.0 }
 0x656   : > { %v27093_v7 = vpack.c.bf16 %v3895_v50, %v3887_v48  ;;  %v27095_v62 = vpack.c.bf16 %v3897_v51, %v3889_v49 }
 0x657   : > { %v27099_v1 = vpack.c.bf16 %v3896_v60, %v3888_v52  ;;  %v27101_v2 = vpack.c.bf16 %v3898_v61, %v3890_v58  ;;  %v3457_v4 = vpop.f32.mrb[20].mxu0  ;;  %v3530_v6 = vpop.f32.mrb[20].mxu1 }
 0x658   : > { %v3839_v12 = vadd.f32 %v27035_v25, %v3457_v4  ;;  %v3841_v11 = vadd.f32 %v27039_v26, %v3530_v6  ;;  %v3459_v3 = vpop.f32.mrb[21].mxu0  ;;  %v3532_v14 = vpop.f32.mrb[21].mxu1  ;;  %v27143_v6 = vld [vmem:[#allocation10] sm:$0xff] }
 0x659   : > { %v3840_v5 = vadd.f32 %v27043_v28, %v3459_v3  ;;  %v3842_v15 = vadd.f32 %v27047_v19, %v3532_v14  ;;  %v3461_v30 = vpop.f32.mrb[22].mxu0  ;;  %v3534_v8 = vpop.f32.mrb[22].mxu1  ;;  %22021 = vmatprep.subr.bf16.mxu1 %v27099_v1 }
 0x65a   : > { %v3847_v17 = vadd.f32 %v27035_v25, %v3461_v30  ;;  %v3849_v18 = vadd.f32 %v27039_v26, %v3534_v8  ;;  %v3463_v13 = vpop.f32.mrb[23].mxu0  ;;  %v3536_v21 = vpop.f32.mrb[23].mxu1  ;;  %22023 = vmatpush1.bf16.msra.mxu1 %v27093_v7  ;;  %v27125_v25 = vrot.slane %v27025_v16, %v3781_v10  ;;  %v3903_v26 = vmax.f32 %v3839_v12, 0.0 }
 0x65b   : > { %v3848_v35 = vadd.f32 %v27043_v28, %v3463_v13  ;;  %v3850_v24 = vadd.f32 %v27047_v19, %v3536_v21  ;;  %v3905_v37 = vmax.f32 %v3841_v11, 0.0  ;;  %v3904_v42 = vmax.f32 %v3840_v5, 0.0  ;;  %v27156_v13 = vld [vmem:[#allocation10 + $0x8] sm:$0xff] }
 0x65c   : > { %v3911_v38 = vmax.f32 %v3847_v17, 0.0  ;;  %v3913_v39 = vmax.f32 %v3849_v18, 0.0  ;;  %v3906_v40 = vmax.f32 %v3842_v15, 0.0 }
 0x65d   : > { %v3912_v41 = vmax.f32 %v3848_v35, 0.0  ;;  %v3914_v43 = vmax.f32 %v3850_v24, 0.0 }
 0x65e   : > { %v27127_v29 = vpack.c.bf16 %v3911_v38, %v3903_v26  ;;  %v27129_v45 = vpack.c.bf16 %v3913_v39, %v3905_v37 }
 0x65f   : > { %v27131_v28 = vpack.c.bf16 %v3912_v41, %v3904_v42  ;;  %v27133_v19 = vpack.c.bf16 %v3914_v43, %v3906_v40  ;;  %v3573_v46 = vpop.f32.mrb[24].mxu0  ;;  %v3646_v47 = vpop.f32.mrb[24].mxu1 }
 0x660   : > { %v3795_v16 = vadd.f32 %v27114_v59, %v3573_v46  ;;  %v3797_v48 = vadd.f32 %v27117_v34, %v3646_v47  ;;  %v3575_v49 = vpop.f32.mrb[25].mxu0  ;;  %v3648_v50 = vpop.f32.mrb[25].mxu1 }
 0x661   : > { %v3796_v51 = vadd.f32 %v27122_v36, %v3575_v49  ;;  %v3798_v52 = vadd.f32 %v27125_v25, %v3648_v50  ;;  %v3577_v58 = vpop.f32.mrb[26].mxu0  ;;  %v3650_v60 = vpop.f32.mrb[26].mxu1  ;;  %22025 = vmatprep.subr.bf16.mxu1 %v27131_v28  ;;  %v27174_v50 = vld [vmem:[#allocation10 + $0x10] sm:$0xff] }
 0x662   : > { %v3803_v61 = vadd.f32 %v27114_v59, %v3577_v58  ;;  %v3805_v63 = vadd.f32 %v27117_v34, %v3650_v60  ;;  %v3579_v0 = vpop.f32.mrb[27].mxu0  ;;  %v3652_v4 = vpop.f32.mrb[27].mxu1  ;;  %22027 = vmatpush1.bf16.msra.mxu1 %v27127_v29  ;;  %v3859_v12 = vmax.f32 %v3795_v16, 0.0  ;;  %v3861_v11 = vmax.f32 %v3797_v48, 0.0 }
 0x663   : > { %v3804_v9 = vadd.f32 %v27122_v36, %v3579_v0  ;;  %v3806_v10 = vadd.f32 %v27125_v25, %v3652_v4  ;;  %22029 = vmatprep.subr.bf16.mxu1 %v27063_v57  ;;  %v3860_v5 = vmax.f32 %v3796_v51, 0.0  ;;  %v3862_v15 = vmax.f32 %v3798_v52, 0.0 }
 0x664   : > { %v3867_v3 = vmax.f32 %v3803_v61, 0.0  ;;  %v3869_v14 = vmax.f32 %v3805_v63, 0.0 }
 0x665   : > { %v3868_v30 = vmax.f32 %v3804_v9, 0.0  ;;  %v3870_v8 = vmax.f32 %v3806_v10, 0.0  ;;  %19796 = vmatmul.mubr.msk.f32.vlgmr.msra.gmra.mrb[40].mxu1 %vm3923_vm0, %v27143_v6 }
 0x666   : > { %v27150_v17 = vpack.c.bf16 %v3867_v3, %v3859_v12  ;;  %v27152_v18 = vpack.c.bf16 %v3869_v14, %v3861_v11  ;;  %22031 = vmatpush1.bf16.msra.mxu1 %v27059_v55  ;;  %4006 = vmatprep.mubr.f32.mxu1 %v26127_v20  ;;  %v27188_v3 = vld [vmem:[#allocation10 + $0x18] sm:$0xff] }
 0x667   : > { %v27158_v21 = vpack.c.bf16 %v3868_v30, %v3860_v5  ;;  %v27160_v35 = vpack.c.bf16 %v3870_v8, %v3862_v15  ;;  %v3583_v24 = vpop.f32.mrb[28].mxu0  ;;  %v3656_v26 = vpop.f32.mrb[28].mxu1  ;;  %22033 = vmatprep.subr.bf16.mxu1 %v27081_v33 }
 0x668   : > { %v3811_v37 = vadd.f32 %v27114_v59, %v3583_v24  ;;  %v3813_v38 = vadd.f32 %v27117_v34, %v3656_v26  ;;  %v3585_v39 = vpop.f32.mrb[29].mxu0  ;;  %v3658_v42 = vpop.f32.mrb[29].mxu1 }
 0x669   : > { %v3812_v40 = vadd.f32 %v27122_v36, %v3585_v39  ;;  %v3814_v41 = vadd.f32 %v27125_v25, %v3658_v42  ;;  %v3587_v43 = vpop.f32.mrb[30].mxu0  ;;  %v3660_v46 = vpop.f32.mrb[30].mxu1  ;;  %22045 = vmatprep.subr.bf16.mxu0 %v27158_v21  ;;  %19797 = vmatmul.mubr.msk.f32.gmra.mrb[42].mxu1 %vm3923_vm0, %v27156_v13 }
 0x66a   : > { %v3819_v47 = vadd.f32 %v27114_v59, %v3587_v43  ;;  %v3821_v16 = vadd.f32 %v27117_v34, %v3660_v46  ;;  %v3589_v48 = vpop.f32.mrb[31].mxu0  ;;  %v3662_v49 = vpop.f32.mrb[31].mxu1  ;;  %22035 = vmatpush1.bf16.msra.mxu1 %v27077_v31  ;;  %22047 = vmatpush1.bf16.msra.mxu0 %v27150_v17  ;;  %v3875_v58 = vmax.f32 %v3811_v37, 0.0  ;;  %v3877_v60 = vmax.f32 %v3813_v38, 0.0 }
 0x66b   : > { %v3820_v51 = vadd.f32 %v27122_v36, %v3589_v48  ;;  %v3822_v52 = vadd.f32 %v27125_v25, %v3662_v49  ;;  %22037 = vmatprep.subr.bf16.mxu1 %v27101_v2  ;;  %4012 = vmatprep.mubr.f32.mxu1 %v26127_v20  ;;  %v3876_v0 = vmax.f32 %v3812_v40, 0.0  ;;  %v3878_v4 = vmax.f32 %v3814_v41, 0.0 }
 0x66c   : > { %v3883_v61 = vmax.f32 %v3819_v47, 0.0  ;;  %v3885_v63 = vmax.f32 %v3821_v16, 0.0 }
 0x66d   : > { %v3884_v9 = vmax.f32 %v3820_v51, 0.0  ;;  %v3886_v10 = vmax.f32 %v3822_v52, 0.0  ;;  %19798 = vmatmul.mubr.msk.f32.gmra.mrb[44].mxu1 %vm3923_vm0, %v27174_v50 }
 0x66e   : > { %v27182_v12 = vpack.c.bf16 %v3883_v61, %v3875_v58  ;;  %v27184_v11 = vpack.c.bf16 %v3885_v63, %v3877_v60  ;;  %22039 = vmatpush1.bf16.msra.mxu1 %v27095_v62  ;;  %4018 = vmatprep.mubr.f32.mxu1 %v26127_v20 }
 0x66f   : > { %v27190_v14 = vpack.c.bf16 %v3884_v9, %v3876_v0  ;;  %v27192_v5 = vpack.c.bf16 %v3886_v10, %v3878_v4  ;;  %v3593_v15 = vpop.f32.mrb[32].mxu0  ;;  %v3666_v30 = vpop.f32.mrb[32].mxu1  ;;  %22041 = vmatprep.subr.bf16.mxu1 %v27133_v19 }
 0x670   : > { %v3827_v8 = vadd.f32 %v27114_v59, %v3593_v15  ;;  %v3829_v24 = vadd.f32 %v27117_v34, %v3666_v30  ;;  %v3595_v26 = vpop.f32.mrb[33].mxu0  ;;  %v3668_v37 = vpop.f32.mrb[33].mxu1 }
 0x671   : > { %v3828_v38 = vadd.f32 %v27122_v36, %v3595_v26  ;;  %v3830_v39 = vadd.f32 %v27125_v25, %v3668_v37  ;;  %v3597_v42 = vpop.f32.mrb[34].mxu0  ;;  %v3670_v40 = vpop.f32.mrb[34].mxu1  ;;  %22049 = vmatprep.subr.bf16.mxu0 %v27190_v14  ;;  %19799 = vmatmul.mubr.msk.f32.gmra.mrb[46].mxu1 %vm3923_vm0, %v27188_v3 }
 0x672   : > { %v3835_v41 = vadd.f32 %v27114_v59, %v3597_v42  ;;  %v3837_v43 = vadd.f32 %v27117_v34, %v3670_v40  ;;  %v3599_v46 = vpop.f32.mrb[35].mxu0  ;;  %v3672_v47 = vpop.f32.mrb[35].mxu1  ;;  %22043 = vmatpush1.bf16.msra.mxu1 %v27129_v45  ;;  %22051 = vmatpush1.bf16.msra.mxu0 %v27182_v12  ;;  %v3891_v49 = vmax.f32 %v3827_v8, 0.0  ;;  %v3893_v51 = vmax.f32 %v3829_v24, 0.0 }
 0x673   : > { %v3836_v16 = vadd.f32 %v27122_v36, %v3599_v46  ;;  %v3838_v48 = vadd.f32 %v27125_v25, %v3672_v47  ;;  %22061 = vmatprep.subr.bf16.mxu1 %v27160_v35  ;;  %4089 = vmatprep.mubr.f32.mxu1 %v26127_v20  ;;  %v3892_v60 = vmax.f32 %v3828_v38, 0.0  ;;  %v3894_v61 = vmax.f32 %v3830_v39, 0.0 }
 0x674   : > { %v3899_v52 = vmax.f32 %v3835_v41, 0.0  ;;  %v3901_v58 = vmax.f32 %v3837_v43, 0.0 }
 0x675   : > { %v3900_v63 = vmax.f32 %v3836_v16, 0.0  ;;  %v3902_v0 = vmax.f32 %v3838_v48, 0.0  ;;  %19800 = vmatmul.mubr.msk.f32.vlgmr.msra.gmra.mrb[48].mxu1 %vm3923_vm0, %v27143_v6 }
 0x676   : > { %v27212_v4 = vpack.c.bf16 %v3899_v52, %v3891_v49  ;;  %v27214_v9 = vpack.c.bf16 %v3901_v58, %v3893_v51  ;;  %22063 = vmatpush1.bf16.msra.mxu1 %v27152_v18  ;;  %4095 = vmatprep.mubr.f32.mxu1 %v26127_v20 }
 0x677   : > { %v27218_v10 = vpack.c.bf16 %v3900_v63, %v3892_v60  ;;  %v27220_v15 = vpack.c.bf16 %v3902_v0, %v3894_v61  ;;  %v3603_v30 = vpop.f32.mrb[36].mxu0  ;;  %v3676_v8 = vpop.f32.mrb[36].mxu1  ;;  %22065 = vmatprep.subr.bf16.mxu1 %v27192_v5 }
 0x678   : > { %v3843_v24 = vadd.f32 %v27114_v59, %v3603_v30  ;;  %v3845_v26 = vadd.f32 %v27117_v34, %v3676_v8  ;;  %v3605_v37 = vpop.f32.mrb[37].mxu0  ;;  %v3678_v38 = vpop.f32.mrb[37].mxu1  ;;  %v22981_v8 = vld [vmem:[#allocation11 + $0xc8] ss:$16 sps:$4 sm:$0xff]  }
 0x679   : > { %v3844_v39 = vadd.f32 %v27122_v36, %v3605_v37  ;;  %v3846_v42 = vadd.f32 %v27125_v25, %v3678_v38  ;;  %v3607_v40 = vpop.f32.mrb[38].mxu0  ;;  %v3680_v41 = vpop.f32.mrb[38].mxu1  ;;  %22053 = vmatprep.subr.bf16.mxu0 %v27218_v10  ;;  %19801 = vmatmul.mubr.msk.f32.gmra.mrb[50].mxu1 %vm3923_vm0, %v27156_v13  ;;  %v22992_v37 = vld [vmem:[#allocation11 + $0x104] ss:$16 sps:$4 sm:$0xff]   ;;  %v22987_v38 = vld [vmem:[#allocation11 + $0xe8] ss:$16 sps:$4 sm:$0xff]  }
 0x67a   : > { %v3851_v43 = vadd.f32 %v27114_v59, %v3607_v40  ;;  %v3853_v46 = vadd.f32 %v27117_v34, %v3680_v41  ;;  %v3609_v47 = vpop.f32.mrb[39].mxu0  ;;  %v3682_v16 = vpop.f32.mrb[39].mxu1  ;;  %22055 = vmatpush1.bf16.msra.mxu0 %v27212_v4  ;;  %22067 = vmatpush1.bf16.msra.mxu1 %v27184_v11  ;;  %v3907_v51 = vmax.f32 %v3843_v24, 0.0  ;;  %v3909_v52 = vmax.f32 %v3845_v26, 0.0  ;;  %v22984_v24 = vld [vmem:[#allocation11 + $0xe0] ss:$16 sps:$4 sm:$0xff]  }
 0x67b   : > { %v3852_v48 = vadd.f32 %v27122_v36, %v3609_v47  ;;  %v3854_v49 = vadd.f32 %v27125_v25, %v3682_v16  ;;  %22069 = vmatprep.subr.bf16.mxu1 %v27220_v15  ;;  %4101 = vmatprep.mubr.f32.mxu1 %v26127_v20  ;;  %v3908_v60 = vmax.f32 %v3844_v39, 0.0  ;;  %v3910_v34 = vmax.f32 %v3846_v42, 0.0  ;;  %v22989_v26 = vld [vmem:[#allocation11 + $0xec] ss:$16 sps:$4 sm:$0xff]   ;;  %v22990_v39 = vld [vmem:[#allocation11 + $0x100] ss:$16 sps:$4 sm:$0xff]  }
 0x67c   : > { %v3915_v58 = vmax.f32 %v3851_v43, 0.0  ;;  %v3917_v59 = vmax.f32 %v3853_v46, 0.0  ;;  %v22995_v42 = vld [vmem:[#allocation11 + $0x10c] ss:$16 sps:$4 sm:$0xff]   ;;  %v22998_v40 = vld [vmem:[#allocation11 + $0x124] ss:$16 sps:$4 sm:$0xff]  }
 0x67d   : > { %v3916_v61 = vmax.f32 %v3852_v48, 0.0  ;;  %v3918_v63 = vmax.f32 %v3854_v49, 0.0  ;;  %19802 = vmatmul.mubr.msk.f32.gmra.mrb[52].mxu1 %vm3923_vm0, %v27174_v50  ;;  %v22993_v41 = vld [vmem:[#allocation11 + $0x108] ss:$16 sps:$4 sm:$0xff]   ;;  %v22996_v43 = vld [vmem:[#allocation11 + $0x120] ss:$16 sps:$4 sm:$0xff]  }
 0x67e   : > { %v27240_v0 = vpack.c.bf16 %v3915_v58, %v3907_v51  ;;  %v27242_v36 = vpack.c.bf16 %v3917_v59, %v3909_v52  ;;  %22071 = vmatpush1.bf16.msra.mxu1 %v27214_v9  ;;  %4107 = vmatprep.mubr.f32.mxu1 %v26127_v20  ;;  %v23001_v46 = vld [vmem:[#allocation11 + $0x12c] ss:$16 sps:$4 sm:$0xff]   ;;  %v22999_v47 = vld [vmem:[#allocation11 + $0x128] ss:$16 sps:$4 sm:$0xff]   ;;  %v23002_v16 = vld [vmem:[#allocation11 + $0x140] ss:$16 sps:$4 sm:$0xff]  }
 0x67f   : > { %v27246_v25 = vpack.c.bf16 %v3916_v61, %v3908_v60  ;;  %v27248_v30 = vpack.c.bf16 %v3918_v63, %v3910_v34  ;;  %v23004_v48 = vld [vmem:[#allocation11 + $0x144] ss:$16 sps:$4 sm:$0xff]   ;;  %v23005_v49 = vld [vmem:[#allocation11 + $0x148] ss:$16 sps:$4 sm:$0xff]   ;;  %v23007_v51 = vld [vmem:[#allocation11 + $0x14c] ss:$16 sps:$4 sm:$0xff]  }
 0x680   : > { %v23008_v52 = vld [vmem:[#allocation11 + $0x160] ss:$16 sps:$4 sm:$0xff]   ;;  %v23010_v58 = vld [vmem:[#allocation11 + $0x164] ss:$16 sps:$4 sm:$0xff]   ;;  %v23011_v59 = vld [vmem:[#allocation11 + $0x168] ss:$16 sps:$4 sm:$0xff]  }
 0x681   : > { %22057 = vmatprep.subr.bf16.mxu0 %v27246_v25  ;;  %22073 = vmatprep.subr.bf16.mxu1 %v27248_v30  ;;  %v23013_v60 = vld [vmem:[#allocation11 + $0x16c] ss:$16 sps:$4 sm:$0xff]   ;;  %v23014_v34 = vld [vmem:[#allocation11 + $0x180] ss:$16 sps:$4 sm:$0xff]   ;;  %v23016_v61 = vld [vmem:[#allocation11 + $0x184] ss:$16 sps:$4 sm:$0xff]  }
 0x682   : > { %19803 = vmatmul.mubr.msk.f32.gmra.mrb[54].mxu1 %vm3923_vm0, %v27188_v3  ;;  %22059 = vmatpush1.bf16.msra.mxu0 %v27240_v0  ;;  %v23017_v63 = vld [vmem:[#allocation11 + $0x188] ss:$16 sps:$4 sm:$0xff]  }
 0x683   : > { %22075 = vmatpush1.bf16.msra.mxu1 %v27242_v36  ;;  %22077 = vmatprep.subr.bf16.mxu0 %v27061_v56  ;;  %v4295_v56 = vld [vmem:[#allocation10 + $0x30] sm:$0xff] }
 0x684   : > { %22093 = vmatprep.subr.bf16.mxu1 %v27063_v57  ;;  %4267 = vmatprep.mubr.f32.mxu1 %v26127_v20  ;;  %v4296_v57 = vld [vmem:[#allocation10 + $0x38] sm:$0xff] }
 0x685   : > { %19804 = vmatmul.mubr.msk.f32.vlgmr.msra.gmra.mrb[48].mxu0 %vm3923_vm0, %v27143_v6 }
 0x686   : > { %19808 = vmatmul.mubr.msk.f32.vlgmr.msra.gmra.mrb[56].mxu1 %vm3923_vm0, %v27143_v6  ;;  %22079 = vmatpush1.bf16.msra.mxu0 %v27057_v54  ;;  %v4293_v54 = vld [vmem:[#allocation10 + $0x20] sm:$0xff]  ;;  %v22957_v6 = vld [vmem:[#allocation11 + $0x48] ss:$16 sps:$4 sm:$0xff]  }
 0x687   : > { %22095 = vmatpush1.bf16.msra.mxu1 %v27059_v55  ;;  %22081 = vmatprep.subr.bf16.mxu0 %v27079_v32  ;;  %v4294_v55 = vld [vmem:[#allocation10 + $0x28] sm:$0xff]  ;;  %v22942_v32 = vld [vmem:[#allocation11] ss:$16 sps:$4 sm:$0xff]  }
 0x688   : > { %22097 = vmatprep.subr.bf16.mxu1 %v27081_v33  ;;  %4184 = vmatprep.mubr.f32.mxu0 %v26127_v20  ;;  %v22950_v33 = vld [vmem:[#allocation11 + $0x24] ss:$16 sps:$4 sm:$0xff]  }
 0x689   : > { %19805 = vmatmul.mubr.msk.f32.gmra.mrb[50].mxu0 %vm3923_vm0, %v27156_v13  ;;  %4273 = vmatprep.mubr.f32.mxu1 %v26127_v20 }
 0x68a   : > { %19809 = vmatmul.mubr.msk.f32.gmra.mrb[58].mxu1 %vm3923_vm0, %v27156_v13  ;;  %22083 = vmatpush1.bf16.msra.mxu0 %v27075_v27  ;;  %v22944_v27 = vld [vmem:[#allocation11 + $0x4] ss:$16 sps:$4 sm:$0xff]  }
 0x68b   : > { %22099 = vmatpush1.bf16.msra.mxu1 %v27077_v31  ;;  %22085 = vmatprep.subr.bf16.mxu0 %v27099_v1  ;;  %v22947_v31 = vld [vmem:[#allocation11 + $0xc] ss:$16 sps:$4 sm:$0xff]   ;;  %v22968_v13 = vld [vmem:[#allocation11 + $0x84] ss:$16 sps:$4 sm:$0xff]  }
 0x68c   : > { %22101 = vmatprep.subr.bf16.mxu1 %v27101_v2  ;;  %4190 = vmatprep.mubr.f32.mxu0 %v26127_v20  ;;  %v22953_v1 = vld [vmem:[#allocation11 + $0x2c] ss:$16 sps:$4 sm:$0xff]   ;;  %v22956_v2 = vld [vmem:[#allocation11 + $0x44] ss:$16 sps:$4 sm:$0xff]  }
 0x68d   : > { %19806 = vmatmul.mubr.msk.f32.gmra.mrb[52].mxu0 %vm3923_vm0, %v27174_v50  ;;  %4279 = vmatprep.mubr.f32.mxu1 %v26127_v20 }
 0x68e   : > { %19810 = vmatmul.mubr.msk.f32.gmra.mrb[60].mxu1 %vm3923_vm0, %v27174_v50  ;;  %22087 = vmatpush1.bf16.msra.mxu0 %v27093_v7  ;;  %v22945_v7 = vld [vmem:[#allocation11 + $0x8] ss:$16 sps:$4 sm:$0xff]   ;;  %v22971_v50 = vld [vmem:[#allocation11 + $0x8c] ss:$16 sps:$4 sm:$0xff]  }
 0x68f   : > { %22103 = vmatpush1.bf16.msra.mxu1 %v27095_v62  ;;  %22089 = vmatprep.subr.bf16.mxu0 %v27131_v28  ;;  %v22948_v62 = vld [vmem:[#allocation11 + $0x20] ss:$16 sps:$4 sm:$0xff]   ;;  %v22959_v28 = vld [vmem:[#allocation11 + $0x4c] ss:$16 sps:$4 sm:$0xff]  }
 0x690   : > { %22105 = vmatprep.subr.bf16.mxu1 %v27133_v19  ;;  %4196 = vmatprep.mubr.f32.mxu0 %v26127_v20  ;;  %v22962_v19 = vld [vmem:[#allocation11 + $0x64] ss:$16 sps:$4 sm:$0xff]  }
 0x691   : > { %19807 = vmatmul.mubr.msk.f32.gmra.mrb[54].mxu0 %vm3923_vm0, %v27188_v3  ;;  %4285 = vmatprep.mubr.f32.mxu1 %v26127_v20 }
 0x692   : > { %19811 = vmatmul.mubr.msk.f32.gmra.mrb[62].mxu1 %vm3923_vm0, %v27188_v3  ;;  %22091 = vmatpush1.bf16.msra.mxu0 %v27127_v29  ;;  %v22951_v29 = vld [vmem:[#allocation11 + $0x28] ss:$16 sps:$4 sm:$0xff]   ;;  %v22972_v3 = vld [vmem:[#allocation11 + $0xa0] ss:$16 sps:$4 sm:$0xff]  }
 0x693   : > { %22107 = vmatpush1.bf16.msra.mxu1 %v27129_v45  ;;  %22109 = vmatprep.subr.bf16.mxu0 %v27158_v21  ;;  %v22954_v45 = vld [vmem:[#allocation11 + $0x40] ss:$16 sps:$4 sm:$0xff]   ;;  %v22963_v21 = vld [vmem:[#allocation11 + $0x68] ss:$16 sps:$4 sm:$0xff]  }
 0x694   : > { %22125 = vmatprep.subr.bf16.mxu1 %v27160_v35  ;;  %4373 = vmatprep.mubr.f32.mxu0 %v26127_v20  ;;  %v22966_v35 = vld [vmem:[#allocation11 + $0x80] ss:$16 sps:$4 sm:$0xff]  }
 0x695   : > { %19812 = vmatmul.mubr.msk.f32.vlgmr.msra.gmra.mrb[56].mxu0 %vm3923_vm0, %v4293_v54  ;;  %4462 = vmatprep.mubr.f32.mxu1 %v26127_v20 }
 0x696   : > { %19816 = vmatmul.mubr.msk.f32.vlgmr.msra.gmra.mrb[64].mxu1 %vm3923_vm0, %v4293_v54  ;;  %22111 = vmatpush1.bf16.msra.mxu0 %v27150_v17  ;;  %v22960_v17 = vld [vmem:[#allocation11 + $0x60] ss:$16 sps:$4 sm:$0xff]  }
 0x697   : > { %22127 = vmatpush1.bf16.msra.mxu1 %v27152_v18  ;;  %22113 = vmatprep.subr.bf16.mxu0 %v27190_v14  ;;  %v22965_v18 = vld [vmem:[#allocation11 + $0x6c] ss:$16 sps:$4 sm:$0xff]  }
 0x698   : > { %22129 = vmatprep.subr.bf16.mxu1 %v27192_v5  ;;  %4379 = vmatprep.mubr.f32.mxu0 %v26127_v20  ;;  %v22977_v14 = vld [vmem:[#allocation11 + $0xac] ss:$16 sps:$4 sm:$0xff]   ;;  %v22980_v5 = vld [vmem:[#allocation11 + $0xc4] ss:$16 sps:$4 sm:$0xff]  }
 0x699   : > { %19813 = vmatmul.mubr.msk.f32.gmra.mrb[58].mxu0 %vm3923_vm0, %v4294_v55  ;;  %4468 = vmatprep.mubr.f32.mxu1 %v26127_v20 }
 0x69a   : > { %22115 = vmatpush1.bf16.msra.mxu0 %v27182_v12  ;;  %4385 = vmatprep.mubr.f32.mxu0 %v26127_v20  ;;  %v22974_v12 = vld [vmem:[#allocation11 + $0xa4] ss:$16 sps:$4 sm:$0xff]  }
 0x69b   : > { %22131 = vmatpush1.bf16.msra.mxu1 %v27184_v11  ;;  %22117 = vmatprep.subr.bf16.mxu0 %v27218_v10  ;;  %v22969_v11 = vld [vmem:[#allocation11 + $0x88] ss:$16 sps:$4 sm:$0xff]   ;;  %v22983_v10 = vld [vmem:[#allocation11 + $0xcc] ss:$16 sps:$4 sm:$0xff]  }
 0x69c   : > { %22133 = vmatprep.subr.bf16.mxu1 %v27220_v15  ;;  %19817 = vmatmul.mubr.msk.f32.gmra.mrb[66].mxu1 %vm3923_vm0, %v4294_v55  ;;  %v22986_v15 = vld [vmem:[#allocation11 + $0xe4] ss:$16 sps:$4 sm:$0xff]  }
 0x69d   : > { %19814 = vmatmul.mubr.msk.f32.gmra.mrb[60].mxu0 %vm3923_vm0, %v4295_v56  ;;  %4474 = vmatprep.mubr.f32.mxu1 %v26127_v20 }
 0x69e   : > { %22119 = vmatpush1.bf16.msra.mxu0 %v27212_v4  ;;  %4391 = vmatprep.mubr.f32.mxu0 %v26127_v20  ;;  %v22975_v4 = vld [vmem:[#allocation11 + $0xa8] ss:$16 sps:$4 sm:$0xff]  }
 0x69f   : > { %22135 = vmatpush1.bf16.msra.mxu1 %v27214_v9  ;;  %22121 = vmatprep.subr.bf16.mxu0 %v27246_v25  ;;  %v22978_v9 = vld [vmem:[#allocation11 + $0xc0] ss:$16 sps:$4 sm:$0xff]   ;;  %v23022_v25 = vld [vmem:[#allocation11 + $0x1a4] ss:$16 sps:$4 sm:$0xff]  }
 0x6a0   : > { %22137 = vmatprep.subr.bf16.mxu1 %v27248_v30  ;;  %19818 = vmatmul.mubr.msk.f32.gmra.mrb[68].mxu1 %vm3923_vm0, %v4295_v56  ;;  %v23023_v30 = vld [vmem:[#allocation11 + $0x1a8] ss:$16 sps:$4 sm:$0xff]  }
 0x6a1   : > { %19815 = vmatmul.mubr.msk.f32.gmra.mrb[62].mxu0 %vm3923_vm0, %v4296_v57  ;;  %4480 = vmatprep.mubr.f32.mxu1 %v26127_v20 }
 0x6a2   : > { %22123 = vmatpush1.bf16.msra.mxu0 %v27240_v0  ;;  %4551 = vmatprep.mubr.f32.mxu0 %v26127_v20  ;;  %v23019_v0 = vld [vmem:[#allocation11 + $0x18c] ss:$16 sps:$4 sm:$0xff]  }
 0x6a3   : > { %22139 = vmatpush1.bf16.msra.mxu1 %v27242_v36  ;;  %6249 = vmatprep.subr.bf16.mxu0 %v22944_v27  ;;  %v23020_v36 = vld [vmem:[#allocation11 + $0x1a0] ss:$16 sps:$4 sm:$0xff]   ;;  %v23029_v27 = vld [vmem:[#allocation11 + $0x1c8] ss:$16 sps:$4 sm:$0xff]  }
 0x6a4   : > { %19819 = vmatmul.mubr.msk.f32.gmra.mrb[70].mxu1 %vm3923_vm0, %v4296_v57  ;;  %6461 = vmatprep.subr.bf16.mxu1 %v22947_v31  ;;  %v23034_v31 = vld [vmem:[#allocation11 + $0x1e4] ss:$16 sps:$4 sm:$0xff]  }
 0x6a5   : > { %19820 = vmatmul.mubr.msk.f32.vlgmr.msra.gmra.mrb[64].mxu0 %vm3923_vm0, %v4293_v54  ;;  %4640 = vmatprep.mubr.f32.mxu1 %v26127_v20 }
 0x6a6   : > { %4557 = vmatprep.mubr.f32.mxu0 %v26127_v20  ;;  %6250 = vmatpush1.bf16.msra.mxu0 %v22942_v32  ;;  %v23037_v32 = vld [vmem:[#allocation11 + $0x1ec] ss:$16 sps:$4 sm:$0xff]  }
 0x6a7   : > { %6251 = vmatprep.subr.bf16.mxu0 %v22950_v33  ;;  %v23032_v33 = vld [vmem:[#allocation11 + $0x1e0] ss:$16 sps:$4 sm:$0xff]  }
 0x6a8   : > { %19824 = vmatmul.mubr.msk.f32.vlgmr.msra.gmra.mrb[72].mxu1 %vm3923_vm0, %v4293_v54  ;;  %v23025_v54 = vld [vmem:[#allocation11 + $0x1ac] ss:$16 sps:$4 sm:$0xff]  }
 0x6a9   : > { %19821 = vmatmul.mubr.msk.f32.gmra.mrb[66].mxu0 %vm3923_vm0, %v4294_v55  ;;  %4646 = vmatprep.mubr.f32.mxu1 %v26127_v20 }
 0x6aa   : > { %4563 = vmatprep.mubr.f32.mxu0 %v26127_v20  ;;  %6462 = vmatpush1.bf16.msra.mxu1 %v22945_v7  ;;  %v23035_v7 = vld [vmem:[#allocation11 + $0x1e8] ss:$16 sps:$4 sm:$0xff]  }
 0x6ab   : > { %6463 = vmatprep.subr.bf16.mxu1 %v22953_v1  ;;  %6252 = vmatpush1.bf16.msra.mxu0 %v22948_v62  ;;  %v23040_v62 = vld [vmem:[#allocation11 + $0x204] ss:$16 sps:$4 sm:$0xff]   ;;  %v23043_v1 = vld [vmem:[#allocation11 + $0x20c] ss:$16 sps:$4 sm:$0xff]  }
 0x6ac   : > { %19825 = vmatmul.mubr.msk.f32.gmra.mrb[74].mxu1 %vm3923_vm0, %v4294_v55  ;;  %6253 = vmatprep.subr.bf16.mxu0 %v22956_v2  ;;  %v23028_v55 = vld [vmem:[#allocation11 + $0x1c4] ss:$16 sps:$4 sm:$0xff]  }
 0x6ad   : > { %19822 = vmatmul.mubr.msk.f32.gmra.mrb[68].mxu0 %vm3923_vm0, %v4295_v56  ;;  %4652 = vmatprep.mubr.f32.mxu1 %v26127_v20 }
 0x6ae   : > { %4569 = vmatprep.mubr.f32.mxu0 %v26127_v20  ;;  %6464 = vmatpush1.bf16.msra.mxu1 %v22951_v29 }
 0x6af   : > { %6465 = vmatprep.subr.bf16.mxu1 %v22959_v28  ;;  %6254 = vmatpush1.bf16.msra.mxu0 %v22954_v45 }
 0x6b0   : > { %19826 = vmatmul.mubr.msk.f32.gmra.mrb[76].mxu1 %vm3923_vm0, %v4295_v56  ;;  %6255 = vmatprep.subr.bf16.mxu0 %v22962_v19  ;;  %v23031_v56 = vld [vmem:[#allocation11 + $0x1cc] ss:$16 sps:$4 sm:$0xff]  }
 0x6b1   : > { %19823 = vmatmul.mubr.msk.f32.gmra.mrb[70].mxu0 %vm3923_vm0, %v4296_v57  ;;  %4658 = vmatprep.mubr.f32.mxu1 %v26127_v20 }
 0x6b2   : > { %6466 = vmatpush1.bf16.msra.mxu1 %v22957_v6 }
 0x6b3   : > { %6467 = vmatprep.subr.bf16.mxu1 %v22965_v18  ;;  %6256 = vmatpush1.bf16.msra.mxu0 %v22960_v17 }
 0x6b4   : > { %19827 = vmatmul.mubr.msk.f32.gmra.mrb[78].mxu1 %vm3923_vm0, %v4296_v57  ;;  %6257 = vmatprep.subr.bf16.mxu0 %v22968_v13  ;;  %v23026_v57 = vld [vmem:[#allocation11 + $0x1c0] ss:$16 sps:$4 sm:$0xff]  }
 0x6b6   : > { %6468 = vmatpush1.bf16.msra.mxu1 %v22963_v21 }
 0x6b7   : > { %6469 = vmatprep.subr.bf16.mxu1 %v22971_v50  ;;  %6258 = vmatpush1.bf16.msra.mxu0 %v22966_v35 }
 0x6b8   : > { %6259 = vmatprep.subr.bf16.mxu0 %v22974_v12 }
 0x6ba   : > { %6470 = vmatpush1.bf16.msra.mxu1 %v22969_v11 }
 0x6bb   : > { %6471 = vmatprep.subr.bf16.mxu1 %v22977_v14  ;;  %6260 = vmatpush1.bf16.msra.mxu0 %v22972_v3 }
 0x6bc   : > { %6261 = vmatprep.subr.bf16.mxu0 %v22980_v5 }
 0x6be   : > { %6472 = vmatpush1.bf16.msra.mxu1 %v22975_v4 }
 0x6bf   : > { %6473 = vmatprep.subr.bf16.mxu1 %v22983_v10  ;;  %6262 = vmatpush1.bf16.msra.mxu0 %v22978_v9 }
 0x6c0   : > { %6263 = vmatprep.subr.bf16.mxu0 %v22986_v15 }
 0x6c2   : > { %6474 = vmatpush1.bf16.msra.mxu1 %v22981_v8 }
 0x6c3   : > { %6475 = vmatprep.subr.bf16.mxu1 %v22989_v26  ;;  %6264 = vmatpush1.bf16.msra.mxu0 %v22984_v24 }
 0x6c4   : > { %6265 = vmatprep.subr.bf16.mxu0 %v22992_v37 }
 0x6c6   : > { %6476 = vmatpush1.bf16.msra.mxu1 %v22987_v38 }
 0x6c7   : > { %6477 = vmatprep.subr.bf16.mxu1 %v22995_v42  ;;  %6266 = vmatpush1.bf16.msra.mxu0 %v22990_v39 }
 0x6c8   : > { %6267 = vmatprep.subr.bf16.mxu0 %v22998_v40 }
 0x6ca   : > { %6478 = vmatpush1.bf16.msra.mxu1 %v22993_v41 }
 0x6cb   : > { %6479 = vmatprep.subr.bf16.mxu1 %v23001_v46  ;;  %6268 = vmatpush1.bf16.msra.mxu0 %v22996_v43 }
 0x6cc   : > { %6269 = vmatprep.subr.bf16.mxu0 %v23004_v48 }
 0x6ce   : > { %6480 = vmatpush1.bf16.msra.mxu1 %v22999_v47 }
 0x6cf   : > { %6481 = vmatprep.subr.bf16.mxu1 %v23007_v51  ;;  %6270 = vmatpush1.bf16.msra.mxu0 %v23002_v16 }
 0x6d0   : > { %6271 = vmatprep.subr.bf16.mxu0 %v23010_v58 }
 0x6d2   : > { %6482 = vmatpush1.bf16.msra.mxu1 %v23005_v49 }
 0x6d3   : > { %6483 = vmatprep.subr.bf16.mxu1 %v23013_v60  ;;  %6272 = vmatpush1.bf16.msra.mxu0 %v23008_v52 }
 0x6d4   : > { %6273 = vmatprep.subr.bf16.mxu0 %v23016_v61 }
 0x6d6   : > { %6484 = vmatpush1.bf16.msra.mxu1 %v23011_v59 }
 0x6d7   : > { %6485 = vmatprep.subr.bf16.mxu1 %v23019_v0  ;;  %6274 = vmatpush1.bf16.msra.mxu0 %v23014_v34 }
 0x6d8   : > { %6275 = vmatprep.subr.bf16.mxu0 %v23022_v25 }
 0x6da   : > { %6486 = vmatpush1.bf16.msra.mxu1 %v23017_v63 }
 0x6db   : > { %6487 = vmatprep.subr.bf16.mxu1 %v23025_v54  ;;  %6276 = vmatpush1.bf16.msra.mxu0 %v23020_v36  ;;  %v23041_v54 = vld [vmem:[#allocation11 + $0x208] ss:$16 sps:$4 sm:$0xff]  }
 0x6dc   : > { %6277 = vmatprep.subr.bf16.mxu0 %v23028_v55 }
 0x6de   : > { %6488 = vmatpush1.bf16.msra.mxu1 %v23023_v30  ;;  %v23038_v30 = vld [vmem:[#allocation11 + $0x200] ss:$16 sps:$4 sm:$0xff]  }
 0x6df   : > { %6489 = vmatprep.subr.bf16.mxu1 %v23031_v56  ;;  %6278 = vmatpush1.bf16.msra.mxu0 %v23026_v57 }
 0x6e0   : > { %6279 = vmatprep.subr.bf16.mxu0 %v23034_v31 }
 0x6e2   : > { %6490 = vmatpush1.bf16.msra.mxu1 %v23029_v27 }
 0x6e3   : > { %6491 = vmatprep.subr.bf16.mxu1 %v23037_v32  ;;  %6280 = vmatpush1.bf16.msra.mxu0 %v23032_v33  ;;  %v23046_v32 = vld [vmem:[#allocation11 + $0x224] ss:$16 sps:$4 sm:$0xff]   ;;  %v23049_v33 = vld [vmem:[#allocation11 + $0x22c] ss:$16 sps:$4 sm:$0xff]  }
 0x6e4   : > { %6302 = vmatprep.subr.bf16.mxu0 %v23040_v62 }
 0x6e6   : > { %6492 = vmatpush1.bf16.msra.mxu1 %v23035_v7 }
 0x6e7   : > { %6514 = vmatprep.subr.bf16.mxu1 %v23043_v1 }
 0x738   : > { %v4002_v2 = vpop.f32.mrb[40].mxu1 }
 0x739   : > { %v4004_v29 = vpop.f32.mrb[41].mxu1 }
 0x73c   : > { %v4008_v45 = vpop.f32.mrb[42].mxu1 }
 0x73d   : > { %v4010_v28 = vpop.f32.mrb[43].mxu1 }
 0x740   : > { %v27343_v19 = vpop.f32.mrb[44].mxu1 }
 0x741   : > { %v27345_v6 = vpop.f32.mrb[45].mxu1 }
 0x744   : > { %v27347_v17 = vpop.f32.mrb[46].mxu1 }
 0x745   : > { %v27349_v18 = vpop.f32.mrb[47].mxu1 }
 0x748   : > { %v4091_v13 = vpop.f32.mrb[48].mxu1 }
 0x749   : > { %v4093_v21 = vpop.f32.mrb[49].mxu1 }
 0x74c   : > { %v4097_v35 = vpop.f32.mrb[50].mxu1 }
 0x74d   : > { %v4099_v50 = vpop.f32.mrb[51].mxu1 }
 0x750   : > { %v27351_v12 = vpop.f32.mrb[52].mxu1 }
 0x751   : > { %v27353_v11 = vpop.f32.mrb[53].mxu1 }
 0x755   : > { %v27355_v3 = vpop.f32.mrb[54].mxu1 }
 0x756   : > { %v27357_v14 = vpop.f32.mrb[55].mxu1 }
 0x758   : > { %v27359_v5 = vpop.f32.mrb[48].mxu0 }
 0x759   : > { %v27361_v4 = vpop.f32.mrb[49].mxu0  ;;  %v27363_v9 = vpop.f32.mrb[56].mxu1 }
 0x75a   : > { %v27365_v10 = vpop.f32.mrb[57].mxu1 }
 0x75c   : > { %v27367_v15 = vpop.f32.mrb[50].mxu0 }
 0x75d   : > { %v27369_v8 = vpop.f32.mrb[51].mxu0  ;;  %v27371_v24 = vpop.f32.mrb[58].mxu1 }
 0x75e   : > { %v27373_v26 = vpop.f32.mrb[59].mxu1 }
 0x760   : > { %v27375_v37 = vpop.f32.mrb[52].mxu0 }
 0x761   : > { %v27377_v38 = vpop.f32.mrb[53].mxu0  ;;  %v27379_v39 = vpop.f32.mrb[60].mxu1 }
 0x762   : > { %v27381_v42 = vpop.f32.mrb[61].mxu1 }
 0x764   : > { %v27383_v40 = vpop.f32.mrb[54].mxu0 }
 0x765   : > { %v27385_v41 = vpop.f32.mrb[55].mxu0  ;;  %v27387_v43 = vpop.f32.mrb[62].mxu1 }
 0x766   : > { %v27389_v46 = vpop.f32.mrb[63].mxu1 }
 0x768   : > { %v4375_v47 = vpop.f32.mrb[56].mxu0 }
 0x769   : > { %v4665_v16 = vmax.f32 %v4002_v2, %v4375_v47  ;;  %v4377_v48 = vpop.f32.mrb[57].mxu0  ;;  %v4464_v49 = vpop.f32.mrb[64].mxu1  ;;  %v23055_v47 = vld [vmem:[#allocation11 + $0x24c] ss:$16 sps:$4 sm:$0xff]  }
 0x76a   : > { %v4666_v51 = vmax.f32 %v4004_v29, %v4377_v48  ;;  %v4667_v52 = vmax.f32 %v4091_v13, %v4464_v49  ;;  %v4466_v58 = vpop.f32.mrb[65].mxu1 }
 0x76b   : > { %v4668_v59 = vmax.f32 %v4093_v21, %v4466_v58  ;;  %v23050_v58 = vld [vmem:[#allocation11 + $0x240] ss:$16 sps:$4 sm:$0xff]  }
 0x76c   : > { %v4381_v60 = vpop.f32.mrb[58].mxu0 }
 0x76d   : > { %v4673_v34 = vmax.f32 %v4008_v45, %v4381_v60  ;;  %v4383_v61 = vpop.f32.mrb[59].mxu0 }
 0x76e   : > { %v4674_v63 = vmax.f32 %v4010_v28, %v4383_v61  ;;  %v23044_v28 = vld [vmem:[#allocation11 + $0x220] ss:$16 sps:$4 sm:$0xff]  }
 0x76f   : > { %v27391_v0 = vpack.c.bf16 %v4673_v34, %v4665_v16  ;;  %v4470_v36 = vpop.f32.mrb[66].mxu1 }
 0x770   : > { %v27393_v25 = vpack.c.bf16 %v4674_v63, %v4666_v51  ;;  %v4387_v55 = vpop.f32.mrb[60].mxu0  ;;  %v4675_v56 = vmax.f32 %v4097_v35, %v4470_v36  ;;  %v4472_v57 = vpop.f32.mrb[67].mxu1 }
 0x771   : > { %v4681_v27 = vmax.f32 %v27343_v19, %v4387_v55  ;;  %v4389_v31 = vpop.f32.mrb[61].mxu0  ;;  %v4676_v7 = vmax.f32 %v4099_v50, %v4472_v57  ;;  %v23047_v19 = vld [vmem:[#allocation11 + $0x228] ss:$16 sps:$4 sm:$0xff]   ;;  %v23052_v50 = vld [vmem:[#allocation11 + $0x244] ss:$16 sps:$4 sm:$0xff]  }
 0x772   : > { %6281 = vmatprep.mubr.bf16.mxu0 %v27393_v25  ;;  %6493 = vmatprep.mubr.bf16.mxu1 %v27393_v25  ;;  %v4682_v62 = vmax.f32 %v27345_v6, %v4389_v31  ;;  %v27399_v1 = vpack.c.bf16 %v4675_v56, %v4667_v52  ;;  %v23056_v55 = vld [vmem:[#allocation11 + $0x260] ss:$16 sps:$4 sm:$0xff]   ;;  %v23064_v31 = vld [vmem:[#allocation11 + $0x284] ss:$16 sps:$4 sm:$0xff]  }
 0x773   : > { %6282 = vmatmul.mubr.bf16.vlgmr.msra.gmra.mrb[72].mxu0 %v27391_v0  ;;  %6494 = vmatmul.mubr.bf16.vlgmr.msra.gmra.mrb[80].mxu1 %v27391_v0  ;;  %v27403_v2 = vpack.c.bf16 %v4676_v7, %v4668_v59  ;;  %v4476_v29 = vpop.f32.mrb[68].mxu1  ;;  %v23053_v59 = vld [vmem:[#allocation11 + $0x248] ss:$16 sps:$4 sm:$0xff]  }
 0x774   : > { %6303 = vmatpush1.bf16.msra.mxu0 %v23038_v30  ;;  %6515 = vmatpush1.bf16.msra.mxu1 %v23041_v54  ;;  %v4393_v45 = vpop.f32.mrb[62].mxu0  ;;  %v4683_v13 = vmax.f32 %v27351_v12, %v4476_v29  ;;  %v4478_v21 = vpop.f32.mrb[69].mxu1 }
 0x775   : > { %v4689_v35 = vmax.f32 %v27347_v17, %v4393_v45  ;;  %6304 = vmatprep.subr.bf16.mxu0 %v23046_v32  ;;  %6516 = vmatprep.subr.bf16.mxu1 %v23049_v33  ;;  %v4395_v6 = vpop.f32.mrb[63].mxu0  ;;  %v4684_v16 = vmax.f32 %v27353_v11, %v4478_v21  ;;  %v23058_v11 = vld [vmem:[#allocation11 + $0x264] ss:$16 sps:$4 sm:$0xff]   ;;  %v23067_v32 = vld [vmem:[#allocation11 + $0x28c] ss:$16 sps:$4 sm:$0xff]  }
 0x776   : > { %v4690_v48 = vmax.f32 %v27349_v18, %v4395_v6  ;;  %v23061_v18 = vld [vmem:[#allocation11 + $0x26c] ss:$16 sps:$4 sm:$0xff]   ;;  %v23062_v45 = vld [vmem:[#allocation11 + $0x280] ss:$16 sps:$4 sm:$0xff]   ;;  %v23070_v21 = vld [vmem:[#allocation11 + $0x2a4] ss:$16 sps:$4 sm:$0xff]  }
 0x777   : > { %v27409_v49 = vpack.c.bf16 %v4689_v35, %v4681_v27  ;;  %v4482_v51 = vpop.f32.mrb[70].mxu1  ;;  %v23073_v35 = vld [vmem:[#allocation11 + $0x2ac] ss:$16 sps:$4 sm:$0xff]  }
 0x778   : > { %v27411_v52 = vpack.c.bf16 %v4690_v48, %v4682_v62  ;;  %6305 = vmatpush1.bf16.msra.mxu0 %v23044_v28  ;;  %6517 = vmatpush1.bf16.msra.mxu1 %v23047_v19  ;;  %v4553_v12 = vpop.f32.mrb[64].mxu0  ;;  %v4691_v17 = vmax.f32 %v27355_v3, %v4482_v51  ;;  %v4484_v60 = vpop.f32.mrb[71].mxu1  ;;  %v23065_v28 = vld [vmem:[#allocation11 + $0x288] ss:$16 sps:$4 sm:$0xff]   ;;  %v23068_v51 = vld [vmem:[#allocation11 + $0x2a0] ss:$16 sps:$4 sm:$0xff]  }
 0x779   : > { %v4669_v34 = vmax.f32 %v27359_v5, %v4553_v12  ;;  %v4555_v61 = vpop.f32.mrb[65].mxu0  ;;  %6306 = vmatprep.subr.bf16.mxu0 %v23052_v50  ;;  %6518 = vmatprep.subr.bf16.mxu1 %v23055_v47  ;;  %v4692_v63 = vmax.f32 %v27357_v14, %v4484_v60  ;;  %v23059_v14 = vld [vmem:[#allocation11 + $0x268] ss:$16 sps:$4 sm:$0xff]  }
 0x77a   : > { %v4670_v36 = vmax.f32 %v27361_v4, %v4555_v61  ;;  %6291 = vmatprep.mubr.bf16.mxu0 %v27411_v52  ;;  %6503 = vmatprep.mubr.bf16.mxu1 %v27411_v52  ;;  %v27419_v30 = vpack.c.bf16 %v4691_v17, %v4683_v13  ;;  %v23071_v12 = vld [vmem:[#allocation11 + $0x2a8] ss:$16 sps:$4 sm:$0xff]  }
 0x77b   : > { %6292 = vmatmul.mubr.bf16.gmra.mrb[76].mxu0 %v27409_v49  ;;  %6504 = vmatmul.mubr.bf16.gmra.mrb[84].mxu1 %v27409_v49  ;;  %v27423_v3 = vpack.c.bf16 %v4692_v63, %v4684_v16  ;;  %v4642_v5 = vpop.f32.mrb[72].mxu1  ;;  %v23077_v63 = vld [vmem:[#allocation11 + $0x2c8] ss:$16 sps:$4 sm:$0xff]  }
 0x77c   : > { %6307 = vmatpush1.bf16.msra.mxu0 %v23050_v58  ;;  %6519 = vmatpush1.bf16.msra.mxu1 %v23053_v59  ;;  %v4559_v54 = vpop.f32.mrb[66].mxu0  ;;  %v4671_v4 = vmax.f32 %v27363_v9, %v4642_v5  ;;  %v4644_v56 = vpop.f32.mrb[73].mxu1  ;;  %v23082_v5 = vld [vmem:[#allocation11 + $0x2e4] ss:$16 sps:$4 sm:$0xff]  }
 0x77d   : > { %v4677_v57 = vmax.f32 %v27367_v15, %v4559_v54  ;;  %v4561_v27 = vpop.f32.mrb[67].mxu0  ;;  %6308 = vmatprep.subr.bf16.mxu0 %v23058_v11  ;;  %6520 = vmatprep.subr.bf16.mxu1 %v23061_v18  ;;  %v4672_v33 = vmax.f32 %v27365_v10, %v4644_v56  ;;  %v23085_v54 = vld [vmem:[#allocation11 + $0x2ec] ss:$16 sps:$4 sm:$0xff]   ;;  %v23088_v56 = vld [vmem:[#allocation11 + $0x304] ss:$16 sps:$4 sm:$0xff]  }
 0x77e   : > { %v4678_v7 = vmax.f32 %v27369_v8, %v4561_v27  ;;  %6334 = vmatprep.mubr.bf16.mxu0 %v27403_v2  ;;  %6546 = vmatprep.mubr.bf16.mxu1 %v27403_v2  ;;  %v23089_v27 = vld [vmem:[#allocation11 + $0x308] ss:$16 sps:$4 sm:$0xff]  }
 0x77f   : > { %v27431_v62 = vpack.c.bf16 %v4677_v57, %v4669_v34  ;;  %v4648_v29 = vpop.f32.mrb[74].mxu1  ;;  %v23091_v57 = vld [vmem:[#allocation11 + $0x30c] ss:$16 sps:$4 sm:$0xff]  }
 0x780   : > { %v27433_v9 = vpack.c.bf16 %v4678_v7, %v4670_v36  ;;  %6309 = vmatpush1.bf16.msra.mxu0 %v23056_v55  ;;  %6521 = vmatpush1.bf16.msra.mxu1 %v23059_v14  ;;  %v4565_v15 = vpop.f32.mrb[68].mxu0  ;;  %v4679_v19 = vmax.f32 %v27371_v24, %v4648_v29  ;;  %v4650_v13 = vpop.f32.mrb[75].mxu1  ;;  %v23080_v14 = vld [vmem:[#allocation11 + $0x2e0] ss:$16 sps:$4 sm:$0xff]   ;;  %v23100_v7 = vld [vmem:[#allocation11 + $0x344] ss:$16 sps:$4 sm:$0xff]  }
 0x781   : > { %v4685_v10 = vmax.f32 %v27375_v37, %v4565_v15  ;;  %v4567_v8 = vpop.f32.mrb[69].mxu0  ;;  %6310 = vmatprep.subr.bf16.mxu0 %v23064_v31  ;;  %6522 = vmatprep.subr.bf16.mxu1 %v23067_v32  ;;  %v4680_v6 = vmax.f32 %v27373_v26, %v4650_v13  ;;  %v23076_v26 = vld [vmem:[#allocation11 + $0x2c4] ss:$16 sps:$4 sm:$0xff]   ;;  %v23092_v32 = vld [vmem:[#allocation11 + $0x320] ss:$16 sps:$4 sm:$0xff]  }
 0x782   : > { %v4686_v50 = vmax.f32 %v27377_v38, %v4567_v8  ;;  %v27439_v47 = vpack.c.bf16 %v4679_v19, %v4671_v4  ;;  %v23079_v38 = vld [vmem:[#allocation11 + $0x2cc] ss:$16 sps:$4 sm:$0xff]   ;;  %v23083_v4 = vld [vmem:[#allocation11 + $0x2e8] ss:$16 sps:$4 sm:$0xff]   ;;  %v23094_v31 = vld [vmem:[#allocation11 + $0x324] ss:$16 sps:$4 sm:$0xff]  }
 0x783   : > { %v27441_v16 = vpack.c.bf16 %v4680_v6, %v4672_v33  ;;  %v4654_v48 = vpop.f32.mrb[76].mxu1  ;;  %v23095_v33 = vld [vmem:[#allocation11 + $0x328] ss:$16 sps:$4 sm:$0xff]   ;;  %v23103_v29 = vld [vmem:[#allocation11 + $0x34c] ss:$16 sps:$4 sm:$0xff]  }
 0x784   : > { %6311 = vmatpush1.bf16.msra.mxu0 %v23062_v45  ;;  %6523 = vmatpush1.bf16.msra.mxu1 %v23065_v28  ;;  %v4571_v24 = vpop.f32.mrb[70].mxu0  ;;  %v4687_v37 = vmax.f32 %v27379_v39, %v4654_v48  ;;  %v4656_v58 = vpop.f32.mrb[77].mxu1  ;;  %v23074_v39 = vld [vmem:[#allocation11 + $0x2c0] ss:$16 sps:$4 sm:$0xff]   ;;  %v23101_v45 = vld [vmem:[#allocation11 + $0x348] ss:$16 sps:$4 sm:$0xff]  }
 0x785   : > { %v4693_v59 = vmax.f32 %v27383_v40, %v4571_v24  ;;  %v4573_v17 = vpop.f32.mrb[71].mxu0  ;;  %6312 = vmatprep.subr.bf16.mxu0 %v23070_v21  ;;  %6524 = vmatprep.subr.bf16.mxu1 %v23073_v35  ;;  %v4688_v60 = vmax.f32 %v27381_v42, %v4656_v58  ;;  %v23098_v15 = vld [vmem:[#allocation11 + $0x340] ss:$16 sps:$4 sm:$0xff]   ;;  %v23106_v28 = vld [vmem:[#allocation11 + $0x364] ss:$16 sps:$4 sm:$0xff]  }
 0x786   : > { %v4694_v34 = vmax.f32 %v27385_v41, %v4573_v17  ;;  %v23109_v19 = vld [vmem:[#allocation11 + $0x36c] ss:$16 sps:$4 sm:$0xff]   ;;  %v23104_v13 = vld [vmem:[#allocation11 + $0x360] ss:$16 sps:$4 sm:$0xff]   ;;  %v23112_v8 = vld [vmem:[#allocation11 + $0x384] ss:$16 sps:$4 sm:$0xff]  }
 0x787   : > { %v27447_v61 = vpack.c.bf16 %v4693_v59, %v4685_v10  ;;  %v4660_v11 = vpop.f32.mrb[78].mxu1  ;;  %v23107_v10 = vld [vmem:[#allocation11 + $0x368] ss:$16 sps:$4 sm:$0xff]   ;;  %v23115_v21 = vld [vmem:[#allocation11 + $0x38c] ss:$16 sps:$4 sm:$0xff]  }
 0x788   : > { %v27449_v18 = vpack.c.bf16 %v4694_v34, %v4686_v50  ;;  %6313 = vmatpush1.bf16.msra.mxu0 %v23068_v51  ;;  %6525 = vmatpush1.bf16.msra.mxu1 %v23071_v12  ;;  %v4695_v40 = vmax.f32 %v27387_v43, %v4660_v11  ;;  %v4662_v36 = vpop.f32.mrb[79].mxu1  ;;  %v23086_v43 = vld [vmem:[#allocation11 + $0x300] ss:$16 sps:$4 sm:$0xff]   ;;  %v23113_v6 = vld [vmem:[#allocation11 + $0x388] ss:$16 sps:$4 sm:$0xff]  }
 0x789   : > { %6314 = vmatprep.subr.bf16.mxu0 %v23076_v26  ;;  %6526 = vmatprep.subr.bf16.mxu1 %v23079_v38  ;;  %v4696_v42 = vmax.f32 %v27389_v46, %v4662_v36  ;;  %v23097_v46 = vld [vmem:[#allocation11 + $0x32c] ss:$16 sps:$4 sm:$0xff]   ;;  %v23110_v35 = vld [vmem:[#allocation11 + $0x380] ss:$16 sps:$4 sm:$0xff]   ;;  %v23118_v50 = vld [vmem:[#allocation11 + $0x3a4] ss:$16 sps:$4 sm:$0xff]  }
 0x78a   : > { %v27453_v55 = vpack.c.bf16 %v4695_v40, %v4687_v37  ;;  %v23121_v48 = vld [vmem:[#allocation11 + $0x3ac] ss:$16 sps:$4 sm:$0xff]   ;;  %v23116_v24 = vld [vmem:[#allocation11 + $0x3a0] ss:$16 sps:$4 sm:$0xff]   ;;  %v23119_v51 = vld [vmem:[#allocation11 + $0x3a8] ss:$16 sps:$4 sm:$0xff]  }
 0x78b   : > { %v27455_v41 = vpack.c.bf16 %v4696_v42, %v4688_v60  ;;  %v23124_v12 = vld [vmem:[#allocation11 + $0x3c4] ss:$16 sps:$4 sm:$0xff]   ;;  %v23127_v37 = vld [vmem:[#allocation11 + $0x3cc] ss:$16 sps:$4 sm:$0xff]   ;;  %v23122_v58 = vld [vmem:[#allocation11 + $0x3c0] ss:$16 sps:$4 sm:$0xff]  }
 0x78c   : > { %6315 = vmatpush1.bf16.msra.mxu0 %v23074_v39  ;;  %6527 = vmatpush1.bf16.msra.mxu1 %v23077_v63  ;;  %v23125_v59 = vld [vmem:[#allocation11 + $0x3c8] ss:$16 sps:$4 sm:$0xff]   ;;  %v23130_v17 = vld [vmem:[#allocation11 + $0x3e4] ss:$16 sps:$4 sm:$0xff]   ;;  %v23133_v26 = vld [vmem:[#allocation11 + $0x3ec] ss:$16 sps:$4 sm:$0xff]  }
 0x78d   : > { %6316 = vmatprep.subr.bf16.mxu0 %v23082_v5  ;;  %6528 = vmatprep.subr.bf16.mxu1 %v23085_v54  ;;  %v23128_v38 = vld [vmem:[#allocation11 + $0x3e0] ss:$16 sps:$4 sm:$0xff]   ;;  %v23131_v60 = vld [vmem:[#allocation11 + $0x3e8] ss:$16 sps:$4 sm:$0xff]   ;;  %v23136_v34 = vld [vmem:[#allocation11 + $0x404] ss:$16 sps:$4 sm:$0xff]  }
 0x78e   : > { %v23139_v11 = vld [vmem:[#allocation11 + $0x40c] ss:$16 sps:$4 sm:$0xff]   ;;  %v23134_v39 = vld [vmem:[#allocation11 + $0x400] ss:$16 sps:$4 sm:$0xff]   ;;  %v23137_v63 = vld [vmem:[#allocation11 + $0x408] ss:$16 sps:$4 sm:$0xff]  }
 0x78f   : > { %v23142_v40 = vld [vmem:[#allocation11 + $0x424] ss:$16 sps:$4 sm:$0xff]   ;;  %v23145_v36 = vld [vmem:[#allocation11 + $0x42c] ss:$16 sps:$4 sm:$0xff]   ;;  %v23140_v5 = vld [vmem:[#allocation11 + $0x420] ss:$16 sps:$4 sm:$0xff]  }
 0x790   : > { %6317 = vmatpush1.bf16.msra.mxu0 %v23080_v14  ;;  %6529 = vmatpush1.bf16.msra.mxu1 %v23083_v4  ;;  %v23143_v54 = vld [vmem:[#allocation11 + $0x428] ss:$16 sps:$4 sm:$0xff]   ;;  %v23148_v42 = vld [vmem:[#allocation11 + $0x444] ss:$16 sps:$4 sm:$0xff]   ;;  %v23151_v14 = vld [vmem:[#allocation11 + $0x44c] ss:$16 sps:$4 sm:$0xff]  }
 0x791   : > { %6318 = vmatprep.subr.bf16.mxu0 %v23088_v56  ;;  %6530 = vmatprep.subr.bf16.mxu1 %v23091_v57  ;;  %v23146_v4 = vld [vmem:[#allocation11 + $0x440] ss:$16 sps:$4 sm:$0xff]   ;;  %v23149_v56 = vld [vmem:[#allocation11 + $0x448] ss:$16 sps:$4 sm:$0xff]   ;;  %v23154_v57 = vld [vmem:[#allocation11 + $0x464] ss:$16 sps:$4 sm:$0xff]  }
 0x794   : > { %6319 = vmatpush1.bf16.msra.mxu0 %v23086_v43  ;;  %6531 = vmatpush1.bf16.msra.mxu1 %v23089_v27  ;;  %v23157_v43 = vld [vmem:[#allocation11 + $0x46c] ss:$16 sps:$4 sm:$0xff]   ;;  %v23152_v27 = vld [vmem:[#allocation11 + $0x460] ss:$16 sps:$4 sm:$0xff]  }
 0x795   : > { %6320 = vmatprep.subr.bf16.mxu0 %v23094_v31  ;;  %6532 = vmatprep.subr.bf16.mxu1 %v23097_v46  ;;  %v23155_v31 = vld [vmem:[#allocation11 + $0x468] ss:$16 sps:$4 sm:$0xff]   ;;  %v23160_v46 = vld [vmem:[#allocation11 + $0x484] ss:$16 sps:$4 sm:$0xff]  }
 0x798   : > { %6321 = vmatpush1.bf16.msra.mxu0 %v23092_v32  ;;  %6533 = vmatpush1.bf16.msra.mxu1 %v23095_v33  ;;  %v23163_v32 = vld [vmem:[#allocation11 + $0x48c] ss:$16 sps:$4 sm:$0xff]   ;;  %v23158_v33 = vld [vmem:[#allocation11 + $0x480] ss:$16 sps:$4 sm:$0xff]  }
 0x799   : > { %6322 = vmatprep.subr.bf16.mxu0 %v23100_v7  ;;  %6534 = vmatprep.subr.bf16.mxu1 %v23103_v29  ;;  %v23161_v7 = vld [vmem:[#allocation11 + $0x488] ss:$16 sps:$4 sm:$0xff]   ;;  %v23166_v29 = vld [vmem:[#allocation11 + $0x4a4] ss:$16 sps:$4 sm:$0xff]  }
 0x79c   : > { %6323 = vmatpush1.bf16.msra.mxu0 %v23098_v15  ;;  %6535 = vmatpush1.bf16.msra.mxu1 %v23101_v45  ;;  %v23169_v15 = vld [vmem:[#allocation11 + $0x4ac] ss:$16 sps:$4 sm:$0xff]   ;;  %v23164_v45 = vld [vmem:[#allocation11 + $0x4a0] ss:$16 sps:$4 sm:$0xff]  }
 0x79d   : > { %6324 = vmatprep.subr.bf16.mxu0 %v23106_v28  ;;  %6536 = vmatprep.subr.bf16.mxu1 %v23109_v19  ;;  %v23167_v28 = vld [vmem:[#allocation11 + $0x4a8] ss:$16 sps:$4 sm:$0xff]   ;;  %v23172_v19 = vld [vmem:[#allocation11 + $0x4c4] ss:$16 sps:$4 sm:$0xff]  }
 0x7a0   : > { %6325 = vmatpush1.bf16.msra.mxu0 %v23104_v13  ;;  %6537 = vmatpush1.bf16.msra.mxu1 %v23107_v10  ;;  %v23175_v13 = vld [vmem:[#allocation11 + $0x4cc] ss:$16 sps:$4 sm:$0xff]   ;;  %v23170_v10 = vld [vmem:[#allocation11 + $0x4c0] ss:$16 sps:$4 sm:$0xff]  }
 0x7a1   : > { %6326 = vmatprep.subr.bf16.mxu0 %v23112_v8  ;;  %6538 = vmatprep.subr.bf16.mxu1 %v23115_v21  ;;  %v23173_v8 = vld [vmem:[#allocation11 + $0x4c8] ss:$16 sps:$4 sm:$0xff]   ;;  %v23178_v21 = vld [vmem:[#allocation11 + $0x4e4] ss:$16 sps:$4 sm:$0xff]  }
 0x7a4   : > { %6327 = vmatpush1.bf16.msra.mxu0 %v23110_v35  ;;  %6539 = vmatpush1.bf16.msra.mxu1 %v23113_v6  ;;  %v23181_v35 = vld [vmem:[#allocation11 + $0x4ec] ss:$16 sps:$4 sm:$0xff]   ;;  %v23176_v6 = vld [vmem:[#allocation11 + $0x4e0] ss:$16 sps:$4 sm:$0xff]  }
 0x7a5   : > { %6328 = vmatprep.subr.bf16.mxu0 %v23118_v50  ;;  %6540 = vmatprep.subr.bf16.mxu1 %v23121_v48  ;;  %v23179_v50 = vld [vmem:[#allocation11 + $0x4e8] ss:$16 sps:$4 sm:$0xff]   ;;  %v23184_v48 = vld [vmem:[#allocation11 + $0x504] ss:$16 sps:$4 sm:$0xff]  }
 0x7a8   : > { %6329 = vmatpush1.bf16.msra.mxu0 %v23116_v24  ;;  %6541 = vmatpush1.bf16.msra.mxu1 %v23119_v51  ;;  %v23187_v24 = vld [vmem:[#allocation11 + $0x50c] ss:$16 sps:$4 sm:$0xff]   ;;  %v23182_v51 = vld [vmem:[#allocation11 + $0x500] ss:$16 sps:$4 sm:$0xff]  }
 0x7a9   : > { %6330 = vmatprep.subr.bf16.mxu0 %v23124_v12  ;;  %6542 = vmatprep.subr.bf16.mxu1 %v23127_v37  ;;  %v23185_v12 = vld [vmem:[#allocation11 + $0x508] ss:$16 sps:$4 sm:$0xff]   ;;  %v23190_v37 = vld [vmem:[#allocation11 + $0x524] ss:$16 sps:$4 sm:$0xff]  }
 0x7ac   : > { %6331 = vmatpush1.bf16.msra.mxu0 %v23122_v58  ;;  %6543 = vmatpush1.bf16.msra.mxu1 %v23125_v59  ;;  %v23193_v58 = vld [vmem:[#allocation11 + $0x52c] ss:$16 sps:$4 sm:$0xff]   ;;  %v23188_v59 = vld [vmem:[#allocation11 + $0x520] ss:$16 sps:$4 sm:$0xff]  }
 0x7ad   : > { %6332 = vmatprep.subr.bf16.mxu0 %v23130_v17  ;;  %6544 = vmatprep.subr.bf16.mxu1 %v23133_v26  ;;  %v23191_v17 = vld [vmem:[#allocation11 + $0x528] ss:$16 sps:$4 sm:$0xff]   ;;  %v23196_v26 = vld [vmem:[#allocation11 + $0x544] ss:$16 sps:$4 sm:$0xff]  }
 0x7b0   : > { %6333 = vmatpush1.bf16.msra.mxu0 %v23128_v38  ;;  %6545 = vmatpush1.bf16.msra.mxu1 %v23131_v60  ;;  %v23199_v38 = vld [vmem:[#allocation11 + $0x54c] ss:$16 sps:$4 sm:$0xff]   ;;  %v23194_v60 = vld [vmem:[#allocation11 + $0x540] ss:$16 sps:$4 sm:$0xff]  }
 0x7b1   : > { %6355 = vmatprep.subr.bf16.mxu0 %v23136_v34  ;;  %6567 = vmatprep.subr.bf16.mxu1 %v23139_v11  ;;  %v23197_v34 = vld [vmem:[#allocation11 + $0x548] ss:$16 sps:$4 sm:$0xff]   ;;  %v23202_v11 = vld [vmem:[#allocation11 + $0x564] ss:$16 sps:$4 sm:$0xff]  }
 0x7b3   : > { %6335 = vmatmul.mubr.bf16.vlgmr.msra.gmra.mrb[72].mxu0 %v27399_v1  ;;  %6547 = vmatmul.mubr.bf16.vlgmr.msra.gmra.mrb[80].mxu1 %v27399_v1 }
 0x7b4   : > { %6344 = vmatprep.mubr.bf16.mxu0 %v27423_v3  ;;  %6356 = vmatpush1.bf16.msra.mxu0 %v23134_v39  ;;  %v23205_v39 = vld [vmem:[#allocation11 + $0x56c] ss:$16 sps:$4 sm:$0xff]  }
 0x7b5   : > { %6556 = vmatprep.mubr.bf16.mxu1 %v27423_v3  ;;  %6568 = vmatpush1.bf16.msra.mxu1 %v23137_v63  ;;  %v23200_v63 = vld [vmem:[#allocation11 + $0x560] ss:$16 sps:$4 sm:$0xff]  }
 0x7b6   : > { %6357 = vmatprep.subr.bf16.mxu0 %v23142_v40  ;;  %6569 = vmatprep.subr.bf16.mxu1 %v23145_v36  ;;  %v23203_v40 = vld [vmem:[#allocation11 + $0x568] ss:$16 sps:$4 sm:$0xff]   ;;  %v23208_v36 = vld [vmem:[#allocation11 + $0x584] ss:$16 sps:$4 sm:$0xff]  }
 0x7b8   : > { %6358 = vmatpush1.bf16.msra.mxu0 %v23140_v5  ;;  %v23211_v5 = vld [vmem:[#allocation11 + $0x58c] ss:$16 sps:$4 sm:$0xff]  }
 0x7b9   : > { %6570 = vmatpush1.bf16.msra.mxu1 %v23143_v54  ;;  %6359 = vmatprep.subr.bf16.mxu0 %v23148_v42  ;;  %v23206_v54 = vld [vmem:[#allocation11 + $0x580] ss:$16 sps:$4 sm:$0xff]   ;;  %v23209_v42 = vld [vmem:[#allocation11 + $0x588] ss:$16 sps:$4 sm:$0xff]  }
 0x7ba   : > { %6571 = vmatprep.subr.bf16.mxu1 %v23151_v14  ;;  %v23214_v14 = vld [vmem:[#allocation11 + $0x5a4] ss:$16 sps:$4 sm:$0xff]  }
 0x7bb   : > { %6345 = vmatmul.mubr.bf16.gmra.mrb[76].mxu0 %v27419_v30  ;;  %6557 = vmatmul.mubr.bf16.gmra.mrb[84].mxu1 %v27419_v30 }
 0x7bc   : > { %6360 = vmatpush1.bf16.msra.mxu0 %v23146_v4  ;;  %6387 = vmatprep.mubr.bf16.mxu0 %v27433_v9  ;;  %v23217_v4 = vld [vmem:[#allocation11 + $0x5ac] ss:$16 sps:$4 sm:$0xff]  }
 0x7bd   : > { %6572 = vmatpush1.bf16.msra.mxu1 %v23149_v56  ;;  %6599 = vmatprep.mubr.bf16.mxu1 %v27433_v9  ;;  %v23212_v56 = vld [vmem:[#allocation11 + $0x5a0] ss:$16 sps:$4 sm:$0xff]  }
 0x7be   : > { %6361 = vmatprep.subr.bf16.mxu0 %v23154_v57  ;;  %6573 = vmatprep.subr.bf16.mxu1 %v23157_v43  ;;  %v23215_v57 = vld [vmem:[#allocation11 + $0x5a8] ss:$16 sps:$4 sm:$0xff]   ;;  %v23220_v43 = vld [vmem:[#allocation11 + $0x5c4] ss:$16 sps:$4 sm:$0xff]  }
 0x7c0   : > { %6362 = vmatpush1.bf16.msra.mxu0 %v23152_v27  ;;  %v23223_v27 = vld [vmem:[#allocation11 + $0x5cc] ss:$16 sps:$4 sm:$0xff]  }
 0x7c1   : > { %6574 = vmatpush1.bf16.msra.mxu1 %v23155_v31  ;;  %6363 = vmatprep.subr.bf16.mxu0 %v23160_v46  ;;  %v23218_v31 = vld [vmem:[#allocation11 + $0x5c0] ss:$16 sps:$4 sm:$0xff]   ;;  %v23221_v46 = vld [vmem:[#allocation11 + $0x5c8] ss:$16 sps:$4 sm:$0xff]  }
 0x7c2   : > { %6575 = vmatprep.subr.bf16.mxu1 %v23163_v32  ;;  %v23226_v32 = vld [vmem:[#allocation11 + $0x5e4] ss:$16 sps:$4 sm:$0xff]  }
 0x7c4   : > { %6364 = vmatpush1.bf16.msra.mxu0 %v23158_v33  ;;  %v23229_v33 = vld [vmem:[#allocation11 + $0x5ec] ss:$16 sps:$4 sm:$0xff]  }
 0x7c5   : > { %6576 = vmatpush1.bf16.msra.mxu1 %v23161_v7  ;;  %6365 = vmatprep.subr.bf16.mxu0 %v23166_v29  ;;  %v23224_v7 = vld [vmem:[#allocation11 + $0x5e0] ss:$16 sps:$4 sm:$0xff]   ;;  %v23227_v29 = vld [vmem:[#allocation11 + $0x5e8] ss:$16 sps:$4 sm:$0xff]  }
 0x7c6   : > { %6577 = vmatprep.subr.bf16.mxu1 %v23169_v15  ;;  %v23232_v15 = vld [vmem:[#allocation11 + $0x604] ss:$16 sps:$4 sm:$0xff]  }
 0x7c8   : > { %6366 = vmatpush1.bf16.msra.mxu0 %v23164_v45  ;;  %v23235_v45 = vld [vmem:[#allocation11 + $0x60c] ss:$16 sps:$4 sm:$0xff]  }
 0x7c9   : > { %6578 = vmatpush1.bf16.msra.mxu1 %v23167_v28  ;;  %6367 = vmatprep.subr.bf16.mxu0 %v23172_v19  ;;  %v23230_v28 = vld [vmem:[#allocation11 + $0x600] ss:$16 sps:$4 sm:$0xff]   ;;  %v23233_v19 = vld [vmem:[#allocation11 + $0x608] ss:$16 sps:$4 sm:$0xff]  }
 0x7ca   : > { %6579 = vmatprep.subr.bf16.mxu1 %v23175_v13  ;;  %v23238_v13 = vld [vmem:[#allocation11 + $0x624] ss:$16 sps:$4 sm:$0xff]  }
 0x7cc   : > { %6368 = vmatpush1.bf16.msra.mxu0 %v23170_v10  ;;  %v23241_v10 = vld [vmem:[#allocation11 + $0x62c] ss:$16 sps:$4 sm:$0xff]  }
 0x7cd   : > { %6580 = vmatpush1.bf16.msra.mxu1 %v23173_v8  ;;  %6369 = vmatprep.subr.bf16.mxu0 %v23178_v21  ;;  %v23236_v8 = vld [vmem:[#allocation11 + $0x620] ss:$16 sps:$4 sm:$0xff]   ;;  %v23239_v21 = vld [vmem:[#allocation11 + $0x628] ss:$16 sps:$4 sm:$0xff]  }
 0x7ce   : > { %6581 = vmatprep.subr.bf16.mxu1 %v23181_v35  ;;  %v23244_v35 = vld [vmem:[#allocation11 + $0x644] ss:$16 sps:$4 sm:$0xff]  }
 0x7d0   : > { %6370 = vmatpush1.bf16.msra.mxu0 %v23176_v6  ;;  %v23247_v6 = vld [vmem:[#allocation11 + $0x64c] ss:$16 sps:$4 sm:$0xff]  }
 0x7d1   : > { %6582 = vmatpush1.bf16.msra.mxu1 %v23179_v50  ;;  %6371 = vmatprep.subr.bf16.mxu0 %v23184_v48  ;;  %v23242_v50 = vld [vmem:[#allocation11 + $0x640] ss:$16 sps:$4 sm:$0xff]   ;;  %v23245_v48 = vld [vmem:[#allocation11 + $0x648] ss:$16 sps:$4 sm:$0xff]  }
 0x7d2   : > { %6583 = vmatprep.subr.bf16.mxu1 %v23187_v24  ;;  %v23250_v24 = vld [vmem:[#allocation11 + $0x664] ss:$16 sps:$4 sm:$0xff]  }
 0x7d4   : > { %6372 = vmatpush1.bf16.msra.mxu0 %v23182_v51  ;;  %v23253_v51 = vld [vmem:[#allocation11 + $0x66c] ss:$16 sps:$4 sm:$0xff]  }
 0x7d5   : > { %6584 = vmatpush1.bf16.msra.mxu1 %v23185_v12  ;;  %6373 = vmatprep.subr.bf16.mxu0 %v23190_v37  ;;  %v23248_v12 = vld [vmem:[#allocation11 + $0x660] ss:$16 sps:$4 sm:$0xff]   ;;  %v23251_v37 = vld [vmem:[#allocation11 + $0x668] ss:$16 sps:$4 sm:$0xff]  }
 0x7d6   : > { %6585 = vmatprep.subr.bf16.mxu1 %v23193_v58  ;;  %v23256_v58 = vld [vmem:[#allocation11 + $0x684] ss:$16 sps:$4 sm:$0xff]  }
 0x7d8   : > { %6374 = vmatpush1.bf16.msra.mxu0 %v23188_v59  ;;  %v23259_v59 = vld [vmem:[#allocation11 + $0x68c] ss:$16 sps:$4 sm:$0xff]  }
 0x7d9   : > { %6586 = vmatpush1.bf16.msra.mxu1 %v23191_v17  ;;  %6375 = vmatprep.subr.bf16.mxu0 %v23196_v26  ;;  %v23254_v17 = vld [vmem:[#allocation11 + $0x680] ss:$16 sps:$4 sm:$0xff]   ;;  %v23257_v26 = vld [vmem:[#allocation11 + $0x688] ss:$16 sps:$4 sm:$0xff]  }
 0x7da   : > { %6587 = vmatprep.subr.bf16.mxu1 %v23199_v38  ;;  %v23262_v38 = vld [vmem:[#allocation11 + $0x6a4] ss:$16 sps:$4 sm:$0xff]  }
 0x7dc   : > { %6376 = vmatpush1.bf16.msra.mxu0 %v23194_v60  ;;  %v23265_v60 = vld [vmem:[#allocation11 + $0x6ac] ss:$16 sps:$4 sm:$0xff]  }
 0x7dd   : > { %6588 = vmatpush1.bf16.msra.mxu1 %v23197_v34  ;;  %6377 = vmatprep.subr.bf16.mxu0 %v23202_v11  ;;  %v23260_v34 = vld [vmem:[#allocation11 + $0x6a0] ss:$16 sps:$4 sm:$0xff]   ;;  %v23263_v11 = vld [vmem:[#allocation11 + $0x6a8] ss:$16 sps:$4 sm:$0xff]  }
 0x7de   : > { %6589 = vmatprep.subr.bf16.mxu1 %v23205_v39  ;;  %v23268_v39 = vld [vmem:[#allocation11 + $0x6c4] ss:$16 sps:$4 sm:$0xff]  }
 0x7e0   : > { %6378 = vmatpush1.bf16.msra.mxu0 %v23200_v63  ;;  %v23271_v63 = vld [vmem:[#allocation11 + $0x6cc] ss:$16 sps:$4 sm:$0xff]  }
 0x7e1   : > { %6590 = vmatpush1.bf16.msra.mxu1 %v23203_v40  ;;  %6379 = vmatprep.subr.bf16.mxu0 %v23208_v36  ;;  %v23266_v40 = vld [vmem:[#allocation11 + $0x6c0] ss:$16 sps:$4 sm:$0xff]   ;;  %v23269_v36 = vld [vmem:[#allocation11 + $0x6c8] ss:$16 sps:$4 sm:$0xff]  }
 0x7e2   : > { %6591 = vmatprep.subr.bf16.mxu1 %v23211_v5  ;;  %v23274_v5 = vld [vmem:[#allocation11 + $0x6e4] ss:$16 sps:$4 sm:$0xff]  }
 0x7e4   : > { %6380 = vmatpush1.bf16.msra.mxu0 %v23206_v54  ;;  %v23277_v54 = vld [vmem:[#allocation11 + $0x6ec] ss:$16 sps:$4 sm:$0xff]  }
 0x7e5   : > { %6592 = vmatpush1.bf16.msra.mxu1 %v23209_v42  ;;  %6381 = vmatprep.subr.bf16.mxu0 %v23214_v14  ;;  %v23272_v42 = vld [vmem:[#allocation11 + $0x6e0] ss:$16 sps:$4 sm:$0xff]   ;;  %v23275_v14 = vld [vmem:[#allocation11 + $0x6e8] ss:$16 sps:$4 sm:$0xff]  }
 0x7e6   : > { %6593 = vmatprep.subr.bf16.mxu1 %v23217_v4  ;;  %v23280_v4 = vld [vmem:[#allocation11 + $0x704] ss:$16 sps:$4 sm:$0xff]  }
 0x7e8   : > { %6382 = vmatpush1.bf16.msra.mxu0 %v23212_v56  ;;  %v23283_v56 = vld [vmem:[#allocation11 + $0x70c] ss:$16 sps:$4 sm:$0xff]  }
 0x7e9   : > { %6594 = vmatpush1.bf16.msra.mxu1 %v23215_v57  ;;  %6383 = vmatprep.subr.bf16.mxu0 %v23220_v43  ;;  %v23278_v57 = vld [vmem:[#allocation11 + $0x700] ss:$16 sps:$4 sm:$0xff]   ;;  %v23281_v43 = vld [vmem:[#allocation11 + $0x708] ss:$16 sps:$4 sm:$0xff]  }
 0x7ea   : > { %6595 = vmatprep.subr.bf16.mxu1 %v23223_v27  ;;  %v23286_v27 = vld [vmem:[#allocation11 + $0x724] ss:$16 sps:$4 sm:$0xff]  }
 0x7ec   : > { %6384 = vmatpush1.bf16.msra.mxu0 %v23218_v31  ;;  %v23289_v31 = vld [vmem:[#allocation11 + $0x72c] ss:$16 sps:$4 sm:$0xff]  }
 0x7ed   : > { %6596 = vmatpush1.bf16.msra.mxu1 %v23221_v46  ;;  %6385 = vmatprep.subr.bf16.mxu0 %v23226_v32  ;;  %v23284_v46 = vld [vmem:[#allocation11 + $0x720] ss:$16 sps:$4 sm:$0xff]   ;;  %v23287_v32 = vld [vmem:[#allocation11 + $0x728] ss:$16 sps:$4 sm:$0xff]  }
 0x7ee   : > { %6597 = vmatprep.subr.bf16.mxu1 %v23229_v33  ;;  %v23292_v33 = vld [vmem:[#allocation11 + $0x744] ss:$16 sps:$4 sm:$0xff]  }
 0x7f0   : > { %6386 = vmatpush1.bf16.msra.mxu0 %v23224_v7  ;;  %v23295_v7 = vld [vmem:[#allocation11 + $0x74c] ss:$16 sps:$4 sm:$0xff]  }
 0x7f1   : > { %6598 = vmatpush1.bf16.msra.mxu1 %v23227_v29  ;;  %6408 = vmatprep.subr.bf16.mxu0 %v23232_v15  ;;  %v23290_v29 = vld [vmem:[#allocation11 + $0x740] ss:$16 sps:$4 sm:$0xff]   ;;  %v23293_v15 = vld [vmem:[#allocation11 + $0x748] ss:$16 sps:$4 sm:$0xff]  }
 0x7f2   : > { %6620 = vmatprep.subr.bf16.mxu1 %v23235_v45  ;;  %v23298_v45 = vld [vmem:[#allocation11 + $0x764] ss:$16 sps:$4 sm:$0xff]  }
 0x7f3   : > { %6388 = vmatmul.mubr.bf16.vlgmr.msra.gmra.mrb[72].mxu0 %v27431_v62 }
 0x7f4   : > { %6600 = vmatmul.mubr.bf16.vlgmr.msra.gmra.mrb[80].mxu1 %v27431_v62  ;;  %6397 = vmatprep.mubr.bf16.mxu0 %v27449_v18 }
 0x7f5   : > { %6409 = vmatpush1.bf16.msra.mxu0 %v23230_v28  ;;  %6609 = vmatprep.mubr.bf16.mxu1 %v27449_v18  ;;  %v23301_v28 = vld [vmem:[#allocation11 + $0x76c] ss:$16 sps:$4 sm:$0xff]  }
 0x7f6   : > { %6621 = vmatpush1.bf16.msra.mxu1 %v23233_v19  ;;  %6410 = vmatprep.subr.bf16.mxu0 %v23238_v13  ;;  %v23296_v19 = vld [vmem:[#allocation11 + $0x760] ss:$16 sps:$4 sm:$0xff]   ;;  %v23299_v13 = vld [vmem:[#allocation11 + $0x768] ss:$16 sps:$4 sm:$0xff]  }
 0x7f7   : > { %6622 = vmatprep.subr.bf16.mxu1 %v23241_v10  ;;  %v23304_v10 = vld [vmem:[#allocation11 + $0x784] ss:$16 sps:$4 sm:$0xff]  }
 0x7f9   : > { %6411 = vmatpush1.bf16.msra.mxu0 %v23236_v8  ;;  %v23307_v8 = vld [vmem:[#allocation11 + $0x78c] ss:$16 sps:$4 sm:$0xff]  }
 0x7fa   : > { %6623 = vmatpush1.bf16.msra.mxu1 %v23239_v21  ;;  %6412 = vmatprep.subr.bf16.mxu0 %v23244_v35  ;;  %v23302_v21 = vld [vmem:[#allocation11 + $0x780] ss:$16 sps:$4 sm:$0xff]   ;;  %v23305_v35 = vld [vmem:[#allocation11 + $0x788] ss:$16 sps:$4 sm:$0xff]  }
 0x7fb   : > { %6398 = vmatmul.mubr.bf16.gmra.mrb[76].mxu0 %v27447_v61  ;;  %6624 = vmatprep.subr.bf16.mxu1 %v23247_v6  ;;  %v23310_v6 = vld [vmem:[#allocation11 + $0x7a4] ss:$16 sps:$4 sm:$0xff]  }
 0x7fc   : > { %6610 = vmatmul.mubr.bf16.gmra.mrb[84].mxu1 %v27447_v61  ;;  %6440 = vmatprep.mubr.bf16.mxu0 %v27441_v16 }
 0x7fd   : > { %6413 = vmatpush1.bf16.msra.mxu0 %v23242_v50  ;;  %6652 = vmatprep.mubr.bf16.mxu1 %v27441_v16  ;;  %v23313_v50 = vld [vmem:[#allocation11 + $0x7ac] ss:$16 sps:$4 sm:$0xff]  }
 0x7fe   : > { %6625 = vmatpush1.bf16.msra.mxu1 %v23245_v48  ;;  %6414 = vmatprep.subr.bf16.mxu0 %v23250_v24  ;;  %v23308_v48 = vld [vmem:[#allocation11 + $0x7a0] ss:$16 sps:$4 sm:$0xff]   ;;  %v23311_v24 = vld [vmem:[#allocation11 + $0x7a8] ss:$16 sps:$4 sm:$0xff]  }
 0x7ff   : > { %6626 = vmatprep.subr.bf16.mxu1 %v23253_v51  ;;  %v23316_v51 = vld [vmem:[#allocation11 + $0x7c4] ss:$16 sps:$4 sm:$0xff]  }
 0x801   : > { %6415 = vmatpush1.bf16.msra.mxu0 %v23248_v12  ;;  %v23319_v12 = vld [vmem:[#allocation11 + $0x7cc] ss:$16 sps:$4 sm:$0xff]  }
 0x802   : > { %6627 = vmatpush1.bf16.msra.mxu1 %v23251_v37  ;;  %6416 = vmatprep.subr.bf16.mxu0 %v23256_v58  ;;  %v23314_v37 = vld [vmem:[#allocation11 + $0x7c0] ss:$16 sps:$4 sm:$0xff]   ;;  %v23317_v58 = vld [vmem:[#allocation11 + $0x7c8] ss:$16 sps:$4 sm:$0xff]  }
 0x803   : > { %6628 = vmatprep.subr.bf16.mxu1 %v23259_v59  ;;  %v23322_v59 = vld [vmem:[#allocation11 + $0x7e4] ss:$16 sps:$4 sm:$0xff]  }
 0x805   : > { %6417 = vmatpush1.bf16.msra.mxu0 %v23254_v17  ;;  %v23325_v17 = vld [vmem:[#allocation11 + $0x7ec] ss:$16 sps:$4 sm:$0xff]  }
 0x806   : > { %6629 = vmatpush1.bf16.msra.mxu1 %v23257_v26  ;;  %6418 = vmatprep.subr.bf16.mxu0 %v23262_v38  ;;  %v23320_v26 = vld [vmem:[#allocation11 + $0x7e0] ss:$16 sps:$4 sm:$0xff]   ;;  %v23323_v38 = vld [vmem:[#allocation11 + $0x7e8] ss:$16 sps:$4 sm:$0xff]  }
 0x807   : > { %6630 = vmatprep.subr.bf16.mxu1 %v23265_v60  ;;  %v23328_v60 = vld [vmem:[#allocation11 + $0x804] ss:$16 sps:$4 sm:$0xff]  }
 0x809   : > { %6419 = vmatpush1.bf16.msra.mxu0 %v23260_v34  ;;  %v23331_v34 = vld [vmem:[#allocation11 + $0x80c] ss:$16 sps:$4 sm:$0xff]  }
 0x80a   : > { %6631 = vmatpush1.bf16.msra.mxu1 %v23263_v11  ;;  %6420 = vmatprep.subr.bf16.mxu0 %v23268_v39  ;;  %v23326_v11 = vld [vmem:[#allocation11 + $0x800] ss:$16 sps:$4 sm:$0xff]   ;;  %v23329_v39 = vld [vmem:[#allocation11 + $0x808] ss:$16 sps:$4 sm:$0xff]  }
 0x80b   : > { %6632 = vmatprep.subr.bf16.mxu1 %v23271_v63  ;;  %v23334_v63 = vld [vmem:[#allocation11 + $0x824] ss:$16 sps:$4 sm:$0xff]  }
 0x80d   : > { %6421 = vmatpush1.bf16.msra.mxu0 %v23266_v40  ;;  %v23337_v40 = vld [vmem:[#allocation11 + $0x82c] ss:$16 sps:$4 sm:$0xff]  }
 0x80e   : > { %6633 = vmatpush1.bf16.msra.mxu1 %v23269_v36  ;;  %6422 = vmatprep.subr.bf16.mxu0 %v23274_v5  ;;  %v23332_v36 = vld [vmem:[#allocation11 + $0x820] ss:$16 sps:$4 sm:$0xff]   ;;  %v23335_v5 = vld [vmem:[#allocation11 + $0x828] ss:$16 sps:$4 sm:$0xff]  }
 0x80f   : > { %6634 = vmatprep.subr.bf16.mxu1 %v23277_v54  ;;  %v23340_v54 = vld [vmem:[#allocation11 + $0x844] ss:$16 sps:$4 sm:$0xff]  }
 0x811   : > { %6423 = vmatpush1.bf16.msra.mxu0 %v23272_v42  ;;  %v23343_v42 = vld [vmem:[#allocation11 + $0x84c] ss:$16 sps:$4 sm:$0xff]  }
 0x812   : > { %6635 = vmatpush1.bf16.msra.mxu1 %v23275_v14  ;;  %6424 = vmatprep.subr.bf16.mxu0 %v23280_v4  ;;  %v23338_v14 = vld [vmem:[#allocation11 + $0x840] ss:$16 sps:$4 sm:$0xff]   ;;  %v23341_v4 = vld [vmem:[#allocation11 + $0x848] ss:$16 sps:$4 sm:$0xff]  }
 0x813   : > { %6636 = vmatprep.subr.bf16.mxu1 %v23283_v56  ;;  %v23346_v56 = vld [vmem:[#allocation11 + $0x864] ss:$16 sps:$4 sm:$0xff]  }
 0x815   : > { %6425 = vmatpush1.bf16.msra.mxu0 %v23278_v57  ;;  %v23349_v57 = vld [vmem:[#allocation11 + $0x86c] ss:$16 sps:$4 sm:$0xff]  }
 0x816   : > { %6637 = vmatpush1.bf16.msra.mxu1 %v23281_v43  ;;  %6426 = vmatprep.subr.bf16.mxu0 %v23286_v27  ;;  %v23344_v43 = vld [vmem:[#allocation11 + $0x860] ss:$16 sps:$4 sm:$0xff]   ;;  %v23347_v27 = vld [vmem:[#allocation11 + $0x868] ss:$16 sps:$4 sm:$0xff]  }
 0x817   : > { %6638 = vmatprep.subr.bf16.mxu1 %v23289_v31  ;;  %v23352_v31 = vld [vmem:[#allocation11 + $0x884] ss:$16 sps:$4 sm:$0xff]  }
 0x819   : > { %6427 = vmatpush1.bf16.msra.mxu0 %v23284_v46  ;;  %v23355_v46 = vld [vmem:[#allocation11 + $0x88c] ss:$16 sps:$4 sm:$0xff]  }
 0x81a   : > { %6639 = vmatpush1.bf16.msra.mxu1 %v23287_v32  ;;  %6428 = vmatprep.subr.bf16.mxu0 %v23292_v33  ;;  %v23350_v32 = vld [vmem:[#allocation11 + $0x880] ss:$16 sps:$4 sm:$0xff]   ;;  %v23353_v33 = vld [vmem:[#allocation11 + $0x888] ss:$16 sps:$4 sm:$0xff]  }
 0x81b   : > { %6640 = vmatprep.subr.bf16.mxu1 %v23295_v7  ;;  %v23358_v7 = vld [vmem:[#allocation11 + $0x8a4] ss:$16 sps:$4 sm:$0xff]  }
 0x81d   : > { %6429 = vmatpush1.bf16.msra.mxu0 %v23290_v29  ;;  %v23361_v29 = vld [vmem:[#allocation11 + $0x8ac] ss:$16 sps:$4 sm:$0xff]  }
 0x81e   : > { %6641 = vmatpush1.bf16.msra.mxu1 %v23293_v15  ;;  %6430 = vmatprep.subr.bf16.mxu0 %v23298_v45  ;;  %v23356_v15 = vld [vmem:[#allocation11 + $0x8a0] ss:$16 sps:$4 sm:$0xff]   ;;  %v23364_v45 = vld [vmem:[#allocation11 + $0x8c4] ss:$16 sps:$4 sm:$0xff]  }
 0x81f   : > { %6642 = vmatprep.subr.bf16.mxu1 %v23301_v28  ;;  %v23367_v28 = vld [vmem:[#allocation11 + $0x8cc] ss:$16 sps:$4 sm:$0xff]  }
 0x821   : > { %6431 = vmatpush1.bf16.msra.mxu0 %v23296_v19  ;;  %v23362_v19 = vld [vmem:[#allocation11 + $0x8c0] ss:$16 sps:$4 sm:$0xff]  }
 0x822   : > { %6643 = vmatpush1.bf16.msra.mxu1 %v23299_v13  ;;  %6432 = vmatprep.subr.bf16.mxu0 %v23304_v10  ;;  %v23365_v13 = vld [vmem:[#allocation11 + $0x8c8] ss:$16 sps:$4 sm:$0xff]   ;;  %v23370_v10 = vld [vmem:[#allocation11 + $0x8e4] ss:$16 sps:$4 sm:$0xff]  }
 0x823   : > { %6644 = vmatprep.subr.bf16.mxu1 %v23307_v8  ;;  %v23373_v8 = vld [vmem:[#allocation11 + $0x8ec] ss:$16 sps:$4 sm:$0xff]  }
 0x825   : > { %6433 = vmatpush1.bf16.msra.mxu0 %v23302_v21  ;;  %v23368_v21 = vld [vmem:[#allocation11 + $0x8e0] ss:$16 sps:$4 sm:$0xff]  }
 0x826   : > { %6645 = vmatpush1.bf16.msra.mxu1 %v23305_v35  ;;  %6434 = vmatprep.subr.bf16.mxu0 %v23310_v6  ;;  %v23371_v35 = vld [vmem:[#allocation11 + $0x8e8] ss:$16 sps:$4 sm:$0xff]   ;;  %v23376_v6 = vld [vmem:[#allocation11 + $0x904] ss:$16 sps:$4 sm:$0xff]  }
 0x827   : > { %6646 = vmatprep.subr.bf16.mxu1 %v23313_v50  ;;  %v23379_v50 = vld [vmem:[#allocation11 + $0x90c] ss:$16 sps:$4 sm:$0xff]  }
 0x829   : > { %6435 = vmatpush1.bf16.msra.mxu0 %v23308_v48  ;;  %v23374_v48 = vld [vmem:[#allocation11 + $0x900] ss:$16 sps:$4 sm:$0xff]  }
 0x82a   : > { %6647 = vmatpush1.bf16.msra.mxu1 %v23311_v24  ;;  %6436 = vmatprep.subr.bf16.mxu0 %v23316_v51  ;;  %v23377_v24 = vld [vmem:[#allocation11 + $0x908] ss:$16 sps:$4 sm:$0xff]   ;;  %v23382_v51 = vld [vmem:[#allocation11 + $0x924] ss:$16 sps:$4 sm:$0xff]  }
 0x82b   : > { %6648 = vmatprep.subr.bf16.mxu1 %v23319_v12  ;;  %v23385_v12 = vld [vmem:[#allocation11 + $0x92c] ss:$16 sps:$4 sm:$0xff]  }
 0x82d   : > { %6437 = vmatpush1.bf16.msra.mxu0 %v23314_v37  ;;  %v23380_v37 = vld [vmem:[#allocation11 + $0x920] ss:$16 sps:$4 sm:$0xff]  }
 0x82e   : > { %6649 = vmatpush1.bf16.msra.mxu1 %v23317_v58  ;;  %6438 = vmatprep.subr.bf16.mxu0 %v23322_v59  ;;  %v23383_v58 = vld [vmem:[#allocation11 + $0x928] ss:$16 sps:$4 sm:$0xff]   ;;  %v23388_v59 = vld [vmem:[#allocation11 + $0x944] ss:$16 sps:$4 sm:$0xff]  }
 0x82f   : > { %6650 = vmatprep.subr.bf16.mxu1 %v23325_v17  ;;  %v23391_v17 = vld [vmem:[#allocation11 + $0x94c] ss:$16 sps:$4 sm:$0xff]  }
 0x831   : > { %6439 = vmatpush1.bf16.msra.mxu0 %v23320_v26  ;;  %v23386_v26 = vld [vmem:[#allocation11 + $0x940] ss:$16 sps:$4 sm:$0xff]  }
 0x832   : > { %6651 = vmatpush1.bf16.msra.mxu1 %v23323_v38  ;;  %8210 = vmatprep.subr.bf16.mxu0 %v23328_v60  ;;  %v23389_v38 = vld [vmem:[#allocation11 + $0x948] ss:$16 sps:$4 sm:$0xff]   ;;  %v23394_v60 = vld [vmem:[#allocation11 + $0x964] ss:$16 sps:$4 sm:$0xff]  }
 0x833   : > { %8422 = vmatprep.subr.bf16.mxu1 %v23331_v34  ;;  %v23397_v34 = vld [vmem:[#allocation11 + $0x96c] ss:$16 sps:$4 sm:$0xff]  }
 0x834   : > { %6441 = vmatmul.mubr.bf16.vlgmr.msra.gmra.mrb[72].mxu0 %v27439_v47 }
 0x835   : > { %6653 = vmatmul.mubr.bf16.vlgmr.msra.gmra.mrb[80].mxu1 %v27439_v47  ;;  %6450 = vmatprep.mubr.bf16.mxu0 %v27455_v41 }
 0x836   : > { %6662 = vmatprep.mubr.bf16.mxu1 %v27455_v41  ;;  %8211 = vmatpush1.bf16.msra.mxu0 %v23326_v11  ;;  %v23392_v11 = vld [vmem:[#allocation11 + $0x960] ss:$16 sps:$4 sm:$0xff]  }
 0x837   : > { %8423 = vmatpush1.bf16.msra.mxu1 %v23329_v39  ;;  %8212 = vmatprep.subr.bf16.mxu0 %v23334_v63  ;;  %v23395_v39 = vld [vmem:[#allocation11 + $0x968] ss:$16 sps:$4 sm:$0xff]   ;;  %v23400_v63 = vld [vmem:[#allocation11 + $0x984] ss:$16 sps:$4 sm:$0xff]  }
 0x838   : > { %8424 = vmatprep.subr.bf16.mxu1 %v23337_v40  ;;  %v23403_v40 = vld [vmem:[#allocation11 + $0x98c] ss:$16 sps:$4 sm:$0xff]  }
 0x83a   : > { %8213 = vmatpush1.bf16.msra.mxu0 %v23332_v36  ;;  %v23398_v36 = vld [vmem:[#allocation11 + $0x980] ss:$16 sps:$4 sm:$0xff]  }
 0x83b   : > { %8425 = vmatpush1.bf16.msra.mxu1 %v23335_v5  ;;  %8214 = vmatprep.subr.bf16.mxu0 %v23340_v54  ;;  %v23401_v5 = vld [vmem:[#allocation11 + $0x988] ss:$16 sps:$4 sm:$0xff]   ;;  %v23406_v54 = vld [vmem:[#allocation11 + $0x9a4] ss:$16 sps:$4 sm:$0xff]  }
 0x83c   : > { %6451 = vmatmul.mubr.bf16.gmra.mrb[76].mxu0 %v27453_v55  ;;  %8426 = vmatprep.subr.bf16.mxu1 %v23343_v42  ;;  %v23409_v42 = vld [vmem:[#allocation11 + $0x9ac] ss:$16 sps:$4 sm:$0xff]  }
 0x83d   : > { %6663 = vmatmul.mubr.bf16.gmra.mrb[84].mxu1 %v27453_v55  ;;  %8242 = vmatprep.mubr.bf16.mxu0 %v27393_v25 }
 0x83e   : > { %8215 = vmatpush1.bf16.msra.mxu0 %v23338_v14  ;;  %8454 = vmatprep.mubr.bf16.mxu1 %v27393_v25  ;;  %v23359_v25 = vld [vmem:[#allocation11 + $0x8a8] ss:$16 sps:$4 sm:$0xff]   ;;  %v23404_v14 = vld [vmem:[#allocation11 + $0x9a0] ss:$16 sps:$4 sm:$0xff]  }
 0x83f   : > { %8427 = vmatpush1.bf16.msra.mxu1 %v23341_v4  ;;  %8216 = vmatprep.subr.bf16.mxu0 %v23346_v56  ;;  %v23407_v4 = vld [vmem:[#allocation11 + $0x9a8] ss:$16 sps:$4 sm:$0xff]   ;;  %v23412_v56 = vld [vmem:[#allocation11 + $0x9c4] ss:$16 sps:$4 sm:$0xff]  }
 0x840   : > { %8428 = vmatprep.subr.bf16.mxu1 %v23349_v57  ;;  %v23415_v57 = vld [vmem:[#allocation11 + $0x9cc] ss:$16 sps:$4 sm:$0xff]  }
 0x842   : > { %8217 = vmatpush1.bf16.msra.mxu0 %v23344_v43  ;;  %v23410_v43 = vld [vmem:[#allocation11 + $0x9c0] ss:$16 sps:$4 sm:$0xff]  }
 0x843   : > { %8429 = vmatpush1.bf16.msra.mxu1 %v23347_v27  ;;  %8218 = vmatprep.subr.bf16.mxu0 %v23352_v31  ;;  %v23413_v27 = vld [vmem:[#allocation11 + $0x9c8] ss:$16 sps:$4 sm:$0xff]   ;;  %v23418_v31 = vld [vmem:[#allocation11 + $0x9e4] ss:$16 sps:$4 sm:$0xff]  }
 0x844   : > { %8430 = vmatprep.subr.bf16.mxu1 %v23355_v46  ;;  %v23421_v46 = vld [vmem:[#allocation11 + $0x9ec] ss:$16 sps:$4 sm:$0xff]  }
 0x846   : > { %8219 = vmatpush1.bf16.msra.mxu0 %v23350_v32  ;;  %v23416_v32 = vld [vmem:[#allocation11 + $0x9e0] ss:$16 sps:$4 sm:$0xff]  }
 0x847   : > { %8431 = vmatpush1.bf16.msra.mxu1 %v23353_v33  ;;  %8220 = vmatprep.subr.bf16.mxu0 %v23358_v7  ;;  %v23419_v33 = vld [vmem:[#allocation11 + $0x9e8] ss:$16 sps:$4 sm:$0xff]   ;;  %v23424_v7 = vld [vmem:[#allocation11 + $0xa04] ss:$16 sps:$4 sm:$0xff]  }
 0x848   : > { %8432 = vmatprep.subr.bf16.mxu1 %v23361_v29  ;;  %v23427_v29 = vld [vmem:[#allocation11 + $0xa0c] ss:$16 sps:$4 sm:$0xff]  }
 0x84a   : > { %8221 = vmatpush1.bf16.msra.mxu0 %v23356_v15  ;;  %v23422_v15 = vld [vmem:[#allocation11 + $0xa00] ss:$16 sps:$4 sm:$0xff]  }
 0x84b   : > { %8433 = vmatpush1.bf16.msra.mxu1 %v23359_v25  ;;  %8222 = vmatprep.subr.bf16.mxu0 %v23364_v45  ;;  %v23425_v25 = vld [vmem:[#allocation11 + $0xa08] ss:$16 sps:$4 sm:$0xff]   ;;  %v23430_v45 = vld [vmem:[#allocation11 + $0xa24] ss:$16 sps:$4 sm:$0xff]  }
 0x84c   : > { %8434 = vmatprep.subr.bf16.mxu1 %v23367_v28  ;;  %v23433_v28 = vld [vmem:[#allocation11 + $0xa2c] ss:$16 sps:$4 sm:$0xff]  }
 0x84e   : > { %8223 = vmatpush1.bf16.msra.mxu0 %v23362_v19  ;;  %v23428_v19 = vld [vmem:[#allocation11 + $0xa20] ss:$16 sps:$4 sm:$0xff]  }
 0x84f   : > { %8435 = vmatpush1.bf16.msra.mxu1 %v23365_v13  ;;  %8224 = vmatprep.subr.bf16.mxu0 %v23370_v10  ;;  %v23431_v13 = vld [vmem:[#allocation11 + $0xa28] ss:$16 sps:$4 sm:$0xff]   ;;  %v23436_v10 = vld [vmem:[#allocation11 + $0xa44] ss:$16 sps:$4 sm:$0xff]  }
 0x850   : > { %8436 = vmatprep.subr.bf16.mxu1 %v23373_v8  ;;  %v23439_v8 = vld [vmem:[#allocation11 + $0xa4c] ss:$16 sps:$4 sm:$0xff]  }
 0x852   : > { %8225 = vmatpush1.bf16.msra.mxu0 %v23368_v21  ;;  %v23434_v21 = vld [vmem:[#allocation11 + $0xa40] ss:$16 sps:$4 sm:$0xff]  }
 0x853   : > { %8437 = vmatpush1.bf16.msra.mxu1 %v23371_v35  ;;  %8226 = vmatprep.subr.bf16.mxu0 %v23376_v6  ;;  %v23437_v35 = vld [vmem:[#allocation11 + $0xa48] ss:$16 sps:$4 sm:$0xff]   ;;  %v23442_v6 = vld [vmem:[#allocation11 + $0xa64] ss:$16 sps:$4 sm:$0xff]  }
 0x854   : > { %8438 = vmatprep.subr.bf16.mxu1 %v23379_v50  ;;  %v23443_v50 = vld [vmem:[#allocation11 + $0xa68] ss:$16 sps:$4 sm:$0xff]  }
 0x856   : > { %8227 = vmatpush1.bf16.msra.mxu0 %v23374_v48  ;;  %v23448_v48 = vld [vmem:[#allocation11 + $0xa84] ss:$16 sps:$4 sm:$0xff]  }
 0x857   : > { %8439 = vmatpush1.bf16.msra.mxu1 %v23377_v24  ;;  %8228 = vmatprep.subr.bf16.mxu0 %v23382_v51  ;;  %v23451_v24 = vld [vmem:[#allocation11 + $0xa8c] ss:$16 sps:$4 sm:$0xff]   ;;  %v23446_v51 = vld [vmem:[#allocation11 + $0xa80] ss:$16 sps:$4 sm:$0xff]  }
 0x858   : > { %8440 = vmatprep.subr.bf16.mxu1 %v23385_v12  ;;  %v23449_v12 = vld [vmem:[#allocation11 + $0xa88] ss:$16 sps:$4 sm:$0xff]  }
 0x85a   : > { %8229 = vmatpush1.bf16.msra.mxu0 %v23380_v37  ;;  %v23454_v37 = vld [vmem:[#allocation11 + $0xaa4] ss:$16 sps:$4 sm:$0xff]  }
 0x85b   : > { %8441 = vmatpush1.bf16.msra.mxu1 %v23383_v58  ;;  %8230 = vmatprep.subr.bf16.mxu0 %v23388_v59  ;;  %v23452_v58 = vld [vmem:[#allocation11 + $0xaa0] ss:$16 sps:$4 sm:$0xff]   ;;  %v23460_v59 = vld [vmem:[#allocation11 + $0xac4] ss:$16 sps:$4 sm:$0xff]  }
 0x85c   : > { %8442 = vmatprep.subr.bf16.mxu1 %v23391_v17  ;;  %v23463_v17 = vld [vmem:[#allocation11 + $0xacc] ss:$16 sps:$4 sm:$0xff]  }
 0x85e   : > { %8231 = vmatpush1.bf16.msra.mxu0 %v23386_v26  ;;  %v23458_v26 = vld [vmem:[#allocation11 + $0xac0] ss:$16 sps:$4 sm:$0xff]  }
 0x85f   : > { %8443 = vmatpush1.bf16.msra.mxu1 %v23389_v38  ;;  %8232 = vmatprep.subr.bf16.mxu0 %v23394_v60  ;;  %v23461_v38 = vld [vmem:[#allocation11 + $0xac8] ss:$16 sps:$4 sm:$0xff]   ;;  %v23466_v60 = vld [vmem:[#allocation11 + $0xae4] ss:$16 sps:$4 sm:$0xff]  }
 0x860   : > { %8444 = vmatprep.subr.bf16.mxu1 %v23397_v34  ;;  %v23469_v34 = vld [vmem:[#allocation11 + $0xaec] ss:$16 sps:$4 sm:$0xff]  }
 0x862   : > { %8233 = vmatpush1.bf16.msra.mxu0 %v23392_v11  ;;  %v23464_v11 = vld [vmem:[#allocation11 + $0xae0] ss:$16 sps:$4 sm:$0xff]  }
 0x863   : > { %8445 = vmatpush1.bf16.msra.mxu1 %v23395_v39  ;;  %8234 = vmatprep.subr.bf16.mxu0 %v23400_v63  ;;  %v23467_v39 = vld [vmem:[#allocation11 + $0xae8] ss:$16 sps:$4 sm:$0xff]   ;;  %v23472_v63 = vld [vmem:[#allocation11 + $0xb04] ss:$16 sps:$4 sm:$0xff]  }
 0x864   : > { %8446 = vmatprep.subr.bf16.mxu1 %v23403_v40  ;;  %v23475_v40 = vld [vmem:[#allocation11 + $0xb0c] ss:$16 sps:$4 sm:$0xff]  }
 0x866   : > { %8235 = vmatpush1.bf16.msra.mxu0 %v23398_v36  ;;  %v23470_v36 = vld [vmem:[#allocation11 + $0xb00] ss:$16 sps:$4 sm:$0xff]  }
 0x867   : > { %8447 = vmatpush1.bf16.msra.mxu1 %v23401_v5  ;;  %8236 = vmatprep.subr.bf16.mxu0 %v23406_v54  ;;  %v23473_v5 = vld [vmem:[#allocation11 + $0xb08] ss:$16 sps:$4 sm:$0xff]   ;;  %v23478_v54 = vld [vmem:[#allocation11 + $0xb24] ss:$16 sps:$4 sm:$0xff]  }
 0x868   : > { %8448 = vmatprep.subr.bf16.mxu1 %v23409_v42  ;;  %v23481_v42 = vld [vmem:[#allocation11 + $0xb2c] ss:$16 sps:$4 sm:$0xff]  }
 0x86a   : > { %8237 = vmatpush1.bf16.msra.mxu0 %v23404_v14  ;;  %v23476_v14 = vld [vmem:[#allocation11 + $0xb20] ss:$16 sps:$4 sm:$0xff]  }
 0x86b   : > { %8449 = vmatpush1.bf16.msra.mxu1 %v23407_v4  ;;  %8238 = vmatprep.subr.bf16.mxu0 %v23412_v56  ;;  %v23479_v4 = vld [vmem:[#allocation11 + $0xb28] ss:$16 sps:$4 sm:$0xff]   ;;  %v23484_v56 = vld [vmem:[#allocation11 + $0xb44] ss:$16 sps:$4 sm:$0xff]  }
 0x86c   : > { %8450 = vmatprep.subr.bf16.mxu1 %v23415_v57  ;;  %v23487_v57 = vld [vmem:[#allocation11 + $0xb4c] ss:$16 sps:$4 sm:$0xff]  }
 0x86e   : > { %8239 = vmatpush1.bf16.msra.mxu0 %v23410_v43  ;;  %v23482_v43 = vld [vmem:[#allocation11 + $0xb40] ss:$16 sps:$4 sm:$0xff]  }
 0x86f   : > { %8451 = vmatpush1.bf16.msra.mxu1 %v23413_v27  ;;  %8240 = vmatprep.subr.bf16.mxu0 %v23418_v31  ;;  %v23485_v27 = vld [vmem:[#allocation11 + $0xb48] ss:$16 sps:$4 sm:$0xff]   ;;  %v23490_v31 = vld [vmem:[#allocation11 + $0xb64] ss:$16 sps:$4 sm:$0xff]  }
 0x870   : > { %8452 = vmatprep.subr.bf16.mxu1 %v23421_v46  ;;  %v23493_v46 = vld [vmem:[#allocation11 + $0xb6c] ss:$16 sps:$4 sm:$0xff]  }
 0x872   : > { %8241 = vmatpush1.bf16.msra.mxu0 %v23416_v32  ;;  %v23488_v32 = vld [vmem:[#allocation11 + $0xb60] ss:$16 sps:$4 sm:$0xff]  }
 0x873   : > { %8453 = vmatpush1.bf16.msra.mxu1 %v23419_v33  ;;  %8263 = vmatprep.subr.bf16.mxu0 %v23424_v7  ;;  %v23491_v33 = vld [vmem:[#allocation11 + $0xb68] ss:$16 sps:$4 sm:$0xff]   ;;  %v23496_v7 = vld [vmem:[#allocation11 + $0xb84] ss:$16 sps:$4 sm:$0xff]  }
 0x874   : > { %8475 = vmatprep.subr.bf16.mxu1 %v23427_v29  ;;  %v23499_v29 = vld [vmem:[#allocation11 + $0xb8c] ss:$16 sps:$4 sm:$0xff]  }
 0x875   : > { %8243 = vmatmul.mubr.bf16.vlgmr.msra.gmra.mrb[80].mxu0 %v27391_v0 }
 0x876   : > { %8455 = vmatmul.mubr.bf16.vlgmr.msra.gmra.mrb[88].mxu1 %v27391_v0  ;;  %8252 = vmatprep.mubr.bf16.mxu0 %v27411_v52  ;;  %v23445_v0 = vld [vmem:[#allocation11 + $0xa6c] ss:$16 sps:$4 sm:$0xff]  }
 0x877   : > { %8264 = vmatpush1.bf16.msra.mxu0 %v23422_v15  ;;  %8464 = vmatprep.mubr.bf16.mxu1 %v27411_v52  ;;  %v23440_v52 = vld [vmem:[#allocation11 + $0xa60] ss:$16 sps:$4 sm:$0xff]  }
 0x878   : > { %8476 = vmatpush1.bf16.msra.mxu1 %v23425_v25  ;;  %8265 = vmatprep.subr.bf16.mxu0 %v23430_v45  ;;  %v23494_v15 = vld [vmem:[#allocation11 + $0xb80] ss:$16 sps:$4 sm:$0xff]   ;;  %v23497_v25 = vld [vmem:[#allocation11 + $0xb88] ss:$16 sps:$4 sm:$0xff]   ;;  %v23502_v45 = vld [vmem:[#allocation11 + $0xba4] ss:$16 sps:$4 sm:$0xff]  }
 0x879   : > { %8477 = vmatprep.subr.bf16.mxu1 %v23433_v28  ;;  %v23505_v28 = vld [vmem:[#allocation11 + $0xbac] ss:$16 sps:$4 sm:$0xff]  }
 0x87b   : > { %8266 = vmatpush1.bf16.msra.mxu0 %v23428_v19  ;;  %v23500_v19 = vld [vmem:[#allocation11 + $0xba0] ss:$16 sps:$4 sm:$0xff]  }
 0x87c   : > { %8478 = vmatpush1.bf16.msra.mxu1 %v23431_v13  ;;  %8267 = vmatprep.subr.bf16.mxu0 %v23436_v10  ;;  %v23503_v13 = vld [vmem:[#allocation11 + $0xba8] ss:$16 sps:$4 sm:$0xff]   ;;  %v23508_v10 = vld [vmem:[#allocation11 + $0xbc4] ss:$16 sps:$4 sm:$0xff]  }
 0x87d   : > { %8253 = vmatmul.mubr.bf16.gmra.mrb[84].mxu0 %v27409_v49  ;;  %8479 = vmatprep.subr.bf16.mxu1 %v23439_v8  ;;  %v23511_v8 = vld [vmem:[#allocation11 + $0xbcc] ss:$16 sps:$4 sm:$0xff]  }
 0x87e   : > { %8465 = vmatmul.mubr.bf16.gmra.mrb[92].mxu1 %v27409_v49  ;;  %8295 = vmatprep.mubr.bf16.mxu0 %v27403_v2  ;;  %v23457_v49 = vld [vmem:[#allocation11 + $0xaac] ss:$16 sps:$4 sm:$0xff]  }
 0x87f   : > { %8268 = vmatpush1.bf16.msra.mxu0 %v23434_v21  ;;  %8507 = vmatprep.mubr.bf16.mxu1 %v27403_v2  ;;  %v23455_v2 = vld [vmem:[#allocation11 + $0xaa8] ss:$16 sps:$4 sm:$0xff]   ;;  %v23506_v21 = vld [vmem:[#allocation11 + $0xbc0] ss:$16 sps:$4 sm:$0xff]  }
 0x880   : > { %8480 = vmatpush1.bf16.msra.mxu1 %v23437_v35  ;;  %8269 = vmatprep.subr.bf16.mxu0 %v23442_v6  ;;  %v23509_v35 = vld [vmem:[#allocation11 + $0xbc8] ss:$16 sps:$4 sm:$0xff]   ;;  %v23514_v6 = vld [vmem:[#allocation11 + $0xbe4] ss:$16 sps:$4 sm:$0xff]  }
 0x881   : > { %8481 = vmatprep.subr.bf16.mxu1 %v23445_v0  ;;  %v23517_v0 = vld [vmem:[#allocation11 + $0xbec] ss:$16 sps:$4 sm:$0xff]  }
 0x883   : > { %8270 = vmatpush1.bf16.msra.mxu0 %v23440_v52  ;;  %v23512_v52 = vld [vmem:[#allocation11 + $0xbe0] ss:$16 sps:$4 sm:$0xff]  }
 0x884   : > { %8482 = vmatpush1.bf16.msra.mxu1 %v23443_v50  ;;  %8271 = vmatprep.subr.bf16.mxu0 %v23448_v48  ;;  %v23515_v50 = vld [vmem:[#allocation11 + $0xbe8] ss:$16 sps:$4 sm:$0xff]   ;;  %v23520_v48 = vld [vmem:[#allocation11 + $0xc04] ss:$16 sps:$4 sm:$0xff]  }
 0x885   : > { %8483 = vmatprep.subr.bf16.mxu1 %v23451_v24  ;;  %v23523_v24 = vld [vmem:[#allocation11 + $0xc0c] ss:$16 sps:$4 sm:$0xff]  }
 0x887   : > { %8272 = vmatpush1.bf16.msra.mxu0 %v23446_v51  ;;  %v23518_v51 = vld [vmem:[#allocation11 + $0xc00] ss:$16 sps:$4 sm:$0xff]  }
 0x888   : > { %8484 = vmatpush1.bf16.msra.mxu1 %v23449_v12  ;;  %8273 = vmatprep.subr.bf16.mxu0 %v23454_v37  ;;  %v23521_v12 = vld [vmem:[#allocation11 + $0xc08] ss:$16 sps:$4 sm:$0xff]   ;;  %v23526_v37 = vld [vmem:[#allocation11 + $0xc24] ss:$16 sps:$4 sm:$0xff]  }
 0x889   : > { %8485 = vmatprep.subr.bf16.mxu1 %v23457_v49  ;;  %v23529_v49 = vld [vmem:[#allocation11 + $0xc2c] ss:$16 sps:$4 sm:$0xff]  }
 0x88b   : > { %8274 = vmatpush1.bf16.msra.mxu0 %v23452_v58  ;;  %v23524_v58 = vld [vmem:[#allocation11 + $0xc20] ss:$16 sps:$4 sm:$0xff]  }
 0x88c   : > { %8486 = vmatpush1.bf16.msra.mxu1 %v23455_v2  ;;  %8275 = vmatprep.subr.bf16.mxu0 %v23460_v59  ;;  %v23527_v2 = vld [vmem:[#allocation11 + $0xc28] ss:$16 sps:$4 sm:$0xff]   ;;  %v23532_v59 = vld [vmem:[#allocation11 + $0xc44] ss:$16 sps:$4 sm:$0xff]  }
 0x88d   : > { %8487 = vmatprep.subr.bf16.mxu1 %v23463_v17  ;;  %v23535_v17 = vld [vmem:[#allocation11 + $0xc4c] ss:$16 sps:$4 sm:$0xff]  }
 0x88f   : > { %8276 = vmatpush1.bf16.msra.mxu0 %v23458_v26  ;;  %v23530_v26 = vld [vmem:[#allocation11 + $0xc40] ss:$16 sps:$4 sm:$0xff]  }
 0x890   : > { %8488 = vmatpush1.bf16.msra.mxu1 %v23461_v38  ;;  %8277 = vmatprep.subr.bf16.mxu0 %v23466_v60  ;;  %v23533_v38 = vld [vmem:[#allocation11 + $0xc48] ss:$16 sps:$4 sm:$0xff]   ;;  %v23538_v60 = vld [vmem:[#allocation11 + $0xc64] ss:$16 sps:$4 sm:$0xff]  }
 0x891   : > { %8489 = vmatprep.subr.bf16.mxu1 %v23469_v34  ;;  %v23539_v34 = vld [vmem:[#allocation11 + $0xc68] ss:$16 sps:$4 sm:$0xff]  }
 0x893   : > { %8278 = vmatpush1.bf16.msra.mxu0 %v23464_v11  ;;  %v23544_v11 = vld [vmem:[#allocation11 + $0xc84] ss:$16 sps:$4 sm:$0xff]  }
 0x894   : > { %8490 = vmatpush1.bf16.msra.mxu1 %v23467_v39  ;;  %8279 = vmatprep.subr.bf16.mxu0 %v23472_v63  ;;  %v23547_v39 = vld [vmem:[#allocation11 + $0xc8c] ss:$16 sps:$4 sm:$0xff]   ;;  %v23542_v63 = vld [vmem:[#allocation11 + $0xc80] ss:$16 sps:$4 sm:$0xff]  }
 0x895   : > { %8491 = vmatprep.subr.bf16.mxu1 %v23475_v40  ;;  %v23545_v40 = vld [vmem:[#allocation11 + $0xc88] ss:$16 sps:$4 sm:$0xff]  }
 0x897   : > { %8280 = vmatpush1.bf16.msra.mxu0 %v23470_v36  ;;  %v23550_v36 = vld [vmem:[#allocation11 + $0xca4] ss:$16 sps:$4 sm:$0xff]  }
 0x898   : > { %8492 = vmatpush1.bf16.msra.mxu1 %v23473_v5  ;;  %8281 = vmatprep.subr.bf16.mxu0 %v23478_v54  ;;  %v23548_v5 = vld [vmem:[#allocation11 + $0xca0] ss:$16 sps:$4 sm:$0xff]   ;;  %v23556_v54 = vld [vmem:[#allocation11 + $0xcc4] ss:$16 sps:$4 sm:$0xff]  }
 0x899   : > { %8493 = vmatprep.subr.bf16.mxu1 %v23481_v42  ;;  %v23559_v42 = vld [vmem:[#allocation11 + $0xccc] ss:$16 sps:$4 sm:$0xff]  }
 0x89b   : > { %8282 = vmatpush1.bf16.msra.mxu0 %v23476_v14  ;;  %v23554_v14 = vld [vmem:[#allocation11 + $0xcc0] ss:$16 sps:$4 sm:$0xff]  }
 0x89c   : > { %8494 = vmatpush1.bf16.msra.mxu1 %v23479_v4  ;;  %8283 = vmatprep.subr.bf16.mxu0 %v23484_v56  ;;  %v23557_v4 = vld [vmem:[#allocation11 + $0xcc8] ss:$16 sps:$4 sm:$0xff]   ;;  %v23562_v56 = vld [vmem:[#allocation11 + $0xce4] ss:$16 sps:$4 sm:$0xff]  }
 0x89d   : > { %8495 = vmatprep.subr.bf16.mxu1 %v23487_v57  ;;  %v23565_v57 = vld [vmem:[#allocation11 + $0xcec] ss:$16 sps:$4 sm:$0xff]  }
 0x89f   : > { %8284 = vmatpush1.bf16.msra.mxu0 %v23482_v43  ;;  %v23560_v43 = vld [vmem:[#allocation11 + $0xce0] ss:$16 sps:$4 sm:$0xff]  }
 0x8a0   : > { %8496 = vmatpush1.bf16.msra.mxu1 %v23485_v27  ;;  %8285 = vmatprep.subr.bf16.mxu0 %v23490_v31  ;;  %v23563_v27 = vld [vmem:[#allocation11 + $0xce8] ss:$16 sps:$4 sm:$0xff]   ;;  %v23568_v31 = vld [vmem:[#allocation11 + $0xd04] ss:$16 sps:$4 sm:$0xff]  }
 0x8a1   : > { %8497 = vmatprep.subr.bf16.mxu1 %v23493_v46  ;;  %v23571_v46 = vld [vmem:[#allocation11 + $0xd0c] ss:$16 sps:$4 sm:$0xff]  }
 0x8a3   : > { %8286 = vmatpush1.bf16.msra.mxu0 %v23488_v32  ;;  %v23566_v32 = vld [vmem:[#allocation11 + $0xd00] ss:$16 sps:$4 sm:$0xff]  }
 0x8a4   : > { %8498 = vmatpush1.bf16.msra.mxu1 %v23491_v33  ;;  %8287 = vmatprep.subr.bf16.mxu0 %v23496_v7  ;;  %v23569_v33 = vld [vmem:[#allocation11 + $0xd08] ss:$16 sps:$4 sm:$0xff]   ;;  %v23574_v7 = vld [vmem:[#allocation11 + $0xd24] ss:$16 sps:$4 sm:$0xff]  }
 0x8a5   : > { %8499 = vmatprep.subr.bf16.mxu1 %v23499_v29  ;;  %v23577_v29 = vld [vmem:[#allocation11 + $0xd2c] ss:$16 sps:$4 sm:$0xff]  }
 0x8a7   : > { %8288 = vmatpush1.bf16.msra.mxu0 %v23494_v15  ;;  %v23572_v15 = vld [vmem:[#allocation11 + $0xd20] ss:$16 sps:$4 sm:$0xff]  }
 0x8a8   : > { %8500 = vmatpush1.bf16.msra.mxu1 %v23497_v25  ;;  %8289 = vmatprep.subr.bf16.mxu0 %v23502_v45  ;;  %v23575_v25 = vld [vmem:[#allocation11 + $0xd28] ss:$16 sps:$4 sm:$0xff]   ;;  %v23580_v45 = vld [vmem:[#allocation11 + $0xd44] ss:$16 sps:$4 sm:$0xff]  }
 0x8a9   : > { %8501 = vmatprep.subr.bf16.mxu1 %v23505_v28  ;;  %v23583_v28 = vld [vmem:[#allocation11 + $0xd4c] ss:$16 sps:$4 sm:$0xff]  }
 0x8ab   : > { %8290 = vmatpush1.bf16.msra.mxu0 %v23500_v19  ;;  %v23578_v19 = vld [vmem:[#allocation11 + $0xd40] ss:$16 sps:$4 sm:$0xff]  }
 0x8ac   : > { %8502 = vmatpush1.bf16.msra.mxu1 %v23503_v13  ;;  %8291 = vmatprep.subr.bf16.mxu0 %v23508_v10  ;;  %v23581_v13 = vld [vmem:[#allocation11 + $0xd48] ss:$16 sps:$4 sm:$0xff]   ;;  %v23586_v10 = vld [vmem:[#allocation11 + $0xd64] ss:$16 sps:$4 sm:$0xff]  }
 0x8ad   : > { %8503 = vmatprep.subr.bf16.mxu1 %v23511_v8  ;;  %v23589_v8 = vld [vmem:[#allocation11 + $0xd6c] ss:$16 sps:$4 sm:$0xff]  }
 0x8af   : > { %8292 = vmatpush1.bf16.msra.mxu0 %v23506_v21  ;;  %v23584_v21 = vld [vmem:[#allocation11 + $0xd60] ss:$16 sps:$4 sm:$0xff]  }
 0x8b0   : > { %8504 = vmatpush1.bf16.msra.mxu1 %v23509_v35  ;;  %8293 = vmatprep.subr.bf16.mxu0 %v23514_v6  ;;  %v23587_v35 = vld [vmem:[#allocation11 + $0xd68] ss:$16 sps:$4 sm:$0xff]   ;;  %v23592_v6 = vld [vmem:[#allocation11 + $0xd84] ss:$16 sps:$4 sm:$0xff]  }
 0x8b1   : > { %8505 = vmatprep.subr.bf16.mxu1 %v23517_v0  ;;  %v23595_v0 = vld [vmem:[#allocation11 + $0xd8c] ss:$16 sps:$4 sm:$0xff]  }
 0x8b3   : > { %8294 = vmatpush1.bf16.msra.mxu0 %v23512_v52  ;;  %v23590_v52 = vld [vmem:[#allocation11 + $0xd80] ss:$16 sps:$4 sm:$0xff]  }
 0x8b4   : > { %8506 = vmatpush1.bf16.msra.mxu1 %v23515_v50  ;;  %8316 = vmatprep.subr.bf16.mxu0 %v23520_v48  ;;  %v23593_v50 = vld [vmem:[#allocation11 + $0xd88] ss:$16 sps:$4 sm:$0xff]   ;;  %v23598_v48 = vld [vmem:[#allocation11 + $0xda4] ss:$16 sps:$4 sm:$0xff]  }
 0x8b5   : > { %8528 = vmatprep.subr.bf16.mxu1 %v23523_v24  ;;  %v23601_v24 = vld [vmem:[#allocation11 + $0xdac] ss:$16 sps:$4 sm:$0xff]  }
 0x8b6   : > { %8296 = vmatmul.mubr.bf16.vlgmr.msra.gmra.mrb[80].mxu0 %v27399_v1 }
 0x8b7   : > { %8508 = vmatmul.mubr.bf16.vlgmr.msra.gmra.mrb[88].mxu1 %v27399_v1  ;;  %8305 = vmatprep.mubr.bf16.mxu0 %v27423_v3  ;;  %v23541_v1 = vld [vmem:[#allocation11 + $0xc6c] ss:$16 sps:$4 sm:$0xff]  }
 0x8b8   : > { %8317 = vmatpush1.bf16.msra.mxu0 %v23518_v51  ;;  %8517 = vmatprep.mubr.bf16.mxu1 %v27423_v3  ;;  %v23536_v3 = vld [vmem:[#allocation11 + $0xc60] ss:$16 sps:$4 sm:$0xff]  }
 0x8b9   : > { %8529 = vmatpush1.bf16.msra.mxu1 %v23521_v12  ;;  %8318 = vmatprep.subr.bf16.mxu0 %v23526_v37  ;;  %v23596_v51 = vld [vmem:[#allocation11 + $0xda0] ss:$16 sps:$4 sm:$0xff]   ;;  %v23599_v12 = vld [vmem:[#allocation11 + $0xda8] ss:$16 sps:$4 sm:$0xff]   ;;  %v23604_v37 = vld [vmem:[#allocation11 + $0xdc4] ss:$16 sps:$4 sm:$0xff]  }
 0x8ba   : > { %8530 = vmatprep.subr.bf16.mxu1 %v23529_v49  ;;  %v23607_v49 = vld [vmem:[#allocation11 + $0xdcc] ss:$16 sps:$4 sm:$0xff]  }
 0x8bc   : > { %8319 = vmatpush1.bf16.msra.mxu0 %v23524_v58  ;;  %v23602_v58 = vld [vmem:[#allocation11 + $0xdc0] ss:$16 sps:$4 sm:$0xff]  }
 0x8bd   : > { %8531 = vmatpush1.bf16.msra.mxu1 %v23527_v2  ;;  %8320 = vmatprep.subr.bf16.mxu0 %v23532_v59  ;;  %v23605_v2 = vld [vmem:[#allocation11 + $0xdc8] ss:$16 sps:$4 sm:$0xff]   ;;  %v23610_v59 = vld [vmem:[#allocation11 + $0xde4] ss:$16 sps:$4 sm:$0xff]  }
 0x8be   : > { %8306 = vmatmul.mubr.bf16.gmra.mrb[84].mxu0 %v27419_v30  ;;  %8532 = vmatprep.subr.bf16.mxu1 %v23535_v17  ;;  %v23613_v17 = vld [vmem:[#allocation11 + $0xdec] ss:$16 sps:$4 sm:$0xff]  }
 0x8bf   : > { %8518 = vmatmul.mubr.bf16.gmra.mrb[92].mxu1 %v27419_v30  ;;  %8348 = vmatprep.mubr.bf16.mxu0 %v27433_v9  ;;  %v23553_v30 = vld [vmem:[#allocation11 + $0xcac] ss:$16 sps:$4 sm:$0xff]  }
 0x8c0   : > { %8321 = vmatpush1.bf16.msra.mxu0 %v23530_v26  ;;  %8560 = vmatprep.mubr.bf16.mxu1 %v27433_v9  ;;  %v23551_v9 = vld [vmem:[#allocation11 + $0xca8] ss:$16 sps:$4 sm:$0xff]   ;;  %v23608_v26 = vld [vmem:[#allocation11 + $0xde0] ss:$16 sps:$4 sm:$0xff]  }
 0x8c1   : > { %8533 = vmatpush1.bf16.msra.mxu1 %v23533_v38  ;;  %8322 = vmatprep.subr.bf16.mxu0 %v23538_v60  ;;  %v23611_v38 = vld [vmem:[#allocation11 + $0xde8] ss:$16 sps:$4 sm:$0xff]   ;;  %v23616_v60 = vld [vmem:[#allocation11 + $0xe04] ss:$16 sps:$4 sm:$0xff]  }
 0x8c2   : > { %8534 = vmatprep.subr.bf16.mxu1 %v23541_v1  ;;  %v23619_v1 = vld [vmem:[#allocation11 + $0xe0c] ss:$16 sps:$4 sm:$0xff]  }
 0x8c4   : > { %8323 = vmatpush1.bf16.msra.mxu0 %v23536_v3  ;;  %v23614_v3 = vld [vmem:[#allocation11 + $0xe00] ss:$16 sps:$4 sm:$0xff]  }
 0x8c5   : > { %8535 = vmatpush1.bf16.msra.mxu1 %v23539_v34  ;;  %8324 = vmatprep.subr.bf16.mxu0 %v23544_v11  ;;  %v23617_v34 = vld [vmem:[#allocation11 + $0xe08] ss:$16 sps:$4 sm:$0xff]   ;;  %v23622_v11 = vld [vmem:[#allocation11 + $0xe24] ss:$16 sps:$4 sm:$0xff]  }
 0x8c6   : > { %8536 = vmatprep.subr.bf16.mxu1 %v23547_v39  ;;  %v23625_v39 = vld [vmem:[#allocation11 + $0xe2c] ss:$16 sps:$4 sm:$0xff]  }
 0x8c8   : > { %8325 = vmatpush1.bf16.msra.mxu0 %v23542_v63  ;;  %v23620_v63 = vld [vmem:[#allocation11 + $0xe20] ss:$16 sps:$4 sm:$0xff]  }
 0x8c9   : > { %8537 = vmatpush1.bf16.msra.mxu1 %v23545_v40  ;;  %8326 = vmatprep.subr.bf16.mxu0 %v23550_v36  ;;  %v23623_v40 = vld [vmem:[#allocation11 + $0xe28] ss:$16 sps:$4 sm:$0xff]   ;;  %v23628_v36 = vld [vmem:[#allocation11 + $0xe44] ss:$16 sps:$4 sm:$0xff]  }
 0x8ca   : > { %8538 = vmatprep.subr.bf16.mxu1 %v23553_v30  ;;  %v23631_v30 = vld [vmem:[#allocation11 + $0xe4c] ss:$16 sps:$4 sm:$0xff]  }
 0x8cc   : > { %8327 = vmatpush1.bf16.msra.mxu0 %v23548_v5  ;;  %v23626_v5 = vld [vmem:[#allocation11 + $0xe40] ss:$16 sps:$4 sm:$0xff]  }
 0x8cd   : > { %8539 = vmatpush1.bf16.msra.mxu1 %v23551_v9  ;;  %8328 = vmatprep.subr.bf16.mxu0 %v23556_v54  ;;  %v23629_v9 = vld [vmem:[#allocation11 + $0xe48] ss:$16 sps:$4 sm:$0xff]   ;;  %v23634_v54 = vld [vmem:[#allocation11 + $0xe64] ss:$16 sps:$4 sm:$0xff]  }
 0x8ce   : > { %8540 = vmatprep.subr.bf16.mxu1 %v23559_v42  ;;  %v23635_v42 = vld [vmem:[#allocation11 + $0xe68] ss:$16 sps:$4 sm:$0xff]  }
 0x8d0   : > { %8329 = vmatpush1.bf16.msra.mxu0 %v23554_v14  ;;  %v23640_v14 = vld [vmem:[#allocation11 + $0xe84] ss:$16 sps:$4 sm:$0xff]  }
 0x8d1   : > { %8541 = vmatpush1.bf16.msra.mxu1 %v23557_v4  ;;  %8330 = vmatprep.subr.bf16.mxu0 %v23562_v56  ;;  %v23643_v4 = vld [vmem:[#allocation11 + $0xe8c] ss:$16 sps:$4 sm:$0xff]   ;;  %v23638_v56 = vld [vmem:[#allocation11 + $0xe80] ss:$16 sps:$4 sm:$0xff]  }
 0x8d2   : > { %8542 = vmatprep.subr.bf16.mxu1 %v23565_v57  ;;  %v23641_v57 = vld [vmem:[#allocation11 + $0xe88] ss:$16 sps:$4 sm:$0xff]  }
 0x8d4   : > { %8331 = vmatpush1.bf16.msra.mxu0 %v23560_v43  ;;  %v23646_v43 = vld [vmem:[#allocation11 + $0xea4] ss:$16 sps:$4 sm:$0xff]  }
 0x8d5   : > { %8543 = vmatpush1.bf16.msra.mxu1 %v23563_v27  ;;  %8332 = vmatprep.subr.bf16.mxu0 %v23568_v31  ;;  %v23649_v27 = vld [vmem:[#allocation11 + $0xeac] ss:$16 sps:$4 sm:$0xff]  }
 0x8d6   : > { %8544 = vmatprep.subr.bf16.mxu1 %v23571_v46 }
 0x8d8   : > { %8333 = vmatpush1.bf16.msra.mxu0 %v23566_v32  ;;  %v23644_v32 = vld [vmem:[#allocation11 + $0xea0] ss:$16 sps:$4 sm:$0xff]  }
 0x8d9   : > { %8545 = vmatpush1.bf16.msra.mxu1 %v23569_v33  ;;  %8334 = vmatprep.subr.bf16.mxu0 %v23574_v7  ;;  %v23647_v7 = vld [vmem:[#allocation11 + $0xea8] ss:$16 sps:$4 sm:$0xff]  }
 0x8da   : > { %8546 = vmatprep.subr.bf16.mxu1 %v23577_v29 }
 0x8dc   : > { %8335 = vmatpush1.bf16.msra.mxu0 %v23572_v15 }
 0x8dd   : > { %8547 = vmatpush1.bf16.msra.mxu1 %v23575_v25  ;;  %8336 = vmatprep.subr.bf16.mxu0 %v23580_v45  ;;  %v23652_v25 = vld [vmem:[#allocation11 + $0xec4] ss:$16 sps:$4 sm:$0xff]  }
 0x8de   : > { %8548 = vmatprep.subr.bf16.mxu1 %v23583_v28  ;;  %v23655_v28 = vld [vmem:[#allocation11 + $0xecc] ss:$16 sps:$4 sm:$0xff]  }
 0x8e0   : > { %8337 = vmatpush1.bf16.msra.mxu0 %v23578_v19  ;;  %v23650_v19 = vld [vmem:[#allocation11 + $0xec0] ss:$16 sps:$4 sm:$0xff]  }
 0x8e1   : > { %8549 = vmatpush1.bf16.msra.mxu1 %v23581_v13  ;;  %8338 = vmatprep.subr.bf16.mxu0 %v23586_v10  ;;  %v23653_v13 = vld [vmem:[#allocation11 + $0xec8] ss:$16 sps:$4 sm:$0xff]   ;;  %v23658_v10 = vld [vmem:[#allocation11 + $0xee4] ss:$16 sps:$4 sm:$0xff]  }
 0x8e2   : > { %8550 = vmatprep.subr.bf16.mxu1 %v23589_v8 }
 0x8e4   : > { %8339 = vmatpush1.bf16.msra.mxu0 %v23584_v21  ;;  %v23661_v21 = vld [vmem:[#allocation11 + $0xeec] ss:$16 sps:$4 sm:$0xff]  }
 0x8e5   : > { %8551 = vmatpush1.bf16.msra.mxu1 %v23587_v35  ;;  %8340 = vmatprep.subr.bf16.mxu0 %v23592_v6 }
 0x8e6   : > { %8552 = vmatprep.subr.bf16.mxu1 %v23595_v0 }
 0x8e8   : > { %8341 = vmatpush1.bf16.msra.mxu0 %v23590_v52  ;;  %v23656_v52 = vld [vmem:[#allocation11 + $0xee0] ss:$16 sps:$4 sm:$0xff]  }
 0x8e9   : > { %8553 = vmatpush1.bf16.msra.mxu1 %v23593_v50  ;;  %8342 = vmatprep.subr.bf16.mxu0 %v23598_v48  ;;  %v23659_v48 = vld [vmem:[#allocation11 + $0xee8] ss:$16 sps:$4 sm:$0xff]  }
 0x8ea   : > { %8554 = vmatprep.subr.bf16.mxu1 %v23601_v24 }
 0x8ec   : > { %8343 = vmatpush1.bf16.msra.mxu0 %v23596_v51 }
 0x8ed   : > { %8555 = vmatpush1.bf16.msra.mxu1 %v23599_v12  ;;  %8344 = vmatprep.subr.bf16.mxu0 %v23604_v37  ;;  %v23664_v12 = vld [vmem:[#allocation11 + $0xf04] ss:$16 sps:$4 sm:$0xff]  }
 0x8ee   : > { %8556 = vmatprep.subr.bf16.mxu1 %v23607_v49  ;;  %v23667_v49 = vld [vmem:[#allocation11 + $0xf0c] ss:$16 sps:$4 sm:$0xff]  }
 0x8f0   : > { %8345 = vmatpush1.bf16.msra.mxu0 %v23602_v58  ;;  %v23662_v58 = vld [vmem:[#allocation11 + $0xf00] ss:$16 sps:$4 sm:$0xff]  }
 0x8f1   : > { %8557 = vmatpush1.bf16.msra.mxu1 %v23605_v2  ;;  %8346 = vmatprep.subr.bf16.mxu0 %v23610_v59  ;;  %v23665_v2 = vld [vmem:[#allocation11 + $0xf08] ss:$16 sps:$4 sm:$0xff]   ;;  %v23670_v59 = vld [vmem:[#allocation11 + $0xf24] ss:$16 sps:$4 sm:$0xff]  }
 0x8f2   : > { %8558 = vmatprep.subr.bf16.mxu1 %v23613_v17  ;;  %v23673_v17 = vld [vmem:[#allocation11 + $0xf2c] ss:$16 sps:$4 sm:$0xff]  }
 0x8f4   : > { %8347 = vmatpush1.bf16.msra.mxu0 %v23608_v26  ;;  %v23668_v26 = vld [vmem:[#allocation11 + $0xf20] ss:$16 sps:$4 sm:$0xff]  }
 0x8f5   : > { %8559 = vmatpush1.bf16.msra.mxu1 %v23611_v38  ;;  %8369 = vmatprep.subr.bf16.mxu0 %v23616_v60  ;;  %v23671_v38 = vld [vmem:[#allocation11 + $0xf28] ss:$16 sps:$4 sm:$0xff]   ;;  %v23676_v60 = vld [vmem:[#allocation11 + $0xf44] ss:$16 sps:$4 sm:$0xff]  }
 0x8f6   : > { %8581 = vmatprep.subr.bf16.mxu1 %v23619_v1  ;;  %v23679_v1 = vld [vmem:[#allocation11 + $0xf4c] ss:$16 sps:$4 sm:$0xff]  }
 0x8f7   : > { %8349 = vmatmul.mubr.bf16.vlgmr.msra.gmra.mrb[80].mxu0 %v27431_v62 }
 0x8f8   : > { %8561 = vmatmul.mubr.bf16.vlgmr.msra.gmra.mrb[88].mxu1 %v27431_v62  ;;  %8358 = vmatprep.mubr.bf16.mxu0 %v27449_v18  ;;  %v23637_v62 = vld [vmem:[#allocation11 + $0xe6c] ss:$16 sps:$4 sm:$0xff]  }
 0x8f9   : > { %8370 = vmatpush1.bf16.msra.mxu0 %v23614_v3  ;;  %8570 = vmatprep.mubr.bf16.mxu1 %v27449_v18  ;;  %v23632_v18 = vld [vmem:[#allocation11 + $0xe60] ss:$16 sps:$4 sm:$0xff]  }
 0x8fa   : > { %8582 = vmatpush1.bf16.msra.mxu1 %v23617_v34  ;;  %8371 = vmatprep.subr.bf16.mxu0 %v23622_v11  ;;  %v23674_v3 = vld [vmem:[#allocation11 + $0xf40] ss:$16 sps:$4 sm:$0xff]   ;;  %v23677_v34 = vld [vmem:[#allocation11 + $0xf48] ss:$16 sps:$4 sm:$0xff]   ;;  %v23682_v11 = vld [vmem:[#allocation11 + $0xf64] ss:$16 sps:$4 sm:$0xff]  }
 0x8fb   : > { %8583 = vmatprep.subr.bf16.mxu1 %v23625_v39  ;;  %v23685_v39 = vld [vmem:[#allocation11 + $0xf6c] ss:$16 sps:$4 sm:$0xff]  }
 0x8fd   : > { %8372 = vmatpush1.bf16.msra.mxu0 %v23620_v63  ;;  %v23680_v63 = vld [vmem:[#allocation11 + $0xf60] ss:$16 sps:$4 sm:$0xff]  }
 0x8fe   : > { %8584 = vmatpush1.bf16.msra.mxu1 %v23623_v40  ;;  %8373 = vmatprep.subr.bf16.mxu0 %v23628_v36  ;;  %v23683_v40 = vld [vmem:[#allocation11 + $0xf68] ss:$16 sps:$4 sm:$0xff]   ;;  %v23688_v36 = vld [vmem:[#allocation11 + $0xf84] ss:$16 sps:$4 sm:$0xff]  }
 0x8ff   : > { %8359 = vmatmul.mubr.bf16.gmra.mrb[84].mxu0 %v27447_v61  ;;  %8585 = vmatprep.subr.bf16.mxu1 %v23631_v30  ;;  %v23691_v30 = vld [vmem:[#allocation11 + $0xf8c] ss:$16 sps:$4 sm:$0xff]  }
 0x900   : > { %8571 = vmatmul.mubr.bf16.gmra.mrb[92].mxu1 %v27447_v61  ;;  %8401 = vmatprep.mubr.bf16.mxu0 %v27441_v16 }
 0x901   : > { %8374 = vmatpush1.bf16.msra.mxu0 %v23626_v5  ;;  %8613 = vmatprep.mubr.bf16.mxu1 %v27441_v16  ;;  %v23686_v5 = vld [vmem:[#allocation11 + $0xf80] ss:$16 sps:$4 sm:$0xff]  }
 0x902   : > { %8586 = vmatpush1.bf16.msra.mxu1 %v23629_v9  ;;  %8375 = vmatprep.subr.bf16.mxu0 %v23634_v54  ;;  %v23689_v9 = vld [vmem:[#allocation11 + $0xf88] ss:$16 sps:$4 sm:$0xff]   ;;  %v23694_v54 = vld [vmem:[#allocation11 + $0xfa4] ss:$16 sps:$4 sm:$0xff]  }
 0x903   : > { %8587 = vmatprep.subr.bf16.mxu1 %v23637_v62  ;;  %v23697_v62 = vld [vmem:[#allocation11 + $0xfac] ss:$16 sps:$4 sm:$0xff]  }
 0x905   : > { %8376 = vmatpush1.bf16.msra.mxu0 %v23632_v18  ;;  %v23692_v18 = vld [vmem:[#allocation11 + $0xfa0] ss:$16 sps:$4 sm:$0xff]  }
 0x906   : > { %8588 = vmatpush1.bf16.msra.mxu1 %v23635_v42  ;;  %8377 = vmatprep.subr.bf16.mxu0 %v23640_v14  ;;  %v23695_v42 = vld [vmem:[#allocation11 + $0xfa8] ss:$16 sps:$4 sm:$0xff]   ;;  %v23700_v14 = vld [vmem:[#allocation11 + $0xfc4] ss:$16 sps:$4 sm:$0xff]  }
 0x907   : > { %8589 = vmatprep.subr.bf16.mxu1 %v23643_v4  ;;  %v27505_v61 = vpop.f32.mrb[72].mxu0  ;;  %v23703_v4 = vld [vmem:[#allocation11 + $0xfcc] ss:$16 sps:$4 sm:$0xff]  }
 0x908   : > { %v27507_v31 = vpop.f32.mrb[80].mxu1  ;;  %v27509_v16 = vpop.f32.mrb[73].mxu0 }
 0x909   : > { %8378 = vmatpush1.bf16.msra.mxu0 %v23638_v56  ;;  %v27511_v46 = vpop.f32.mrb[81].mxu1  ;;  %v27513_v33 = vpop.f32.mrb[74].mxu0  ;;  %v23698_v56 = vld [vmem:[#allocation11 + $0xfc0] ss:$16 sps:$4 sm:$0xff]  }
 0x90a   : > { %8590 = vmatpush1.bf16.msra.mxu1 %v23641_v57  ;;  %8379 = vmatprep.subr.bf16.mxu0 %v23646_v43  ;;  %v27515_v29 = vpop.f32.mrb[82].mxu1  ;;  %v27517_v15 = vpop.f32.mrb[75].mxu0  ;;  %v23701_v57 = vld [vmem:[#allocation11 + $0xfc8] ss:$16 sps:$4 sm:$0xff]   ;;  %v23706_v43 = vld [vmem:[#allocation11 + $0xfe4] ss:$16 sps:$4 sm:$0xff]  }
 0x90b   : > { %8591 = vmatprep.subr.bf16.mxu1 %v23649_v27  ;;  %v27519_v45 = vpop.f32.mrb[83].mxu1  ;;  %v23709_v27 = vld [vmem:[#allocation11 + $0xfec] ss:$16 sps:$4 sm:$0xff]  }
 0x90d   : > { %8380 = vmatpush1.bf16.msra.mxu0 %v23644_v32  ;;  %v23704_v32 = vld [vmem:[#allocation11 + $0xfe0] ss:$16 sps:$4 sm:$0xff]  }
 0x90e   : > { %8592 = vmatpush1.bf16.msra.mxu1 %v23647_v7  ;;  %8381 = vmatprep.subr.bf16.mxu0 %v23652_v25  ;;  %v23707_v7 = vld [vmem:[#allocation11 + $0xfe8] ss:$16 sps:$4 sm:$0xff]  }
 0x90f   : > { %8593 = vmatprep.subr.bf16.mxu1 %v23655_v28  ;;  %v27521_v8 = vpop.f32.mrb[76].mxu0 }
 0x910   : > { %v27523_v35 = vpop.f32.mrb[84].mxu1  ;;  %v27525_v6 = vpop.f32.mrb[77].mxu0 }
 0x911   : > { %8382 = vmatpush1.bf16.msra.mxu0 %v23650_v19  ;;  %v27527_v0 = vpop.f32.mrb[85].mxu1  ;;  %v27529_v50 = vpop.f32.mrb[78].mxu0 }
 0x912   : > { %8594 = vmatpush1.bf16.msra.mxu1 %v23653_v13  ;;  %8383 = vmatprep.subr.bf16.mxu0 %v23658_v10  ;;  %v27531_v24 = vpop.f32.mrb[86].mxu1  ;;  %v27533_v51 = vpop.f32.mrb[79].mxu0 }
 0x913   : > { %8595 = vmatprep.subr.bf16.mxu1 %v23661_v21  ;;  %v27535_v37 = vpop.f32.mrb[87].mxu1 }
 0x915   : > { %8384 = vmatpush1.bf16.msra.mxu0 %v23656_v52 }
 0x916   : > { %8596 = vmatpush1.bf16.msra.mxu1 %v23659_v48  ;;  %8385 = vmatprep.subr.bf16.mxu0 %v23664_v12 }
 0x917   : > { %8597 = vmatprep.subr.bf16.mxu1 %v23667_v49 }
 0x919   : > { %8386 = vmatpush1.bf16.msra.mxu0 %v23662_v58 }
 0x91a   : > { %8598 = vmatpush1.bf16.msra.mxu1 %v23665_v2  ;;  %8387 = vmatprep.subr.bf16.mxu0 %v23670_v59 }
 0x91b   : > { %8599 = vmatprep.subr.bf16.mxu1 %v23673_v17 }
 0x91d   : > { %8388 = vmatpush1.bf16.msra.mxu0 %v23668_v26 }
 0x91e   : > { %8600 = vmatpush1.bf16.msra.mxu1 %v23671_v38  ;;  %8389 = vmatprep.subr.bf16.mxu0 %v23676_v60 }
 0x91f   : > { %8601 = vmatprep.subr.bf16.mxu1 %v23679_v1 }
 0x921   : > { %8390 = vmatpush1.bf16.msra.mxu0 %v23674_v3 }
 0x922   : > { %8602 = vmatpush1.bf16.msra.mxu1 %v23677_v34  ;;  %8391 = vmatprep.subr.bf16.mxu0 %v23682_v11 }
 0x923   : > { %8603 = vmatprep.subr.bf16.mxu1 %v23685_v39 }
 0x925   : > { %8392 = vmatpush1.bf16.msra.mxu0 %v23680_v63 }
 0x926   : > { %8604 = vmatpush1.bf16.msra.mxu1 %v23683_v40  ;;  %8393 = vmatprep.subr.bf16.mxu0 %v23688_v36 }
 0x927   : > { %8605 = vmatprep.subr.bf16.mxu1 %v23691_v30 }
 0x929   : > { %8394 = vmatpush1.bf16.msra.mxu0 %v23686_v5  ;;  %v23713_v5 = vld [vmem:[#allocation14 + $0x408] ss:$16 sps:$4 sm:$0xff]  }
 0x92a   : > { %8606 = vmatpush1.bf16.msra.mxu1 %v23689_v9  ;;  %8395 = vmatprep.subr.bf16.mxu0 %v23694_v54  ;;  %v8982_v9 = vld [vmem:[#allocation13 + $0x20] sm:$0xff]  ;;  %v23721_v54 = vld [vmem:[#allocation14 + $0x42c] ss:$16 sps:$4 sm:$0xff]  }
 0x92b   : > { %8607 = vmatprep.subr.bf16.mxu1 %v23697_v62  ;;  %v8983_v62 = vld [vmem:[#allocation13 + $0x28] sm:$0xff] }
 0x92d   : > { %8396 = vmatpush1.bf16.msra.mxu0 %v23692_v18  ;;  %v23719_v18 = vld [vmem:[#allocation14 + $0x428] ss:$16 sps:$4 sm:$0xff]  }
 0x92e   : > { %8608 = vmatpush1.bf16.msra.mxu1 %v23695_v42  ;;  %8397 = vmatprep.subr.bf16.mxu0 %v23700_v14  ;;  %v23727_v42 = vld [vmem:[#allocation14 + $0x44c] ss:$16 sps:$4 sm:$0xff]   ;;  %v8984_v14 = vld [vmem:[#allocation13 + $0x30] sm:$0xff] }
 0x92f   : > { %8609 = vmatprep.subr.bf16.mxu1 %v23703_v4  ;;  %v23712_v4 = vld [vmem:[#allocation14 + $0x404] ss:$16 sps:$4 sm:$0xff]  }
 0x931   : > { %8398 = vmatpush1.bf16.msra.mxu0 %v23698_v56  ;;  %v23725_v56 = vld [vmem:[#allocation14 + $0x448] ss:$16 sps:$4 sm:$0xff]  }
 0x932   : > { %8610 = vmatpush1.bf16.msra.mxu1 %v23701_v57  ;;  %8399 = vmatprep.subr.bf16.mxu0 %v23706_v43  ;;  %v23733_v57 = vld [vmem:[#allocation14 + $0x46c] ss:$16 sps:$4 sm:$0xff]   ;;  %v23710_v43 = vld [vmem:[#allocation14 + $0x400] ss:$16 sps:$4 sm:$0xff]  }
 0x933   : > { %8611 = vmatprep.subr.bf16.mxu1 %v23709_v27  ;;  %v8985_v27 = vld [vmem:[#allocation13 + $0x38] sm:$0xff] }
 0x935   : > { %8400 = vmatpush1.bf16.msra.mxu0 %v23704_v32  ;;  %v23718_v32 = vld [vmem:[#allocation14 + $0x424] ss:$16 sps:$4 sm:$0xff]  }
 0x936   : > { %8612 = vmatpush1.bf16.msra.mxu1 %v23707_v7  ;;  %v23731_v7 = vld [vmem:[#allocation14 + $0x468] ss:$16 sps:$4 sm:$0xff]  }
 0x938   : > { %8402 = vmatmul.mubr.bf16.vlgmr.msra.gmra.mrb[80].mxu0 %v27439_v47 }
 0x939   : > { %8614 = vmatmul.mubr.bf16.vlgmr.msra.gmra.mrb[88].mxu1 %v27439_v47  ;;  %8411 = vmatprep.mubr.bf16.mxu0 %v27455_v41 }
 0x93a   : > { %8623 = vmatprep.mubr.bf16.mxu1 %v27455_v41 }
 0x940   : > { %8412 = vmatmul.mubr.bf16.gmra.mrb[84].mxu0 %v27453_v55 }
 0x941   : > { %8624 = vmatmul.mubr.bf16.gmra.mrb[92].mxu1 %v27453_v55  ;;  %8731 = vmatprep.mubr.f32.mxu0 %v26127_v20 }
 0x942   : > { %8832 = vmatprep.mubr.f32.mxu1 %v26127_v20 }
 0xa0b   : > { %v8403_v25 = vpop.f32.mrb[80].mxu0 }
 0xa0c   : > { %v8634_v28 = vmax.f32 %v27505_v61, %v8403_v25  ;;  %v8615_v19 = vpop.f32.mrb[88].mxu1  ;;  %v8405_v13 = vpop.f32.mrb[81].mxu0  ;;  %v23739_v25 = vld [vmem:[#allocation14 + $0x48c] ss:$16 sps:$4 sm:$0xff]  }
 0xa0d   : > { %v8636_v10 = vmax.f32 %v27507_v31, %v8615_v19  ;;  %v8635_v47 = vmax.f32 %v27509_v16, %v8405_v13  ;;  %v8617_v21 = vpop.f32.mrb[89].mxu1  ;;  %v8407_v52 = vpop.f32.mrb[82].mxu0  ;;  %v23724_v19 = vld [vmem:[#allocation14 + $0x444] ss:$16 sps:$4 sm:$0xff]   ;;  %v23737_v13 = vld [vmem:[#allocation14 + $0x488] ss:$16 sps:$4 sm:$0xff]  }
 0xa0e   : > { %v8637_v41 = vmax.f32 %v27511_v46, %v8617_v21  ;;  %v8638_v48 = vmax.f32 %v27513_v33, %v8407_v52  ;;  %v8619_v55 = vpop.f32.mrb[90].mxu1  ;;  %v8409_v12 = vpop.f32.mrb[83].mxu0  ;;  %v23730_v21 = vld [vmem:[#allocation14 + $0x464] ss:$16 sps:$4 sm:$0xff]   ;;  %v23743_v52 = vld [vmem:[#allocation14 + $0x4a8] ss:$16 sps:$4 sm:$0xff]  }
 0xa0f   : > { %v8640_v49 = vmax.f32 %v27515_v29, %v8619_v55  ;;  %v8639_v58 = vmax.f32 %v27517_v15, %v8409_v12  ;;  %v8621_v2 = vpop.f32.mrb[91].mxu1  ;;  %v23736_v55 = vld [vmem:[#allocation14 + $0x484] ss:$16 sps:$4 sm:$0xff]   ;;  %v23749_v12 = vld [vmem:[#allocation14 + $0x4c8] ss:$16 sps:$4 sm:$0xff]  }
 0xa10   : > { %v27552_v61 = vpack.c.bf16 %v8638_v48, %v8634_v28  ;;  %v8641_v59 = vmax.f32 %v27519_v45, %v8621_v2  ;;  %v23716_v28 = vld [vmem:[#allocation14 + $0x420] ss:$16 sps:$4 sm:$0xff]   ;;  %v23742_v2 = vld [vmem:[#allocation14 + $0x4a4] ss:$16 sps:$4 sm:$0xff]  }
 0xa11   : > { %v27555_v31 = vpack.c.bf16 %v8640_v49, %v8636_v10  ;;  %v27557_v16 = vpack.c.bf16 %v8639_v58, %v8635_v47  ;;  %v23745_v10 = vld [vmem:[#allocation14 + $0x4ac] ss:$16 sps:$4 sm:$0xff]   ;;  %v23722_v47 = vld [vmem:[#allocation14 + $0x440] ss:$16 sps:$4 sm:$0xff]  }
 0xa12   : > { %v27559_v17 = vpack.c.bf16 %v8641_v59, %v8637_v41  ;;  %v23751_v41 = vld [vmem:[#allocation14 + $0x4cc] ss:$16 sps:$4 sm:$0xff]   ;;  %v23728_v48 = vld [vmem:[#allocation14 + $0x460] ss:$16 sps:$4 sm:$0xff]   ;;  %v23755_v59 = vld [vmem:[#allocation14 + $0x4e8] ss:$16 sps:$4 sm:$0xff]  }
 0xa13   : > { %v8413_v46 = vpop.f32.mrb[84].mxu0  ;;  %22141 = vmatprep.subr.bf16.mxu0 %v27557_v16  ;;  %v23757_v49 = vld [vmem:[#allocation14 + $0x4ec] ss:$16 sps:$4 sm:$0xff]   ;;  %v23734_v58 = vld [vmem:[#allocation14 + $0x480] ss:$16 sps:$4 sm:$0xff]  }
 0xa14   : > { %v8642_v33 = vmax.f32 %v27521_v8, %v8413_v46  ;;  %v8625_v26 = vpop.f32.mrb[92].mxu1  ;;  %22248 = vmatprep.subr.bf16.mxu1 %v27559_v17  ;;  %v8415_v29 = vpop.f32.mrb[85].mxu0  ;;  %22143 = vmatpush1.bf16.msra.mxu0 %v27552_v61  ;;  %v23740_v46 = vld [vmem:[#allocation14 + $0x4a0] ss:$16 sps:$4 sm:$0xff]  }
 0xa15   : > { %v8644_v15 = vmax.f32 %v27523_v35, %v8625_v26  ;;  %v8643_v45 = vmax.f32 %v27525_v6, %v8415_v29  ;;  %v8627_v38 = vpop.f32.mrb[93].mxu1  ;;  %22250 = vmatpush1.bf16.msra.mxu1 %v27555_v31  ;;  %v8417_v60 = vpop.f32.mrb[86].mxu0  ;;  %v23746_v26 = vld [vmem:[#allocation14 + $0x4c0] ss:$16 sps:$4 sm:$0xff]   ;;  %v23754_v29 = vld [vmem:[#allocation14 + $0x4e4] ss:$16 sps:$4 sm:$0xff]  }
 0xa16   : > { %v8645_v1 = vmax.f32 %v27527_v0, %v8627_v38  ;;  %v8646_v3 = vmax.f32 %v27529_v50, %v8417_v60  ;;  %v8629_v34 = vpop.f32.mrb[94].mxu1  ;;  %v8419_v8 = vpop.f32.mrb[87].mxu0  ;;  %v8650_v0 = vld [vmem:[#allocation13] sm:$0xff]  ;;  %v8652_v50 = vld [vmem:[#allocation13 + $0x10] sm:$0xff]  ;;  %v23763_v38 = vld [vmem:[#allocation14 + $0x50c] ss:$16 sps:$4 sm:$0xff]  }
 0xa17   : > { %v8648_v11 = vmax.f32 %v27531_v24, %v8629_v34  ;;  %v8647_v39 = vmax.f32 %v27533_v51, %v8419_v8  ;;  %v8631_v63 = vpop.f32.mrb[95].mxu1  ;;  %v8651_v24 = vld [vmem:[#allocation13 + $0x8] sm:$0xff]  ;;  %v23758_v60 = vld [vmem:[#allocation14 + $0x500] ss:$16 sps:$4 sm:$0xff]  }
 0xa18   : > { %v27572_v40 = vpack.c.bf16 %v8646_v3, %v8642_v33  ;;  %v8649_v35 = vmax.f32 %v27535_v37, %v8631_v63  ;;  %v23715_v51 = vld [vmem:[#allocation14 + $0x40c] ss:$16 sps:$4 sm:$0xff]   ;;  %v23748_v33 = vld [vmem:[#allocation14 + $0x4c4] ss:$16 sps:$4 sm:$0xff]   ;;  %v23764_v8 = vld [vmem:[#allocation14 + $0x520] ss:$16 sps:$4 sm:$0xff]  }
 0xa19   : > { %v27575_v6 = vpack.c.bf16 %v8648_v11, %v8644_v15  ;;  %v27577_v36 = vpack.c.bf16 %v8647_v39, %v8643_v45  ;;  %v8653_v37 = vld [vmem:[#allocation13 + $0x18] sm:$0xff]  ;;  %v23752_v15 = vld [vmem:[#allocation14 + $0x4e0] ss:$16 sps:$4 sm:$0xff]   ;;  %v23760_v45 = vld [vmem:[#allocation14 + $0x504] ss:$16 sps:$4 sm:$0xff]  }
 0xa1a   : > { %v27579_v30 = vpack.c.bf16 %v8649_v35, %v8645_v1  ;;  %v23761_v1 = vld [vmem:[#allocation14 + $0x508] ss:$16 sps:$4 sm:$0xff]   ;;  %v23766_v3 = vld [vmem:[#allocation14 + $0x524] ss:$16 sps:$4 sm:$0xff]   ;;  %v23769_v34 = vld [vmem:[#allocation14 + $0x52c] ss:$16 sps:$4 sm:$0xff]  }
 0xa1b   : > { %22145 = vmatprep.subr.bf16.mxu0 %v27577_v36  ;;  %v23767_v11 = vld [vmem:[#allocation14 + $0x528] ss:$16 sps:$4 sm:$0xff]   ;;  %v23772_v39 = vld [vmem:[#allocation14 + $0x544] ss:$16 sps:$4 sm:$0xff]   ;;  %v23775_v63 = vld [vmem:[#allocation14 + $0x54c] ss:$16 sps:$4 sm:$0xff]  }
 0xa1c   : > { %22249 = vmatprep.subr.bf16.mxu1 %v27579_v30  ;;  %22147 = vmatpush1.bf16.msra.mxu0 %v27572_v40  ;;  %v23770_v35 = vld [vmem:[#allocation14 + $0x540] ss:$16 sps:$4 sm:$0xff]  }
 0xa1d   : > { %22251 = vmatpush1.bf16.msra.mxu1 %v27575_v6  ;;  %22149 = vmatprep.subr.bf16.mxu0 %v27559_v17 }
 0xa1e   : > { %22165 = vmatprep.subr.bf16.mxu1 %v27559_v17 }
 0xa1f   : > { %20340 = vmatmul.mubr.msk.f32.vlgmr.msra.gmra.mrb[88].mxu0 %vm8654_vm1, %v8650_v0 }
 0xa20   : > { %22151 = vmatpush1.bf16.msra.mxu0 %v27555_v31  ;;  %20346 = vmatmul.mubr.msk.f32.vlgmr.msra.gmra.mrb[96].mxu1 %vm8654_vm1, %v8652_v50 }
 0xa21   : > { %22167 = vmatpush1.bf16.msra.mxu1 %v27555_v31  ;;  %22153 = vmatprep.subr.bf16.mxu0 %v27579_v30 }
 0xa22   : > { %22169 = vmatprep.subr.bf16.mxu1 %v27579_v30  ;;  %8737 = vmatprep.mubr.f32.mxu0 %v26127_v20 }
 0xa23   : > { %20341 = vmatmul.mubr.msk.f32.gmra.mrb[90].mxu0 %vm8654_vm1, %v8651_v24  ;;  %8838 = vmatprep.mubr.f32.mxu1 %v26127_v20 }
 0xa24   : > { %22155 = vmatpush1.bf16.msra.mxu0 %v27575_v6  ;;  %8743 = vmatprep.mubr.f32.mxu0 %v26127_v20 }
 0xa25   : > { %22171 = vmatpush1.bf16.msra.mxu1 %v27575_v6  ;;  %22157 = vmatprep.subr.bf16.mxu0 %v27557_v16 }
 0xa26   : > { %20347 = vmatmul.mubr.msk.f32.gmra.mrb[98].mxu1 %vm8654_vm1, %v8653_v37  ;;  %10059 = vmatprep.subr.bf16.mxu1 %v23715_v51  ;;  %v23776_v51 = vld [vmem:[#allocation14 + $0x560] ss:$16 sps:$4 sm:$0xff]  }
 0xa27   : > { %20342 = vmatmul.mubr.msk.f32.gmra.mrb[92].mxu0 %vm8654_vm1, %v8652_v50  ;;  %9151 = vmatprep.mubr.f32.mxu1 %v26127_v20  ;;  %v23778_v50 = vld [vmem:[#allocation14 + $0x564] ss:$16 sps:$4 sm:$0xff]  }
 0xa28   : > { %8749 = vmatprep.mubr.f32.mxu0 %v26127_v20 }
 0xa2a   : > { %20352 = vmatmul.mubr.msk.f32.vlgmr.msra.gmra.mrb[100].mxu1 %vm8654_vm1, %v8982_v9 }
 0xa2b   : > { %20343 = vmatmul.mubr.msk.f32.gmra.mrb[94].mxu0 %vm8654_vm1, %v8653_v37  ;;  %9157 = vmatprep.mubr.f32.mxu1 %v26127_v20  ;;  %v23779_v37 = vld [vmem:[#allocation14 + $0x568] ss:$16 sps:$4 sm:$0xff]  }
 0xa2c   : > { %8820 = vmatprep.mubr.f32.mxu0 %v26127_v20  ;;  %10060 = vmatpush1.bf16.msra.mxu1 %v23713_v5  ;;  %v23784_v5 = vld [vmem:[#allocation14 + $0x584] ss:$16 sps:$4 sm:$0xff]  }
 0xa2d   : > { %10061 = vmatprep.subr.bf16.mxu1 %v23721_v54  ;;  %v23782_v54 = vld [vmem:[#allocation14 + $0x580] ss:$16 sps:$4 sm:$0xff]  }
 0xa2e   : > { %20353 = vmatmul.mubr.msk.f32.gmra.mrb[102].mxu1 %vm8654_vm1, %v8983_v62 }
 0xa2f   : > { %20344 = vmatmul.mubr.msk.f32.vlgmr.msra.gmra.mrb[96].mxu0 %vm8654_vm1, %v8650_v0  ;;  %9163 = vmatprep.mubr.f32.mxu1 %v26127_v20  ;;  %v23773_v0 = vld [vmem:[#allocation14 + $0x548] ss:$16 sps:$4 sm:$0xff]  }
 0xa30   : > { %22159 = vmatpush1.bf16.msra.mxu0 %v27552_v61  ;;  %8826 = vmatprep.mubr.f32.mxu0 %v26127_v20 }
 0xa31   : > { %22161 = vmatprep.subr.bf16.mxu0 %v27577_v36  ;;  %10062 = vmatpush1.bf16.msra.mxu1 %v23719_v18  ;;  %v23790_v18 = vld [vmem:[#allocation14 + $0x5a4] ss:$16 sps:$4 sm:$0xff]  }
 0xa32   : > { %20354 = vmatmul.mubr.msk.f32.gmra.mrb[104].mxu1 %vm8654_vm1, %v8984_v14  ;;  %10063 = vmatprep.subr.bf16.mxu1 %v23727_v42  ;;  %v23793_v42 = vld [vmem:[#allocation14 + $0x5ac] ss:$16 sps:$4 sm:$0xff]  }
 0xa33   : > { %20345 = vmatmul.mubr.msk.f32.gmra.mrb[98].mxu0 %vm8654_vm1, %v8651_v24  ;;  %9169 = vmatprep.mubr.f32.mxu1 %v26127_v20  ;;  %v23781_v24 = vld [vmem:[#allocation14 + $0x56c] ss:$16 sps:$4 sm:$0xff]  }
 0xa34   : > { %22163 = vmatpush1.bf16.msra.mxu0 %v27572_v40  ;;  %9062 = vmatprep.mubr.f32.mxu0 %v26127_v20 }
 0xa35   : > { %9953 = vmatprep.subr.bf16.mxu0 %v23712_v4  ;;  %10064 = vmatpush1.bf16.msra.mxu1 %v23725_v56  ;;  %v23791_v4 = vld [vmem:[#allocation14 + $0x5a8] ss:$16 sps:$4 sm:$0xff]   ;;  %v23796_v56 = vld [vmem:[#allocation14 + $0x5c4] ss:$16 sps:$4 sm:$0xff]  }
 0xa36   : > { %20355 = vmatmul.mubr.msk.f32.gmra.mrb[106].mxu1 %vm8654_vm1, %v8985_v27  ;;  %10065 = vmatprep.subr.bf16.mxu1 %v23733_v57  ;;  %v23799_v57 = vld [vmem:[#allocation14 + $0x5cc] ss:$16 sps:$4 sm:$0xff]  }
 0xa37   : > { %20348 = vmatmul.mubr.msk.f32.vlgmr.msra.gmra.mrb[100].mxu0 %vm8654_vm1, %v8982_v9  ;;  %v23787_v9 = vld [vmem:[#allocation14 + $0x58c] ss:$16 sps:$4 sm:$0xff]  }
 0xa38   : > { %9068 = vmatprep.mubr.f32.mxu0 %v26127_v20  ;;  %9954 = vmatpush1.bf16.msra.mxu0 %v23710_v43  ;;  %v23794_v43 = vld [vmem:[#allocation14 + $0x5c0] ss:$16 sps:$4 sm:$0xff]  }
 0xa39   : > { %9955 = vmatprep.subr.bf16.mxu0 %v23718_v32  ;;  %10066 = vmatpush1.bf16.msra.mxu1 %v23731_v7  ;;  %v23802_v32 = vld [vmem:[#allocation14 + $0x5e4] ss:$16 sps:$4 sm:$0xff]   ;;  %v23805_v7 = vld [vmem:[#allocation14 + $0x5ec] ss:$16 sps:$4 sm:$0xff]  }
 0xa3a   : > { %10067 = vmatprep.subr.bf16.mxu1 %v23739_v25  ;;  %v23800_v25 = vld [vmem:[#allocation14 + $0x5e0] ss:$16 sps:$4 sm:$0xff]  }
 0xa3b   : > { %20349 = vmatmul.mubr.msk.f32.gmra.mrb[102].mxu0 %vm8654_vm1, %v8983_v62  ;;  %v23785_v62 = vld [vmem:[#allocation14 + $0x588] ss:$16 sps:$4 sm:$0xff]  }
 0xa3c   : > { %9074 = vmatprep.mubr.f32.mxu0 %v26127_v20  ;;  %9956 = vmatpush1.bf16.msra.mxu0 %v23716_v28  ;;  %v23803_v28 = vld [vmem:[#allocation14 + $0x5e8] ss:$16 sps:$4 sm:$0xff]  }
 0xa3d   : > { %9957 = vmatprep.subr.bf16.mxu0 %v23724_v19  ;;  %10068 = vmatpush1.bf16.msra.mxu1 %v23737_v13  ;;  %v23808_v19 = vld [vmem:[#allocation14 + $0x604] ss:$16 sps:$4 sm:$0xff]   ;;  %v23811_v13 = vld [vmem:[#allocation14 + $0x60c] ss:$16 sps:$4 sm:$0xff]  }
 0xa3e   : > { %10069 = vmatprep.subr.bf16.mxu1 %v23745_v10 }
 0xa3f   : > { %20350 = vmatmul.mubr.msk.f32.gmra.mrb[104].mxu0 %vm8654_vm1, %v8984_v14  ;;  %v23788_v14 = vld [vmem:[#allocation14 + $0x5a0] ss:$16 sps:$4 sm:$0xff]  }
 0xa40   : > { %9080 = vmatprep.mubr.f32.mxu0 %v26127_v20  ;;  %9958 = vmatpush1.bf16.msra.mxu0 %v23722_v47 }
 0xa41   : > { %9959 = vmatprep.subr.bf16.mxu0 %v23730_v21  ;;  %10070 = vmatpush1.bf16.msra.mxu1 %v23743_v52 }
 0xa42   : > { %10071 = vmatprep.subr.bf16.mxu1 %v23751_v41 }
 0xa43   : > { %20351 = vmatmul.mubr.msk.f32.gmra.mrb[106].mxu0 %vm8654_vm1, %v8985_v27  ;;  %v23797_v27 = vld [vmem:[#allocation14 + $0x5c8] ss:$16 sps:$4 sm:$0xff]  }
 0xa44   : > { %9960 = vmatpush1.bf16.msra.mxu0 %v23728_v48 }
 0xa45   : > { %9961 = vmatprep.subr.bf16.mxu0 %v23736_v55  ;;  %10072 = vmatpush1.bf16.msra.mxu1 %v23749_v12 }
 0xa46   : > { %10073 = vmatprep.subr.bf16.mxu1 %v23757_v49 }
 0xa48   : > { %9962 = vmatpush1.bf16.msra.mxu0 %v23734_v58 }
 0xa49   : > { %9963 = vmatprep.subr.bf16.mxu0 %v23742_v2  ;;  %10074 = vmatpush1.bf16.msra.mxu1 %v23755_v59 }
 0xa4a   : > { %10075 = vmatprep.subr.bf16.mxu1 %v23763_v38 }
 0xa4c   : > { %9964 = vmatpush1.bf16.msra.mxu0 %v23740_v46 }
 0xa4d   : > { %9965 = vmatprep.subr.bf16.mxu0 %v23748_v33  ;;  %10076 = vmatpush1.bf16.msra.mxu1 %v23761_v1 }
 0xa4e   : > { %10077 = vmatprep.subr.bf16.mxu1 %v23769_v34 }
 0xa50   : > { %9966 = vmatpush1.bf16.msra.mxu0 %v23746_v26 }
 0xa51   : > { %9967 = vmatprep.subr.bf16.mxu0 %v23754_v29  ;;  %10078 = vmatpush1.bf16.msra.mxu1 %v23767_v11 }
 0xa52   : > { %10079 = vmatprep.subr.bf16.mxu1 %v23775_v63 }
 0xa54   : > { %9968 = vmatpush1.bf16.msra.mxu0 %v23752_v15 }
 0xa55   : > { %9969 = vmatprep.subr.bf16.mxu0 %v23760_v45  ;;  %10080 = vmatpush1.bf16.msra.mxu1 %v23773_v0 }
 0xa56   : > { %10081 = vmatprep.subr.bf16.mxu1 %v23781_v24 }
 0xa58   : > { %9970 = vmatpush1.bf16.msra.mxu0 %v23758_v60 }
 0xa59   : > { %9971 = vmatprep.subr.bf16.mxu0 %v23766_v3  ;;  %10082 = vmatpush1.bf16.msra.mxu1 %v23779_v37 }
 0xa5a   : > { %10083 = vmatprep.subr.bf16.mxu1 %v23787_v9 }
 0xa5c   : > { %9972 = vmatpush1.bf16.msra.mxu0 %v23764_v8 }
 0xa5d   : > { %9973 = vmatprep.subr.bf16.mxu0 %v23772_v39  ;;  %10084 = vmatpush1.bf16.msra.mxu1 %v23785_v62 }
 0xa5e   : > { %10085 = vmatprep.subr.bf16.mxu1 %v23793_v42 }
 0xa60   : > { %9974 = vmatpush1.bf16.msra.mxu0 %v23770_v35 }
 0xa61   : > { %9975 = vmatprep.subr.bf16.mxu0 %v23778_v50  ;;  %10086 = vmatpush1.bf16.msra.mxu1 %v23791_v4 }
 0xa62   : > { %10087 = vmatprep.subr.bf16.mxu1 %v23799_v57  ;;  %v23806_v57 = vld [vmem:[#allocation14 + $0x600] ss:$16 sps:$4 sm:$0xff]  }
 0xa64   : > { %9976 = vmatpush1.bf16.msra.mxu0 %v23776_v51 }
 0xa65   : > { %9977 = vmatprep.subr.bf16.mxu0 %v23784_v5  ;;  %10088 = vmatpush1.bf16.msra.mxu1 %v23797_v27  ;;  %v23814_v27 = vld [vmem:[#allocation14 + $0x624] ss:$16 sps:$4 sm:$0xff]  }
 0xa66   : > { %10089 = vmatprep.subr.bf16.mxu1 %v23805_v7 }
 0xa68   : > { %9978 = vmatpush1.bf16.msra.mxu0 %v23782_v54 }
 0xa69   : > { %9979 = vmatprep.subr.bf16.mxu0 %v23790_v18  ;;  %10090 = vmatpush1.bf16.msra.mxu1 %v23803_v28  ;;  %v23812_v28 = vld [vmem:[#allocation14 + $0x620] ss:$16 sps:$4 sm:$0xff]  }
 0xa6a   : > { %10112 = vmatprep.subr.bf16.mxu1 %v23811_v13  ;;  %v23820_v13 = vld [vmem:[#allocation14 + $0x644] ss:$16 sps:$4 sm:$0xff]  }
 0xa6c   : > { %9980 = vmatpush1.bf16.msra.mxu0 %v23788_v14 }
 0xa6d   : > { %9981 = vmatprep.subr.bf16.mxu0 %v23796_v56 }
 0xa70   : > { %9982 = vmatpush1.bf16.msra.mxu0 %v23794_v43  ;;  %v23809_v43 = vld [vmem:[#allocation14 + $0x608] ss:$16 sps:$4 sm:$0xff]  }
 0xa71   : > { %9983 = vmatprep.subr.bf16.mxu0 %v23802_v32  ;;  %v23817_v32 = vld [vmem:[#allocation14 + $0x62c] ss:$16 sps:$4 sm:$0xff]  }
 0xa74   : > { %9984 = vmatpush1.bf16.msra.mxu0 %v23800_v25 }
 0xa75   : > { %10006 = vmatprep.subr.bf16.mxu0 %v23808_v19  ;;  %v23815_v19 = vld [vmem:[#allocation14 + $0x628] ss:$16 sps:$4 sm:$0xff]  }
 0xaf2   : > { %v8733_v10 = vpop.f32.mrb[88].mxu0 }
 0xaf3   : > { %v8735_v47 = vpop.f32.mrb[89].mxu0  ;;  %v8834_v21 = vpop.f32.mrb[96].mxu1 }
 0xaf4   : > { %v8836_v52 = vpop.f32.mrb[97].mxu1 }
 0xaf6   : > { %v8739_v41 = vpop.f32.mrb[90].mxu0 }
 0xaf7   : > { %v27627_v48 = vpack.c.bf16 %v8739_v41, %v8733_v10  ;;  %v8741_v55 = vpop.f32.mrb[91].mxu0  ;;  %v23823_v10 = vld [vmem:[#allocation14 + $0x64c] ss:$16 sps:$4 sm:$0xff]   ;;  %v23818_v41 = vld [vmem:[#allocation14 + $0x640] ss:$16 sps:$4 sm:$0xff]  }
 0xaf8   : > { %v27629_v12 = vpack.c.bf16 %v8741_v55, %v8735_v47  ;;  %v23821_v55 = vld [vmem:[#allocation14 + $0x648] ss:$16 sps:$4 sm:$0xff]  }
 0xaf9   : > { %v8840_v49 = vpop.f32.mrb[98].mxu1 }
 0xafa   : > { %v8745_v58 = vpop.f32.mrb[92].mxu0  ;;  %v27631_v2 = vpack.c.bf16 %v8840_v49, %v8834_v21  ;;  %v8842_v59 = vpop.f32.mrb[99].mxu1 }
 0xafb   : > { %v8747_v46 = vpop.f32.mrb[93].mxu0  ;;  %v27633_v33 = vpack.c.bf16 %v8842_v59, %v8836_v52  ;;  %v23829_v59 = vld [vmem:[#allocation14 + $0x66c] ss:$16 sps:$4 sm:$0xff]  }
 0xafd   : > { %v9153_v26 = vpop.f32.mrb[100].mxu1 }
 0xafe   : > { %v8751_v29 = vpop.f32.mrb[94].mxu0  ;;  %v9155_v15 = vpop.f32.mrb[101].mxu1 }
 0xaff   : > { %v27635_v45 = vpack.c.bf16 %v8751_v29, %v8745_v58  ;;  %v8753_v38 = vpop.f32.mrb[95].mxu0  ;;  %v23826_v58 = vld [vmem:[#allocation14 + $0x664] ss:$16 sps:$4 sm:$0xff]  }
 0xb00   : > { %v27637_v60 = vpack.c.bf16 %v8753_v38, %v8747_v46  ;;  %v23824_v46 = vld [vmem:[#allocation14 + $0x660] ss:$16 sps:$4 sm:$0xff]   ;;  %v23832_v29 = vld [vmem:[#allocation14 + $0x684] ss:$16 sps:$4 sm:$0xff]  }
 0xb01   : > { %v9159_v1 = vpop.f32.mrb[102].mxu1  ;;  %v23830_v38 = vld [vmem:[#allocation14 + $0x680] ss:$16 sps:$4 sm:$0xff]  }
 0xb02   : > { %v8822_v3 = vpop.f32.mrb[96].mxu0  ;;  %v27639_v34 = vpack.c.bf16 %v9159_v1, %v9153_v26  ;;  %v9161_v8 = vpop.f32.mrb[103].mxu1  ;;  %v23827_v26 = vld [vmem:[#allocation14 + $0x668] ss:$16 sps:$4 sm:$0xff]  }
 0xb03   : > { %v8824_v11 = vpop.f32.mrb[97].mxu0  ;;  %v9179_v39 = vpack.c.bf16 %v9161_v8, %v9155_v15  ;;  %v23835_v15 = vld [vmem:[#allocation14 + $0x68c] ss:$16 sps:$4 sm:$0xff]   ;;  %v23833_v1 = vld [vmem:[#allocation14 + $0x688] ss:$16 sps:$4 sm:$0xff]  }
 0xb04   : > { %v23841_v8 = vld [vmem:[#allocation14 + $0x6ac] ss:$16 sps:$4 sm:$0xff]  }
 0xb05   : > { %v9165_v63 = vpop.f32.mrb[104].mxu1 }
 0xb06   : > { %v8828_v35 = vpop.f32.mrb[98].mxu0  ;;  %v9167_v0 = vpop.f32.mrb[105].mxu1 }
 0xb07   : > { %v27641_v50 = vpack.c.bf16 %v8828_v35, %v8822_v3  ;;  %v8830_v24 = vpop.f32.mrb[99].mxu0  ;;  %v23838_v3 = vld [vmem:[#allocation14 + $0x6a4] ss:$16 sps:$4 sm:$0xff]  }
 0xb08   : > { %v27643_v51 = vpack.c.bf16 %v8830_v24, %v8824_v11  ;;  %v23836_v11 = vld [vmem:[#allocation14 + $0x6a0] ss:$16 sps:$4 sm:$0xff]   ;;  %v23844_v35 = vld [vmem:[#allocation14 + $0x6c4] ss:$16 sps:$4 sm:$0xff]  }
 0xb09   : > { %v9171_v37 = vpop.f32.mrb[106].mxu1  ;;  %v23842_v24 = vld [vmem:[#allocation14 + $0x6c0] ss:$16 sps:$4 sm:$0xff]  }
 0xb0a   : > { %v9064_v5 = vpop.f32.mrb[100].mxu0  ;;  %v27645_v9 = vpack.c.bf16 %v9171_v37, %v9165_v63  ;;  %v9173_v54 = vpop.f32.mrb[107].mxu1  ;;  %v23839_v63 = vld [vmem:[#allocation14 + $0x6a8] ss:$16 sps:$4 sm:$0xff]   ;;  %v23850_v37 = vld [vmem:[#allocation14 + $0x6e4] ss:$16 sps:$4 sm:$0xff]  }
 0xb0b   : > { %v9066_v62 = vpop.f32.mrb[101].mxu0  ;;  %v27647_v18 = vpack.c.bf16 %v9173_v54, %v9167_v0  ;;  %v23847_v0 = vld [vmem:[#allocation14 + $0x6cc] ss:$16 sps:$4 sm:$0xff]   ;;  %v23848_v54 = vld [vmem:[#allocation14 + $0x6e0] ss:$16 sps:$4 sm:$0xff]  }
 0xb0e   : > { %v9070_v42 = vpop.f32.mrb[102].mxu0 }
 0xb0f   : > { %v9176_v14 = vpack.c.bf16 %v9070_v42, %v9064_v5  ;;  %v9072_v4 = vpop.f32.mrb[103].mxu0  ;;  %v23853_v5 = vld [vmem:[#allocation14 + $0x6ec] ss:$16 sps:$4 sm:$0xff]   ;;  %v23856_v42 = vld [vmem:[#allocation14 + $0x704] ss:$16 sps:$4 sm:$0xff]  }
 0xb10   : > { %v9177_v56 = vpack.c.bf16 %v9072_v4, %v9066_v62  ;;  %v23851_v62 = vld [vmem:[#allocation14 + $0x6e8] ss:$16 sps:$4 sm:$0xff]   ;;  %v23854_v4 = vld [vmem:[#allocation14 + $0x700] ss:$16 sps:$4 sm:$0xff]  }
 0xb12   : > { %9985 = vmatprep.mubr.bf16.mxu0 %v9177_v56  ;;  %10091 = vmatprep.mubr.bf16.mxu1 %v9177_v56  ;;  %v9076_v7 = vpop.f32.mrb[104].mxu0  ;;  %v23857_v56 = vld [vmem:[#allocation14 + $0x708] ss:$16 sps:$4 sm:$0xff]  }
 0xb13   : > { %9986 = vmatmul.mubr.bf16.vlgmr.msra.gmra.mrb[108].mxu0 %v9176_v14  ;;  %10092 = vmatmul.mubr.bf16.vlgmr.msra.gmra.mrb[108].mxu1 %v9176_v14  ;;  %v9078_v25 = vpop.f32.mrb[105].mxu0  ;;  %v23859_v14 = vld [vmem:[#allocation14 + $0x70c] ss:$16 sps:$4 sm:$0xff]  }
 0xb14   : > { %10007 = vmatpush1.bf16.msra.mxu0 %v23806_v57  ;;  %10113 = vmatpush1.bf16.msra.mxu1 %v23809_v43  ;;  %v23862_v57 = vld [vmem:[#allocation14 + $0x724] ss:$16 sps:$4 sm:$0xff]   ;;  %v23865_v43 = vld [vmem:[#allocation14 + $0x72c] ss:$16 sps:$4 sm:$0xff]  }
 0xb15   : > { %10008 = vmatprep.subr.bf16.mxu0 %v23814_v27  ;;  %10114 = vmatprep.subr.bf16.mxu1 %v23817_v32  ;;  %v23860_v27 = vld [vmem:[#allocation14 + $0x720] ss:$16 sps:$4 sm:$0xff]   ;;  %v23863_v32 = vld [vmem:[#allocation14 + $0x728] ss:$16 sps:$4 sm:$0xff]  }
 0xb16   : > { %v9082_v47 = vpop.f32.mrb[106].mxu0 }
 0xb17   : > { %v9180_v21 = vpack.c.bf16 %v9082_v47, %v9076_v7  ;;  %v9084_v52 = vpop.f32.mrb[107].mxu0  ;;  %v23868_v7 = vld [vmem:[#allocation14 + $0x744] ss:$16 sps:$4 sm:$0xff]   ;;  %v23872_v47 = vld [vmem:[#allocation14 + $0x760] ss:$16 sps:$4 sm:$0xff]  }
 0xb18   : > { %10009 = vmatpush1.bf16.msra.mxu0 %v23812_v28  ;;  %10115 = vmatpush1.bf16.msra.mxu1 %v23815_v19  ;;  %v9181_v49 = vpack.c.bf16 %v9084_v52, %v9078_v25  ;;  %v23871_v25 = vld [vmem:[#allocation14 + $0x74c] ss:$16 sps:$4 sm:$0xff]   ;;  %v23866_v28 = vld [vmem:[#allocation14 + $0x740] ss:$16 sps:$4 sm:$0xff]   ;;  %v23869_v19 = vld [vmem:[#allocation14 + $0x748] ss:$16 sps:$4 sm:$0xff]  }
 0xb19   : > { %10010 = vmatprep.subr.bf16.mxu0 %v23820_v13  ;;  %10116 = vmatprep.subr.bf16.mxu1 %v23823_v10  ;;  %v23874_v13 = vld [vmem:[#allocation14 + $0x764] ss:$16 sps:$4 sm:$0xff]   ;;  %v23877_v10 = vld [vmem:[#allocation14 + $0x76c] ss:$16 sps:$4 sm:$0xff]  }
 0xb1a   : > { %9995 = vmatprep.mubr.bf16.mxu0 %v9181_v49  ;;  %10101 = vmatprep.mubr.bf16.mxu1 %v9181_v49  ;;  %v23880_v52 = vld [vmem:[#allocation14 + $0x784] ss:$16 sps:$4 sm:$0xff]   ;;  %v23881_v49 = vld [vmem:[#allocation14 + $0x788] ss:$16 sps:$4 sm:$0xff]  }
 0xb1b   : > { %9996 = vmatmul.mubr.bf16.gmra.mrb[112].mxu0 %v9180_v21  ;;  %10102 = vmatmul.mubr.bf16.gmra.mrb[112].mxu1 %v9180_v21  ;;  %v23875_v21 = vld [vmem:[#allocation14 + $0x768] ss:$16 sps:$4 sm:$0xff]  }
 0xb1c   : > { %10011 = vmatpush1.bf16.msra.mxu0 %v23818_v41  ;;  %10117 = vmatpush1.bf16.msra.mxu1 %v23821_v55  ;;  %v23883_v41 = vld [vmem:[#allocation14 + $0x78c] ss:$16 sps:$4 sm:$0xff]   ;;  %v23878_v55 = vld [vmem:[#allocation14 + $0x780] ss:$16 sps:$4 sm:$0xff]  }
 0xb1d   : > { %10012 = vmatprep.subr.bf16.mxu0 %v23826_v58  ;;  %10118 = vmatprep.subr.bf16.mxu1 %v23829_v59  ;;  %v23886_v58 = vld [vmem:[#allocation14 + $0x7a4] ss:$16 sps:$4 sm:$0xff]   ;;  %v23889_v59 = vld [vmem:[#allocation14 + $0x7ac] ss:$16 sps:$4 sm:$0xff]  }
 0xb1e   : > { %10038 = vmatprep.mubr.bf16.mxu0 %v9179_v39  ;;  %10144 = vmatprep.mubr.bf16.mxu1 %v9179_v39  ;;  %v23845_v39 = vld [vmem:[#allocation14 + $0x6c8] ss:$16 sps:$4 sm:$0xff]  }
 0xb20   : > { %10013 = vmatpush1.bf16.msra.mxu0 %v23824_v46  ;;  %10119 = vmatpush1.bf16.msra.mxu1 %v23827_v26  ;;  %v23884_v46 = vld [vmem:[#allocation14 + $0x7a0] ss:$16 sps:$4 sm:$0xff]   ;;  %v23887_v26 = vld [vmem:[#allocation14 + $0x7a8] ss:$16 sps:$4 sm:$0xff]  }
 0xb21   : > { %10014 = vmatprep.subr.bf16.mxu0 %v23832_v29  ;;  %10120 = vmatprep.subr.bf16.mxu1 %v23835_v15  ;;  %v23892_v29 = vld [vmem:[#allocation14 + $0x7c4] ss:$16 sps:$4 sm:$0xff]   ;;  %v23895_v15 = vld [vmem:[#allocation14 + $0x7cc] ss:$16 sps:$4 sm:$0xff]  }
 0xb24   : > { %10015 = vmatpush1.bf16.msra.mxu0 %v23830_v38  ;;  %10121 = vmatpush1.bf16.msra.mxu1 %v23833_v1  ;;  %v23890_v38 = vld [vmem:[#allocation14 + $0x7c0] ss:$16 sps:$4 sm:$0xff]   ;;  %v23893_v1 = vld [vmem:[#allocation14 + $0x7c8] ss:$16 sps:$4 sm:$0xff]  }
 0xb25   : > { %10016 = vmatprep.subr.bf16.mxu0 %v23838_v3  ;;  %10122 = vmatprep.subr.bf16.mxu1 %v23841_v8  ;;  %v23898_v3 = vld [vmem:[#allocation14 + $0x7e4] ss:$16 sps:$4 sm:$0xff]   ;;  %v23901_v8 = vld [vmem:[#allocation14 + $0x7ec] ss:$16 sps:$4 sm:$0xff]  }
 0xb28   : > { %10017 = vmatpush1.bf16.msra.mxu0 %v23836_v11  ;;  %10123 = vmatpush1.bf16.msra.mxu1 %v23839_v63  ;;  %v23896_v11 = vld [vmem:[#allocation14 + $0x7e0] ss:$16 sps:$4 sm:$0xff]   ;;  %v23899_v63 = vld [vmem:[#allocation14 + $0x7e8] ss:$16 sps:$4 sm:$0xff]  }
 0xb29   : > { %10018 = vmatprep.subr.bf16.mxu0 %v23844_v35  ;;  %10124 = vmatprep.subr.bf16.mxu1 %v23847_v0  ;;  %v23904_v35 = vld [vmem:[#allocation14 + $0x4] ss:$16 sps:$4 sm:$0xff]   ;;  %v23907_v0 = vld [vmem:[#allocation14 + $0xc] ss:$16 sps:$4 sm:$0xff]  }
 0xb2c   : > { %10019 = vmatpush1.bf16.msra.mxu0 %v23842_v24  ;;  %10125 = vmatpush1.bf16.msra.mxu1 %v23845_v39  ;;  %v23902_v24 = vld [vmem:[#allocation14] ss:$16 sps:$4 sm:$0xff]   ;;  %v23905_v39 = vld [vmem:[#allocation14 + $0x8] ss:$16 sps:$4 sm:$0xff]  }
 0xb2d   : > { %10020 = vmatprep.subr.bf16.mxu0 %v23850_v37  ;;  %10126 = vmatprep.subr.bf16.mxu1 %v23853_v5  ;;  %v23910_v37 = vld [vmem:[#allocation14 + $0x24] ss:$16 sps:$4 sm:$0xff]   ;;  %v23913_v5 = vld [vmem:[#allocation14 + $0x2c] ss:$16 sps:$4 sm:$0xff]  }
 0xb30   : > { %10021 = vmatpush1.bf16.msra.mxu0 %v23848_v54  ;;  %10127 = vmatpush1.bf16.msra.mxu1 %v23851_v62  ;;  %v23908_v54 = vld [vmem:[#allocation14 + $0x20] ss:$16 sps:$4 sm:$0xff]   ;;  %v23911_v62 = vld [vmem:[#allocation14 + $0x28] ss:$16 sps:$4 sm:$0xff]  }
 0xb31   : > { %10022 = vmatprep.subr.bf16.mxu0 %v23856_v42  ;;  %10128 = vmatprep.subr.bf16.mxu1 %v23859_v14  ;;  %v23916_v42 = vld [vmem:[#allocation14 + $0x44] ss:$16 sps:$4 sm:$0xff]   ;;  %v23919_v14 = vld [vmem:[#allocation14 + $0x4c] ss:$16 sps:$4 sm:$0xff]  }
 0xb34   : > { %10023 = vmatpush1.bf16.msra.mxu0 %v23854_v4  ;;  %10129 = vmatpush1.bf16.msra.mxu1 %v23857_v56  ;;  %v23914_v4 = vld [vmem:[#allocation14 + $0x40] ss:$16 sps:$4 sm:$0xff]   ;;  %v23917_v56 = vld [vmem:[#allocation14 + $0x48] ss:$16 sps:$4 sm:$0xff]  }
 0xb35   : > { %10024 = vmatprep.subr.bf16.mxu0 %v23862_v57  ;;  %10130 = vmatprep.subr.bf16.mxu1 %v23865_v43  ;;  %v23922_v57 = vld [vmem:[#allocation14 + $0x64] ss:$16 sps:$4 sm:$0xff]   ;;  %v23920_v43 = vld [vmem:[#allocation14 + $0x60] ss:$16 sps:$4 sm:$0xff]  }
 0xb38   : > { %10025 = vmatpush1.bf16.msra.mxu0 %v23860_v27  ;;  %10131 = vmatpush1.bf16.msra.mxu1 %v23863_v32  ;;  %v23928_v27 = vld [vmem:[#allocation14 + $0x84] ss:$16 sps:$4 sm:$0xff]   ;;  %v23931_v32 = vld [vmem:[#allocation14 + $0x8c] ss:$16 sps:$4 sm:$0xff]  }
 0xb39   : > { %10026 = vmatprep.subr.bf16.mxu0 %v23868_v7  ;;  %10132 = vmatprep.subr.bf16.mxu1 %v23871_v25  ;;  %v23926_v7 = vld [vmem:[#allocation14 + $0x80] ss:$16 sps:$4 sm:$0xff]   ;;  %v23929_v25 = vld [vmem:[#allocation14 + $0x88] ss:$16 sps:$4 sm:$0xff]  }
 0xb3c   : > { %10027 = vmatpush1.bf16.msra.mxu0 %v23866_v28  ;;  %10133 = vmatpush1.bf16.msra.mxu1 %v23869_v19  ;;  %v23934_v28 = vld [vmem:[#allocation14 + $0xa4] ss:$16 sps:$4 sm:$0xff]   ;;  %v23932_v19 = vld [vmem:[#allocation14 + $0xa0] ss:$16 sps:$4 sm:$0xff]  }
 0xb3d   : > { %10028 = vmatprep.subr.bf16.mxu0 %v23874_v13  ;;  %10134 = vmatprep.subr.bf16.mxu1 %v23877_v10  ;;  %v23935_v13 = vld [vmem:[#allocation14 + $0xa8] ss:$16 sps:$4 sm:$0xff]   ;;  %v23940_v10 = vld [vmem:[#allocation14 + $0xc4] ss:$16 sps:$4 sm:$0xff]  }
 0xb40   : > { %10029 = vmatpush1.bf16.msra.mxu0 %v23872_v47  ;;  %10135 = vmatpush1.bf16.msra.mxu1 %v23875_v21  ;;  %v23938_v47 = vld [vmem:[#allocation14 + $0xc0] ss:$16 sps:$4 sm:$0xff]   ;;  %v23941_v21 = vld [vmem:[#allocation14 + $0xc8] ss:$16 sps:$4 sm:$0xff]  }
 0xb41   : > { %10030 = vmatprep.subr.bf16.mxu0 %v23880_v52  ;;  %10136 = vmatprep.subr.bf16.mxu1 %v23883_v41  ;;  %v23946_v52 = vld [vmem:[#allocation14 + $0xe4] ss:$16 sps:$4 sm:$0xff]   ;;  %v23949_v41 = vld [vmem:[#allocation14 + $0xec] ss:$16 sps:$4 sm:$0xff]  }
 0xb44   : > { %10031 = vmatpush1.bf16.msra.mxu0 %v23878_v55  ;;  %10137 = vmatpush1.bf16.msra.mxu1 %v23881_v49  ;;  %v23944_v55 = vld [vmem:[#allocation14 + $0xe0] ss:$16 sps:$4 sm:$0xff]   ;;  %v23947_v49 = vld [vmem:[#allocation14 + $0xe8] ss:$16 sps:$4 sm:$0xff]  }
 0xb45   : > { %10032 = vmatprep.subr.bf16.mxu0 %v23886_v58  ;;  %10138 = vmatprep.subr.bf16.mxu1 %v23889_v59  ;;  %v23952_v58 = vld [vmem:[#allocation14 + $0x104] ss:$16 sps:$4 sm:$0xff]   ;;  %v23955_v59 = vld [vmem:[#allocation14 + $0x10c] ss:$16 sps:$4 sm:$0xff]  }
 0xb48   : > { %10033 = vmatpush1.bf16.msra.mxu0 %v23884_v46  ;;  %10139 = vmatpush1.bf16.msra.mxu1 %v23887_v26  ;;  %v23950_v46 = vld [vmem:[#allocation14 + $0x100] ss:$16 sps:$4 sm:$0xff]   ;;  %v23953_v26 = vld [vmem:[#allocation14 + $0x108] ss:$16 sps:$4 sm:$0xff]  }
 0xb49   : > { %10034 = vmatprep.subr.bf16.mxu0 %v23892_v29  ;;  %10140 = vmatprep.subr.bf16.mxu1 %v23895_v15  ;;  %v23958_v29 = vld [vmem:[#allocation14 + $0x124] ss:$16 sps:$4 sm:$0xff]   ;;  %v23961_v15 = vld [vmem:[#allocation14 + $0x12c] ss:$16 sps:$4 sm:$0xff]  }
 0xb4c   : > { %10035 = vmatpush1.bf16.msra.mxu0 %v23890_v38  ;;  %10141 = vmatpush1.bf16.msra.mxu1 %v23893_v1  ;;  %v23956_v38 = vld [vmem:[#allocation14 + $0x120] ss:$16 sps:$4 sm:$0xff]   ;;  %v23959_v1 = vld [vmem:[#allocation14 + $0x128] ss:$16 sps:$4 sm:$0xff]  }
 0xb4d   : > { %10036 = vmatprep.subr.bf16.mxu0 %v23898_v3  ;;  %10142 = vmatprep.subr.bf16.mxu1 %v23901_v8  ;;  %v23964_v3 = vld [vmem:[#allocation14 + $0x144] ss:$16 sps:$4 sm:$0xff]   ;;  %v23967_v8 = vld [vmem:[#allocation14 + $0x14c] ss:$16 sps:$4 sm:$0xff]  }
 0xb50   : > { %10037 = vmatpush1.bf16.msra.mxu0 %v23896_v11  ;;  %10143 = vmatpush1.bf16.msra.mxu1 %v23899_v63  ;;  %v23962_v11 = vld [vmem:[#allocation14 + $0x140] ss:$16 sps:$4 sm:$0xff]   ;;  %v23965_v63 = vld [vmem:[#allocation14 + $0x148] ss:$16 sps:$4 sm:$0xff]  }
 0xb51   : > { %10805 = vmatprep.subr.bf16.mxu0 %v23904_v35  ;;  %10911 = vmatprep.subr.bf16.mxu1 %v23907_v0  ;;  %v23970_v35 = vld [vmem:[#allocation14 + $0x164] ss:$16 sps:$4 sm:$0xff]   ;;  %v23973_v0 = vld [vmem:[#allocation14 + $0x16c] ss:$16 sps:$4 sm:$0xff]  }
 0xb53   : > { %10039 = vmatmul.mubr.bf16.vlgmr.msra.gmra.mrb[108].mxu0 %v27639_v34  ;;  %10145 = vmatmul.mubr.bf16.vlgmr.msra.gmra.mrb[108].mxu1 %v27639_v34  ;;  %v23925_v34 = vld [vmem:[#allocation14 + $0x6c] ss:$16 sps:$4 sm:$0xff]  }
 0xb54   : > { %10806 = vmatpush1.bf16.msra.mxu0 %v23902_v24  ;;  %10912 = vmatpush1.bf16.msra.mxu1 %v23905_v39  ;;  %v23968_v24 = vld [vmem:[#allocation14 + $0x160] ss:$16 sps:$4 sm:$0xff]   ;;  %v23971_v39 = vld [vmem:[#allocation14 + $0x168] ss:$16 sps:$4 sm:$0xff]  }
 0xb55   : > { %10807 = vmatprep.subr.bf16.mxu0 %v23910_v37  ;;  %10913 = vmatprep.subr.bf16.mxu1 %v23913_v5  ;;  %v23976_v37 = vld [vmem:[#allocation14 + $0x184] ss:$16 sps:$4 sm:$0xff]   ;;  %v23979_v5 = vld [vmem:[#allocation14 + $0x18c] ss:$16 sps:$4 sm:$0xff]  }
 0xb56   : > { %10048 = vmatprep.mubr.bf16.mxu0 %v27647_v18  ;;  %10154 = vmatprep.mubr.bf16.mxu1 %v27647_v18  ;;  %v23923_v18 = vld [vmem:[#allocation14 + $0x68] ss:$16 sps:$4 sm:$0xff]  }
 0xb58   : > { %10808 = vmatpush1.bf16.msra.mxu0 %v23908_v54  ;;  %10914 = vmatpush1.bf16.msra.mxu1 %v23911_v62  ;;  %v23974_v54 = vld [vmem:[#allocation14 + $0x180] ss:$16 sps:$4 sm:$0xff]   ;;  %v23977_v62 = vld [vmem:[#allocation14 + $0x188] ss:$16 sps:$4 sm:$0xff]  }
 0xb59   : > { %10809 = vmatprep.subr.bf16.mxu0 %v23916_v42  ;;  %10915 = vmatprep.subr.bf16.mxu1 %v23919_v14  ;;  %v23982_v42 = vld [vmem:[#allocation14 + $0x1a4] ss:$16 sps:$4 sm:$0xff]   ;;  %v23985_v14 = vld [vmem:[#allocation14 + $0x1ac] ss:$16 sps:$4 sm:$0xff]  }
 0xb5b   : > { %10049 = vmatmul.mubr.bf16.gmra.mrb[112].mxu0 %v27645_v9  ;;  %10155 = vmatmul.mubr.bf16.gmra.mrb[112].mxu1 %v27645_v9  ;;  %v23937_v9 = vld [vmem:[#allocation14 + $0xac] ss:$16 sps:$4 sm:$0xff]  }
 0xb5c   : > { %10810 = vmatpush1.bf16.msra.mxu0 %v23914_v4  ;;  %10837 = vmatprep.mubr.bf16.mxu0 %v27629_v12  ;;  %v23980_v4 = vld [vmem:[#allocation14 + $0x1a0] ss:$16 sps:$4 sm:$0xff]  }
 0xb5d   : > { %10916 = vmatpush1.bf16.msra.mxu1 %v23917_v56  ;;  %10943 = vmatprep.mubr.bf16.mxu1 %v27629_v12  ;;  %v23943_v12 = vld [vmem:[#allocation14 + $0xcc] ss:$16 sps:$4 sm:$0xff]   ;;  %v23983_v56 = vld [vmem:[#allocation14 + $0x1a8] ss:$16 sps:$4 sm:$0xff]  }
 0xb5e   : > { %10811 = vmatprep.subr.bf16.mxu0 %v23922_v57  ;;  %10917 = vmatprep.subr.bf16.mxu1 %v23925_v34  ;;  %v23988_v57 = vld [vmem:[#allocation14 + $0x1c4] ss:$16 sps:$4 sm:$0xff]   ;;  %v23991_v34 = vld [vmem:[#allocation14 + $0x1cc] ss:$16 sps:$4 sm:$0xff]  }
 0xb60   : > { %10812 = vmatpush1.bf16.msra.mxu0 %v23920_v43  ;;  %v23986_v43 = vld [vmem:[#allocation14 + $0x1c0] ss:$16 sps:$4 sm:$0xff]  }
 0xb61   : > { %10918 = vmatpush1.bf16.msra.mxu1 %v23923_v18  ;;  %10813 = vmatprep.subr.bf16.mxu0 %v23928_v27  ;;  %v23989_v18 = vld [vmem:[#allocation14 + $0x1c8] ss:$16 sps:$4 sm:$0xff]   ;;  %v23994_v27 = vld [vmem:[#allocation14 + $0x1e4] ss:$16 sps:$4 sm:$0xff]  }
 0xb62   : > { %10919 = vmatprep.subr.bf16.mxu1 %v23931_v32  ;;  %v23997_v32 = vld [vmem:[#allocation14 + $0x1ec] ss:$16 sps:$4 sm:$0xff]  }
 0xb64   : > { %10814 = vmatpush1.bf16.msra.mxu0 %v23926_v7  ;;  %v23992_v7 = vld [vmem:[#allocation14 + $0x1e0] ss:$16 sps:$4 sm:$0xff]  }
 0xb65   : > { %10920 = vmatpush1.bf16.msra.mxu1 %v23929_v25  ;;  %10815 = vmatprep.subr.bf16.mxu0 %v23934_v28  ;;  %v23995_v25 = vld [vmem:[#allocation14 + $0x1e8] ss:$16 sps:$4 sm:$0xff]   ;;  %v24000_v28 = vld [vmem:[#allocation14 + $0x204] ss:$16 sps:$4 sm:$0xff]  }
 0xb66   : > { %10921 = vmatprep.subr.bf16.mxu1 %v23937_v9  ;;  %v24003_v9 = vld [vmem:[#allocation14 + $0x20c] ss:$16 sps:$4 sm:$0xff]  }
 0xb68   : > { %10816 = vmatpush1.bf16.msra.mxu0 %v23932_v19  ;;  %v23998_v19 = vld [vmem:[#allocation14 + $0x200] ss:$16 sps:$4 sm:$0xff]  }
 0xb69   : > { %10922 = vmatpush1.bf16.msra.mxu1 %v23935_v13  ;;  %10817 = vmatprep.subr.bf16.mxu0 %v23940_v10  ;;  %v24001_v13 = vld [vmem:[#allocation14 + $0x208] ss:$16 sps:$4 sm:$0xff]   ;;  %v24006_v10 = vld [vmem:[#allocation14 + $0x224] ss:$16 sps:$4 sm:$0xff]  }
 0xb6a   : > { %10923 = vmatprep.subr.bf16.mxu1 %v23943_v12  ;;  %v24009_v12 = vld [vmem:[#allocation14 + $0x22c] ss:$16 sps:$4 sm:$0xff]  }
 0xb6c   : > { %10818 = vmatpush1.bf16.msra.mxu0 %v23938_v47  ;;  %v24004_v47 = vld [vmem:[#allocation14 + $0x220] ss:$16 sps:$4 sm:$0xff]  }
 0xb6d   : > { %10924 = vmatpush1.bf16.msra.mxu1 %v23941_v21  ;;  %10819 = vmatprep.subr.bf16.mxu0 %v23946_v52  ;;  %v24007_v21 = vld [vmem:[#allocation14 + $0x228] ss:$16 sps:$4 sm:$0xff]   ;;  %v24012_v52 = vld [vmem:[#allocation14 + $0x244] ss:$16 sps:$4 sm:$0xff]  }
 0xb6e   : > { %10925 = vmatprep.subr.bf16.mxu1 %v23949_v41  ;;  %v24015_v41 = vld [vmem:[#allocation14 + $0x24c] ss:$16 sps:$4 sm:$0xff]  }
 0xb70   : > { %10820 = vmatpush1.bf16.msra.mxu0 %v23944_v55  ;;  %v24010_v55 = vld [vmem:[#allocation14 + $0x240] ss:$16 sps:$4 sm:$0xff]  }
 0xb71   : > { %10926 = vmatpush1.bf16.msra.mxu1 %v23947_v49  ;;  %10821 = vmatprep.subr.bf16.mxu0 %v23952_v58  ;;  %v24013_v49 = vld [vmem:[#allocation14 + $0x248] ss:$16 sps:$4 sm:$0xff]   ;;  %v24018_v58 = vld [vmem:[#allocation14 + $0x264] ss:$16 sps:$4 sm:$0xff]  }
 0xb72   : > { %10927 = vmatprep.subr.bf16.mxu1 %v23955_v59  ;;  %v24019_v59 = vld [vmem:[#allocation14 + $0x268] ss:$16 sps:$4 sm:$0xff]  }
 0xb74   : > { %10822 = vmatpush1.bf16.msra.mxu0 %v23950_v46  ;;  %v24024_v46 = vld [vmem:[#allocation14 + $0x284] ss:$16 sps:$4 sm:$0xff]  }
 0xb75   : > { %10928 = vmatpush1.bf16.msra.mxu1 %v23953_v26  ;;  %10823 = vmatprep.subr.bf16.mxu0 %v23958_v29  ;;  %v24027_v26 = vld [vmem:[#allocation14 + $0x28c] ss:$16 sps:$4 sm:$0xff]   ;;  %v24022_v29 = vld [vmem:[#allocation14 + $0x280] ss:$16 sps:$4 sm:$0xff]  }
 0xb76   : > { %10929 = vmatprep.subr.bf16.mxu1 %v23961_v15  ;;  %v24025_v15 = vld [vmem:[#allocation14 + $0x288] ss:$16 sps:$4 sm:$0xff]  }
 0xb78   : > { %10824 = vmatpush1.bf16.msra.mxu0 %v23956_v38  ;;  %v24030_v38 = vld [vmem:[#allocation14 + $0x2a4] ss:$16 sps:$4 sm:$0xff]  }
 0xb79   : > { %10930 = vmatpush1.bf16.msra.mxu1 %v23959_v1  ;;  %10825 = vmatprep.subr.bf16.mxu0 %v23964_v3  ;;  %v24028_v1 = vld [vmem:[#allocation14 + $0x2a0] ss:$16 sps:$4 sm:$0xff]   ;;  %v24036_v3 = vld [vmem:[#allocation14 + $0x2c4] ss:$16 sps:$4 sm:$0xff]  }
 0xb7a   : > { %10931 = vmatprep.subr.bf16.mxu1 %v23967_v8  ;;  %v24039_v8 = vld [vmem:[#allocation14 + $0x2cc] ss:$16 sps:$4 sm:$0xff]  }
 0xb7c   : > { %10826 = vmatpush1.bf16.msra.mxu0 %v23962_v11  ;;  %v24034_v11 = vld [vmem:[#allocation14 + $0x2c0] ss:$16 sps:$4 sm:$0xff]  }
 0xb7d   : > { %10932 = vmatpush1.bf16.msra.mxu1 %v23965_v63  ;;  %10827 = vmatprep.subr.bf16.mxu0 %v23970_v35  ;;  %v24037_v63 = vld [vmem:[#allocation14 + $0x2c8] ss:$16 sps:$4 sm:$0xff]   ;;  %v24042_v35 = vld [vmem:[#allocation14 + $0x2e4] ss:$16 sps:$4 sm:$0xff]  }
 0xb7e   : > { %10933 = vmatprep.subr.bf16.mxu1 %v23973_v0  ;;  %v24045_v0 = vld [vmem:[#allocation14 + $0x2ec] ss:$16 sps:$4 sm:$0xff]  }
 0xb80   : > { %10828 = vmatpush1.bf16.msra.mxu0 %v23968_v24  ;;  %v24040_v24 = vld [vmem:[#allocation14 + $0x2e0] ss:$16 sps:$4 sm:$0xff]  }
 0xb81   : > { %10934 = vmatpush1.bf16.msra.mxu1 %v23971_v39  ;;  %10829 = vmatprep.subr.bf16.mxu0 %v23976_v37  ;;  %v24043_v39 = vld [vmem:[#allocation14 + $0x2e8] ss:$16 sps:$4 sm:$0xff]   ;;  %v24048_v37 = vld [vmem:[#allocation14 + $0x304] ss:$16 sps:$4 sm:$0xff]  }
 0xb82   : > { %10935 = vmatprep.subr.bf16.mxu1 %v23979_v5  ;;  %v24051_v5 = vld [vmem:[#allocation14 + $0x30c] ss:$16 sps:$4 sm:$0xff]  }
 0xb84   : > { %10830 = vmatpush1.bf16.msra.mxu0 %v23974_v54  ;;  %v24046_v54 = vld [vmem:[#allocation14 + $0x300] ss:$16 sps:$4 sm:$0xff]  }
 0xb85   : > { %10936 = vmatpush1.bf16.msra.mxu1 %v23977_v62  ;;  %10831 = vmatprep.subr.bf16.mxu0 %v23982_v42  ;;  %v24049_v62 = vld [vmem:[#allocation14 + $0x308] ss:$16 sps:$4 sm:$0xff]   ;;  %v24054_v42 = vld [vmem:[#allocation14 + $0x324] ss:$16 sps:$4 sm:$0xff]  }
 0xb86   : > { %10937 = vmatprep.subr.bf16.mxu1 %v23985_v14  ;;  %v24057_v14 = vld [vmem:[#allocation14 + $0x32c] ss:$16 sps:$4 sm:$0xff]  }
 0xb88   : > { %10832 = vmatpush1.bf16.msra.mxu0 %v23980_v4  ;;  %v24052_v4 = vld [vmem:[#allocation14 + $0x320] ss:$16 sps:$4 sm:$0xff]  }
 0xb89   : > { %10938 = vmatpush1.bf16.msra.mxu1 %v23983_v56  ;;  %10833 = vmatprep.subr.bf16.mxu0 %v23988_v57  ;;  %v24055_v56 = vld [vmem:[#allocation14 + $0x328] ss:$16 sps:$4 sm:$0xff]   ;;  %v24060_v57 = vld [vmem:[#allocation14 + $0x344] ss:$16 sps:$4 sm:$0xff]  }
 0xb8a   : > { %10939 = vmatprep.subr.bf16.mxu1 %v23991_v34  ;;  %v24063_v34 = vld [vmem:[#allocation14 + $0x34c] ss:$16 sps:$4 sm:$0xff]  }
 0xb8c   : > { %10834 = vmatpush1.bf16.msra.mxu0 %v23986_v43  ;;  %v24058_v43 = vld [vmem:[#allocation14 + $0x340] ss:$16 sps:$4 sm:$0xff]  }
 0xb8d   : > { %10940 = vmatpush1.bf16.msra.mxu1 %v23989_v18  ;;  %10835 = vmatprep.subr.bf16.mxu0 %v23994_v27  ;;  %v24061_v18 = vld [vmem:[#allocation14 + $0x348] ss:$16 sps:$4 sm:$0xff]   ;;  %v24066_v27 = vld [vmem:[#allocation14 + $0x364] ss:$16 sps:$4 sm:$0xff]  }
 0xb8e   : > { %10941 = vmatprep.subr.bf16.mxu1 %v23997_v32  ;;  %v24069_v32 = vld [vmem:[#allocation14 + $0x36c] ss:$16 sps:$4 sm:$0xff]  }
 0xb90   : > { %10836 = vmatpush1.bf16.msra.mxu0 %v23992_v7  ;;  %v24064_v7 = vld [vmem:[#allocation14 + $0x360] ss:$16 sps:$4 sm:$0xff]  }
 0xb91   : > { %10942 = vmatpush1.bf16.msra.mxu1 %v23995_v25  ;;  %10858 = vmatprep.subr.bf16.mxu0 %v24000_v28  ;;  %v24067_v25 = vld [vmem:[#allocation14 + $0x368] ss:$16 sps:$4 sm:$0xff]   ;;  %v24072_v28 = vld [vmem:[#allocation14 + $0x384] ss:$16 sps:$4 sm:$0xff]  }
 0xb92   : > { %10964 = vmatprep.subr.bf16.mxu1 %v24003_v9  ;;  %v24075_v9 = vld [vmem:[#allocation14 + $0x38c] ss:$16 sps:$4 sm:$0xff]  }
 0xb93   : > { %10838 = vmatmul.mubr.bf16.vlgmr.msra.gmra.mrb[108].mxu0 %v27627_v48 }
 0xb94   : > { %10944 = vmatmul.mubr.bf16.vlgmr.msra.gmra.mrb[108].mxu1 %v27627_v48  ;;  %10847 = vmatprep.mubr.bf16.mxu0 %v27637_v60  ;;  %v24021_v48 = vld [vmem:[#allocation14 + $0x26c] ss:$16 sps:$4 sm:$0xff]  }
 0xb95   : > { %10859 = vmatpush1.bf16.msra.mxu0 %v23998_v19  ;;  %10953 = vmatprep.mubr.bf16.mxu1 %v27637_v60  ;;  %v24016_v60 = vld [vmem:[#allocation14 + $0x260] ss:$16 sps:$4 sm:$0xff]  }
 0xb96   : > { %10965 = vmatpush1.bf16.msra.mxu1 %v24001_v13  ;;  %10860 = vmatprep.subr.bf16.mxu0 %v24006_v10  ;;  %v24070_v19 = vld [vmem:[#allocation14 + $0x380] ss:$16 sps:$4 sm:$0xff]   ;;  %v24073_v13 = vld [vmem:[#allocation14 + $0x388] ss:$16 sps:$4 sm:$0xff]   ;;  %v24078_v10 = vld [vmem:[#allocation14 + $0x3a4] ss:$16 sps:$4 sm:$0xff]  }
 0xb97   : > { %10966 = vmatprep.subr.bf16.mxu1 %v24009_v12  ;;  %v24081_v12 = vld [vmem:[#allocation14 + $0x3ac] ss:$16 sps:$4 sm:$0xff]  }
 0xb99   : > { %10861 = vmatpush1.bf16.msra.mxu0 %v24004_v47  ;;  %v24076_v47 = vld [vmem:[#allocation14 + $0x3a0] ss:$16 sps:$4 sm:$0xff]  }
 0xb9a   : > { %10967 = vmatpush1.bf16.msra.mxu1 %v24007_v21  ;;  %10862 = vmatprep.subr.bf16.mxu0 %v24012_v52  ;;  %v24079_v21 = vld [vmem:[#allocation14 + $0x3a8] ss:$16 sps:$4 sm:$0xff]   ;;  %v24084_v52 = vld [vmem:[#allocation14 + $0x3c4] ss:$16 sps:$4 sm:$0xff]  }
 0xb9b   : > { %10848 = vmatmul.mubr.bf16.gmra.mrb[112].mxu0 %v27635_v45  ;;  %10968 = vmatprep.subr.bf16.mxu1 %v24015_v41  ;;  %v24087_v41 = vld [vmem:[#allocation14 + $0x3cc] ss:$16 sps:$4 sm:$0xff]  }
 0xb9c   : > { %10954 = vmatmul.mubr.bf16.gmra.mrb[112].mxu1 %v27635_v45  ;;  %10890 = vmatprep.mubr.bf16.mxu0 %v27643_v51  ;;  %v24033_v45 = vld [vmem:[#allocation14 + $0x2ac] ss:$16 sps:$4 sm:$0xff]  }
 0xb9d   : > { %10863 = vmatpush1.bf16.msra.mxu0 %v24010_v55  ;;  %10996 = vmatprep.mubr.bf16.mxu1 %v27643_v51  ;;  %v24031_v51 = vld [vmem:[#allocation14 + $0x2a8] ss:$16 sps:$4 sm:$0xff]   ;;  %v24082_v55 = vld [vmem:[#allocation14 + $0x3c0] ss:$16 sps:$4 sm:$0xff]  }
 0xb9e   : > { %10969 = vmatpush1.bf16.msra.mxu1 %v24013_v49  ;;  %10864 = vmatprep.subr.bf16.mxu0 %v24018_v58  ;;  %v24085_v49 = vld [vmem:[#allocation14 + $0x3c8] ss:$16 sps:$4 sm:$0xff]   ;;  %v24090_v58 = vld [vmem:[#allocation14 + $0x3e4] ss:$16 sps:$4 sm:$0xff]  }
 0xb9f   : > { %10970 = vmatprep.subr.bf16.mxu1 %v24021_v48  ;;  %v24093_v48 = vld [vmem:[#allocation14 + $0x3ec] ss:$16 sps:$4 sm:$0xff]  }
 0xba1   : > { %10865 = vmatpush1.bf16.msra.mxu0 %v24016_v60  ;;  %v24088_v60 = vld [vmem:[#allocation14 + $0x3e0] ss:$16 sps:$4 sm:$0xff]  }
 0xba2   : > { %10971 = vmatpush1.bf16.msra.mxu1 %v24019_v59  ;;  %10866 = vmatprep.subr.bf16.mxu0 %v24024_v46  ;;  %v24091_v59 = vld [vmem:[#allocation14 + $0x3e8] ss:$16 sps:$4 sm:$0xff]   ;;  %v24096_v46 = vld [vmem:[#allocation14 + $0x804] ss:$16 sps:$4 sm:$0xff]  }
 0xba3   : > { %10972 = vmatprep.subr.bf16.mxu1 %v24027_v26  ;;  %v11020_v26 = vld [vmem:[#allocation13 + $0x50] sm:$0xff] }
 0xba5   : > { %10867 = vmatpush1.bf16.msra.mxu0 %v24022_v29  ;;  %v24106_v29 = vld [vmem:[#allocation14 + $0x840] ss:$16 sps:$4 sm:$0xff]  }
 0xba6   : > { %10973 = vmatpush1.bf16.msra.mxu1 %v24025_v15  ;;  %10868 = vmatprep.subr.bf16.mxu0 %v24030_v38  ;;  %v24109_v15 = vld [vmem:[#allocation14 + $0x848] ss:$16 sps:$4 sm:$0xff]   ;;  %v24114_v38 = vld [vmem:[#allocation14 + $0x864] ss:$16 sps:$4 sm:$0xff]  }
 0xba7   : > { %10974 = vmatprep.subr.bf16.mxu1 %v24033_v45  ;;  %v24117_v45 = vld [vmem:[#allocation14 + $0x86c] ss:$16 sps:$4 sm:$0xff]  }
 0xba9   : > { %10869 = vmatpush1.bf16.msra.mxu0 %v24028_v1  ;;  %v11021_v1 = vld [vmem:[#allocation13 + $0x58] sm:$0xff] }
 0xbaa   : > { %10975 = vmatpush1.bf16.msra.mxu1 %v24031_v51  ;;  %10870 = vmatprep.subr.bf16.mxu0 %v24036_v3  ;;  %v24112_v51 = vld [vmem:[#allocation14 + $0x860] ss:$16 sps:$4 sm:$0xff]   ;;  %v24115_v3 = vld [vmem:[#allocation14 + $0x868] ss:$16 sps:$4 sm:$0xff]  }
 0xbab   : > { %10976 = vmatprep.subr.bf16.mxu1 %v24039_v8  ;;  %v24120_v8 = vld [vmem:[#allocation14 + $0x884] ss:$16 sps:$4 sm:$0xff]  }
 0xbad   : > { %10871 = vmatpush1.bf16.msra.mxu0 %v24034_v11  ;;  %v24123_v11 = vld [vmem:[#allocation14 + $0x88c] ss:$16 sps:$4 sm:$0xff]  }
 0xbae   : > { %10977 = vmatpush1.bf16.msra.mxu1 %v24037_v63  ;;  %10872 = vmatprep.subr.bf16.mxu0 %v24042_v35  ;;  %v24118_v63 = vld [vmem:[#allocation14 + $0x880] ss:$16 sps:$4 sm:$0xff]   ;;  %v24121_v35 = vld [vmem:[#allocation14 + $0x888] ss:$16 sps:$4 sm:$0xff]  }
 0xbaf   : > { %10978 = vmatprep.subr.bf16.mxu1 %v24045_v0  ;;  %v24126_v0 = vld [vmem:[#allocation14 + $0x8a4] ss:$16 sps:$4 sm:$0xff]  }
 0xbb1   : > { %10873 = vmatpush1.bf16.msra.mxu0 %v24040_v24  ;;  %v24129_v24 = vld [vmem:[#allocation14 + $0x8ac] ss:$16 sps:$4 sm:$0xff]  }
 0xbb2   : > { %10979 = vmatpush1.bf16.msra.mxu1 %v24043_v39  ;;  %10874 = vmatprep.subr.bf16.mxu0 %v24048_v37  ;;  %v24124_v39 = vld [vmem:[#allocation14 + $0x8a0] ss:$16 sps:$4 sm:$0xff]   ;;  %v24127_v37 = vld [vmem:[#allocation14 + $0x8a8] ss:$16 sps:$4 sm:$0xff]  }
 0xbb3   : > { %10980 = vmatprep.subr.bf16.mxu1 %v24051_v5  ;;  %v24132_v5 = vld [vmem:[#allocation14 + $0x8c4] ss:$16 sps:$4 sm:$0xff]  }
 0xbb5   : > { %10875 = vmatpush1.bf16.msra.mxu0 %v24046_v54  ;;  %v24135_v54 = vld [vmem:[#allocation14 + $0x8cc] ss:$16 sps:$4 sm:$0xff]  }
 0xbb6   : > { %10981 = vmatpush1.bf16.msra.mxu1 %v24049_v62  ;;  %10876 = vmatprep.subr.bf16.mxu0 %v24054_v42  ;;  %v24130_v62 = vld [vmem:[#allocation14 + $0x8c0] ss:$16 sps:$4 sm:$0xff]   ;;  %v24133_v42 = vld [vmem:[#allocation14 + $0x8c8] ss:$16 sps:$4 sm:$0xff]  }
 0xbb7   : > { %10982 = vmatprep.subr.bf16.mxu1 %v24057_v14  ;;  %v24138_v14 = vld [vmem:[#allocation14 + $0x8e4] ss:$16 sps:$4 sm:$0xff]  }
 0xbb9   : > { %10877 = vmatpush1.bf16.msra.mxu0 %v24052_v4  ;;  %v24141_v4 = vld [vmem:[#allocation14 + $0x8ec] ss:$16 sps:$4 sm:$0xff]  }
 0xbba   : > { %10983 = vmatpush1.bf16.msra.mxu1 %v24055_v56  ;;  %10878 = vmatprep.subr.bf16.mxu0 %v24060_v57  ;;  %v24136_v56 = vld [vmem:[#allocation14 + $0x8e0] ss:$16 sps:$4 sm:$0xff]   ;;  %v24139_v57 = vld [vmem:[#allocation14 + $0x8e8] ss:$16 sps:$4 sm:$0xff]  }
 0xbbb   : > { %10984 = vmatprep.subr.bf16.mxu1 %v24063_v34  ;;  %v24144_v34 = vld [vmem:[#allocation14 + $0x904] ss:$16 sps:$4 sm:$0xff]  }
 0xbbd   : > { %10879 = vmatpush1.bf16.msra.mxu0 %v24058_v43  ;;  %v24147_v43 = vld [vmem:[#allocation14 + $0x90c] ss:$16 sps:$4 sm:$0xff]  }
 0xbbe   : > { %10985 = vmatpush1.bf16.msra.mxu1 %v24061_v18  ;;  %10880 = vmatprep.subr.bf16.mxu0 %v24066_v27  ;;  %v24142_v18 = vld [vmem:[#allocation14 + $0x900] ss:$16 sps:$4 sm:$0xff]   ;;  %v24145_v27 = vld [vmem:[#allocation14 + $0x908] ss:$16 sps:$4 sm:$0xff]  }
 0xbbf   : > { %10986 = vmatprep.subr.bf16.mxu1 %v24069_v32  ;;  %v24150_v32 = vld [vmem:[#allocation14 + $0x924] ss:$16 sps:$4 sm:$0xff]  }
 0xbc1   : > { %10881 = vmatpush1.bf16.msra.mxu0 %v24064_v7  ;;  %v24153_v7 = vld [vmem:[#allocation14 + $0x92c] ss:$16 sps:$4 sm:$0xff]  }
 0xbc2   : > { %10987 = vmatpush1.bf16.msra.mxu1 %v24067_v25  ;;  %10882 = vmatprep.subr.bf16.mxu0 %v24072_v28  ;;  %v24148_v25 = vld [vmem:[#allocation14 + $0x920] ss:$16 sps:$4 sm:$0xff]   ;;  %v24151_v28 = vld [vmem:[#allocation14 + $0x928] ss:$16 sps:$4 sm:$0xff]  }
 0xbc3   : > { %10988 = vmatprep.subr.bf16.mxu1 %v24075_v9  ;;  %v24156_v9 = vld [vmem:[#allocation14 + $0x944] ss:$16 sps:$4 sm:$0xff]  }
 0xbc5   : > { %10883 = vmatpush1.bf16.msra.mxu0 %v24070_v19  ;;  %v24159_v19 = vld [vmem:[#allocation14 + $0x94c] ss:$16 sps:$4 sm:$0xff]  }
 0xbc6   : > { %10989 = vmatpush1.bf16.msra.mxu1 %v24073_v13  ;;  %10884 = vmatprep.subr.bf16.mxu0 %v24078_v10  ;;  %v24154_v13 = vld [vmem:[#allocation14 + $0x940] ss:$16 sps:$4 sm:$0xff]   ;;  %v24157_v10 = vld [vmem:[#allocation14 + $0x948] ss:$16 sps:$4 sm:$0xff]  }
 0xbc7   : > { %10990 = vmatprep.subr.bf16.mxu1 %v24081_v12  ;;  %v24162_v12 = vld [vmem:[#allocation14 + $0x964] ss:$16 sps:$4 sm:$0xff]  }
 0xbc9   : > { %10885 = vmatpush1.bf16.msra.mxu0 %v24076_v47  ;;  %v24165_v47 = vld [vmem:[#allocation14 + $0x96c] ss:$16 sps:$4 sm:$0xff]  }
 0xbca   : > { %10991 = vmatpush1.bf16.msra.mxu1 %v24079_v21  ;;  %10886 = vmatprep.subr.bf16.mxu0 %v24084_v52  ;;  %v24160_v21 = vld [vmem:[#allocation14 + $0x960] ss:$16 sps:$4 sm:$0xff]   ;;  %v24163_v52 = vld [vmem:[#allocation14 + $0x968] ss:$16 sps:$4 sm:$0xff]  }
 0xbcb   : > { %10992 = vmatprep.subr.bf16.mxu1 %v24087_v41  ;;  %v24168_v41 = vld [vmem:[#allocation14 + $0x984] ss:$16 sps:$4 sm:$0xff]  }
 0xbcd   : > { %10887 = vmatpush1.bf16.msra.mxu0 %v24082_v55  ;;  %v24171_v55 = vld [vmem:[#allocation14 + $0x98c] ss:$16 sps:$4 sm:$0xff]  }
 0xbce   : > { %10993 = vmatpush1.bf16.msra.mxu1 %v24085_v49  ;;  %10888 = vmatprep.subr.bf16.mxu0 %v24090_v58  ;;  %v24166_v49 = vld [vmem:[#allocation14 + $0x980] ss:$16 sps:$4 sm:$0xff]   ;;  %v24169_v58 = vld [vmem:[#allocation14 + $0x988] ss:$16 sps:$4 sm:$0xff]  }
 0xbcf   : > { %10994 = vmatprep.subr.bf16.mxu1 %v24093_v48  ;;  %v24174_v48 = vld [vmem:[#allocation14 + $0x9a4] ss:$16 sps:$4 sm:$0xff]  }
 0xbd1   : > { %10889 = vmatpush1.bf16.msra.mxu0 %v24088_v60  ;;  %v24177_v60 = vld [vmem:[#allocation14 + $0x9ac] ss:$16 sps:$4 sm:$0xff]  }
 0xbd2   : > { %10995 = vmatpush1.bf16.msra.mxu1 %v24091_v59  ;;  %22173 = vmatprep.subr.bf16.mxu0 %v27557_v16  ;;  %v24099_v16 = vld [vmem:[#allocation14 + $0x80c] ss:$16 sps:$4 sm:$0xff]   ;;  %v24172_v59 = vld [vmem:[#allocation14 + $0x9a0] ss:$16 sps:$4 sm:$0xff]  }
 0xbd3   : > { %22181 = vmatprep.subr.bf16.mxu1 %v27559_v17  ;;  %v24097_v17 = vld [vmem:[#allocation14 + $0x808] ss:$16 sps:$4 sm:$0xff]  }
 0xbd4   : > { %10891 = vmatmul.mubr.bf16.vlgmr.msra.gmra.mrb[108].mxu0 %v27641_v50 }
 0xbd5   : > { %10997 = vmatmul.mubr.bf16.vlgmr.msra.gmra.mrb[108].mxu1 %v27641_v50  ;;  %10900 = vmatprep.mubr.bf16.mxu0 %v27633_v33  ;;  %v24111_v50 = vld [vmem:[#allocation14 + $0x84c] ss:$16 sps:$4 sm:$0xff]  }
 0xbd6   : > { %11006 = vmatprep.mubr.bf16.mxu1 %v27633_v33  ;;  %22175 = vmatpush1.bf16.msra.mxu0 %v27552_v61  ;;  %v11018_v61 = vld [vmem:[#allocation13 + $0x40] sm:$0xff] }
 0xbd7   : > { %22183 = vmatpush1.bf16.msra.mxu1 %v27555_v31  ;;  %22177 = vmatprep.subr.bf16.mxu0 %v27577_v36  ;;  %v24094_v31 = vld [vmem:[#allocation14 + $0x800] ss:$16 sps:$4 sm:$0xff]   ;;  %v24102_v36 = vld [vmem:[#allocation14 + $0x824] ss:$16 sps:$4 sm:$0xff]  }
 0xbd8   : > { %22185 = vmatprep.subr.bf16.mxu1 %v27579_v30  ;;  %v24105_v30 = vld [vmem:[#allocation14 + $0x82c] ss:$16 sps:$4 sm:$0xff]   ;;  %v24108_v33 = vld [vmem:[#allocation14 + $0x844] ss:$16 sps:$4 sm:$0xff]  }
 0xbda   : > { %22179 = vmatpush1.bf16.msra.mxu0 %v27572_v40  ;;  %v11019_v40 = vld [vmem:[#allocation13 + $0x48] sm:$0xff] }
 0xbdb   : > { %22187 = vmatpush1.bf16.msra.mxu1 %v27575_v6  ;;  %11989 = vmatprep.subr.bf16.mxu0 %v24096_v46  ;;  %v24100_v6 = vld [vmem:[#allocation14 + $0x820] ss:$16 sps:$4 sm:$0xff]   ;;  %v24175_v46 = vld [vmem:[#allocation14 + $0x9a8] ss:$16 sps:$4 sm:$0xff]  }
 0xbdc   : > { %10901 = vmatmul.mubr.bf16.gmra.mrb[112].mxu0 %v27631_v2  ;;  %12095 = vmatprep.subr.bf16.mxu1 %v24099_v16  ;;  %v24178_v16 = vld [vmem:[#allocation14 + $0x9c0] ss:$16 sps:$4 sm:$0xff]  }
 0xbdd   : > { %11007 = vmatmul.mubr.bf16.gmra.mrb[112].mxu1 %v27631_v2  ;;  %11098 = vmatprep.mubr.f32.mxu0 %v26127_v20  ;;  %v24103_v2 = vld [vmem:[#allocation14 + $0x828] ss:$16 sps:$4 sm:$0xff]  }
 0xbde   : > { %11187 = vmatprep.mubr.f32.mxu1 %v26127_v20 }
 0xbe4   : > { %20612 = vmatmul.mubr.msk.f32.vlgmr.msra.gmra.mrb[116].mxu0 %vm8654_vm1, %v11018_v61 }
 0xbe5   : > { %11104 = vmatprep.mubr.f32.mxu0 %v26127_v20  ;;  %20616 = vmatmul.mubr.msk.f32.vlgmr.msra.gmra.mrb[116].mxu1 %vm8654_vm1, %v11018_v61  ;;  %v24180_v61 = vld [vmem:[#allocation14 + $0x9c4] ss:$16 sps:$4 sm:$0xff]  }
 0xbe6   : > { %11193 = vmatprep.mubr.f32.mxu1 %v26127_v20  ;;  %11990 = vmatpush1.bf16.msra.mxu0 %v24094_v31  ;;  %v24181_v31 = vld [vmem:[#allocation14 + $0x9c8] ss:$16 sps:$4 sm:$0xff]  }
 0xbe7   : > { %12096 = vmatpush1.bf16.msra.mxu1 %v24097_v17  ;;  %11991 = vmatprep.subr.bf16.mxu0 %v24102_v36  ;;  %v24183_v17 = vld [vmem:[#allocation14 + $0x9cc] ss:$16 sps:$4 sm:$0xff]   ;;  %v24186_v36 = vld [vmem:[#allocation14 + $0x9e4] ss:$16 sps:$4 sm:$0xff]  }
 0xbe8   : > { %20613 = vmatmul.mubr.msk.f32.gmra.mrb[118].mxu0 %vm8654_vm1, %v11019_v40  ;;  %12097 = vmatprep.subr.bf16.mxu1 %v24105_v30  ;;  %v24189_v30 = vld [vmem:[#allocation14 + $0x9ec] ss:$16 sps:$4 sm:$0xff]  }
 0xbe9   : > { %11110 = vmatprep.mubr.f32.mxu0 %v26127_v20  ;;  %20617 = vmatmul.mubr.msk.f32.gmra.mrb[118].mxu1 %vm8654_vm1, %v11019_v40  ;;  %v24184_v40 = vld [vmem:[#allocation14 + $0x9e0] ss:$16 sps:$4 sm:$0xff]  }
 0xbea   : > { %11199 = vmatprep.mubr.f32.mxu1 %v26127_v20  ;;  %11992 = vmatpush1.bf16.msra.mxu0 %v24100_v6  ;;  %v24187_v6 = vld [vmem:[#allocation14 + $0x9e8] ss:$16 sps:$4 sm:$0xff]  }
 0xbeb   : > { %12098 = vmatpush1.bf16.msra.mxu1 %v24103_v2  ;;  %11993 = vmatprep.subr.bf16.mxu0 %v24108_v33  ;;  %v24192_v2 = vld [vmem:[#allocation14 + $0xa04] ss:$16 sps:$4 sm:$0xff]   ;;  %v24195_v33 = vld [vmem:[#allocation14 + $0xa0c] ss:$16 sps:$4 sm:$0xff]  }
 0xbec   : > { %20614 = vmatmul.mubr.msk.f32.gmra.mrb[120].mxu0 %vm8654_vm1, %v11020_v26  ;;  %12099 = vmatprep.subr.bf16.mxu1 %v24111_v50 }
 0xbed   : > { %11116 = vmatprep.mubr.f32.mxu0 %v26127_v20  ;;  %20618 = vmatmul.mubr.msk.f32.gmra.mrb[120].mxu1 %vm8654_vm1, %v11020_v26 }
 0xbee   : > { %11205 = vmatprep.mubr.f32.mxu1 %v26127_v20  ;;  %11994 = vmatpush1.bf16.msra.mxu0 %v24106_v29 }
 0xbef   : > { %12100 = vmatpush1.bf16.msra.mxu1 %v24109_v15  ;;  %11995 = vmatprep.subr.bf16.mxu0 %v24114_v38 }
 0xbf0   : > { %20615 = vmatmul.mubr.msk.f32.gmra.mrb[122].mxu0 %vm8654_vm1, %v11021_v1  ;;  %12101 = vmatprep.subr.bf16.mxu1 %v24117_v45 }
 0xbf1   : > { %20619 = vmatmul.mubr.msk.f32.gmra.mrb[122].mxu1 %vm8654_vm1, %v11021_v1 }
 0xbf2   : > { %11996 = vmatpush1.bf16.msra.mxu0 %v24112_v51 }
 0xbf3   : > { %12102 = vmatpush1.bf16.msra.mxu1 %v24115_v3  ;;  %11997 = vmatprep.subr.bf16.mxu0 %v24120_v8  ;;  %v24190_v8 = vld [vmem:[#allocation14 + $0xa00] ss:$16 sps:$4 sm:$0xff]  }
 0xbf4   : > { %12103 = vmatprep.subr.bf16.mxu1 %v24123_v11  ;;  %v24193_v11 = vld [vmem:[#allocation14 + $0xa08] ss:$16 sps:$4 sm:$0xff]  }
 0xbf6   : > { %11998 = vmatpush1.bf16.msra.mxu0 %v24118_v63 }
 0xbf7   : > { %12104 = vmatpush1.bf16.msra.mxu1 %v24121_v35  ;;  %11999 = vmatprep.subr.bf16.mxu0 %v24126_v0  ;;  %v24198_v0 = vld [vmem:[#allocation14 + $0xa24] ss:$16 sps:$4 sm:$0xff]  }
 0xbf8   : > { %12105 = vmatprep.subr.bf16.mxu1 %v24129_v24  ;;  %v24201_v24 = vld [vmem:[#allocation14 + $0xa2c] ss:$16 sps:$4 sm:$0xff]  }
 0xbfa   : > { %12000 = vmatpush1.bf16.msra.mxu0 %v24124_v39 }
 0xbfb   : > { %12106 = vmatpush1.bf16.msra.mxu1 %v24127_v37  ;;  %12001 = vmatprep.subr.bf16.mxu0 %v24132_v5 }
 0xbfc   : > { %12107 = vmatprep.subr.bf16.mxu1 %v24135_v54 }
 0xbfe   : > { %12002 = vmatpush1.bf16.msra.mxu0 %v24130_v62  ;;  %v24196_v62 = vld [vmem:[#allocation14 + $0xa20] ss:$16 sps:$4 sm:$0xff]  }
 0xbff   : > { %12108 = vmatpush1.bf16.msra.mxu1 %v24133_v42  ;;  %12003 = vmatprep.subr.bf16.mxu0 %v24138_v14  ;;  %v24199_v42 = vld [vmem:[#allocation14 + $0xa28] ss:$16 sps:$4 sm:$0xff]  }
 0xc00   : > { %12109 = vmatprep.subr.bf16.mxu1 %v24141_v4  ;;  %v24204_v4 = vld [vmem:[#allocation14 + $0xa44] ss:$16 sps:$4 sm:$0xff]  }
 0xc02   : > { %12004 = vmatpush1.bf16.msra.mxu0 %v24136_v56  ;;  %v24207_v56 = vld [vmem:[#allocation14 + $0xa4c] ss:$16 sps:$4 sm:$0xff]  }
 0xc03   : > { %12110 = vmatpush1.bf16.msra.mxu1 %v24139_v57  ;;  %12005 = vmatprep.subr.bf16.mxu0 %v24144_v34 }
 0xc04   : > { %12111 = vmatprep.subr.bf16.mxu1 %v24147_v43 }
 0xc06   : > { %12006 = vmatpush1.bf16.msra.mxu0 %v24142_v18 }
 0xc07   : > { %12112 = vmatpush1.bf16.msra.mxu1 %v24145_v27  ;;  %12007 = vmatprep.subr.bf16.mxu0 %v24150_v32  ;;  %v24202_v27 = vld [vmem:[#allocation14 + $0xa40] ss:$16 sps:$4 sm:$0xff]   ;;  %v24205_v32 = vld [vmem:[#allocation14 + $0xa48] ss:$16 sps:$4 sm:$0xff]  }
 0xc08   : > { %12113 = vmatprep.subr.bf16.mxu1 %v24153_v7 }
 0xc0a   : > { %12008 = vmatpush1.bf16.msra.mxu0 %v24148_v25 }
 0xc0b   : > { %12114 = vmatpush1.bf16.msra.mxu1 %v24151_v28  ;;  %12009 = vmatprep.subr.bf16.mxu0 %v24156_v9  ;;  %v24210_v9 = vld [vmem:[#allocation14 + $0xa64] ss:$16 sps:$4 sm:$0xff]  }
 0xc0c   : > { %12115 = vmatprep.subr.bf16.mxu1 %v24159_v19  ;;  %v24213_v19 = vld [vmem:[#allocation14 + $0xa6c] ss:$16 sps:$4 sm:$0xff]  }
 0xc0e   : > { %12010 = vmatpush1.bf16.msra.mxu0 %v24154_v13 }
 0xc0f   : > { %12116 = vmatpush1.bf16.msra.mxu1 %v24157_v10  ;;  %12011 = vmatprep.subr.bf16.mxu0 %v24162_v12  ;;  %v24208_v10 = vld [vmem:[#allocation14 + $0xa60] ss:$16 sps:$4 sm:$0xff]   ;;  %v24211_v12 = vld [vmem:[#allocation14 + $0xa68] ss:$16 sps:$4 sm:$0xff]  }
 0xc10   : > { %12117 = vmatprep.subr.bf16.mxu1 %v24165_v47  ;;  %v24216_v47 = vld [vmem:[#allocation14 + $0xa84] ss:$16 sps:$4 sm:$0xff]  }
 0xc12   : > { %12012 = vmatpush1.bf16.msra.mxu0 %v24160_v21  ;;  %v24219_v21 = vld [vmem:[#allocation14 + $0xa8c] ss:$16 sps:$4 sm:$0xff]  }
 0xc13   : > { %12118 = vmatpush1.bf16.msra.mxu1 %v24163_v52  ;;  %12013 = vmatprep.subr.bf16.mxu0 %v24168_v41  ;;  %v24214_v52 = vld [vmem:[#allocation14 + $0xa80] ss:$16 sps:$4 sm:$0xff]   ;;  %v24217_v41 = vld [vmem:[#allocation14 + $0xa88] ss:$16 sps:$4 sm:$0xff]  }
 0xc14   : > { %12119 = vmatprep.subr.bf16.mxu1 %v24171_v55  ;;  %v24222_v55 = vld [vmem:[#allocation14 + $0xaa4] ss:$16 sps:$4 sm:$0xff]  }
 0xc16   : > { %12014 = vmatpush1.bf16.msra.mxu0 %v24166_v49  ;;  %v24225_v49 = vld [vmem:[#allocation14 + $0xaac] ss:$16 sps:$4 sm:$0xff]  }
 0xc17   : > { %12120 = vmatpush1.bf16.msra.mxu1 %v24169_v58  ;;  %12015 = vmatprep.subr.bf16.mxu0 %v24174_v48  ;;  %v24220_v58 = vld [vmem:[#allocation14 + $0xaa0] ss:$16 sps:$4 sm:$0xff]   ;;  %v24223_v48 = vld [vmem:[#allocation14 + $0xaa8] ss:$16 sps:$4 sm:$0xff]  }
 0xc18   : > { %12121 = vmatprep.subr.bf16.mxu1 %v24177_v60  ;;  %v24228_v60 = vld [vmem:[#allocation14 + $0xac4] ss:$16 sps:$4 sm:$0xff]  }
 0xc1a   : > { %12016 = vmatpush1.bf16.msra.mxu0 %v24172_v59  ;;  %v24231_v59 = vld [vmem:[#allocation14 + $0xacc] ss:$16 sps:$4 sm:$0xff]  }
 0xc1b   : > { %12122 = vmatpush1.bf16.msra.mxu1 %v24175_v46  ;;  %12017 = vmatprep.subr.bf16.mxu0 %v24180_v61  ;;  %v24226_v46 = vld [vmem:[#allocation14 + $0xac0] ss:$16 sps:$4 sm:$0xff]   ;;  %v24234_v61 = vld [vmem:[#allocation14 + $0xae4] ss:$16 sps:$4 sm:$0xff]  }
 0xc1c   : > { %12123 = vmatprep.subr.bf16.mxu1 %v24183_v17  ;;  %v24232_v17 = vld [vmem:[#allocation14 + $0xae0] ss:$16 sps:$4 sm:$0xff]  }
 0xc1e   : > { %12018 = vmatpush1.bf16.msra.mxu0 %v24178_v16  ;;  %v24229_v16 = vld [vmem:[#allocation14 + $0xac8] ss:$16 sps:$4 sm:$0xff]  }
 0xc1f   : > { %12124 = vmatpush1.bf16.msra.mxu1 %v24181_v31  ;;  %12019 = vmatprep.subr.bf16.mxu0 %v24186_v36  ;;  %v24237_v31 = vld [vmem:[#allocation14 + $0xaec] ss:$16 sps:$4 sm:$0xff]   ;;  %v24235_v36 = vld [vmem:[#allocation14 + $0xae8] ss:$16 sps:$4 sm:$0xff]  }
 0xc20   : > { %12125 = vmatprep.subr.bf16.mxu1 %v24189_v30  ;;  %v24240_v30 = vld [vmem:[#allocation14 + $0xb04] ss:$16 sps:$4 sm:$0xff]  }
 0xc22   : > { %12020 = vmatpush1.bf16.msra.mxu0 %v24184_v40  ;;  %v24243_v40 = vld [vmem:[#allocation14 + $0xb0c] ss:$16 sps:$4 sm:$0xff]  }
 0xc23   : > { %12126 = vmatpush1.bf16.msra.mxu1 %v24187_v6  ;;  %12042 = vmatprep.subr.bf16.mxu0 %v24192_v2  ;;  %v24238_v6 = vld [vmem:[#allocation14 + $0xb00] ss:$16 sps:$4 sm:$0xff]   ;;  %v24241_v2 = vld [vmem:[#allocation14 + $0xb08] ss:$16 sps:$4 sm:$0xff]  }
 0xc24   : > { %12148 = vmatprep.subr.bf16.mxu1 %v24195_v33  ;;  %v24246_v33 = vld [vmem:[#allocation14 + $0xb24] ss:$16 sps:$4 sm:$0xff]  }
 0xcb7   : > { %v11100_v50 = vpop.f32.mrb[116].mxu0 }
 0xcb8   : > { %v11102_v26 = vpop.f32.mrb[117].mxu0  ;;  %v11189_v29 = vpop.f32.mrb[116].mxu1 }
 0xcb9   : > { %v11191_v15 = vpop.f32.mrb[117].mxu1 }
 0xcbb   : > { %v11106_v38 = vpop.f32.mrb[118].mxu0 }
 0xcbc   : > { %v11212_v45 = vpack.c.bf16 %v11106_v38, %v11100_v50  ;;  %v11108_v1 = vpop.f32.mrb[119].mxu0  ;;  %v11195_v51 = vpop.f32.mrb[118].mxu1  ;;  %v24249_v50 = vld [vmem:[#allocation14 + $0xb2c] ss:$16 sps:$4 sm:$0xff]  }
 0xcbd   : > { %v11213_v3 = vpack.c.bf16 %v11108_v1, %v11102_v26  ;;  %v27695_v63 = vpack.c.bf16 %v11195_v51, %v11189_v29  ;;  %v11197_v35 = vpop.f32.mrb[119].mxu1  ;;  %v24244_v26 = vld [vmem:[#allocation14 + $0xb20] ss:$16 sps:$4 sm:$0xff]   ;;  %v24247_v29 = vld [vmem:[#allocation14 + $0xb28] ss:$16 sps:$4 sm:$0xff]  }
 0xcbe   : > { %v11215_v39 = vpack.c.bf16 %v11197_v35, %v11191_v15  ;;  %v24252_v15 = vld [vmem:[#allocation14 + $0xb44] ss:$16 sps:$4 sm:$0xff]   ;;  %v24255_v38 = vld [vmem:[#allocation14 + $0xb4c] ss:$16 sps:$4 sm:$0xff]   ;;  %v24253_v1 = vld [vmem:[#allocation14 + $0xb48] ss:$16 sps:$4 sm:$0xff]  }
 0xcbf   : > { %12021 = vmatprep.mubr.bf16.mxu0 %v11213_v3  ;;  %12127 = vmatprep.mubr.bf16.mxu1 %v11213_v3  ;;  %v11112_v37 = vpop.f32.mrb[120].mxu0  ;;  %v24258_v51 = vld [vmem:[#allocation14 + $0xb64] ss:$16 sps:$4 sm:$0xff]   ;;  %v24261_v3 = vld [vmem:[#allocation14 + $0xb6c] ss:$16 sps:$4 sm:$0xff]  }
 0xcc0   : > { %12022 = vmatmul.mubr.bf16.vlgmr.msra.gmra.mrb[108].mxu0 %v11212_v45  ;;  %12128 = vmatmul.mubr.bf16.vlgmr.msra.gmra.mrb[108].mxu1 %v11212_v45  ;;  %v11114_v5 = vpop.f32.mrb[121].mxu0  ;;  %v11201_v54 = vpop.f32.mrb[120].mxu1  ;;  %v24250_v45 = vld [vmem:[#allocation14 + $0xb40] ss:$16 sps:$4 sm:$0xff]   ;;  %v24264_v35 = vld [vmem:[#allocation14 + $0xb84] ss:$16 sps:$4 sm:$0xff]  }
 0xcc1   : > { %12043 = vmatpush1.bf16.msra.mxu0 %v24190_v8  ;;  %12149 = vmatpush1.bf16.msra.mxu1 %v24193_v11  ;;  %v11203_v14 = vpop.f32.mrb[121].mxu1  ;;  %v24256_v8 = vld [vmem:[#allocation14 + $0xb60] ss:$16 sps:$4 sm:$0xff]   ;;  %v24259_v11 = vld [vmem:[#allocation14 + $0xb68] ss:$16 sps:$4 sm:$0xff]  }
 0xcc2   : > { %12044 = vmatprep.subr.bf16.mxu0 %v24198_v0  ;;  %12150 = vmatprep.subr.bf16.mxu1 %v24201_v24  ;;  %v24267_v0 = vld [vmem:[#allocation14 + $0xb8c] ss:$16 sps:$4 sm:$0xff]   ;;  %v24262_v24 = vld [vmem:[#allocation14 + $0xb80] ss:$16 sps:$4 sm:$0xff]  }
 0xcc3   : > { %v11118_v57 = vpop.f32.mrb[122].mxu0 }
 0xcc4   : > { %v11216_v34 = vpack.c.bf16 %v11118_v57, %v11112_v37  ;;  %v11120_v43 = vpop.f32.mrb[123].mxu0  ;;  %v11207_v18 = vpop.f32.mrb[122].mxu1  ;;  %v24270_v37 = vld [vmem:[#allocation14 + $0xba4] ss:$16 sps:$4 sm:$0xff]  }
 0xcc5   : > { %12045 = vmatpush1.bf16.msra.mxu0 %v24196_v62  ;;  %12151 = vmatpush1.bf16.msra.mxu1 %v24199_v42  ;;  %v11217_v7 = vpack.c.bf16 %v11120_v43, %v11114_v5  ;;  %v27697_v25 = vpack.c.bf16 %v11207_v18, %v11201_v54  ;;  %v11209_v28 = vpop.f32.mrb[123].mxu1  ;;  %v24273_v5 = vld [vmem:[#allocation14 + $0xbac] ss:$16 sps:$4 sm:$0xff]   ;;  %v24268_v54 = vld [vmem:[#allocation14 + $0xba0] ss:$16 sps:$4 sm:$0xff]  }
 0xcc6   : > { %12046 = vmatprep.subr.bf16.mxu0 %v24204_v4  ;;  %12152 = vmatprep.subr.bf16.mxu1 %v24207_v56  ;;  %v27699_v13 = vpack.c.bf16 %v11209_v28, %v11203_v14  ;;  %v24271_v62 = vld [vmem:[#allocation14 + $0xba8] ss:$16 sps:$4 sm:$0xff]   ;;  %v24276_v42 = vld [vmem:[#allocation14 + $0xbc4] ss:$16 sps:$4 sm:$0xff]   ;;  %v24279_v14 = vld [vmem:[#allocation14 + $0xbcc] ss:$16 sps:$4 sm:$0xff]  }
 0xcc7   : > { %12031 = vmatprep.mubr.bf16.mxu0 %v11217_v7  ;;  %12137 = vmatprep.mubr.bf16.mxu1 %v11217_v7  ;;  %v24274_v4 = vld [vmem:[#allocation14 + $0xbc0] ss:$16 sps:$4 sm:$0xff]   ;;  %v24277_v56 = vld [vmem:[#allocation14 + $0xbc8] ss:$16 sps:$4 sm:$0xff]   ;;  %v24282_v57 = vld [vmem:[#allocation14 + $0xbe4] ss:$16 sps:$4 sm:$0xff]  }
 0xcc8   : > { %12032 = vmatmul.mubr.bf16.gmra.mrb[112].mxu0 %v11216_v34  ;;  %12138 = vmatmul.mubr.bf16.gmra.mrb[112].mxu1 %v11216_v34  ;;  %v24285_v34 = vld [vmem:[#allocation14 + $0xbec] ss:$16 sps:$4 sm:$0xff]   ;;  %v24280_v43 = vld [vmem:[#allocation14 + $0xbe0] ss:$16 sps:$4 sm:$0xff]   ;;  %v24283_v18 = vld [vmem:[#allocation14 + $0xbe8] ss:$16 sps:$4 sm:$0xff]  }
 0xcc9   : > { %12047 = vmatpush1.bf16.msra.mxu0 %v24202_v27  ;;  %12153 = vmatpush1.bf16.msra.mxu1 %v24205_v32  ;;  %v12217_v27 = vld [vmem:[#allocation16] sm:$0xf] }
 0xcca   : > { %12048 = vmatprep.subr.bf16.mxu0 %v24210_v9  ;;  %12154 = vmatprep.subr.bf16.mxu1 %v24213_v19  ;;  %v12222_v32 = vrot.slane %v12217_v27, %v27020_v44  ;;  %v12230_v7 = vrot.slane %v12217_v27, %v27023_v22  ;;  %v12226_v28 = vrot.slane %v12217_v27, %v27028_v53 }
 0xccb   : > { %12074 = vmatprep.mubr.bf16.mxu0 %v11215_v39  ;;  %12180 = vmatprep.mubr.bf16.mxu1 %v11215_v39  ;;  %v24265_v39 = vld [vmem:[#allocation14 + $0xb88] ss:$16 sps:$4 sm:$0xff]  }
 0xccd   : > { %12049 = vmatpush1.bf16.msra.mxu0 %v24208_v10  ;;  %12155 = vmatpush1.bf16.msra.mxu1 %v24211_v12 }
 0xcce   : > { %12050 = vmatprep.subr.bf16.mxu0 %v24216_v47  ;;  %12156 = vmatprep.subr.bf16.mxu1 %v24219_v21 }
 0xcd1   : > { %12051 = vmatpush1.bf16.msra.mxu0 %v24214_v52  ;;  %12157 = vmatpush1.bf16.msra.mxu1 %v24217_v41 }
 0xcd2   : > { %12052 = vmatprep.subr.bf16.mxu0 %v24222_v55  ;;  %12158 = vmatprep.subr.bf16.mxu1 %v24225_v49 }
 0xcd5   : > { %12053 = vmatpush1.bf16.msra.mxu0 %v24220_v58  ;;  %12159 = vmatpush1.bf16.msra.mxu1 %v24223_v48 }
 0xcd6   : > { %12054 = vmatprep.subr.bf16.mxu0 %v24228_v60  ;;  %12160 = vmatprep.subr.bf16.mxu1 %v24231_v59 }
 0xcd9   : > { %12055 = vmatpush1.bf16.msra.mxu0 %v24226_v46  ;;  %12161 = vmatpush1.bf16.msra.mxu1 %v24229_v16 }
 0xcda   : > { %12056 = vmatprep.subr.bf16.mxu0 %v24234_v61  ;;  %12162 = vmatprep.subr.bf16.mxu1 %v24237_v31 }
 0xcdd   : > { %12057 = vmatpush1.bf16.msra.mxu0 %v24232_v17  ;;  %12163 = vmatpush1.bf16.msra.mxu1 %v24235_v36 }
 0xcde   : > { %12058 = vmatprep.subr.bf16.mxu0 %v24240_v30  ;;  %12164 = vmatprep.subr.bf16.mxu1 %v24243_v40 }
 0xce1   : > { %12059 = vmatpush1.bf16.msra.mxu0 %v24238_v6  ;;  %12165 = vmatpush1.bf16.msra.mxu1 %v24241_v2 }
 0xce2   : > { %12060 = vmatprep.subr.bf16.mxu0 %v24246_v33  ;;  %12166 = vmatprep.subr.bf16.mxu1 %v24249_v50 }
 0xce5   : > { %12061 = vmatpush1.bf16.msra.mxu0 %v24244_v26  ;;  %12167 = vmatpush1.bf16.msra.mxu1 %v24247_v29 }
 0xce6   : > { %12062 = vmatprep.subr.bf16.mxu0 %v24252_v15  ;;  %12168 = vmatprep.subr.bf16.mxu1 %v24255_v38 }
 0xce9   : > { %12063 = vmatpush1.bf16.msra.mxu0 %v24250_v45  ;;  %12169 = vmatpush1.bf16.msra.mxu1 %v24253_v1 }
 0xcea   : > { %12064 = vmatprep.subr.bf16.mxu0 %v24258_v51  ;;  %12170 = vmatprep.subr.bf16.mxu1 %v24261_v3 }
 0xced   : > { %12065 = vmatpush1.bf16.msra.mxu0 %v24256_v8  ;;  %12171 = vmatpush1.bf16.msra.mxu1 %v24259_v11 }
 0xcee   : > { %12066 = vmatprep.subr.bf16.mxu0 %v24264_v35  ;;  %12172 = vmatprep.subr.bf16.mxu1 %v24267_v0 }
 0xcf1   : > { %12067 = vmatpush1.bf16.msra.mxu0 %v24262_v24  ;;  %12173 = vmatpush1.bf16.msra.mxu1 %v24265_v39 }
 0xcf2   : > { %12068 = vmatprep.subr.bf16.mxu0 %v24270_v37  ;;  %12174 = vmatprep.subr.bf16.mxu1 %v24273_v5 }
 0xcf5   : > { %12069 = vmatpush1.bf16.msra.mxu0 %v24268_v54  ;;  %12175 = vmatpush1.bf16.msra.mxu1 %v24271_v62 }
 0xcf6   : > { %12070 = vmatprep.subr.bf16.mxu0 %v24276_v42  ;;  %12176 = vmatprep.subr.bf16.mxu1 %v24279_v14 }
 0xcf9   : > { %12071 = vmatpush1.bf16.msra.mxu0 %v24274_v4  ;;  %12177 = vmatpush1.bf16.msra.mxu1 %v24277_v56 }
 0xcfa   : > { %12072 = vmatprep.subr.bf16.mxu0 %v24282_v57  ;;  %12178 = vmatprep.subr.bf16.mxu1 %v24285_v34 }
 0xcfd   : > { %12073 = vmatpush1.bf16.msra.mxu0 %v24280_v43  ;;  %12179 = vmatpush1.bf16.msra.mxu1 %v24283_v18 }
 0xd00   : > { %12075 = vmatmul.mubr.bf16.vlgmr.msra.gmra.mrb[108].mxu0 %v27695_v63  ;;  %12181 = vmatmul.mubr.bf16.vlgmr.msra.gmra.mrb[108].mxu1 %v27695_v63  ;;  %v12234_v63 = vrot.slane %v12217_v27, %v27031_v23 }
 0xd01   : > { %12084 = vmatprep.mubr.bf16.mxu0 %v27699_v13  ;;  %12190 = vmatprep.mubr.bf16.mxu1 %v27699_v13 }
 0xd08   : > { %12085 = vmatmul.mubr.bf16.gmra.mrb[112].mxu0 %v27697_v25  ;;  %12191 = vmatmul.mubr.bf16.gmra.mrb[112].mxu1 %v27697_v25 }
 0xd09   : > { %12343 = vmatprep.mubr.f32.mxu0 %v26127_v20  ;;  %12420 = vmatprep.mubr.f32.mxu1 %v26127_v20 }
 0xdd3   : > { %v12076_v9 = vpop.f32.mrb[108].mxu0  ;;  %v12182_v19 = vpop.f32.mrb[108].mxu1 }
 0xdd4   : > { %v12239_v13 = vadd.f32 %v12222_v32, %v12076_v9  ;;  %v12241_v10 = vadd.f32 %v12230_v7, %v12182_v19  ;;  %v12078_v12 = vpop.f32.mrb[109].mxu0  ;;  %v12184_v47 = vpop.f32.mrb[109].mxu1  ;;  %v12434_v19 = vld [vmem:[#allocation17 + $0x10] sm:$0xff] }
 0xdd5   : > { %v12240_v25 = vadd.f32 %v12226_v28, %v12078_v12  ;;  %v12242_v21 = vadd.f32 %v12234_v63, %v12184_v47  ;;  %v12080_v52 = vpop.f32.mrb[110].mxu0  ;;  %v12186_v41 = vpop.f32.mrb[110].mxu1  ;;  %v24294_v12 = vld [vmem:[#allocation19 + $0x14] ss:$8 sps:$4 sm:$0xff]  }
 0xdd6   : > { %v12243_v55 = vadd.f32 %v12222_v32, %v12080_v52  ;;  %v12245_v49 = vadd.f32 %v12230_v7, %v12186_v41  ;;  %v12082_v58 = vpop.f32.mrb[111].mxu0  ;;  %v12188_v48 = vpop.f32.mrb[111].mxu1  ;;  %v12255_v46 = vmax.f32 %v12239_v13, 0.0  ;;  %v12257_v16 = vmax.f32 %v12241_v10, 0.0  ;;  %v24286_v13 = vld [vmem:[#allocation19] ss:$8 sps:$4 sm:$0xff]  }
 0xdd7   : > { %v12244_v60 = vadd.f32 %v12226_v28, %v12082_v58  ;;  %v12246_v59 = vadd.f32 %v12234_v63, %v12188_v48  ;;  %v12256_v17 = vmax.f32 %v12240_v25, 0.0  ;;  %v12258_v36 = vmax.f32 %v12242_v21, 0.0  ;;  %v24289_v10 = vld [vmem:[#allocation19 + $0x200] ss:$8 sps:$4 sm:$0xff]   ;;  %v24297_v47 = vld [vmem:[#allocation19 + $0x214] ss:$8 sps:$4 sm:$0xff]  }
 0xdd8   : > { %v12259_v61 = vmax.f32 %v12243_v55, 0.0  ;;  %v12261_v31 = vmax.f32 %v12245_v49, 0.0  ;;  %v12435_v25 = vld [vmem:[#allocation17 + $0x18] sm:$0xff]  ;;  %v24300_v41 = vld [vmem:[#allocation19 + $0x24] ss:$8 sps:$4 sm:$0xff]  }
 0xdd9   : > { %v12260_v30 = vmax.f32 %v12244_v60, 0.0  ;;  %v12262_v40 = vmax.f32 %v12246_v59, 0.0  ;;  %v24292_v21 = vld [vmem:[#allocation19 + $0x10] ss:$8 sps:$4 sm:$0xff]   ;;  %v24303_v55 = vld [vmem:[#allocation19 + $0x224] ss:$8 sps:$4 sm:$0xff]  }
 0xdda   : > { %v22190_v6 = vpack.c.bf16 %v12259_v61, %v12255_v46  ;;  %v22198_v2 = vpack.c.bf16 %v12261_v31, %v12257_v16  ;;  %v24295_v52 = vld [vmem:[#allocation19 + $0x210] ss:$8 sps:$4 sm:$0xff]   ;;  %v24298_v49 = vld [vmem:[#allocation19 + $0x20] ss:$8 sps:$4 sm:$0xff]   ;;  %v24306_v48 = vld [vmem:[#allocation19 + $0x34] ss:$8 sps:$4 sm:$0xff]  }
 0xddb   : > { %v22188_v33 = vpack.c.bf16 %v12260_v30, %v12256_v17  ;;  %v22196_v50 = vpack.c.bf16 %v12262_v40, %v12258_v36  ;;  %v12086_v26 = vpop.f32.mrb[112].mxu0  ;;  %v12192_v29 = vpop.f32.mrb[112].mxu1  ;;  %v24301_v58 = vld [vmem:[#allocation19 + $0x220] ss:$8 sps:$4 sm:$0xff]   ;;  %v24309_v60 = vld [vmem:[#allocation19 + $0x234] ss:$8 sps:$4 sm:$0xff]  }
 0xddc   : > { %v12247_v15 = vadd.f32 %v12222_v32, %v12086_v26  ;;  %v12249_v38 = vadd.f32 %v12230_v7, %v12192_v29  ;;  %v12088_v45 = vpop.f32.mrb[113].mxu0  ;;  %v12194_v1 = vpop.f32.mrb[113].mxu1  ;;  %v24304_v59 = vld [vmem:[#allocation19 + $0x30] ss:$8 sps:$4 sm:$0xff]   ;;  %v24312_v16 = vld [vmem:[#allocation19 + $0x44] ss:$8 sps:$4 sm:$0xff]  }
 0xddd   : > { %v12248_v51 = vadd.f32 %v12226_v28, %v12088_v45  ;;  %v12250_v3 = vadd.f32 %v12234_v63, %v12194_v1  ;;  %v12090_v8 = vpop.f32.mrb[114].mxu0  ;;  %v12196_v11 = vpop.f32.mrb[114].mxu1  ;;  %22189 = vmatprep.subr.bf16.mxu0 %v22188_v33  ;;  %22197 = vmatprep.subr.bf16.mxu1 %v22196_v50  ;;  %v24307_v46 = vld [vmem:[#allocation19 + $0x230] ss:$8 sps:$4 sm:$0xff]   ;;  %v24315_v61 = vld [vmem:[#allocation19 + $0x244] ss:$8 sps:$4 sm:$0xff]  }
 0xdde   : > { %v12251_v35 = vadd.f32 %v12222_v32, %v12090_v8  ;;  %v12253_v0 = vadd.f32 %v12230_v7, %v12196_v11  ;;  %v12092_v24 = vpop.f32.mrb[115].mxu0  ;;  %v12198_v39 = vpop.f32.mrb[115].mxu1  ;;  %22191 = vmatpush1.bf16.msra.mxu0 %v22190_v6  ;;  %22199 = vmatpush1.bf16.msra.mxu1 %v22198_v2  ;;  %v12263_v54 = vmax.f32 %v12247_v15, 0.0  ;;  %v12265_v62 = vmax.f32 %v12249_v38, 0.0  ;;  %v12271_v32 = vld [vmem:[#allocation17] sm:$0xff]  ;;  %v12272_v7 = vld [vmem:[#allocation17 + $0x8] sm:$0xff] }
 0xddf   : > { %v12252_v37 = vadd.f32 %v12226_v28, %v12092_v24  ;;  %v12254_v5 = vadd.f32 %v12234_v63, %v12198_v39  ;;  %v12264_v4 = vmax.f32 %v12248_v51, 0.0  ;;  %v12266_v56 = vmax.f32 %v12250_v3, 0.0  ;;  %v24288_v28 = vld [vmem:[#allocation19 + $0x4] ss:$8 sps:$4 sm:$0xff]   ;;  %v24310_v31 = vld [vmem:[#allocation19 + $0x40] ss:$8 sps:$4 sm:$0xff]  }
 0xde0   : > { %v12267_v42 = vmax.f32 %v12251_v35, 0.0  ;;  %v12269_v14 = vmax.f32 %v12253_v0, 0.0  ;;  %v24291_v63 = vld [vmem:[#allocation19 + $0x204] ss:$8 sps:$4 sm:$0xff]   ;;  %v24313_v17 = vld [vmem:[#allocation19 + $0x240] ss:$8 sps:$4 sm:$0xff]  }
 0xde1   : > { %v12268_v57 = vmax.f32 %v12252_v37, 0.0  ;;  %v12270_v34 = vmax.f32 %v12254_v5, 0.0  ;;  %v24318_v36 = vld [vmem:[#allocation19 + $0x54] ss:$8 sps:$4 sm:$0xff]   ;;  %v24316_v40 = vld [vmem:[#allocation19 + $0x50] ss:$8 sps:$4 sm:$0xff]  }
 0xde2   : > { %v22194_v43 = vpack.c.bf16 %v12267_v42, %v12263_v54  ;;  %v22202_v18 = vpack.c.bf16 %v12269_v14, %v12265_v62  ;;  %v24321_v30 = vld [vmem:[#allocation19 + $0x254] ss:$8 sps:$4 sm:$0xff]   ;;  %v24325_v26 = vld [vmem:[#allocation19 + $0x260] ss:$8 sps:$4 sm:$0xff]   ;;  %v24328_v38 = vld [vmem:[#allocation19 + $0x70] ss:$8 sps:$4 sm:$0xff]  }
 0xde3   : > { %v22192_v27 = vpack.c.bf16 %v12268_v57, %v12264_v4  ;;  %v22200_v9 = vpack.c.bf16 %v12270_v34, %v12266_v56  ;;  %v24330_v29 = vld [vmem:[#allocation19 + $0x74] ss:$8 sps:$4 sm:$0xff]   ;;  %v24331_v45 = vld [vmem:[#allocation19 + $0x270] ss:$8 sps:$4 sm:$0xff]   ;;  %v24336_v1 = vld [vmem:[#allocation19 + $0x84] ss:$8 sps:$4 sm:$0xff]  }
 0xde4   : > { %v24333_v15 = vld [vmem:[#allocation19 + $0x274] ss:$8 sps:$4 sm:$0xff]   ;;  %v24339_v51 = vld [vmem:[#allocation19 + $0x284] ss:$8 sps:$4 sm:$0xff]   ;;  %v24334_v3 = vld [vmem:[#allocation19 + $0x80] ss:$8 sps:$4 sm:$0xff]  }
 0xde5   : > { %22193 = vmatprep.subr.bf16.mxu0 %v22192_v27  ;;  %22201 = vmatprep.subr.bf16.mxu1 %v22200_v9  ;;  %v24337_v8 = vld [vmem:[#allocation19 + $0x280] ss:$8 sps:$4 sm:$0xff]   ;;  %v24342_v11 = vld [vmem:[#allocation19 + $0x94] ss:$8 sps:$4 sm:$0xff]   ;;  %v24340_v0 = vld [vmem:[#allocation19 + $0x90] ss:$8 sps:$4 sm:$0xff]  }
 0xde6   : > { %22195 = vmatpush1.bf16.msra.mxu0 %v22194_v43  ;;  %22203 = vmatpush1.bf16.msra.mxu1 %v22202_v18  ;;  %v24345_v35 = vld [vmem:[#allocation19 + $0x294] ss:$8 sps:$4 sm:$0xff]   ;;  %v24343_v24 = vld [vmem:[#allocation19 + $0x290] ss:$8 sps:$4 sm:$0xff]   ;;  %v24348_v39 = vld [vmem:[#allocation19 + $0xa4] ss:$8 sps:$4 sm:$0xff]  }
 0xde7   : > { %22205 = vmatprep.subr.bf16.mxu0 %v22188_v33  ;;  %22213 = vmatprep.subr.bf16.mxu1 %v22196_v50  ;;  %v24327_v33 = vld [vmem:[#allocation19 + $0x264] ss:$8 sps:$4 sm:$0xff]   ;;  %v24322_v50 = vld [vmem:[#allocation19 + $0x60] ss:$8 sps:$4 sm:$0xff]   ;;  %v24354_v62 = vld [vmem:[#allocation19 + $0xb4] ss:$8 sps:$4 sm:$0xff]  }
 0xde8   : > { %v24351_v37 = vld [vmem:[#allocation19 + $0x2a4] ss:$8 sps:$4 sm:$0xff]   ;;  %v24346_v5 = vld [vmem:[#allocation19 + $0xa0] ss:$8 sps:$4 sm:$0xff]   ;;  %v24357_v42 = vld [vmem:[#allocation19 + $0x2b4] ss:$8 sps:$4 sm:$0xff]  }
 0xde9   : > { %20748 = vmatmul.mubr.msk.f32.vlgmr.msra.gmra.mrb[124].mxu0 %vm8654_vm1, %v12271_v32  ;;  %20750 = vmatmul.mubr.msk.f32.vlgmr.msra.gmra.mrb[124].mxu1 %vm8654_vm1, %v12271_v32  ;;  %v24349_v54 = vld [vmem:[#allocation19 + $0x2a0] ss:$8 sps:$4 sm:$0xff]   ;;  %v24352_v14 = vld [vmem:[#allocation19 + $0xb0] ss:$8 sps:$4 sm:$0xff]   ;;  %v24360_v57 = vld [vmem:[#allocation19 + $0xc4] ss:$8 sps:$4 sm:$0xff]  }
 0xdea   : > { %22207 = vmatpush1.bf16.msra.mxu0 %v22190_v6  ;;  %22215 = vmatpush1.bf16.msra.mxu1 %v22198_v2  ;;  %v24319_v6 = vld [vmem:[#allocation19 + $0x250] ss:$8 sps:$4 sm:$0xff]   ;;  %v24324_v2 = vld [vmem:[#allocation19 + $0x64] ss:$8 sps:$4 sm:$0xff]   ;;  %v24358_v56 = vld [vmem:[#allocation19 + $0xc0] ss:$8 sps:$4 sm:$0xff]  }
 0xdeb   : > { %22209 = vmatprep.subr.bf16.mxu0 %v22192_v27  ;;  %22217 = vmatprep.subr.bf16.mxu1 %v22200_v9  ;;  %v24355_v4 = vld [vmem:[#allocation19 + $0x2b0] ss:$8 sps:$4 sm:$0xff]   ;;  %v24361_v34 = vld [vmem:[#allocation19 + $0x2c0] ss:$8 sps:$4 sm:$0xff]   ;;  %v24366_v27 = vld [vmem:[#allocation19 + $0xd4] ss:$8 sps:$4 sm:$0xff]  }
 0xdec   : > { %12349 = vmatprep.mubr.f32.mxu0 %v26127_v20  ;;  %12426 = vmatprep.mubr.f32.mxu1 %v26127_v20  ;;  %v24367_v9 = vld [vmem:[#allocation19 + $0x2d0] ss:$8 sps:$4 sm:$0xff]   ;;  %v24369_v32 = vld [vmem:[#allocation19 + $0x2d4] ss:$8 sps:$4 sm:$0xff]  }
 0xded   : > { %20749 = vmatmul.mubr.msk.f32.gmra.mrb[126].mxu0 %vm8654_vm1, %v12272_v7  ;;  %20751 = vmatmul.mubr.msk.f32.gmra.mrb[126].mxu1 %vm8654_vm1, %v12272_v7  ;;  %v24372_v7 = vld [vmem:[#allocation19 + $0xe4] ss:$8 sps:$4 sm:$0xff]  }
 0xdee   : > { %22211 = vmatpush1.bf16.msra.mxu0 %v22194_v43  ;;  %22219 = vmatpush1.bf16.msra.mxu1 %v22202_v18  ;;  %v24363_v43 = vld [vmem:[#allocation19 + $0x2c4] ss:$8 sps:$4 sm:$0xff]   ;;  %v24364_v18 = vld [vmem:[#allocation19 + $0xd0] ss:$8 sps:$4 sm:$0xff]  }
 0xdef   : > { %12506 = vmatprep.mubr.f32.mxu0 %v26127_v20  ;;  %12583 = vmatprep.mubr.f32.mxu1 %v26127_v20 }
 0xdf0   : > { %12992 = vmatprep.subr.bf16.mxu0 %v24288_v28  ;;  %13463 = vmatprep.subr.bf16.mxu1 %v24291_v63  ;;  %v24375_v28 = vld [vmem:[#allocation19 + $0x2e4] ss:$8 sps:$4 sm:$0xff]   ;;  %v24370_v63 = vld [vmem:[#allocation19 + $0xe0] ss:$8 sps:$4 sm:$0xff]  }
 0xdf1   : > { %20752 = vmatmul.mubr.msk.f32.vlgmr.msra.gmra.mrb[128].mxu0 %vm8654_vm1, %v12434_v19  ;;  %20754 = vmatmul.mubr.msk.f32.vlgmr.msra.gmra.mrb[128].mxu1 %vm8654_vm1, %v12434_v19  ;;  %v24373_v19 = vld [vmem:[#allocation19 + $0x2e0] ss:$8 sps:$4 sm:$0xff]  }
 0xdf2   : > { %12512 = vmatprep.mubr.f32.mxu0 %v26127_v20  ;;  %12589 = vmatprep.mubr.f32.mxu1 %v26127_v20 }
 0xdf3   : > { %12993 = vmatpush1.bf16.msra.mxu0 %v24286_v13  ;;  %13464 = vmatpush1.bf16.msra.mxu1 %v24289_v10  ;;  %v24378_v13 = vld [vmem:[#allocation19 + $0xf4] ss:$8 sps:$4 sm:$0xff]  }
 0xdf4   : > { %12994 = vmatprep.subr.bf16.mxu0 %v24294_v12  ;;  %13465 = vmatprep.subr.bf16.mxu1 %v24297_v47  ;;  %v24381_v10 = vld [vmem:[#allocation19 + $0x2f4] ss:$8 sps:$4 sm:$0xff]   ;;  %v24376_v12 = vld [vmem:[#allocation19 + $0xf0] ss:$8 sps:$4 sm:$0xff]  }
 0xdf5   : > { %20753 = vmatmul.mubr.msk.f32.gmra.mrb[130].mxu0 %vm8654_vm1, %v12435_v25  ;;  %20755 = vmatmul.mubr.msk.f32.gmra.mrb[130].mxu1 %vm8654_vm1, %v12435_v25  ;;  %v24379_v47 = vld [vmem:[#allocation19 + $0x2f0] ss:$8 sps:$4 sm:$0xff]   ;;  %v24384_v25 = vld [vmem:[#allocation19 + $0x104] ss:$8 sps:$4 sm:$0xff]  }
 0xdf7   : > { %12995 = vmatpush1.bf16.msra.mxu0 %v24292_v21  ;;  %13466 = vmatpush1.bf16.msra.mxu1 %v24295_v52  ;;  %v24387_v21 = vld [vmem:[#allocation19 + $0x304] ss:$8 sps:$4 sm:$0xff]  }
 0xdf8   : > { %12996 = vmatprep.subr.bf16.mxu0 %v24300_v41  ;;  %13467 = vmatprep.subr.bf16.mxu1 %v24303_v55 }
 0xdfb   : > { %12997 = vmatpush1.bf16.msra.mxu0 %v24298_v49  ;;  %13468 = vmatpush1.bf16.msra.mxu1 %v24301_v58 }
 0xdfc   : > { %12998 = vmatprep.subr.bf16.mxu0 %v24306_v48  ;;  %13469 = vmatprep.subr.bf16.mxu1 %v24309_v60 }
 0xdff   : > { %12999 = vmatpush1.bf16.msra.mxu0 %v24304_v59  ;;  %13470 = vmatpush1.bf16.msra.mxu1 %v24307_v46 }
 0xe00   : > { %13000 = vmatprep.subr.bf16.mxu0 %v24312_v16  ;;  %13471 = vmatprep.subr.bf16.mxu1 %v24315_v61 }
 0xe03   : > { %13001 = vmatpush1.bf16.msra.mxu0 %v24310_v31  ;;  %13472 = vmatpush1.bf16.msra.mxu1 %v24313_v17 }
 0xe04   : > { %13002 = vmatprep.subr.bf16.mxu0 %v24318_v36  ;;  %13473 = vmatprep.subr.bf16.mxu1 %v24321_v30 }
 0xe07   : > { %13003 = vmatpush1.bf16.msra.mxu0 %v24316_v40  ;;  %13474 = vmatpush1.bf16.msra.mxu1 %v24319_v6 }
 0xe08   : > { %13004 = vmatprep.subr.bf16.mxu0 %v24324_v2  ;;  %13475 = vmatprep.subr.bf16.mxu1 %v24327_v33 }
 0xe0b   : > { %13005 = vmatpush1.bf16.msra.mxu0 %v24322_v50  ;;  %13476 = vmatpush1.bf16.msra.mxu1 %v24325_v26 }
 0xe0c   : > { %13006 = vmatprep.subr.bf16.mxu0 %v24330_v29  ;;  %13477 = vmatprep.subr.bf16.mxu1 %v24333_v15 }
 0xe0f   : > { %13007 = vmatpush1.bf16.msra.mxu0 %v24328_v38  ;;  %13478 = vmatpush1.bf16.msra.mxu1 %v24331_v45 }
 0xe10   : > { %13008 = vmatprep.subr.bf16.mxu0 %v24336_v1  ;;  %13479 = vmatprep.subr.bf16.mxu1 %v24339_v51 }
 0xe13   : > { %13009 = vmatpush1.bf16.msra.mxu0 %v24334_v3  ;;  %13480 = vmatpush1.bf16.msra.mxu1 %v24337_v8  ;;  %v24382_v3 = vld [vmem:[#allocation19 + $0x100] ss:$8 sps:$4 sm:$0xff]  }
 0xe14   : > { %13010 = vmatprep.subr.bf16.mxu0 %v24342_v11  ;;  %13481 = vmatprep.subr.bf16.mxu1 %v24345_v35  ;;  %v24385_v8 = vld [vmem:[#allocation19 + $0x300] ss:$8 sps:$4 sm:$0xff]   ;;  %v24390_v35 = vld [vmem:[#allocation19 + $0x114] ss:$8 sps:$4 sm:$0xff]  }
 0xe17   : > { %13011 = vmatpush1.bf16.msra.mxu0 %v24340_v0  ;;  %13482 = vmatpush1.bf16.msra.mxu1 %v24343_v24  ;;  %v24393_v0 = vld [vmem:[#allocation19 + $0x314] ss:$8 sps:$4 sm:$0xff]   ;;  %v24388_v24 = vld [vmem:[#allocation19 + $0x110] ss:$8 sps:$4 sm:$0xff]  }
 0xe18   : > { %13012 = vmatprep.subr.bf16.mxu0 %v24348_v39  ;;  %13483 = vmatprep.subr.bf16.mxu1 %v24351_v37  ;;  %v24391_v39 = vld [vmem:[#allocation19 + $0x310] ss:$8 sps:$4 sm:$0xff]   ;;  %v24396_v37 = vld [vmem:[#allocation19 + $0x124] ss:$8 sps:$4 sm:$0xff]  }
 0xe1b   : > { %13013 = vmatpush1.bf16.msra.mxu0 %v24346_v5  ;;  %13484 = vmatpush1.bf16.msra.mxu1 %v24349_v54  ;;  %v24399_v5 = vld [vmem:[#allocation19 + $0x324] ss:$8 sps:$4 sm:$0xff]   ;;  %v24394_v54 = vld [vmem:[#allocation19 + $0x120] ss:$8 sps:$4 sm:$0xff]  }
 0xe1c   : > { %13014 = vmatprep.subr.bf16.mxu0 %v24354_v62  ;;  %13485 = vmatprep.subr.bf16.mxu1 %v24357_v42  ;;  %v24397_v62 = vld [vmem:[#allocation19 + $0x320] ss:$8 sps:$4 sm:$0xff]   ;;  %v24402_v42 = vld [vmem:[#allocation19 + $0x134] ss:$8 sps:$4 sm:$0xff]  }
 0xe1f   : > { %13015 = vmatpush1.bf16.msra.mxu0 %v24352_v14  ;;  %13486 = vmatpush1.bf16.msra.mxu1 %v24355_v4  ;;  %v24405_v14 = vld [vmem:[#allocation19 + $0x334] ss:$8 sps:$4 sm:$0xff]   ;;  %v24400_v4 = vld [vmem:[#allocation19 + $0x130] ss:$8 sps:$4 sm:$0xff]  }
 0xe20   : > { %13016 = vmatprep.subr.bf16.mxu0 %v24360_v57  ;;  %13487 = vmatprep.subr.bf16.mxu1 %v24363_v43  ;;  %v24408_v57 = vld [vmem:[#allocation19 + $0x144] ss:$8 sps:$4 sm:$0xff]   ;;  %v24406_v43 = vld [vmem:[#allocation19 + $0x140] ss:$8 sps:$4 sm:$0xff]  }
 0xe23   : > { %13017 = vmatpush1.bf16.msra.mxu0 %v24358_v56  ;;  %13488 = vmatpush1.bf16.msra.mxu1 %v24361_v34  ;;  %v24403_v56 = vld [vmem:[#allocation19 + $0x330] ss:$8 sps:$4 sm:$0xff]   ;;  %v24411_v34 = vld [vmem:[#allocation19 + $0x344] ss:$8 sps:$4 sm:$0xff]  }
 0xe24   : > { %13018 = vmatprep.subr.bf16.mxu0 %v24366_v27  ;;  %13489 = vmatprep.subr.bf16.mxu1 %v24369_v32  ;;  %v24414_v27 = vld [vmem:[#allocation19 + $0x154] ss:$8 sps:$4 sm:$0xff]   ;;  %v24412_v32 = vld [vmem:[#allocation19 + $0x150] ss:$8 sps:$4 sm:$0xff]  }
 0xe27   : > { %13019 = vmatpush1.bf16.msra.mxu0 %v24364_v18  ;;  %13490 = vmatpush1.bf16.msra.mxu1 %v24367_v9  ;;  %v24409_v18 = vld [vmem:[#allocation19 + $0x340] ss:$8 sps:$4 sm:$0xff]   ;;  %v24417_v9 = vld [vmem:[#allocation19 + $0x354] ss:$8 sps:$4 sm:$0xff]  }
 0xe28   : > { %13020 = vmatprep.subr.bf16.mxu0 %v24372_v7  ;;  %13491 = vmatprep.subr.bf16.mxu1 %v24375_v28  ;;  %v24415_v7 = vld [vmem:[#allocation19 + $0x350] ss:$8 sps:$4 sm:$0xff]   ;;  %v24420_v28 = vld [vmem:[#allocation19 + $0x164] ss:$8 sps:$4 sm:$0xff]  }
 0xe2b   : > { %13021 = vmatpush1.bf16.msra.mxu0 %v24370_v63  ;;  %13492 = vmatpush1.bf16.msra.mxu1 %v24373_v19  ;;  %v24423_v63 = vld [vmem:[#allocation19 + $0x364] ss:$8 sps:$4 sm:$0xff]   ;;  %v24418_v19 = vld [vmem:[#allocation19 + $0x160] ss:$8 sps:$4 sm:$0xff]  }
 0xe2c   : > { %13022 = vmatprep.subr.bf16.mxu0 %v24378_v13  ;;  %13493 = vmatprep.subr.bf16.mxu1 %v24381_v10  ;;  %v24421_v13 = vld [vmem:[#allocation19 + $0x360] ss:$8 sps:$4 sm:$0xff]   ;;  %v24426_v10 = vld [vmem:[#allocation19 + $0x174] ss:$8 sps:$4 sm:$0xff]  }
 0xe2f   : > { %13023 = vmatpush1.bf16.msra.mxu0 %v24376_v12  ;;  %13494 = vmatpush1.bf16.msra.mxu1 %v24379_v47  ;;  %v24429_v12 = vld [vmem:[#allocation19 + $0x374] ss:$8 sps:$4 sm:$0xff]   ;;  %v24424_v47 = vld [vmem:[#allocation19 + $0x170] ss:$8 sps:$4 sm:$0xff]  }
 0xe30   : > { %13035 = vmatprep.subr.bf16.mxu0 %v24384_v25  ;;  %13506 = vmatprep.subr.bf16.mxu1 %v24387_v21  ;;  %v24427_v25 = vld [vmem:[#allocation19 + $0x370] ss:$8 sps:$4 sm:$0xff]   ;;  %v24432_v21 = vld [vmem:[#allocation19 + $0x184] ss:$8 sps:$4 sm:$0xff]  }
 0xebc   : > { %v12345_v52 = vpop.f32.mrb[124].mxu0  ;;  %v12422_v41 = vpop.f32.mrb[124].mxu1 }
 0xebd   : > { %v12347_v55 = vpop.f32.mrb[125].mxu0  ;;  %v12424_v49 = vpop.f32.mrb[125].mxu1 }
 0xec0   : > { %v12351_v58 = vpop.f32.mrb[126].mxu0  ;;  %v12428_v48 = vpop.f32.mrb[126].mxu1 }
 0xec1   : > { %v12353_v60 = vpop.f32.mrb[127].mxu0  ;;  %v12430_v59 = vpop.f32.mrb[127].mxu1 }
 0xec4   : > { %v12508_v46 = vpop.f32.mrb[128].mxu0  ;;  %v12585_v16 = vpop.f32.mrb[128].mxu1 }
 0xec5   : > { %v12596_v61 = vmax.f32 %v12345_v52, %v12508_v46  ;;  %v12510_v31 = vpop.f32.mrb[129].mxu0  ;;  %v12598_v17 = vmax.f32 %v12422_v41, %v12585_v16  ;;  %v12587_v36 = vpop.f32.mrb[129].mxu1  ;;  %v24435_v52 = vld [vmem:[#allocation19 + $0x384] ss:$8 sps:$4 sm:$0xff]   ;;  %v24430_v41 = vld [vmem:[#allocation19 + $0x180] ss:$8 sps:$4 sm:$0xff]  }
 0xec6   : > { %v12597_v30 = vmax.f32 %v12347_v55, %v12510_v31  ;;  %v12599_v40 = vmax.f32 %v12424_v49, %v12587_v36  ;;  %v24433_v55 = vld [vmem:[#allocation19 + $0x380] ss:$8 sps:$4 sm:$0xff]   ;;  %v24438_v49 = vld [vmem:[#allocation19 + $0x194] ss:$8 sps:$4 sm:$0xff]   ;;  %v24447_v46 = vld [vmem:[#allocation19 + $0x3a4] ss:$8 sps:$4 sm:$0xff]  }
 0xec7   : > { %v24442_v16 = vld [vmem:[#allocation19 + $0x1a0] ss:$8 sps:$4 sm:$0xff]   ;;  %v24450_v31 = vld [vmem:[#allocation19 + $0x1b4] ss:$8 sps:$4 sm:$0xff]   ;;  %v24448_v36 = vld [vmem:[#allocation19 + $0x1b0] ss:$8 sps:$4 sm:$0xff]  }
 0xec8   : > { %v12514_v6 = vpop.f32.mrb[130].mxu0  ;;  %v12591_v2 = vpop.f32.mrb[130].mxu1 }
 0xec9   : > { %v12600_v33 = vmax.f32 %v12351_v58, %v12514_v6  ;;  %v12516_v50 = vpop.f32.mrb[131].mxu0  ;;  %v12602_v26 = vmax.f32 %v12428_v48, %v12591_v2  ;;  %v12593_v29 = vpop.f32.mrb[131].mxu1  ;;  %v24441_v58 = vld [vmem:[#allocation19 + $0x394] ss:$8 sps:$4 sm:$0xff]   ;;  %v24436_v48 = vld [vmem:[#allocation19 + $0x190] ss:$8 sps:$4 sm:$0xff]  }
 0xeca   : > { %v12601_v15 = vmax.f32 %v12353_v60, %v12516_v50  ;;  %v12603_v38 = vmax.f32 %v12430_v59, %v12593_v29  ;;  %v24439_v60 = vld [vmem:[#allocation19 + $0x390] ss:$8 sps:$4 sm:$0xff]   ;;  %v24444_v59 = vld [vmem:[#allocation19 + $0x1a4] ss:$8 sps:$4 sm:$0xff]   ;;  %v24454_v2 = vld [vmem:[#allocation19 + $0x1c0] ss:$8 sps:$4 sm:$0xff]  }
 0xecb   : > { %v12604_v45 = vpack.c.bf16 %v12600_v33, %v12596_v61  ;;  %v27727_v1 = vpack.c.bf16 %v12602_v26, %v12598_v17  ;;  %v24445_v61 = vld [vmem:[#allocation19 + $0x3a0] ss:$8 sps:$4 sm:$0xff]   ;;  %v24453_v17 = vld [vmem:[#allocation19 + $0x3b4] ss:$8 sps:$4 sm:$0xff]   ;;  %v24459_v6 = vld [vmem:[#allocation19 + $0x3c4] ss:$8 sps:$4 sm:$0xff]  }
 0xecc   : > { %v12605_v51 = vpack.c.bf16 %v12601_v15, %v12597_v30  ;;  %v12607_v11 = vpack.c.bf16 %v12603_v38, %v12599_v40  ;;  %v24451_v30 = vld [vmem:[#allocation19 + $0x3b0] ss:$8 sps:$4 sm:$0xff]   ;;  %v24456_v40 = vld [vmem:[#allocation19 + $0x1c4] ss:$8 sps:$4 sm:$0xff]   ;;  %v24457_v33 = vld [vmem:[#allocation19 + $0x3c0] ss:$8 sps:$4 sm:$0xff]  }
 0xecd   : > { %v24462_v50 = vld [vmem:[#allocation19 + $0x1d4] ss:$8 sps:$4 sm:$0xff]   ;;  %v24460_v29 = vld [vmem:[#allocation19 + $0x1d0] ss:$8 sps:$4 sm:$0xff]   ;;  %v24468_v38 = vld [vmem:[#allocation19 + $0x1e4] ss:$8 sps:$4 sm:$0xff]  }
 0xece   : > { %13024 = vmatprep.mubr.bf16.mxu0 %v12605_v51  ;;  %13495 = vmatprep.mubr.bf16.mxu1 %v12605_v51  ;;  %v24465_v26 = vld [vmem:[#allocation19 + $0x3d4] ss:$8 sps:$4 sm:$0xff]   ;;  %v24463_v15 = vld [vmem:[#allocation19 + $0x3d0] ss:$8 sps:$4 sm:$0xff]   ;;  %v24466_v51 = vld [vmem:[#allocation19 + $0x1e0] ss:$8 sps:$4 sm:$0xff]  }
 0xecf   : > { %13025 = vmatmul.mubr.bf16.vlgmr.msra.gmra.mrb[132].mxu0 %v12604_v45  ;;  %13496 = vmatmul.mubr.bf16.vlgmr.msra.gmra.mrb[132].mxu1 %v12604_v45  ;;  %v24471_v45 = vld [vmem:[#allocation19 + $0x3e4] ss:$8 sps:$4 sm:$0xff]  }
 0xed0   : > { %13036 = vmatpush1.bf16.msra.mxu0 %v24382_v3  ;;  %13507 = vmatpush1.bf16.msra.mxu1 %v24385_v8  ;;  %v24469_v3 = vld [vmem:[#allocation19 + $0x3e0] ss:$8 sps:$4 sm:$0xff]   ;;  %v24474_v8 = vld [vmem:[#allocation19 + $0x1f4] ss:$8 sps:$4 sm:$0xff]  }
 0xed1   : > { %13037 = vmatprep.subr.bf16.mxu0 %v24390_v35  ;;  %13508 = vmatprep.subr.bf16.mxu1 %v24393_v0  ;;  %v24472_v35 = vld [vmem:[#allocation19 + $0x1f0] ss:$8 sps:$4 sm:$0xff]  }
 0xed2   : > { %13067 = vmatprep.mubr.bf16.mxu0 %v12607_v11  ;;  %13538 = vmatprep.mubr.bf16.mxu1 %v12607_v11  ;;  %v24477_v11 = vld [vmem:[#allocation19 + $0x3f4] ss:$8 sps:$4 sm:$0xff]   ;;  %v24475_v0 = vld [vmem:[#allocation19 + $0x3f0] ss:$8 sps:$4 sm:$0xff]  }
 0xed4   : > { %13038 = vmatpush1.bf16.msra.mxu0 %v24388_v24  ;;  %13509 = vmatpush1.bf16.msra.mxu1 %v24391_v39 }
 0xed5   : > { %13039 = vmatprep.subr.bf16.mxu0 %v24396_v37  ;;  %13510 = vmatprep.subr.bf16.mxu1 %v24399_v5 }
 0xed8   : > { %13040 = vmatpush1.bf16.msra.mxu0 %v24394_v54  ;;  %13511 = vmatpush1.bf16.msra.mxu1 %v24397_v62 }
 0xed9   : > { %13041 = vmatprep.subr.bf16.mxu0 %v24402_v42  ;;  %13512 = vmatprep.subr.bf16.mxu1 %v24405_v14 }
 0xedc   : > { %13042 = vmatpush1.bf16.msra.mxu0 %v24400_v4  ;;  %13513 = vmatpush1.bf16.msra.mxu1 %v24403_v56 }
 0xedd   : > { %13043 = vmatprep.subr.bf16.mxu0 %v24408_v57  ;;  %13514 = vmatprep.subr.bf16.mxu1 %v24411_v34 }
 0xee0   : > { %13044 = vmatpush1.bf16.msra.mxu0 %v24406_v43  ;;  %13515 = vmatpush1.bf16.msra.mxu1 %v24409_v18 }
 0xee1   : > { %13045 = vmatprep.subr.bf16.mxu0 %v24414_v27  ;;  %13516 = vmatprep.subr.bf16.mxu1 %v24417_v9  ;;  %v24483_v27 = vld [vmem:[#allocation22 + $0x20c] ss:$16 sps:$4 sm:$0xff]   ;;  %v13706_v9 = vld [vmem:[#allocation20 + $0x10] sm:$0xff] }
 0xee4   : > { %13046 = vmatpush1.bf16.msra.mxu0 %v24412_v32  ;;  %13517 = vmatpush1.bf16.msra.mxu1 %v24415_v7  ;;  %v13553_v32 = vld [vmem:[#allocation20] sm:$0xff] }
 0xee5   : > { %13047 = vmatprep.subr.bf16.mxu0 %v24420_v28  ;;  %13518 = vmatprep.subr.bf16.mxu1 %v24423_v63  ;;  %v24478_v7 = vld [vmem:[#allocation22 + $0x200] ss:$16 sps:$4 sm:$0xff]   ;;  %v24481_v28 = vld [vmem:[#allocation22 + $0x208] ss:$16 sps:$4 sm:$0xff]   ;;  %v24486_v63 = vld [vmem:[#allocation22 + $0x224] ss:$16 sps:$4 sm:$0xff]  }
 0xee8   : > { %13048 = vmatpush1.bf16.msra.mxu0 %v24418_v19  ;;  %13519 = vmatpush1.bf16.msra.mxu1 %v24421_v13  ;;  %v24489_v19 = vld [vmem:[#allocation22 + $0x22c] ss:$16 sps:$4 sm:$0xff]  }
 0xee9   : > { %13049 = vmatprep.subr.bf16.mxu0 %v24426_v10  ;;  %13520 = vmatprep.subr.bf16.mxu1 %v24429_v12  ;;  %v13707_v13 = vld [vmem:[#allocation20 + $0x18] sm:$0xff]  ;;  %v13554_v10 = vld [vmem:[#allocation20 + $0x8] sm:$0xff]  ;;  %v24484_v12 = vld [vmem:[#allocation22 + $0x220] ss:$16 sps:$4 sm:$0xff]  }
 0xeec   : > { %13050 = vmatpush1.bf16.msra.mxu0 %v24424_v47  ;;  %13521 = vmatpush1.bf16.msra.mxu1 %v24427_v25  ;;  %v24487_v47 = vld [vmem:[#allocation22 + $0x228] ss:$16 sps:$4 sm:$0xff]   ;;  %v24492_v25 = vld [vmem:[#allocation22 + $0x244] ss:$16 sps:$4 sm:$0xff]  }
 0xeed   : > { %13051 = vmatprep.subr.bf16.mxu0 %v24432_v21  ;;  %13522 = vmatprep.subr.bf16.mxu1 %v24435_v52  ;;  %v24495_v21 = vld [vmem:[#allocation22 + $0x24c] ss:$16 sps:$4 sm:$0xff]   ;;  %v24490_v52 = vld [vmem:[#allocation22 + $0x240] ss:$16 sps:$4 sm:$0xff]  }
 0xef0   : > { %13052 = vmatpush1.bf16.msra.mxu0 %v24430_v41  ;;  %13523 = vmatpush1.bf16.msra.mxu1 %v24433_v55  ;;  %v24493_v41 = vld [vmem:[#allocation22 + $0x248] ss:$16 sps:$4 sm:$0xff]   ;;  %v24498_v55 = vld [vmem:[#allocation22 + $0x264] ss:$16 sps:$4 sm:$0xff]  }
 0xef1   : > { %13053 = vmatprep.subr.bf16.mxu0 %v24438_v49  ;;  %13524 = vmatprep.subr.bf16.mxu1 %v24441_v58  ;;  %v24501_v49 = vld [vmem:[#allocation22 + $0x26c] ss:$16 sps:$4 sm:$0xff]   ;;  %v24496_v58 = vld [vmem:[#allocation22 + $0x260] ss:$16 sps:$4 sm:$0xff]  }
 0xef4   : > { %13054 = vmatpush1.bf16.msra.mxu0 %v24436_v48  ;;  %13525 = vmatpush1.bf16.msra.mxu1 %v24439_v60  ;;  %v24499_v48 = vld [vmem:[#allocation22 + $0x268] ss:$16 sps:$4 sm:$0xff]   ;;  %v24504_v60 = vld [vmem:[#allocation22 + $0x284] ss:$16 sps:$4 sm:$0xff]  }
 0xef5   : > { %13055 = vmatprep.subr.bf16.mxu0 %v24444_v59  ;;  %13526 = vmatprep.subr.bf16.mxu1 %v24447_v46  ;;  %v24507_v59 = vld [vmem:[#allocation22 + $0x28c] ss:$16 sps:$4 sm:$0xff]   ;;  %v24502_v46 = vld [vmem:[#allocation22 + $0x280] ss:$16 sps:$4 sm:$0xff]  }
 0xef8   : > { %13056 = vmatpush1.bf16.msra.mxu0 %v24442_v16  ;;  %13527 = vmatpush1.bf16.msra.mxu1 %v24445_v61  ;;  %v24505_v16 = vld [vmem:[#allocation22 + $0x288] ss:$16 sps:$4 sm:$0xff]   ;;  %v24510_v61 = vld [vmem:[#allocation22 + $0x2a4] ss:$16 sps:$4 sm:$0xff]  }
 0xef9   : > { %13057 = vmatprep.subr.bf16.mxu0 %v24450_v31  ;;  %13528 = vmatprep.subr.bf16.mxu1 %v24453_v17  ;;  %v24513_v31 = vld [vmem:[#allocation22 + $0x2ac] ss:$16 sps:$4 sm:$0xff]   ;;  %v24508_v17 = vld [vmem:[#allocation22 + $0x2a0] ss:$16 sps:$4 sm:$0xff]  }
 0xefc   : > { %13058 = vmatpush1.bf16.msra.mxu0 %v24448_v36  ;;  %13529 = vmatpush1.bf16.msra.mxu1 %v24451_v30  ;;  %v24511_v36 = vld [vmem:[#allocation22 + $0x2a8] ss:$16 sps:$4 sm:$0xff]   ;;  %v24516_v30 = vld [vmem:[#allocation22 + $0x2c4] ss:$16 sps:$4 sm:$0xff]  }
 0xefd   : > { %13059 = vmatprep.subr.bf16.mxu0 %v24456_v40  ;;  %13530 = vmatprep.subr.bf16.mxu1 %v24459_v6  ;;  %v24519_v40 = vld [vmem:[#allocation22 + $0x2cc] ss:$16 sps:$4 sm:$0xff]   ;;  %v24514_v6 = vld [vmem:[#allocation22 + $0x2c0] ss:$16 sps:$4 sm:$0xff]  }
 0xf00   : > { %13060 = vmatpush1.bf16.msra.mxu0 %v24454_v2  ;;  %13531 = vmatpush1.bf16.msra.mxu1 %v24457_v33  ;;  %v24517_v2 = vld [vmem:[#allocation22 + $0x2c8] ss:$16 sps:$4 sm:$0xff]   ;;  %v24522_v33 = vld [vmem:[#allocation22 + $0x2e4] ss:$16 sps:$4 sm:$0xff]  }
 0xf01   : > { %13061 = vmatprep.subr.bf16.mxu0 %v24462_v50  ;;  %13532 = vmatprep.subr.bf16.mxu1 %v24465_v26  ;;  %v24525_v50 = vld [vmem:[#allocation22 + $0x2ec] ss:$16 sps:$4 sm:$0xff]   ;;  %v24520_v26 = vld [vmem:[#allocation22 + $0x2e0] ss:$16 sps:$4 sm:$0xff]  }
 0xf04   : > { %13062 = vmatpush1.bf16.msra.mxu0 %v24460_v29  ;;  %13533 = vmatpush1.bf16.msra.mxu1 %v24463_v15  ;;  %v24523_v29 = vld [vmem:[#allocation22 + $0x2e8] ss:$16 sps:$4 sm:$0xff]   ;;  %v24528_v15 = vld [vmem:[#allocation22 + $0x304] ss:$16 sps:$4 sm:$0xff]  }
 0xf05   : > { %13063 = vmatprep.subr.bf16.mxu0 %v24468_v38  ;;  %13534 = vmatprep.subr.bf16.mxu1 %v24471_v45  ;;  %v24531_v38 = vld [vmem:[#allocation22 + $0x30c] ss:$16 sps:$4 sm:$0xff]   ;;  %v24526_v45 = vld [vmem:[#allocation22 + $0x300] ss:$16 sps:$4 sm:$0xff]  }
 0xf08   : > { %13064 = vmatpush1.bf16.msra.mxu0 %v24466_v51  ;;  %13535 = vmatpush1.bf16.msra.mxu1 %v24469_v3  ;;  %v24529_v51 = vld [vmem:[#allocation22 + $0x308] ss:$16 sps:$4 sm:$0xff]   ;;  %v24534_v3 = vld [vmem:[#allocation22 + $0x324] ss:$16 sps:$4 sm:$0xff]  }
 0xf09   : > { %13065 = vmatprep.subr.bf16.mxu0 %v24474_v8  ;;  %13536 = vmatprep.subr.bf16.mxu1 %v24477_v11  ;;  %v24537_v8 = vld [vmem:[#allocation22 + $0x32c] ss:$16 sps:$4 sm:$0xff]   ;;  %v24532_v11 = vld [vmem:[#allocation22 + $0x320] ss:$16 sps:$4 sm:$0xff]  }
 0xf0c   : > { %13066 = vmatpush1.bf16.msra.mxu0 %v24472_v35  ;;  %13537 = vmatpush1.bf16.msra.mxu1 %v24475_v0  ;;  %v24535_v35 = vld [vmem:[#allocation22 + $0x328] ss:$16 sps:$4 sm:$0xff]   ;;  %v24540_v0 = vld [vmem:[#allocation22 + $0x344] ss:$16 sps:$4 sm:$0xff]  }
 0xf0f   : > { %13068 = vmatmul.mubr.bf16.vlgmr.msra.gmra.mrb[132].mxu0 %v27727_v1  ;;  %13539 = vmatmul.mubr.bf16.vlgmr.msra.gmra.mrb[132].mxu1 %v27727_v1  ;;  %v24480_v1 = vld [vmem:[#allocation22 + $0x204] ss:$16 sps:$4 sm:$0xff]  }
 0xf10   : > { %13778 = vmatprep.mubr.f32.mxu1 %v26127_v20  ;;  %13626 = vmatprep.mubr.f32.mxu0 %v26127_v20 }
 0xfe2   : > { %v13069_v24 = vpop.f32.mrb[132].mxu0  ;;  %v13540_v39 = vpop.f32.mrb[132].mxu1 }
 0xfe3   : > { %v13549_v37 = vmax.f32 %v13069_v24, %v13540_v39  ;;  %v13071_v5 = vpop.f32.mrb[133].mxu0  ;;  %v13542_v54 = vpop.f32.mrb[133].mxu1  ;;  %v24543_v24 = vld [vmem:[#allocation22 + $0x34c] ss:$16 sps:$4 sm:$0xff]   ;;  %v24538_v39 = vld [vmem:[#allocation22 + $0x340] ss:$16 sps:$4 sm:$0xff]  }
 0xfe4   : > { %v13550_v62 = vmax.f32 %v13071_v5, %v13542_v54  ;;  %v13073_v42 = vpop.f32.mrb[134].mxu0  ;;  %v13544_v14 = vpop.f32.mrb[134].mxu1  ;;  %v24546_v5 = vld [vmem:[#allocation22 + $0x364] ss:$16 sps:$4 sm:$0xff]   ;;  %v24549_v54 = vld [vmem:[#allocation22 + $0x36c] ss:$16 sps:$4 sm:$0xff]  }
 0xfe5   : > { %v13551_v4 = vmax.f32 %v13073_v42, %v13544_v14  ;;  %v13075_v56 = vpop.f32.mrb[135].mxu0  ;;  %v13546_v57 = vpop.f32.mrb[135].mxu1  ;;  %v24547_v42 = vld [vmem:[#allocation22 + $0x368] ss:$16 sps:$4 sm:$0xff]   ;;  %v24552_v14 = vld [vmem:[#allocation22 + $0x384] ss:$16 sps:$4 sm:$0xff]  }
 0xfe6   : > { %v13552_v34 = vmax.f32 %v13075_v56, %v13546_v57  ;;  %v24550_v56 = vld [vmem:[#allocation22 + $0x380] ss:$16 sps:$4 sm:$0xff]   ;;  %v24553_v57 = vld [vmem:[#allocation22 + $0x388] ss:$16 sps:$4 sm:$0xff]  }
 0xfe7   : > { %v27733_v43 = vpack.c.bf16 %v13551_v4, %v13549_v37  ;;  %v24541_v37 = vld [vmem:[#allocation22 + $0x348] ss:$16 sps:$4 sm:$0xff]   ;;  %v24555_v4 = vld [vmem:[#allocation22 + $0x38c] ss:$16 sps:$4 sm:$0xff]  }
 0xfe8   : > { %v27735_v18 = vpack.c.bf16 %v13552_v34, %v13550_v62  ;;  %v24544_v62 = vld [vmem:[#allocation22 + $0x360] ss:$16 sps:$4 sm:$0xff]   ;;  %v24558_v34 = vld [vmem:[#allocation22 + $0x3a4] ss:$16 sps:$4 sm:$0xff]  }
 0xfea   : > { %22221 = vmatprep.subr.bf16.mxu0 %v27735_v18  ;;  %22225 = vmatprep.subr.bf16.mxu1 %v27735_v18 }
 0xfeb   : > { %22223 = vmatpush1.bf16.msra.mxu0 %v27733_v43  ;;  %22227 = vmatpush1.bf16.msra.mxu1 %v27733_v43 }
 0xfec   : > { %14178 = vmatprep.subr.bf16.mxu0 %v24480_v1  ;;  %14221 = vmatprep.subr.bf16.mxu1 %v24483_v27  ;;  %v24561_v1 = vld [vmem:[#allocation22 + $0x3ac] ss:$16 sps:$4 sm:$0xff]   ;;  %v24556_v27 = vld [vmem:[#allocation22 + $0x3a0] ss:$16 sps:$4 sm:$0xff]  }
 0xfee   : > { %20886 = vmatmul.mubr.msk.f32.vlgmr.msra.gmra.mrb[136].mxu1 %vm13555_vm2, %v13706_v9  ;;  %20884 = vmatmul.mubr.msk.f32.vlgmr.msra.gmra.mrb[136].mxu0 %vm13555_vm2, %v13553_v32  ;;  %v24559_v9 = vld [vmem:[#allocation22 + $0x3a8] ss:$16 sps:$4 sm:$0xff]   ;;  %v24564_v32 = vld [vmem:[#allocation22 + $0x3c4] ss:$16 sps:$4 sm:$0xff]  }
 0xfef   : > { %13784 = vmatprep.mubr.f32.mxu1 %v26127_v20  ;;  %13632 = vmatprep.mubr.f32.mxu0 %v26127_v20 }
 0xff0   : > { %14179 = vmatpush1.bf16.msra.mxu0 %v24478_v7  ;;  %14222 = vmatpush1.bf16.msra.mxu1 %v24481_v28  ;;  %v24567_v7 = vld [vmem:[#allocation22 + $0x3cc] ss:$16 sps:$4 sm:$0xff]   ;;  %v24562_v28 = vld [vmem:[#allocation22 + $0x3c0] ss:$16 sps:$4 sm:$0xff]  }
 0xff1   : > { %14180 = vmatprep.subr.bf16.mxu0 %v24486_v63  ;;  %14223 = vmatprep.subr.bf16.mxu1 %v24489_v19  ;;  %v24565_v63 = vld [vmem:[#allocation22 + $0x3c8] ss:$16 sps:$4 sm:$0xff]   ;;  %v24570_v19 = vld [vmem:[#allocation22 + $0x3e4] ss:$16 sps:$4 sm:$0xff]  }
 0xff2   : > { %20887 = vmatmul.mubr.msk.f32.gmra.mrb[138].mxu1 %vm13555_vm2, %v13707_v13  ;;  %20885 = vmatmul.mubr.msk.f32.gmra.mrb[138].mxu0 %vm13555_vm2, %v13554_v10  ;;  %v24573_v13 = vld [vmem:[#allocation22 + $0x3ec] ss:$16 sps:$4 sm:$0xff]   ;;  %v24568_v10 = vld [vmem:[#allocation22 + $0x3e0] ss:$16 sps:$4 sm:$0xff]  }
 0xff4   : > { %14181 = vmatpush1.bf16.msra.mxu0 %v24484_v12  ;;  %14224 = vmatpush1.bf16.msra.mxu1 %v24487_v47  ;;  %v24571_v12 = vld [vmem:[#allocation22 + $0x3e8] ss:$16 sps:$4 sm:$0xff]   ;;  %v24576_v47 = vld [vmem:[#allocation22 + $0x4] ss:$16 sps:$4 sm:$0xff]  }
 0xff5   : > { %14182 = vmatprep.subr.bf16.mxu0 %v24492_v25  ;;  %14225 = vmatprep.subr.bf16.mxu1 %v24495_v21  ;;  %v24579_v25 = vld [vmem:[#allocation22 + $0xc] ss:$16 sps:$4 sm:$0xff]  }
 0xff8   : > { %14183 = vmatpush1.bf16.msra.mxu0 %v24490_v52  ;;  %14226 = vmatpush1.bf16.msra.mxu1 %v24493_v41 }
 0xff9   : > { %14184 = vmatprep.subr.bf16.mxu0 %v24498_v55  ;;  %14227 = vmatprep.subr.bf16.mxu1 %v24501_v49 }
 0xffc   : > { %14185 = vmatpush1.bf16.msra.mxu0 %v24496_v58  ;;  %14228 = vmatpush1.bf16.msra.mxu1 %v24499_v48 }
 0xffd   : > { %14186 = vmatprep.subr.bf16.mxu0 %v24504_v60  ;;  %14229 = vmatprep.subr.bf16.mxu1 %v24507_v59 }
0x1000   : > { %14187 = vmatpush1.bf16.msra.mxu0 %v24502_v46  ;;  %14230 = vmatpush1.bf16.msra.mxu1 %v24505_v16 }
0x1001   : > { %14188 = vmatprep.subr.bf16.mxu0 %v24510_v61  ;;  %14231 = vmatprep.subr.bf16.mxu1 %v24513_v31  ;;  %v24574_v61 = vld [vmem:[#allocation22] ss:$16 sps:$4 sm:$0xff]   ;;  %v24577_v31 = vld [vmem:[#allocation22 + $0x8] ss:$16 sps:$4 sm:$0xff]  }
0x1004   : > { %14189 = vmatpush1.bf16.msra.mxu0 %v24508_v17  ;;  %14232 = vmatpush1.bf16.msra.mxu1 %v24511_v36  ;;  %v24582_v36 = vld [vmem:[#allocation22 + $0x24] ss:$16 sps:$4 sm:$0xff]  }
0x1005   : > { %14190 = vmatprep.subr.bf16.mxu0 %v24516_v30  ;;  %14233 = vmatprep.subr.bf16.mxu1 %v24519_v40  ;;  %v24585_v30 = vld [vmem:[#allocation22 + $0x2c] ss:$16 sps:$4 sm:$0xff]   ;;  %v24580_v40 = vld [vmem:[#allocation22 + $0x20] ss:$16 sps:$4 sm:$0xff]  }
0x1008   : > { %14191 = vmatpush1.bf16.msra.mxu0 %v24514_v6  ;;  %14234 = vmatpush1.bf16.msra.mxu1 %v24517_v2  ;;  %v24583_v6 = vld [vmem:[#allocation22 + $0x28] ss:$16 sps:$4 sm:$0xff]   ;;  %v24588_v2 = vld [vmem:[#allocation22 + $0x44] ss:$16 sps:$4 sm:$0xff]  }
0x1009   : > { %14192 = vmatprep.subr.bf16.mxu0 %v24522_v33  ;;  %14235 = vmatprep.subr.bf16.mxu1 %v24525_v50  ;;  %v24591_v33 = vld [vmem:[#allocation22 + $0x4c] ss:$16 sps:$4 sm:$0xff]   ;;  %v24586_v50 = vld [vmem:[#allocation22 + $0x40] ss:$16 sps:$4 sm:$0xff]  }
0x100c   : > { %14193 = vmatpush1.bf16.msra.mxu0 %v24520_v26  ;;  %14236 = vmatpush1.bf16.msra.mxu1 %v24523_v29  ;;  %v24589_v26 = vld [vmem:[#allocation22 + $0x48] ss:$16 sps:$4 sm:$0xff]   ;;  %v24594_v29 = vld [vmem:[#allocation22 + $0x64] ss:$16 sps:$4 sm:$0xff]  }
0x100d   : > { %14194 = vmatprep.subr.bf16.mxu0 %v24528_v15  ;;  %14237 = vmatprep.subr.bf16.mxu1 %v24531_v38  ;;  %v24597_v15 = vld [vmem:[#allocation22 + $0x6c] ss:$16 sps:$4 sm:$0xff]   ;;  %v24592_v38 = vld [vmem:[#allocation22 + $0x60] ss:$16 sps:$4 sm:$0xff]  }
0x1010   : > { %14195 = vmatpush1.bf16.msra.mxu0 %v24526_v45  ;;  %14238 = vmatpush1.bf16.msra.mxu1 %v24529_v51  ;;  %v24595_v45 = vld [vmem:[#allocation22 + $0x68] ss:$16 sps:$4 sm:$0xff]   ;;  %v24600_v51 = vld [vmem:[#allocation22 + $0x84] ss:$16 sps:$4 sm:$0xff]  }
0x1011   : > { %14196 = vmatprep.subr.bf16.mxu0 %v24534_v3  ;;  %14239 = vmatprep.subr.bf16.mxu1 %v24537_v8  ;;  %v24603_v3 = vld [vmem:[#allocation22 + $0x8c] ss:$16 sps:$4 sm:$0xff]   ;;  %v24598_v8 = vld [vmem:[#allocation22 + $0x80] ss:$16 sps:$4 sm:$0xff]  }
0x1014   : > { %14197 = vmatpush1.bf16.msra.mxu0 %v24532_v11  ;;  %14240 = vmatpush1.bf16.msra.mxu1 %v24535_v35  ;;  %v24601_v11 = vld [vmem:[#allocation22 + $0x88] ss:$16 sps:$4 sm:$0xff]   ;;  %v24606_v35 = vld [vmem:[#allocation22 + $0xa4] ss:$16 sps:$4 sm:$0xff]  }
0x1015   : > { %14198 = vmatprep.subr.bf16.mxu0 %v24540_v0  ;;  %14241 = vmatprep.subr.bf16.mxu1 %v24543_v24  ;;  %v24609_v0 = vld [vmem:[#allocation22 + $0xac] ss:$16 sps:$4 sm:$0xff]   ;;  %v24604_v24 = vld [vmem:[#allocation22 + $0xa0] ss:$16 sps:$4 sm:$0xff]  }
0x1018   : > { %14199 = vmatpush1.bf16.msra.mxu0 %v24538_v39  ;;  %14242 = vmatpush1.bf16.msra.mxu1 %v24541_v37  ;;  %v24607_v39 = vld [vmem:[#allocation22 + $0xa8] ss:$16 sps:$4 sm:$0xff]   ;;  %v24612_v37 = vld [vmem:[#allocation22 + $0xc4] ss:$16 sps:$4 sm:$0xff]  }
0x1019   : > { %14200 = vmatprep.subr.bf16.mxu0 %v24546_v5  ;;  %14243 = vmatprep.subr.bf16.mxu1 %v24549_v54  ;;  %v24615_v5 = vld [vmem:[#allocation22 + $0xcc] ss:$16 sps:$4 sm:$0xff]   ;;  %v24610_v54 = vld [vmem:[#allocation22 + $0xc0] ss:$16 sps:$4 sm:$0xff]  }
0x101c   : > { %14201 = vmatpush1.bf16.msra.mxu0 %v24544_v62  ;;  %14244 = vmatpush1.bf16.msra.mxu1 %v24547_v42  ;;  %v24613_v62 = vld [vmem:[#allocation22 + $0xc8] ss:$16 sps:$4 sm:$0xff]   ;;  %v24618_v42 = vld [vmem:[#allocation22 + $0xe4] ss:$16 sps:$4 sm:$0xff]  }
0x101d   : > { %14202 = vmatprep.subr.bf16.mxu0 %v24552_v14  ;;  %14245 = vmatprep.subr.bf16.mxu1 %v24555_v4  ;;  %v24621_v14 = vld [vmem:[#allocation22 + $0xec] ss:$16 sps:$4 sm:$0xff]   ;;  %v24616_v4 = vld [vmem:[#allocation22 + $0xe0] ss:$16 sps:$4 sm:$0xff]  }
0x1020   : > { %14203 = vmatpush1.bf16.msra.mxu0 %v24550_v56  ;;  %14246 = vmatpush1.bf16.msra.mxu1 %v24553_v57  ;;  %v24619_v56 = vld [vmem:[#allocation22 + $0xe8] ss:$16 sps:$4 sm:$0xff]   ;;  %v24624_v57 = vld [vmem:[#allocation22 + $0x104] ss:$16 sps:$4 sm:$0xff]  }
0x1021   : > { %14204 = vmatprep.subr.bf16.mxu0 %v24558_v34  ;;  %14247 = vmatprep.subr.bf16.mxu1 %v24561_v1  ;;  %v24627_v34 = vld [vmem:[#allocation22 + $0x10c] ss:$16 sps:$4 sm:$0xff]   ;;  %v24622_v1 = vld [vmem:[#allocation22 + $0x100] ss:$16 sps:$4 sm:$0xff]  }
0x1024   : > { %14205 = vmatpush1.bf16.msra.mxu0 %v24556_v27  ;;  %14248 = vmatpush1.bf16.msra.mxu1 %v24559_v9  ;;  %v24625_v27 = vld [vmem:[#allocation22 + $0x108] ss:$16 sps:$4 sm:$0xff]   ;;  %v24630_v9 = vld [vmem:[#allocation22 + $0x124] ss:$16 sps:$4 sm:$0xff]  }
0x1025   : > { %14206 = vmatprep.subr.bf16.mxu0 %v24564_v32  ;;  %14249 = vmatprep.subr.bf16.mxu1 %v24567_v7  ;;  %v24633_v32 = vld [vmem:[#allocation22 + $0x12c] ss:$16 sps:$4 sm:$0xff]   ;;  %v24628_v7 = vld [vmem:[#allocation22 + $0x120] ss:$16 sps:$4 sm:$0xff]  }
0x1028   : > { %14207 = vmatpush1.bf16.msra.mxu0 %v24562_v28  ;;  %14250 = vmatpush1.bf16.msra.mxu1 %v24565_v63  ;;  %v24631_v28 = vld [vmem:[#allocation22 + $0x128] ss:$16 sps:$4 sm:$0xff]   ;;  %v24636_v63 = vld [vmem:[#allocation22 + $0x144] ss:$16 sps:$4 sm:$0xff]  }
0x1029   : > { %14208 = vmatprep.subr.bf16.mxu0 %v24570_v19  ;;  %14251 = vmatprep.subr.bf16.mxu1 %v24573_v13  ;;  %v24639_v19 = vld [vmem:[#allocation22 + $0x14c] ss:$16 sps:$4 sm:$0xff]   ;;  %v24634_v13 = vld [vmem:[#allocation22 + $0x140] ss:$16 sps:$4 sm:$0xff]  }
0x102c   : > { %14209 = vmatpush1.bf16.msra.mxu0 %v24568_v10  ;;  %14252 = vmatpush1.bf16.msra.mxu1 %v24571_v12  ;;  %v24637_v10 = vld [vmem:[#allocation22 + $0x148] ss:$16 sps:$4 sm:$0xff]   ;;  %v24642_v12 = vld [vmem:[#allocation22 + $0x164] ss:$16 sps:$4 sm:$0xff]  }
0x102d   : > { %14584 = vmatprep.subr.bf16.mxu0 %v24576_v47  ;;  %14627 = vmatprep.subr.bf16.mxu1 %v24579_v25  ;;  %v24645_v47 = vld [vmem:[#allocation22 + $0x16c] ss:$16 sps:$4 sm:$0xff]   ;;  %v24640_v25 = vld [vmem:[#allocation22 + $0x160] ss:$16 sps:$4 sm:$0xff]  }
0x10c1   : > { %v13780_v21 = vpop.f32.mrb[136].mxu1  ;;  %v13628_v52 = vpop.f32.mrb[136].mxu0 }
0x10c2   : > { %v13782_v41 = vpop.f32.mrb[137].mxu1  ;;  %v13630_v55 = vpop.f32.mrb[137].mxu0 }
0x10c5   : > { %v13786_v49 = vpop.f32.mrb[138].mxu1  ;;  %v13634_v58 = vpop.f32.mrb[138].mxu0 }
0x10c6   : > { %v13791_v48 = vpack.c.bf16 %v13786_v49, %v13780_v21  ;;  %v13788_v60 = vpop.f32.mrb[139].mxu1  ;;  %v27747_v59 = vpack.c.bf16 %v13634_v58, %v13628_v52  ;;  %v13636_v46 = vpop.f32.mrb[139].mxu0  ;;  %v24643_v21 = vld [vmem:[#allocation22 + $0x168] ss:$16 sps:$4 sm:$0xff]   ;;  %v24648_v52 = vld [vmem:[#allocation22 + $0x184] ss:$16 sps:$4 sm:$0xff]  }
0x10c7   : > { %v13792_v16 = vpack.c.bf16 %v13788_v60, %v13782_v41  ;;  %v13640_v17 = vpack.c.bf16 %v13636_v46, %v13630_v55  ;;  %v24651_v41 = vld [vmem:[#allocation22 + $0x18c] ss:$16 sps:$4 sm:$0xff]   ;;  %v24646_v55 = vld [vmem:[#allocation22 + $0x180] ss:$16 sps:$4 sm:$0xff]   ;;  %v24649_v49 = vld [vmem:[#allocation22 + $0x188] ss:$16 sps:$4 sm:$0xff]  }
0x10c8   : > { %v24654_v58 = vld [vmem:[#allocation22 + $0x1a4] ss:$16 sps:$4 sm:$0xff]   ;;  %v24652_v60 = vld [vmem:[#allocation22 + $0x1a0] ss:$16 sps:$4 sm:$0xff]   ;;  %v24655_v46 = vld [vmem:[#allocation22 + $0x1a8] ss:$16 sps:$4 sm:$0xff]  }
0x10c9   : > { %14210 = vmatprep.mubr.bf16.mxu0 %v13792_v16  ;;  %14253 = vmatprep.mubr.bf16.mxu1 %v13792_v16  ;;  %v24660_v16 = vld [vmem:[#allocation22 + $0x1c4] ss:$16 sps:$4 sm:$0xff]  }
0x10ca   : > { %14211 = vmatmul.mubr.bf16.vlgmr.msra.gmra.mrb[140].mxu0 %v13791_v48  ;;  %14254 = vmatmul.mubr.bf16.vlgmr.msra.gmra.mrb[140].mxu1 %v13791_v48  ;;  %v24657_v48 = vld [vmem:[#allocation22 + $0x1ac] ss:$16 sps:$4 sm:$0xff]  }
0x10cb   : > { %14585 = vmatpush1.bf16.msra.mxu0 %v24574_v61  ;;  %14628 = vmatpush1.bf16.msra.mxu1 %v24577_v31  ;;  %v24663_v61 = vld [vmem:[#allocation22 + $0x1cc] ss:$16 sps:$4 sm:$0xff]   ;;  %v24658_v31 = vld [vmem:[#allocation22 + $0x1c0] ss:$16 sps:$4 sm:$0xff]  }
0x10cc   : > { %14586 = vmatprep.subr.bf16.mxu0 %v24582_v36  ;;  %14629 = vmatprep.subr.bf16.mxu1 %v24585_v30  ;;  %v24666_v36 = vld [vmem:[#allocation22 + $0x1e4] ss:$16 sps:$4 sm:$0xff]   ;;  %v24669_v30 = vld [vmem:[#allocation22 + $0x1ec] ss:$16 sps:$4 sm:$0xff]  }
0x10cd   : > { %14616 = vmatprep.mubr.bf16.mxu0 %v13640_v17  ;;  %14659 = vmatprep.mubr.bf16.mxu1 %v13640_v17  ;;  %v24661_v17 = vld [vmem:[#allocation22 + $0x1c8] ss:$16 sps:$4 sm:$0xff]  }
0x10cf   : > { %14587 = vmatpush1.bf16.msra.mxu0 %v24580_v40  ;;  %14630 = vmatpush1.bf16.msra.mxu1 %v24583_v6  ;;  %v24664_v40 = vld [vmem:[#allocation22 + $0x1e0] ss:$16 sps:$4 sm:$0xff]   ;;  %v24667_v6 = vld [vmem:[#allocation22 + $0x1e8] ss:$16 sps:$4 sm:$0xff]  }
0x10d0   : > { %14588 = vmatprep.subr.bf16.mxu0 %v24588_v2  ;;  %14631 = vmatprep.subr.bf16.mxu1 %v24591_v33  ;;  %v24675_v2 = vld [vmem:[#allocation22 + $0x40c] ss:$16 sps:$4 sm:$0xff]   ;;  %v24672_v33 = vld [vmem:[#allocation22 + $0x404] ss:$16 sps:$4 sm:$0xff]  }
0x10d3   : > { %14589 = vmatpush1.bf16.msra.mxu0 %v24586_v50  ;;  %14632 = vmatpush1.bf16.msra.mxu1 %v24589_v26  ;;  %v24673_v50 = vld [vmem:[#allocation22 + $0x408] ss:$16 sps:$4 sm:$0xff]   ;;  %v24681_v26 = vld [vmem:[#allocation22 + $0x42c] ss:$16 sps:$4 sm:$0xff]  }
0x10d4   : > { %14590 = vmatprep.subr.bf16.mxu0 %v24594_v29  ;;  %14633 = vmatprep.subr.bf16.mxu1 %v24597_v15  ;;  %v24679_v29 = vld [vmem:[#allocation22 + $0x428] ss:$16 sps:$4 sm:$0xff]   ;;  %v24687_v15 = vld [vmem:[#allocation22 + $0x44c] ss:$16 sps:$4 sm:$0xff]  }
0x10d7   : > { %14591 = vmatpush1.bf16.msra.mxu0 %v24592_v38  ;;  %14634 = vmatpush1.bf16.msra.mxu1 %v24595_v45  ;;  %v14671_v38 = vld [vmem:[#allocation20 + $0x20] sm:$0xff] }
0x10d8   : > { %14592 = vmatprep.subr.bf16.mxu0 %v24600_v51  ;;  %14635 = vmatprep.subr.bf16.mxu1 %v24603_v3  ;;  %v24670_v45 = vld [vmem:[#allocation22 + $0x400] ss:$16 sps:$4 sm:$0xff]   ;;  %v24685_v51 = vld [vmem:[#allocation22 + $0x448] ss:$16 sps:$4 sm:$0xff]   ;;  %v24693_v3 = vld [vmem:[#allocation22 + $0x46c] ss:$16 sps:$4 sm:$0xff]  }
0x10db   : > { %14593 = vmatpush1.bf16.msra.mxu0 %v24598_v8  ;;  %14636 = vmatpush1.bf16.msra.mxu1 %v24601_v11  ;;  %v24684_v8 = vld [vmem:[#allocation22 + $0x444] ss:$16 sps:$4 sm:$0xff]   ;;  %v24691_v11 = vld [vmem:[#allocation22 + $0x468] ss:$16 sps:$4 sm:$0xff]  }
0x10dc   : > { %14594 = vmatprep.subr.bf16.mxu0 %v24606_v35  ;;  %14637 = vmatprep.subr.bf16.mxu1 %v24609_v0  ;;  %v24699_v35 = vld [vmem:[#allocation22 + $0x48c] ss:$16 sps:$4 sm:$0xff]   ;;  %v24682_v0 = vld [vmem:[#allocation22 + $0x440] ss:$16 sps:$4 sm:$0xff]  }
0x10df   : > { %14595 = vmatpush1.bf16.msra.mxu0 %v24604_v24  ;;  %14638 = vmatpush1.bf16.msra.mxu1 %v24607_v39  ;;  %v24690_v24 = vld [vmem:[#allocation22 + $0x464] ss:$16 sps:$4 sm:$0xff]   ;;  %v24697_v39 = vld [vmem:[#allocation22 + $0x488] ss:$16 sps:$4 sm:$0xff]  }
0x10e0   : > { %14596 = vmatprep.subr.bf16.mxu0 %v24612_v37  ;;  %14639 = vmatprep.subr.bf16.mxu1 %v24615_v5  ;;  %v24705_v37 = vld [vmem:[#allocation22 + $0x4ac] ss:$16 sps:$4 sm:$0xff]   ;;  %v24688_v5 = vld [vmem:[#allocation22 + $0x460] ss:$16 sps:$4 sm:$0xff]  }
0x10e3   : > { %14597 = vmatpush1.bf16.msra.mxu0 %v24610_v54  ;;  %14640 = vmatpush1.bf16.msra.mxu1 %v24613_v62  ;;  %v24696_v54 = vld [vmem:[#allocation22 + $0x484] ss:$16 sps:$4 sm:$0xff]   ;;  %v24703_v62 = vld [vmem:[#allocation22 + $0x4a8] ss:$16 sps:$4 sm:$0xff]  }
0x10e4   : > { %14598 = vmatprep.subr.bf16.mxu0 %v24618_v42  ;;  %14641 = vmatprep.subr.bf16.mxu1 %v24621_v14  ;;  %v24711_v42 = vld [vmem:[#allocation22 + $0x4cc] ss:$16 sps:$4 sm:$0xff]   ;;  %v24694_v14 = vld [vmem:[#allocation22 + $0x480] ss:$16 sps:$4 sm:$0xff]  }
0x10e7   : > { %14599 = vmatpush1.bf16.msra.mxu0 %v24616_v4  ;;  %14642 = vmatpush1.bf16.msra.mxu1 %v24619_v56  ;;  %v24702_v4 = vld [vmem:[#allocation22 + $0x4a4] ss:$16 sps:$4 sm:$0xff]   ;;  %v24709_v56 = vld [vmem:[#allocation22 + $0x4c8] ss:$16 sps:$4 sm:$0xff]  }
0x10e8   : > { %14600 = vmatprep.subr.bf16.mxu0 %v24624_v57  ;;  %14643 = vmatprep.subr.bf16.mxu1 %v24627_v34  ;;  %v24717_v57 = vld [vmem:[#allocation22 + $0x4ec] ss:$16 sps:$4 sm:$0xff]   ;;  %v24700_v34 = vld [vmem:[#allocation22 + $0x4a0] ss:$16 sps:$4 sm:$0xff]  }
0x10eb   : > { %14601 = vmatpush1.bf16.msra.mxu0 %v24622_v1  ;;  %14644 = vmatpush1.bf16.msra.mxu1 %v24625_v27  ;;  %v24708_v1 = vld [vmem:[#allocation22 + $0x4c4] ss:$16 sps:$4 sm:$0xff]   ;;  %v24715_v27 = vld [vmem:[#allocation22 + $0x4e8] ss:$16 sps:$4 sm:$0xff]  }
0x10ec   : > { %14602 = vmatprep.subr.bf16.mxu0 %v24630_v9  ;;  %14645 = vmatprep.subr.bf16.mxu1 %v24633_v32  ;;  %v24723_v9 = vld [vmem:[#allocation22 + $0x50c] ss:$16 sps:$4 sm:$0xff]   ;;  %v24706_v32 = vld [vmem:[#allocation22 + $0x4c0] ss:$16 sps:$4 sm:$0xff]  }
0x10ef   : > { %14603 = vmatpush1.bf16.msra.mxu0 %v24628_v7  ;;  %14646 = vmatpush1.bf16.msra.mxu1 %v24631_v28  ;;  %v24714_v7 = vld [vmem:[#allocation22 + $0x4e4] ss:$16 sps:$4 sm:$0xff]   ;;  %v24721_v28 = vld [vmem:[#allocation22 + $0x508] ss:$16 sps:$4 sm:$0xff]  }
0x10f0   : > { %14604 = vmatprep.subr.bf16.mxu0 %v24636_v63  ;;  %14647 = vmatprep.subr.bf16.mxu1 %v24639_v19  ;;  %v24729_v63 = vld [vmem:[#allocation22 + $0x52c] ss:$16 sps:$4 sm:$0xff]   ;;  %v24712_v19 = vld [vmem:[#allocation22 + $0x4e0] ss:$16 sps:$4 sm:$0xff]  }
0x10f3   : > { %14605 = vmatpush1.bf16.msra.mxu0 %v24634_v13  ;;  %14648 = vmatpush1.bf16.msra.mxu1 %v24637_v10  ;;  %v24720_v13 = vld [vmem:[#allocation22 + $0x504] ss:$16 sps:$4 sm:$0xff]   ;;  %v24727_v10 = vld [vmem:[#allocation22 + $0x528] ss:$16 sps:$4 sm:$0xff]  }
0x10f4   : > { %14606 = vmatprep.subr.bf16.mxu0 %v24642_v12  ;;  %14649 = vmatprep.subr.bf16.mxu1 %v24645_v47  ;;  %v24735_v12 = vld [vmem:[#allocation22 + $0x54c] ss:$16 sps:$4 sm:$0xff]   ;;  %v24718_v47 = vld [vmem:[#allocation22 + $0x500] ss:$16 sps:$4 sm:$0xff]  }
0x10f7   : > { %14607 = vmatpush1.bf16.msra.mxu0 %v24640_v25  ;;  %14650 = vmatpush1.bf16.msra.mxu1 %v24643_v21  ;;  %v24726_v25 = vld [vmem:[#allocation22 + $0x524] ss:$16 sps:$4 sm:$0xff]   ;;  %v24733_v21 = vld [vmem:[#allocation22 + $0x548] ss:$16 sps:$4 sm:$0xff]  }
0x10f8   : > { %14608 = vmatprep.subr.bf16.mxu0 %v24648_v52  ;;  %14651 = vmatprep.subr.bf16.mxu1 %v24651_v41  ;;  %v24741_v52 = vld [vmem:[#allocation22 + $0x56c] ss:$16 sps:$4 sm:$0xff]   ;;  %v24724_v41 = vld [vmem:[#allocation22 + $0x520] ss:$16 sps:$4 sm:$0xff]  }
0x10fb   : > { %14609 = vmatpush1.bf16.msra.mxu0 %v24646_v55  ;;  %14652 = vmatpush1.bf16.msra.mxu1 %v24649_v49  ;;  %v24732_v55 = vld [vmem:[#allocation22 + $0x544] ss:$16 sps:$4 sm:$0xff]   ;;  %v24739_v49 = vld [vmem:[#allocation22 + $0x568] ss:$16 sps:$4 sm:$0xff]  }
0x10fc   : > { %14610 = vmatprep.subr.bf16.mxu0 %v24654_v58  ;;  %14653 = vmatprep.subr.bf16.mxu1 %v24657_v48  ;;  %v24747_v58 = vld [vmem:[#allocation22 + $0x58c] ss:$16 sps:$4 sm:$0xff]   ;;  %v24730_v48 = vld [vmem:[#allocation22 + $0x540] ss:$16 sps:$4 sm:$0xff]  }
0x10ff   : > { %14611 = vmatpush1.bf16.msra.mxu0 %v24652_v60  ;;  %14654 = vmatpush1.bf16.msra.mxu1 %v24655_v46  ;;  %v24738_v60 = vld [vmem:[#allocation22 + $0x564] ss:$16 sps:$4 sm:$0xff]   ;;  %v24745_v46 = vld [vmem:[#allocation22 + $0x588] ss:$16 sps:$4 sm:$0xff]  }
0x1100   : > { %14612 = vmatprep.subr.bf16.mxu0 %v24660_v16  ;;  %14655 = vmatprep.subr.bf16.mxu1 %v24663_v61  ;;  %v24753_v16 = vld [vmem:[#allocation22 + $0x5ac] ss:$16 sps:$4 sm:$0xff]   ;;  %v24736_v61 = vld [vmem:[#allocation22 + $0x560] ss:$16 sps:$4 sm:$0xff]  }
0x1103   : > { %14613 = vmatpush1.bf16.msra.mxu0 %v24658_v31  ;;  %14656 = vmatpush1.bf16.msra.mxu1 %v24661_v17  ;;  %v24744_v31 = vld [vmem:[#allocation22 + $0x584] ss:$16 sps:$4 sm:$0xff]   ;;  %v24751_v17 = vld [vmem:[#allocation22 + $0x5a8] ss:$16 sps:$4 sm:$0xff]  }
0x1104   : > { %14614 = vmatprep.subr.bf16.mxu0 %v24666_v36  ;;  %14657 = vmatprep.subr.bf16.mxu1 %v24669_v30  ;;  %v24742_v36 = vld [vmem:[#allocation22 + $0x580] ss:$16 sps:$4 sm:$0xff]   ;;  %v24750_v30 = vld [vmem:[#allocation22 + $0x5a4] ss:$16 sps:$4 sm:$0xff]  }
0x1107   : > { %14615 = vmatpush1.bf16.msra.mxu0 %v24664_v40  ;;  %14658 = vmatpush1.bf16.msra.mxu1 %v24667_v6  ;;  %v24748_v40 = vld [vmem:[#allocation22 + $0x5a0] ss:$16 sps:$4 sm:$0xff]   ;;  %v24756_v6 = vld [vmem:[#allocation22 + $0x5c4] ss:$16 sps:$4 sm:$0xff]  }
0x1108   : > { %22229 = vmatprep.subr.bf16.mxu0 %v27735_v18  ;;  %15186 = vmatprep.subr.bf16.mxu1 %v24675_v2  ;;  %v24678_v18 = vld [vmem:[#allocation22 + $0x424] ss:$16 sps:$4 sm:$0xff]   ;;  %v24759_v2 = vld [vmem:[#allocation22 + $0x5cc] ss:$16 sps:$4 sm:$0xff]  }
0x110a   : > { %14617 = vmatmul.mubr.bf16.vlgmr.msra.gmra.mrb[140].mxu0 %v27747_v59  ;;  %14660 = vmatmul.mubr.bf16.vlgmr.msra.gmra.mrb[140].mxu1 %v27747_v59  ;;  %v14672_v59 = vld [vmem:[#allocation20 + $0x28] sm:$0xff] }
0x110b   : > { %22231 = vmatpush1.bf16.msra.mxu0 %v27733_v43  ;;  %14743 = vmatprep.mubr.f32.mxu0 %v26127_v20  ;;  %v24676_v43 = vld [vmem:[#allocation22 + $0x420] ss:$16 sps:$4 sm:$0xff]  }
0x110c   : > { %15143 = vmatprep.subr.bf16.mxu0 %v24672_v33  ;;  %15187 = vmatpush1.bf16.msra.mxu1 %v24673_v50  ;;  %v24754_v33 = vld [vmem:[#allocation22 + $0x5c0] ss:$16 sps:$4 sm:$0xff]   ;;  %v24757_v50 = vld [vmem:[#allocation22 + $0x5c8] ss:$16 sps:$4 sm:$0xff]  }
0x110d   : > { %15188 = vmatprep.subr.bf16.mxu1 %v24681_v26  ;;  %v24762_v26 = vld [vmem:[#allocation22 + $0x5e4] ss:$16 sps:$4 sm:$0xff]  }
0x1110   : > { %15189 = vmatpush1.bf16.msra.mxu1 %v24679_v29  ;;  %v24765_v29 = vld [vmem:[#allocation22 + $0x5ec] ss:$16 sps:$4 sm:$0xff]  }
0x1111   : > { %15190 = vmatprep.subr.bf16.mxu1 %v24687_v15  ;;  %v24760_v15 = vld [vmem:[#allocation22 + $0x5e0] ss:$16 sps:$4 sm:$0xff]  }
0x1112   : > { %21016 = vmatmul.mubr.msk.f32.vlgmr.msra.gmra.mrb[144].mxu0 %vm13555_vm2, %v14671_v38  ;;  %v24763_v38 = vld [vmem:[#allocation22 + $0x5e8] ss:$16 sps:$4 sm:$0xff]  }
0x1113   : > { %14749 = vmatprep.mubr.f32.mxu0 %v26127_v20  ;;  %15144 = vmatpush1.bf16.msra.mxu0 %v24670_v45 }
0x1114   : > { %15145 = vmatprep.subr.bf16.mxu0 %v24678_v18  ;;  %15191 = vmatpush1.bf16.msra.mxu1 %v24685_v51 }
0x1115   : > { %15192 = vmatprep.subr.bf16.mxu1 %v24693_v3 }
0x1116   : > { %21017 = vmatmul.mubr.msk.f32.gmra.mrb[146].mxu0 %vm13555_vm2, %v14672_v59 }
0x1117   : > { %15146 = vmatpush1.bf16.msra.mxu0 %v24676_v43 }
0x1118   : > { %15147 = vmatprep.subr.bf16.mxu0 %v24684_v8  ;;  %15193 = vmatpush1.bf16.msra.mxu1 %v24691_v11  ;;  %v15237_v8 = vld [vmem:[#allocation23] sm:$0xf] }
0x1119   : > { %15194 = vmatprep.subr.bf16.mxu1 %v24699_v35  ;;  %v15242_v11 = vrot.slane %v15237_v8, %v27020_v44  ;;  %v15250_v35 = vrot.slane %v15237_v8, %v27023_v22 }
0x111b   : > { %15148 = vmatpush1.bf16.msra.mxu0 %v24682_v0  ;;  %v15246_v0 = vrot.slane %v15237_v8, %v27028_v53 }
0x111c   : > { %15149 = vmatprep.subr.bf16.mxu0 %v24690_v24  ;;  %15195 = vmatpush1.bf16.msra.mxu1 %v24697_v39  ;;  %v15254_v24 = vrot.slane %v15237_v8, %v27031_v23  ;;  %v24799_v8 = vld [vmem:[#allocation26 + $0x250] ss:$8 sps:$4 sm:$0xff]  }
0x111d   : > { %15196 = vmatprep.subr.bf16.mxu1 %v24705_v37 }
0x111f   : > { %15150 = vmatpush1.bf16.msra.mxu0 %v24688_v5 }
0x1120   : > { %15151 = vmatprep.subr.bf16.mxu0 %v24696_v54  ;;  %15197 = vmatpush1.bf16.msra.mxu1 %v24703_v62 }
0x1121   : > { %15198 = vmatprep.subr.bf16.mxu1 %v24711_v42 }
0x1123   : > { %15152 = vmatpush1.bf16.msra.mxu0 %v24694_v14 }
0x1124   : > { %15153 = vmatprep.subr.bf16.mxu0 %v24702_v4  ;;  %15199 = vmatpush1.bf16.msra.mxu1 %v24709_v56 }
0x1125   : > { %15200 = vmatprep.subr.bf16.mxu1 %v24717_v57 }
0x1127   : > { %15154 = vmatpush1.bf16.msra.mxu0 %v24700_v34 }
0x1128   : > { %15155 = vmatprep.subr.bf16.mxu0 %v24708_v1  ;;  %15201 = vmatpush1.bf16.msra.mxu1 %v24715_v27 }
0x1129   : > { %15202 = vmatprep.subr.bf16.mxu1 %v24723_v9 }
0x112b   : > { %15156 = vmatpush1.bf16.msra.mxu0 %v24706_v32 }
0x112c   : > { %15157 = vmatprep.subr.bf16.mxu0 %v24714_v7  ;;  %15203 = vmatpush1.bf16.msra.mxu1 %v24721_v28 }
0x112d   : > { %15204 = vmatprep.subr.bf16.mxu1 %v24729_v63 }
0x112f   : > { %15158 = vmatpush1.bf16.msra.mxu0 %v24712_v19 }
0x1130   : > { %15159 = vmatprep.subr.bf16.mxu0 %v24720_v13  ;;  %15205 = vmatpush1.bf16.msra.mxu1 %v24727_v10 }
0x1131   : > { %15206 = vmatprep.subr.bf16.mxu1 %v24735_v12 }
0x1133   : > { %15160 = vmatpush1.bf16.msra.mxu0 %v24718_v47 }
0x1134   : > { %15161 = vmatprep.subr.bf16.mxu0 %v24726_v25  ;;  %15207 = vmatpush1.bf16.msra.mxu1 %v24733_v21 }
0x1135   : > { %15208 = vmatprep.subr.bf16.mxu1 %v24741_v52 }
0x1137   : > { %15162 = vmatpush1.bf16.msra.mxu0 %v24724_v41  ;;  %v24768_v41 = vld [vmem:[#allocation26 + $0x4] ss:$8 sps:$4 sm:$0xff]  }
0x1138   : > { %15163 = vmatprep.subr.bf16.mxu0 %v24732_v55  ;;  %15209 = vmatpush1.bf16.msra.mxu1 %v24739_v49  ;;  %v15275_v55 = vld [vmem:[#allocation25] sm:$0xff]  ;;  %v15422_v49 = vld [vmem:[#allocation25 + $0x8] sm:$0xff] }
0x1139   : > { %15210 = vmatprep.subr.bf16.mxu1 %v24747_v58  ;;  %v24766_v58 = vld [vmem:[#allocation26] ss:$8 sps:$4 sm:$0xff]  }
0x113b   : > { %15164 = vmatpush1.bf16.msra.mxu0 %v24730_v48  ;;  %v24774_v48 = vld [vmem:[#allocation26 + $0x14] ss:$8 sps:$4 sm:$0xff]  }
0x113c   : > { %15165 = vmatprep.subr.bf16.mxu0 %v24738_v60  ;;  %15211 = vmatpush1.bf16.msra.mxu1 %v24745_v46  ;;  %v24771_v60 = vld [vmem:[#allocation26 + $0x204] ss:$8 sps:$4 sm:$0xff]   ;;  %v24772_v46 = vld [vmem:[#allocation26 + $0x10] ss:$8 sps:$4 sm:$0xff]  }
0x113d   : > { %15212 = vmatprep.subr.bf16.mxu1 %v24753_v16  ;;  %v24780_v16 = vld [vmem:[#allocation26 + $0x24] ss:$8 sps:$4 sm:$0xff]  }
0x113f   : > { %15166 = vmatpush1.bf16.msra.mxu0 %v24736_v61  ;;  %v24769_v61 = vld [vmem:[#allocation26 + $0x200] ss:$8 sps:$4 sm:$0xff]  }
0x1140   : > { %15167 = vmatprep.subr.bf16.mxu0 %v24744_v31  ;;  %15213 = vmatpush1.bf16.msra.mxu1 %v24751_v17  ;;  %v24777_v31 = vld [vmem:[#allocation26 + $0x214] ss:$8 sps:$4 sm:$0xff]   ;;  %v24778_v17 = vld [vmem:[#allocation26 + $0x20] ss:$8 sps:$4 sm:$0xff]  }
0x1141   : > { %15214 = vmatprep.subr.bf16.mxu1 %v24759_v2  ;;  %v24792_v2 = vld [vmem:[#allocation26 + $0x44] ss:$8 sps:$4 sm:$0xff]  }
0x1143   : > { %15168 = vmatpush1.bf16.msra.mxu0 %v24742_v36  ;;  %v24786_v36 = vld [vmem:[#allocation26 + $0x34] ss:$8 sps:$4 sm:$0xff]  }
0x1144   : > { %15169 = vmatprep.subr.bf16.mxu0 %v24750_v30  ;;  %15215 = vmatpush1.bf16.msra.mxu1 %v24757_v50  ;;  %v24775_v30 = vld [vmem:[#allocation26 + $0x210] ss:$8 sps:$4 sm:$0xff]   ;;  %v24789_v50 = vld [vmem:[#allocation26 + $0x234] ss:$8 sps:$4 sm:$0xff]  }
0x1145   : > { %15216 = vmatprep.subr.bf16.mxu1 %v24765_v29  ;;  %v24798_v29 = vld [vmem:[#allocation26 + $0x54] ss:$8 sps:$4 sm:$0xff]  }
0x1147   : > { %15170 = vmatpush1.bf16.msra.mxu0 %v24748_v40  ;;  %v24783_v40 = vld [vmem:[#allocation26 + $0x224] ss:$8 sps:$4 sm:$0xff]  }
0x1148   : > { %15171 = vmatprep.subr.bf16.mxu0 %v24756_v6  ;;  %15217 = vmatpush1.bf16.msra.mxu1 %v24763_v38  ;;  %v24784_v6 = vld [vmem:[#allocation26 + $0x30] ss:$8 sps:$4 sm:$0xff]   ;;  %v24795_v38 = vld [vmem:[#allocation26 + $0x244] ss:$8 sps:$4 sm:$0xff]  }
0x114b   : > { %15172 = vmatpush1.bf16.msra.mxu0 %v24754_v33  ;;  %v24781_v33 = vld [vmem:[#allocation26 + $0x220] ss:$8 sps:$4 sm:$0xff]  }
0x114c   : > { %15173 = vmatprep.subr.bf16.mxu0 %v24762_v26  ;;  %v24790_v26 = vld [vmem:[#allocation26 + $0x40] ss:$8 sps:$4 sm:$0xff]  }
0x114f   : > { %15174 = vmatpush1.bf16.msra.mxu0 %v24760_v15  ;;  %v24787_v15 = vld [vmem:[#allocation26 + $0x230] ss:$8 sps:$4 sm:$0xff]  }
0x11e5   : > { %v14745_v45 = vpop.f32.mrb[144].mxu0 }
0x11e6   : > { %v14747_v18 = vpop.f32.mrb[145].mxu0 }
0x11e9   : > { %v14751_v51 = vpop.f32.mrb[146].mxu0 }
0x11ea   : > { %v14756_v3 = vpack.c.bf16 %v14751_v51, %v14745_v45  ;;  %v14753_v59 = vpop.f32.mrb[147].mxu0  ;;  %v24796_v45 = vld [vmem:[#allocation26 + $0x50] ss:$8 sps:$4 sm:$0xff]   ;;  %v24793_v51 = vld [vmem:[#allocation26 + $0x240] ss:$8 sps:$4 sm:$0xff]  }
0x11eb   : > { %v14757_v43 = vpack.c.bf16 %v14753_v59, %v14747_v18  ;;  %v24804_v18 = vld [vmem:[#allocation26 + $0x64] ss:$8 sps:$4 sm:$0xff]   ;;  %v24802_v59 = vld [vmem:[#allocation26 + $0x60] ss:$8 sps:$4 sm:$0xff]  }
0x11ed   : > { %15175 = vmatprep.mubr.bf16.mxu0 %v14757_v43  ;;  %15218 = vmatprep.mubr.bf16.mxu1 %v14757_v43  ;;  %v24810_v43 = vld [vmem:[#allocation26 + $0x74] ss:$8 sps:$4 sm:$0xff]  }
0x11ee   : > { %15176 = vmatmul.mubr.bf16.vlgmr.msra.gmra.mrb[140].mxu0 %v14756_v3  ;;  %15219 = vmatmul.mubr.bf16.vlgmr.msra.gmra.mrb[140].mxu1 %v14756_v3  ;;  %v24801_v3 = vld [vmem:[#allocation26 + $0x254] ss:$8 sps:$4 sm:$0xff]  }
0x11ef   : > { %15343 = vmatprep.mubr.f32.mxu1 %v26127_v20  ;;  %15490 = vmatprep.mubr.f32.mxu0 %v26127_v20 }
0x12c1   : > { %v15177_v39 = vpop.f32.mrb[140].mxu0  ;;  %v15220_v37 = vpop.f32.mrb[140].mxu1 }
0x12c2   : > { %v15259_v5 = vadd.f32 %v15242_v11, %v15177_v39  ;;  %v15261_v54 = vadd.f32 %v15250_v35, %v15220_v37  ;;  %v15179_v62 = vpop.f32.mrb[141].mxu0  ;;  %v15222_v42 = vpop.f32.mrb[141].mxu1  ;;  %v24813_v39 = vld [vmem:[#allocation26 + $0x274] ss:$8 sps:$4 sm:$0xff]   ;;  %v24814_v37 = vld [vmem:[#allocation26 + $0x80] ss:$8 sps:$4 sm:$0xff]  }
0x12c3   : > { %v15260_v14 = vadd.f32 %v15246_v0, %v15179_v62  ;;  %v15262_v4 = vadd.f32 %v15254_v24, %v15222_v42  ;;  %v15181_v56 = vpop.f32.mrb[142].mxu0  ;;  %v15224_v57 = vpop.f32.mrb[142].mxu1  ;;  %v24819_v62 = vld [vmem:[#allocation26 + $0x284] ss:$8 sps:$4 sm:$0xff]   ;;  %v24820_v42 = vld [vmem:[#allocation26 + $0x90] ss:$8 sps:$4 sm:$0xff]  }
0x12c4   : > { %v15263_v34 = vadd.f32 %v15242_v11, %v15181_v56  ;;  %v15265_v1 = vadd.f32 %v15250_v35, %v15224_v57  ;;  %v15183_v27 = vpop.f32.mrb[143].mxu0  ;;  %v15226_v9 = vpop.f32.mrb[143].mxu1  ;;  %v15267_v7 = vmax.f32 %v15259_v5, 0.0  ;;  %v15269_v28 = vmax.f32 %v15261_v54, 0.0  ;;  %v24807_v11 = vld [vmem:[#allocation26 + $0x264] ss:$8 sps:$4 sm:$0xff]  }
0x12c5   : > { %v15264_v32 = vadd.f32 %v15246_v0, %v15183_v27  ;;  %v15266_v22 = vadd.f32 %v15254_v24, %v15226_v9  ;;  %v15268_v19 = vmax.f32 %v15260_v14, 0.0  ;;  %v15270_v13 = vmax.f32 %v15262_v4, 0.0  ;;  %v24808_v35 = vld [vmem:[#allocation26 + $0x70] ss:$8 sps:$4 sm:$0xff]   ;;  %v24816_v0 = vld [vmem:[#allocation26 + $0x84] ss:$8 sps:$4 sm:$0xff]  }
0x12c6   : > { %v15271_v63 = vmax.f32 %v15263_v34, 0.0  ;;  %v15273_v23 = vmax.f32 %v15265_v1, 0.0  ;;  %v24805_v24 = vld [vmem:[#allocation26 + $0x260] ss:$8 sps:$4 sm:$0xff]   ;;  %v24822_v5 = vld [vmem:[#allocation26 + $0x94] ss:$8 sps:$4 sm:$0xff]  }
0x12c7   : > { %v15272_v10 = vmax.f32 %v15264_v32, 0.0  ;;  %v15274_v12 = vmax.f32 %v15266_v22, 0.0  ;;  %v24811_v54 = vld [vmem:[#allocation26 + $0x270] ss:$8 sps:$4 sm:$0xff]   ;;  %v24828_v14 = vld [vmem:[#allocation26 + $0xa4] ss:$8 sps:$4 sm:$0xff]  }
0x12c8   : > { %v22234_v47 = vpack.c.bf16 %v15271_v63, %v15267_v7  ;;  %v22238_v25 = vpack.c.bf16 %v15273_v23, %v15269_v28  ;;  %v24817_v4 = vld [vmem:[#allocation26 + $0x280] ss:$8 sps:$4 sm:$0xff]   ;;  %v24825_v56 = vld [vmem:[#allocation26 + $0x294] ss:$8 sps:$4 sm:$0xff]   ;;  %v24823_v1 = vld [vmem:[#allocation26 + $0x290] ss:$8 sps:$4 sm:$0xff]  }
0x12c9   : > { %v22232_v21 = vpack.c.bf16 %v15272_v10, %v15268_v19  ;;  %v22236_v52 = vpack.c.bf16 %v15274_v12, %v15270_v13  ;;  %v24826_v57 = vld [vmem:[#allocation26 + $0xa0] ss:$8 sps:$4 sm:$0xff]   ;;  %v24834_v34 = vld [vmem:[#allocation26 + $0xb4] ss:$8 sps:$4 sm:$0xff]   ;;  %v24831_v27 = vld [vmem:[#allocation26 + $0x2a4] ss:$8 sps:$4 sm:$0xff]  }
0x12ca   : > { %v24832_v9 = vld [vmem:[#allocation26 + $0xb0] ss:$8 sps:$4 sm:$0xff]   ;;  %v24840_v32 = vld [vmem:[#allocation26 + $0xc4] ss:$8 sps:$4 sm:$0xff]   ;;  %v24829_v22 = vld [vmem:[#allocation26 + $0x2a0] ss:$8 sps:$4 sm:$0xff]  }
0x12cb   : > { %22233 = vmatprep.subr.bf16.mxu1 %v22232_v21  ;;  %22241 = vmatprep.subr.bf16.mxu0 %v22232_v21  ;;  %v24837_v7 = vld [vmem:[#allocation26 + $0x2b4] ss:$8 sps:$4 sm:$0xff]   ;;  %v24838_v28 = vld [vmem:[#allocation26 + $0xc0] ss:$8 sps:$4 sm:$0xff]   ;;  %v24835_v23 = vld [vmem:[#allocation26 + $0x2b0] ss:$8 sps:$4 sm:$0xff]  }
0x12cc   : > { %22235 = vmatpush1.bf16.msra.mxu1 %v22234_v47  ;;  %22243 = vmatpush1.bf16.msra.mxu0 %v22234_v47  ;;  %v24846_v63 = vld [vmem:[#allocation26 + $0xd4] ss:$8 sps:$4 sm:$0xff]   ;;  %v24843_v19 = vld [vmem:[#allocation26 + $0x2c4] ss:$8 sps:$4 sm:$0xff]   ;;  %v24844_v13 = vld [vmem:[#allocation26 + $0xd0] ss:$8 sps:$4 sm:$0xff]  }
0x12cd   : > { %22237 = vmatprep.subr.bf16.mxu1 %v22236_v52  ;;  %15960 = vmatprep.subr.bf16.mxu0 %v24768_v41  ;;  %v24852_v10 = vld [vmem:[#allocation26 + $0xe4] ss:$8 sps:$4 sm:$0xff]   ;;  %v24841_v12 = vld [vmem:[#allocation26 + $0x2c0] ss:$8 sps:$4 sm:$0xff]   ;;  %v24849_v47 = vld [vmem:[#allocation26 + $0x2d4] ss:$8 sps:$4 sm:$0xff]  }
0x12ce   : > { %v24847_v21 = vld [vmem:[#allocation26 + $0x2d0] ss:$8 sps:$4 sm:$0xff]   ;;  %v24853_v41 = vld [vmem:[#allocation26 + $0x2e0] ss:$8 sps:$4 sm:$0xff]  }
0x12cf   : > { %21082 = vmatmul.mubr.msk.f32.vlgmr.msra.gmra.mrb[144].mxu1 %vm13555_vm2, %v15275_v55  ;;  %21084 = vmatmul.mubr.msk.f32.vlgmr.msra.gmra.mrb[148].mxu0 %vm13555_vm2, %v15422_v49 }
0x12d0   : > { %22239 = vmatpush1.bf16.msra.mxu1 %v22238_v25  ;;  %15414 = vmatprep.mubr.f32.mxu1 %v26127_v20 }
0x12d1   : > { %22245 = vmatprep.subr.bf16.mxu1 %v22236_v52  ;;  %15961 = vmatpush1.bf16.msra.mxu0 %v24766_v58  ;;  %v24855_v52 = vld [vmem:[#allocation26 + $0x2e4] ss:$8 sps:$4 sm:$0xff]   ;;  %v24856_v58 = vld [vmem:[#allocation26 + $0xf0] ss:$8 sps:$4 sm:$0xff]  }
0x12d2   : > { %15962 = vmatprep.subr.bf16.mxu0 %v24774_v48  ;;  %v24859_v48 = vld [vmem:[#allocation26 + $0x2f0] ss:$8 sps:$4 sm:$0xff]  }
0x12d3   : > { %21083 = vmatmul.mubr.msk.f32.vlgmr.msra.gmra.mrb[146].mxu1 %vm13555_vm2, %v15275_v55  ;;  %v24858_v55 = vld [vmem:[#allocation26 + $0xf4] ss:$8 sps:$4 sm:$0xff]  }
0x12d4   : > { %22247 = vmatpush1.bf16.msra.mxu1 %v22238_v25  ;;  %15561 = vmatprep.mubr.f32.mxu1 %v26127_v20  ;;  %v24850_v25 = vld [vmem:[#allocation26 + $0xe0] ss:$8 sps:$4 sm:$0xff]  }
0x12d5   : > { %16427 = vmatprep.subr.bf16.mxu1 %v24771_v60  ;;  %15963 = vmatpush1.bf16.msra.mxu0 %v24772_v46  ;;  %v24864_v60 = vld [vmem:[#allocation26 + $0x104] ss:$8 sps:$4 sm:$0xff]  }
0x12d6   : > { %15964 = vmatprep.subr.bf16.mxu0 %v24780_v16  ;;  %v24867_v46 = vld [vmem:[#allocation26 + $0x304] ss:$8 sps:$4 sm:$0xff]  }
0x12d7   : > { %21085 = vmatmul.mubr.msk.f32.vlgmr.msra.gmra.mrb[148].mxu1 %vm13555_vm2, %v15422_v49  ;;  %v24861_v49 = vld [vmem:[#allocation26 + $0x2f4] ss:$8 sps:$4 sm:$0xff]  }
0x12d8   : > { %16428 = vmatpush1.bf16.msra.mxu1 %v24769_v61 }
0x12d9   : > { %16429 = vmatprep.subr.bf16.mxu1 %v24777_v31  ;;  %15965 = vmatpush1.bf16.msra.mxu0 %v24778_v17 }
0x12da   : > { %15966 = vmatprep.subr.bf16.mxu0 %v24786_v36 }
0x12dc   : > { %16430 = vmatpush1.bf16.msra.mxu1 %v24775_v30 }
0x12dd   : > { %16431 = vmatprep.subr.bf16.mxu1 %v24783_v40  ;;  %15967 = vmatpush1.bf16.msra.mxu0 %v24784_v6  ;;  %v24862_v6 = vld [vmem:[#allocation26 + $0x100] ss:$8 sps:$4 sm:$0xff]  }
0x12de   : > { %15968 = vmatprep.subr.bf16.mxu0 %v24792_v2  ;;  %v24865_v2 = vld [vmem:[#allocation26 + $0x300] ss:$8 sps:$4 sm:$0xff]  }
0x12e0   : > { %16432 = vmatpush1.bf16.msra.mxu1 %v24781_v33 }
0x12e1   : > { %16433 = vmatprep.subr.bf16.mxu1 %v24789_v50  ;;  %15969 = vmatpush1.bf16.msra.mxu0 %v24790_v26  ;;  %v24870_v26 = vld [vmem:[#allocation26 + $0x114] ss:$8 sps:$4 sm:$0xff]  }
0x12e2   : > { %15970 = vmatprep.subr.bf16.mxu0 %v24798_v29  ;;  %v24873_v29 = vld [vmem:[#allocation26 + $0x314] ss:$8 sps:$4 sm:$0xff]  }
0x12e4   : > { %16434 = vmatpush1.bf16.msra.mxu1 %v24787_v15 }
0x12e5   : > { %16435 = vmatprep.subr.bf16.mxu1 %v24795_v38  ;;  %15971 = vmatpush1.bf16.msra.mxu0 %v24796_v45  ;;  %v24868_v38 = vld [vmem:[#allocation26 + $0x110] ss:$8 sps:$4 sm:$0xff]  }
0x12e6   : > { %15972 = vmatprep.subr.bf16.mxu0 %v24804_v18  ;;  %v24871_v45 = vld [vmem:[#allocation26 + $0x310] ss:$8 sps:$4 sm:$0xff]  }
0x12e8   : > { %16436 = vmatpush1.bf16.msra.mxu1 %v24793_v51  ;;  %v24876_v51 = vld [vmem:[#allocation26 + $0x124] ss:$8 sps:$4 sm:$0xff]  }
0x12e9   : > { %16437 = vmatprep.subr.bf16.mxu1 %v24801_v3  ;;  %15973 = vmatpush1.bf16.msra.mxu0 %v24802_v59  ;;  %v24879_v3 = vld [vmem:[#allocation26 + $0x324] ss:$8 sps:$4 sm:$0xff]  }
0x12ea   : > { %15974 = vmatprep.subr.bf16.mxu0 %v24810_v43 }
0x12ec   : > { %16438 = vmatpush1.bf16.msra.mxu1 %v24799_v8 }
0x12ed   : > { %16439 = vmatprep.subr.bf16.mxu1 %v24807_v11  ;;  %15975 = vmatpush1.bf16.msra.mxu0 %v24808_v35  ;;  %v24874_v11 = vld [vmem:[#allocation26 + $0x120] ss:$8 sps:$4 sm:$0xff]  }
0x12ee   : > { %15976 = vmatprep.subr.bf16.mxu0 %v24816_v0  ;;  %v24877_v35 = vld [vmem:[#allocation26 + $0x320] ss:$8 sps:$4 sm:$0xff]  }
0x12f0   : > { %16440 = vmatpush1.bf16.msra.mxu1 %v24805_v24  ;;  %v24882_v24 = vld [vmem:[#allocation26 + $0x134] ss:$8 sps:$4 sm:$0xff]  }
0x12f1   : > { %16441 = vmatprep.subr.bf16.mxu1 %v24813_v39  ;;  %15977 = vmatpush1.bf16.msra.mxu0 %v24814_v37  ;;  %v24885_v39 = vld [vmem:[#allocation26 + $0x334] ss:$8 sps:$4 sm:$0xff]   ;;  %v24880_v37 = vld [vmem:[#allocation26 + $0x130] ss:$8 sps:$4 sm:$0xff]  }
0x12f2   : > { %15978 = vmatprep.subr.bf16.mxu0 %v24822_v5  ;;  %v24883_v5 = vld [vmem:[#allocation26 + $0x330] ss:$8 sps:$4 sm:$0xff]  }
0x12f4   : > { %16442 = vmatpush1.bf16.msra.mxu1 %v24811_v54  ;;  %v24888_v54 = vld [vmem:[#allocation26 + $0x144] ss:$8 sps:$4 sm:$0xff]  }
0x12f5   : > { %16443 = vmatprep.subr.bf16.mxu1 %v24819_v62  ;;  %15979 = vmatpush1.bf16.msra.mxu0 %v24820_v42  ;;  %v24891_v62 = vld [vmem:[#allocation26 + $0x344] ss:$8 sps:$4 sm:$0xff]   ;;  %v24886_v42 = vld [vmem:[#allocation26 + $0x140] ss:$8 sps:$4 sm:$0xff]  }
0x12f6   : > { %15980 = vmatprep.subr.bf16.mxu0 %v24828_v14  ;;  %v24889_v14 = vld [vmem:[#allocation26 + $0x340] ss:$8 sps:$4 sm:$0xff]  }
0x12f8   : > { %16444 = vmatpush1.bf16.msra.mxu1 %v24817_v4  ;;  %v24894_v4 = vld [vmem:[#allocation26 + $0x154] ss:$8 sps:$4 sm:$0xff]  }
0x12f9   : > { %16445 = vmatprep.subr.bf16.mxu1 %v24825_v56  ;;  %15981 = vmatpush1.bf16.msra.mxu0 %v24826_v57  ;;  %v24897_v56 = vld [vmem:[#allocation26 + $0x354] ss:$8 sps:$4 sm:$0xff]   ;;  %v24892_v57 = vld [vmem:[#allocation26 + $0x150] ss:$8 sps:$4 sm:$0xff]  }
0x12fa   : > { %15982 = vmatprep.subr.bf16.mxu0 %v24834_v34  ;;  %v24895_v34 = vld [vmem:[#allocation26 + $0x350] ss:$8 sps:$4 sm:$0xff]  }
0x12fc   : > { %16446 = vmatpush1.bf16.msra.mxu1 %v24823_v1  ;;  %v24900_v1 = vld [vmem:[#allocation26 + $0x164] ss:$8 sps:$4 sm:$0xff]  }
0x12fd   : > { %16447 = vmatprep.subr.bf16.mxu1 %v24831_v27  ;;  %15983 = vmatpush1.bf16.msra.mxu0 %v24832_v9  ;;  %v24903_v27 = vld [vmem:[#allocation26 + $0x364] ss:$8 sps:$4 sm:$0xff]   ;;  %v24898_v9 = vld [vmem:[#allocation26 + $0x160] ss:$8 sps:$4 sm:$0xff]  }
0x12fe   : > { %15984 = vmatprep.subr.bf16.mxu0 %v24840_v32  ;;  %v24901_v32 = vld [vmem:[#allocation26 + $0x360] ss:$8 sps:$4 sm:$0xff]  }
0x1300   : > { %16448 = vmatpush1.bf16.msra.mxu1 %v24829_v22  ;;  %v24906_v22 = vld [vmem:[#allocation26 + $0x174] ss:$8 sps:$4 sm:$0xff]  }
0x1301   : > { %16449 = vmatprep.subr.bf16.mxu1 %v24837_v7  ;;  %15985 = vmatpush1.bf16.msra.mxu0 %v24838_v28  ;;  %v24909_v7 = vld [vmem:[#allocation26 + $0x374] ss:$8 sps:$4 sm:$0xff]   ;;  %v24904_v28 = vld [vmem:[#allocation26 + $0x170] ss:$8 sps:$4 sm:$0xff]  }
0x1302   : > { %15986 = vmatprep.subr.bf16.mxu0 %v24846_v63  ;;  %v24907_v63 = vld [vmem:[#allocation26 + $0x370] ss:$8 sps:$4 sm:$0xff]  }
0x1304   : > { %16450 = vmatpush1.bf16.msra.mxu1 %v24835_v23  ;;  %v24912_v23 = vld [vmem:[#allocation26 + $0x184] ss:$8 sps:$4 sm:$0xff]  }
0x1305   : > { %16451 = vmatprep.subr.bf16.mxu1 %v24843_v19  ;;  %15987 = vmatpush1.bf16.msra.mxu0 %v24844_v13  ;;  %v24915_v19 = vld [vmem:[#allocation26 + $0x384] ss:$8 sps:$4 sm:$0xff]   ;;  %v24910_v13 = vld [vmem:[#allocation26 + $0x180] ss:$8 sps:$4 sm:$0xff]  }
0x1306   : > { %15988 = vmatprep.subr.bf16.mxu0 %v24852_v10  ;;  %v24913_v10 = vld [vmem:[#allocation26 + $0x380] ss:$8 sps:$4 sm:$0xff]  }
0x1308   : > { %16452 = vmatpush1.bf16.msra.mxu1 %v24841_v12  ;;  %v24918_v12 = vld [vmem:[#allocation26 + $0x194] ss:$8 sps:$4 sm:$0xff]  }
0x1309   : > { %16453 = vmatprep.subr.bf16.mxu1 %v24849_v47  ;;  %15989 = vmatpush1.bf16.msra.mxu0 %v24850_v25  ;;  %v24921_v47 = vld [vmem:[#allocation26 + $0x394] ss:$8 sps:$4 sm:$0xff]   ;;  %v24916_v25 = vld [vmem:[#allocation26 + $0x190] ss:$8 sps:$4 sm:$0xff]  }
0x130a   : > { %15990 = vmatprep.subr.bf16.mxu0 %v24858_v55  ;;  %v24922_v55 = vld [vmem:[#allocation26 + $0x1a0] ss:$8 sps:$4 sm:$0xff]  }
0x130c   : > { %16454 = vmatpush1.bf16.msra.mxu1 %v24847_v21  ;;  %v24919_v21 = vld [vmem:[#allocation26 + $0x390] ss:$8 sps:$4 sm:$0xff]  }
0x130d   : > { %16455 = vmatprep.subr.bf16.mxu1 %v24855_v52  ;;  %15991 = vmatpush1.bf16.msra.mxu0 %v24856_v58  ;;  %v24924_v52 = vld [vmem:[#allocation26 + $0x1a4] ss:$8 sps:$4 sm:$0xff]   ;;  %v24930_v58 = vld [vmem:[#allocation26 + $0x1b4] ss:$8 sps:$4 sm:$0xff]  }
0x130e   : > { %16001 = vmatprep.subr.bf16.mxu0 %v24864_v60  ;;  %v24928_v60 = vld [vmem:[#allocation26 + $0x1b0] ss:$8 sps:$4 sm:$0xff]  }
0x1310   : > { %16456 = vmatpush1.bf16.msra.mxu1 %v24853_v41  ;;  %v24927_v41 = vld [vmem:[#allocation26 + $0x3a4] ss:$8 sps:$4 sm:$0xff]  }
0x1311   : > { %16457 = vmatprep.subr.bf16.mxu1 %v24861_v49  ;;  %v24925_v49 = vld [vmem:[#allocation26 + $0x3a0] ss:$8 sps:$4 sm:$0xff]  }
0x1314   : > { %16458 = vmatpush1.bf16.msra.mxu1 %v24859_v48  ;;  %v24933_v48 = vld [vmem:[#allocation26 + $0x3b4] ss:$8 sps:$4 sm:$0xff]  }
0x1315   : > { %16468 = vmatprep.subr.bf16.mxu1 %v24867_v46  ;;  %v24931_v46 = vld [vmem:[#allocation26 + $0x3b0] ss:$8 sps:$4 sm:$0xff]  }
0x13a2   : > { %v15345_v16 = vpop.f32.mrb[144].mxu1  ;;  %v15492_v61 = vpop.f32.mrb[148].mxu0 }
0x13a3   : > { %v15568_v31 = vmax.f32 %v15345_v16, %v15492_v61  ;;  %v15347_v17 = vpop.f32.mrb[145].mxu1  ;;  %v15494_v36 = vpop.f32.mrb[149].mxu0  ;;  %v24936_v16 = vld [vmem:[#allocation26 + $0x1c4] ss:$8 sps:$4 sm:$0xff]  }
0x13a4   : > { %v15569_v30 = vmax.f32 %v15347_v17, %v15494_v36  ;;  %v24939_v61 = vld [vmem:[#allocation26 + $0x3c4] ss:$8 sps:$4 sm:$0xff]   ;;  %v24937_v17 = vld [vmem:[#allocation26 + $0x3c0] ss:$8 sps:$4 sm:$0xff]   ;;  %v24942_v36 = vld [vmem:[#allocation26 + $0x1d4] ss:$8 sps:$4 sm:$0xff]  }
0x13a5   : > { %v15572_v50 = vpack.c.bf16 %v15568_v31, %v15568_v31  ;;  %v24934_v31 = vld [vmem:[#allocation26 + $0x1c0] ss:$8 sps:$4 sm:$0xff]  }
0x13a6   : > { %v15573_v40 = vpack.c.bf16 %v15569_v30, %v15569_v30  ;;  %v15416_v33 = vpop.f32.mrb[146].mxu1  ;;  %v24945_v30 = vld [vmem:[#allocation26 + $0x3d4] ss:$8 sps:$4 sm:$0xff]  }
0x13a7   : > { %v15418_v15 = vpop.f32.mrb[147].mxu1 }
0x13a8   : > { %15992 = vmatprep.mubr.bf16.mxu0 %v15573_v40  ;;  %16459 = vmatprep.mubr.bf16.mxu1 %v15573_v40  ;;  %v24940_v40 = vld [vmem:[#allocation26 + $0x1d0] ss:$8 sps:$4 sm:$0xff]  }
0x13a9   : > { %15993 = vmatmul.mubr.bf16.vlgmr.msra.gmra.mrb[152].mxu0 %v15572_v50  ;;  %16460 = vmatmul.mubr.bf16.vlgmr.msra.gmra.mrb[152].mxu1 %v15572_v50  ;;  %v24946_v50 = vld [vmem:[#allocation26 + $0x1e0] ss:$8 sps:$4 sm:$0xff]  }
0x13aa   : > { %16002 = vmatpush1.bf16.msra.mxu0 %v24862_v6  ;;  %16469 = vmatpush1.bf16.msra.mxu1 %v24865_v2  ;;  %v15563_v18 = vpop.f32.mrb[148].mxu1  ;;  %v24943_v6 = vld [vmem:[#allocation26 + $0x3d0] ss:$8 sps:$4 sm:$0xff]   ;;  %v24948_v2 = vld [vmem:[#allocation26 + $0x1e4] ss:$8 sps:$4 sm:$0xff]  }
0x13ab   : > { %16003 = vmatprep.subr.bf16.mxu0 %v24870_v26  ;;  %16470 = vmatprep.subr.bf16.mxu1 %v24873_v29  ;;  %v27769_v59 = vmax.f32 %v15416_v33, %v15563_v18  ;;  %v15565_v43 = vpop.f32.mrb[149].mxu1  ;;  %v24951_v33 = vld [vmem:[#allocation26 + $0x3e4] ss:$8 sps:$4 sm:$0xff]   ;;  %v24949_v26 = vld [vmem:[#allocation26 + $0x3e0] ss:$8 sps:$4 sm:$0xff]  }
0x13ac   : > { %v15571_v8 = vmax.f32 %v15418_v15, %v15565_v43  ;;  %v24954_v29 = vld [vmem:[#allocation26 + $0x1f4] ss:$8 sps:$4 sm:$0xff]  }
0x13ad   : > { %v24957_v15 = vld [vmem:[#allocation26 + $0x3f4] ss:$8 sps:$4 sm:$0xff]   ;;  %v15574_v18 = vpack.c.bf16 %v27769_v59, %v27769_v59 }
0x13ae   : > { %16004 = vmatpush1.bf16.msra.mxu0 %v24868_v38  ;;  %16471 = vmatpush1.bf16.msra.mxu1 %v24871_v45  ;;  %v15575_v0 = vpack.c.bf16 %v15571_v8, %v15571_v8  ;;  %v24952_v38 = vld [vmem:[#allocation26 + $0x1f0] ss:$8 sps:$4 sm:$0xff]  }
0x13af   : > { %16005 = vmatprep.subr.bf16.mxu0 %v24876_v51  ;;  %16472 = vmatprep.subr.bf16.mxu1 %v24879_v3  ;;  %v24955_v45 = vld [vmem:[#allocation26 + $0x3f0] ss:$8 sps:$4 sm:$0xff]  }
0x13b0   : > { %16033 = vmatprep.mubr.bf16.mxu0 %v15575_v0  ;;  %16500 = vmatprep.mubr.bf16.mxu1 %v15575_v0 }
0x13b2   : > { %16006 = vmatpush1.bf16.msra.mxu0 %v24874_v11  ;;  %16473 = vmatpush1.bf16.msra.mxu1 %v24877_v35 }
0x13b3   : > { %16007 = vmatprep.subr.bf16.mxu0 %v24882_v24  ;;  %16474 = vmatprep.subr.bf16.mxu1 %v24885_v39  ;;  %v16511_v39 = vld [vmem:[#allocation28] sm:$0xff] }
0x13b6   : > { %16008 = vmatpush1.bf16.msra.mxu0 %v24880_v37  ;;  %16475 = vmatpush1.bf16.msra.mxu1 %v24883_v5  ;;  %v24960_v37 = vld [vmem:[#allocation29 + $0x104] ss:$8 sps:$4 sm:$0xff]  }
0x13b7   : > { %16009 = vmatprep.subr.bf16.mxu0 %v24888_v54  ;;  %16476 = vmatprep.subr.bf16.mxu1 %v24891_v62  ;;  %v16622_v54 = vld [vmem:[#allocation28 + $0x8] sm:$0xff]  ;;  %v25008_v62 = vld [vmem:[#allocation29 + $0x4] ss:$8 sps:$4 sm:$0xff]  }
0x13ba   : > { %16010 = vmatpush1.bf16.msra.mxu0 %v24886_v42  ;;  %16477 = vmatpush1.bf16.msra.mxu1 %v24889_v14  ;;  %v24958_v42 = vld [vmem:[#allocation29 + $0x100] ss:$8 sps:$4 sm:$0xff]  }
0x13bb   : > { %16011 = vmatprep.subr.bf16.mxu0 %v24894_v4  ;;  %16478 = vmatprep.subr.bf16.mxu1 %v24897_v56  ;;  %v25006_v14 = vld [vmem:[#allocation29] ss:$8 sps:$4 sm:$0xff]   ;;  %v24963_v4 = vld [vmem:[#allocation29 + $0x114] ss:$8 sps:$4 sm:$0xff]  }
0x13bc   : > { %v25011_v56 = vld [vmem:[#allocation29 + $0x14] ss:$8 sps:$4 sm:$0xff]  }
0x13be   : > { %16012 = vmatpush1.bf16.msra.mxu0 %v24892_v57  ;;  %16479 = vmatpush1.bf16.msra.mxu1 %v24895_v34  ;;  %v24961_v57 = vld [vmem:[#allocation29 + $0x110] ss:$8 sps:$4 sm:$0xff]  }
0x13bf   : > { %16013 = vmatprep.subr.bf16.mxu0 %v24900_v1  ;;  %16480 = vmatprep.subr.bf16.mxu1 %v24903_v27  ;;  %v25009_v34 = vld [vmem:[#allocation29 + $0x10] ss:$8 sps:$4 sm:$0xff]   ;;  %v24966_v1 = vld [vmem:[#allocation29 + $0x124] ss:$8 sps:$4 sm:$0xff]  }
0x13c0   : > { %v25014_v27 = vld [vmem:[#allocation29 + $0x24] ss:$8 sps:$4 sm:$0xff]  }
0x13c2   : > { %16014 = vmatpush1.bf16.msra.mxu0 %v24898_v9  ;;  %16481 = vmatpush1.bf16.msra.mxu1 %v24901_v32  ;;  %v24964_v9 = vld [vmem:[#allocation29 + $0x120] ss:$8 sps:$4 sm:$0xff]  }
0x13c3   : > { %16015 = vmatprep.subr.bf16.mxu0 %v24906_v22  ;;  %16482 = vmatprep.subr.bf16.mxu1 %v24909_v7  ;;  %v25012_v32 = vld [vmem:[#allocation29 + $0x20] ss:$8 sps:$4 sm:$0xff]   ;;  %v24969_v22 = vld [vmem:[#allocation29 + $0x134] ss:$8 sps:$4 sm:$0xff]  }
0x13c4   : > { %v25017_v7 = vld [vmem:[#allocation29 + $0x34] ss:$8 sps:$4 sm:$0xff]  }
0x13c6   : > { %16016 = vmatpush1.bf16.msra.mxu0 %v24904_v28  ;;  %16483 = vmatpush1.bf16.msra.mxu1 %v24907_v63  ;;  %v24967_v28 = vld [vmem:[#allocation29 + $0x130] ss:$8 sps:$4 sm:$0xff]  }
0x13c7   : > { %16017 = vmatprep.subr.bf16.mxu0 %v24912_v23  ;;  %16484 = vmatprep.subr.bf16.mxu1 %v24915_v19  ;;  %v25015_v63 = vld [vmem:[#allocation29 + $0x30] ss:$8 sps:$4 sm:$0xff]   ;;  %v24972_v23 = vld [vmem:[#allocation29 + $0x144] ss:$8 sps:$4 sm:$0xff]  }
0x13c8   : > { %v25020_v19 = vld [vmem:[#allocation29 + $0x44] ss:$8 sps:$4 sm:$0xff]  }
0x13ca   : > { %16018 = vmatpush1.bf16.msra.mxu0 %v24910_v13  ;;  %16485 = vmatpush1.bf16.msra.mxu1 %v24913_v10  ;;  %v24970_v13 = vld [vmem:[#allocation29 + $0x140] ss:$8 sps:$4 sm:$0xff]  }
0x13cb   : > { %16019 = vmatprep.subr.bf16.mxu0 %v24918_v12  ;;  %16486 = vmatprep.subr.bf16.mxu1 %v24921_v47  ;;  %v25018_v10 = vld [vmem:[#allocation29 + $0x40] ss:$8 sps:$4 sm:$0xff]   ;;  %v24975_v12 = vld [vmem:[#allocation29 + $0x154] ss:$8 sps:$4 sm:$0xff]  }
0x13cc   : > { %v25023_v47 = vld [vmem:[#allocation29 + $0x54] ss:$8 sps:$4 sm:$0xff]  }
0x13ce   : > { %16020 = vmatpush1.bf16.msra.mxu0 %v24916_v25  ;;  %16487 = vmatpush1.bf16.msra.mxu1 %v24919_v21  ;;  %v24973_v25 = vld [vmem:[#allocation29 + $0x150] ss:$8 sps:$4 sm:$0xff]  }
0x13cf   : > { %16021 = vmatprep.subr.bf16.mxu0 %v24924_v52  ;;  %16488 = vmatprep.subr.bf16.mxu1 %v24927_v41  ;;  %v25021_v21 = vld [vmem:[#allocation29 + $0x50] ss:$8 sps:$4 sm:$0xff]   ;;  %v24978_v52 = vld [vmem:[#allocation29 + $0x164] ss:$8 sps:$4 sm:$0xff]  }
0x13d0   : > { %v25026_v41 = vld [vmem:[#allocation29 + $0x64] ss:$8 sps:$4 sm:$0xff]  }
0x13d2   : > { %16022 = vmatpush1.bf16.msra.mxu0 %v24922_v55  ;;  %16489 = vmatpush1.bf16.msra.mxu1 %v24925_v49  ;;  %v24976_v55 = vld [vmem:[#allocation29 + $0x160] ss:$8 sps:$4 sm:$0xff]  }
0x13d3   : > { %16023 = vmatprep.subr.bf16.mxu0 %v24930_v58  ;;  %16490 = vmatprep.subr.bf16.mxu1 %v24933_v48  ;;  %v25024_v49 = vld [vmem:[#allocation29 + $0x60] ss:$8 sps:$4 sm:$0xff]   ;;  %v24981_v58 = vld [vmem:[#allocation29 + $0x174] ss:$8 sps:$4 sm:$0xff]  }
0x13d4   : > { %v25029_v48 = vld [vmem:[#allocation29 + $0x74] ss:$8 sps:$4 sm:$0xff]  }
0x13d6   : > { %16024 = vmatpush1.bf16.msra.mxu0 %v24928_v60  ;;  %16491 = vmatpush1.bf16.msra.mxu1 %v24931_v46  ;;  %v24979_v60 = vld [vmem:[#allocation29 + $0x170] ss:$8 sps:$4 sm:$0xff]  }
0x13d7   : > { %16025 = vmatprep.subr.bf16.mxu0 %v24936_v16  ;;  %16492 = vmatprep.subr.bf16.mxu1 %v24939_v61  ;;  %v25027_v46 = vld [vmem:[#allocation29 + $0x70] ss:$8 sps:$4 sm:$0xff]   ;;  %v24984_v16 = vld [vmem:[#allocation29 + $0x184] ss:$8 sps:$4 sm:$0xff]  }
0x13d8   : > { %v25032_v61 = vld [vmem:[#allocation29 + $0x84] ss:$8 sps:$4 sm:$0xff]  }
0x13da   : > { %16026 = vmatpush1.bf16.msra.mxu0 %v24934_v31  ;;  %16493 = vmatpush1.bf16.msra.mxu1 %v24937_v17  ;;  %v24982_v31 = vld [vmem:[#allocation29 + $0x180] ss:$8 sps:$4 sm:$0xff]  }
0x13db   : > { %16027 = vmatprep.subr.bf16.mxu0 %v24942_v36  ;;  %16494 = vmatprep.subr.bf16.mxu1 %v24945_v30  ;;  %v25030_v17 = vld [vmem:[#allocation29 + $0x80] ss:$8 sps:$4 sm:$0xff]   ;;  %v24987_v36 = vld [vmem:[#allocation29 + $0x194] ss:$8 sps:$4 sm:$0xff]  }
0x13dc   : > { %v25035_v30 = vld [vmem:[#allocation29 + $0x94] ss:$8 sps:$4 sm:$0xff]  }
0x13de   : > { %16028 = vmatpush1.bf16.msra.mxu0 %v24940_v40  ;;  %16495 = vmatpush1.bf16.msra.mxu1 %v24943_v6  ;;  %v24985_v40 = vld [vmem:[#allocation29 + $0x190] ss:$8 sps:$4 sm:$0xff]  }
0x13df   : > { %16029 = vmatprep.subr.bf16.mxu0 %v24948_v2  ;;  %16496 = vmatprep.subr.bf16.mxu1 %v24951_v33  ;;  %v25033_v6 = vld [vmem:[#allocation29 + $0x90] ss:$8 sps:$4 sm:$0xff]   ;;  %v24990_v2 = vld [vmem:[#allocation29 + $0x1a4] ss:$8 sps:$4 sm:$0xff]  }
0x13e0   : > { %v25038_v33 = vld [vmem:[#allocation29 + $0xa4] ss:$8 sps:$4 sm:$0xff]  }
0x13e2   : > { %16030 = vmatpush1.bf16.msra.mxu0 %v24946_v50  ;;  %16497 = vmatpush1.bf16.msra.mxu1 %v24949_v26  ;;  %v24988_v50 = vld [vmem:[#allocation29 + $0x1a0] ss:$8 sps:$4 sm:$0xff]  }
0x13e3   : > { %16031 = vmatprep.subr.bf16.mxu0 %v24954_v29  ;;  %16498 = vmatprep.subr.bf16.mxu1 %v24957_v15  ;;  %v25036_v26 = vld [vmem:[#allocation29 + $0xa0] ss:$8 sps:$4 sm:$0xff]   ;;  %v24993_v29 = vld [vmem:[#allocation29 + $0x1b4] ss:$8 sps:$4 sm:$0xff]  }
0x13e4   : > { %v25041_v15 = vld [vmem:[#allocation29 + $0xb4] ss:$8 sps:$4 sm:$0xff]  }
0x13e6   : > { %16032 = vmatpush1.bf16.msra.mxu0 %v24952_v38  ;;  %16499 = vmatpush1.bf16.msra.mxu1 %v24955_v45  ;;  %v24991_v38 = vld [vmem:[#allocation29 + $0x1b0] ss:$8 sps:$4 sm:$0xff]  }
0x13e7   : > { %v25039_v45 = vld [vmem:[#allocation29 + $0xb0] ss:$8 sps:$4 sm:$0xff]  }
0x13e9   : > { %16034 = vmatmul.mubr.bf16.vlgmr.msra.gmra.mrb[152].mxu0 %v15574_v18  ;;  %16501 = vmatmul.mubr.bf16.vlgmr.msra.gmra.mrb[152].mxu1 %v15574_v18  ;;  %v24996_v18 = vld [vmem:[#allocation29 + $0x1c4] ss:$8 sps:$4 sm:$0xff]  }
0x13ea   : > { %16580 = vmatprep.mubr.f32.mxu0 %v26127_v20  ;;  %16690 = vmatprep.mubr.f32.mxu1 %v26127_v20 }
0x14bc   : > { %v16035_v51 = vpop.f32.mrb[152].mxu0  ;;  %v16502_v3 = vpop.f32.mrb[152].mxu1 }
0x14bd   : > { %v27775_v43 = vmax.f32 %v16035_v51, %v16502_v3  ;;  %v16037_v8 = vpop.f32.mrb[153].mxu0  ;;  %v16504_v11 = vpop.f32.mrb[153].mxu1  ;;  %v25044_v51 = vld [vmem:[#allocation29 + $0xc4] ss:$8 sps:$4 sm:$0xff]   ;;  %v24994_v3 = vld [vmem:[#allocation29 + $0x1c0] ss:$8 sps:$4 sm:$0xff]  }
0x14be   : > { %v27777_v35 = vmax.f32 %v16037_v8, %v16504_v11  ;;  %v16039_v0 = vpop.f32.mrb[154].mxu0  ;;  %v16506_v24 = vpop.f32.mrb[154].mxu1  ;;  %v25042_v8 = vld [vmem:[#allocation29 + $0xc0] ss:$8 sps:$4 sm:$0xff]   ;;  %v24999_v11 = vld [vmem:[#allocation29 + $0x1d4] ss:$8 sps:$4 sm:$0xff]  }
0x14bf   : > { %v16040_v5 = vpop.f32.mrb[155].mxu0  ;;  %v16507_v59 = vpop.f32.mrb[155].mxu1  ;;  %v25047_v0 = vld [vmem:[#allocation29 + $0xd4] ss:$8 sps:$4 sm:$0xff]   ;;  %v24997_v24 = vld [vmem:[#allocation29 + $0x1d0] ss:$8 sps:$4 sm:$0xff]  }
0x14c0   : > { %16516 = vmatprep.subr.mxu0 %v27777_v35  ;;  %16626 = vmatprep.subr.mxu1 %v27777_v35  ;;  %v25050_v5 = vld [vmem:[#allocation29 + $0xe4] ss:$8 sps:$4 sm:$0xff]   ;;  %v25000_v59 = vld [vmem:[#allocation29 + $0x1e0] ss:$8 sps:$4 sm:$0xff]  }
0x14c1   : > { %16517 = vmatpush1.msra.mxu0 %v27775_v43  ;;  %16627 = vmatpush1.msra.mxu1 %v27775_v43 }
0x14c2   : > { %21214 = vmatmul.mubr.msk.f32.vlgmr.msra.gmra.mrb[150].mxu0 %vm16512_vm3, %v16511_v39  ;;  %21215 = vmatmul.mubr.msk.f32.vlgmr.msra.gmra.mrb[150].mxu1 %vm16512_vm3, %v16622_v54  ;;  %v25045_v39 = vld [vmem:[#allocation29 + $0xd0] ss:$8 sps:$4 sm:$0xff]   ;;  %v25048_v54 = vld [vmem:[#allocation29 + $0xe0] ss:$8 sps:$4 sm:$0xff]  }
0x14c3   : > { %16892 = vmatprep.subr.bf16.mxu0 %v24960_v37  ;;  %17093 = vmatprep.subr.bf16.mxu1 %v25008_v62  ;;  %v25002_v37 = vld [vmem:[#allocation29 + $0x1e4] ss:$8 sps:$4 sm:$0xff]   ;;  %v25005_v62 = vld [vmem:[#allocation29 + $0x1f4] ss:$8 sps:$4 sm:$0xff]  }
0x14c4   : > { %16893 = vmatpush1.bf16.msra.mxu0 %v24958_v42  ;;  %17094 = vmatpush1.bf16.msra.mxu1 %v25006_v14  ;;  %v25003_v42 = vld [vmem:[#allocation29 + $0x1f0] ss:$8 sps:$4 sm:$0xff]   ;;  %v25053_v14 = vld [vmem:[#allocation29 + $0xf4] ss:$8 sps:$4 sm:$0xff]  }
0x14c5   : > { %16894 = vmatprep.subr.bf16.mxu0 %v24963_v4  ;;  %17095 = vmatprep.subr.bf16.mxu1 %v25011_v56  ;;  %v25051_v4 = vld [vmem:[#allocation29 + $0xf0] ss:$8 sps:$4 sm:$0xff]   ;;  %v25056_v56 = vld [vmem:[#allocation29 + $0x204] ss:$8 sps:$4 sm:$0xff]  }
0x14c8   : > { %16895 = vmatpush1.bf16.msra.mxu0 %v24961_v57  ;;  %17096 = vmatpush1.bf16.msra.mxu1 %v25009_v34 }
0x14c9   : > { %16896 = vmatprep.subr.bf16.mxu0 %v24966_v1  ;;  %17097 = vmatprep.subr.bf16.mxu1 %v25014_v27 }
0x14cc   : > { %16897 = vmatpush1.bf16.msra.mxu0 %v24964_v9  ;;  %17098 = vmatpush1.bf16.msra.mxu1 %v25012_v32 }
0x14cd   : > { %16898 = vmatprep.subr.bf16.mxu0 %v24969_v22  ;;  %17099 = vmatprep.subr.bf16.mxu1 %v25017_v7 }
0x14d0   : > { %16899 = vmatpush1.bf16.msra.mxu0 %v24967_v28  ;;  %17100 = vmatpush1.bf16.msra.mxu1 %v25015_v63  ;;  %v25054_v28 = vld [vmem:[#allocation29 + $0x200] ss:$8 sps:$4 sm:$0xff]   ;;  %v25059_v63 = vld [vmem:[#allocation29 + $0x214] ss:$8 sps:$4 sm:$0xff]  }
0x14d1   : > { %16900 = vmatprep.subr.bf16.mxu0 %v24972_v23  ;;  %17101 = vmatprep.subr.bf16.mxu1 %v25020_v19  ;;  %v25062_v23 = vld [vmem:[#allocation29 + $0x224] ss:$8 sps:$4 sm:$0xff]   ;;  %v17135_v19 = vld [vmem:[#allocation28 + $0x10] sm:$0xff] }
0x14d4   : > { %16901 = vmatpush1.bf16.msra.mxu0 %v24970_v13  ;;  %17102 = vmatpush1.bf16.msra.mxu1 %v25018_v10  ;;  %v25060_v13 = vld [vmem:[#allocation29 + $0x220] ss:$8 sps:$4 sm:$0xff]   ;;  %v25065_v10 = vld [vmem:[#allocation29 + $0x234] ss:$8 sps:$4 sm:$0xff]  }
0x14d5   : > { %16902 = vmatprep.subr.bf16.mxu0 %v24975_v12  ;;  %17103 = vmatprep.subr.bf16.mxu1 %v25023_v47  ;;  %v25063_v12 = vld [vmem:[#allocation29 + $0x230] ss:$8 sps:$4 sm:$0xff]   ;;  %v25068_v47 = vld [vmem:[#allocation29 + $0x244] ss:$8 sps:$4 sm:$0xff]  }
0x14d8   : > { %16903 = vmatpush1.bf16.msra.mxu0 %v24973_v25  ;;  %17104 = vmatpush1.bf16.msra.mxu1 %v25021_v21  ;;  %v25071_v25 = vld [vmem:[#allocation29 + $0x254] ss:$8 sps:$4 sm:$0xff]   ;;  %v25069_v21 = vld [vmem:[#allocation29 + $0x250] ss:$8 sps:$4 sm:$0xff]  }
0x14d9   : > { %16904 = vmatprep.subr.bf16.mxu0 %v24978_v52  ;;  %17105 = vmatprep.subr.bf16.mxu1 %v25026_v41  ;;  %v25074_v52 = vld [vmem:[#allocation29 + $0x264] ss:$8 sps:$4 sm:$0xff]   ;;  %v25072_v41 = vld [vmem:[#allocation29 + $0x260] ss:$8 sps:$4 sm:$0xff]  }
0x14dc   : > { %16905 = vmatpush1.bf16.msra.mxu0 %v24976_v55  ;;  %17106 = vmatpush1.bf16.msra.mxu1 %v25024_v49  ;;  %v25077_v55 = vld [vmem:[#allocation29 + $0x274] ss:$8 sps:$4 sm:$0xff]   ;;  %v25075_v49 = vld [vmem:[#allocation29 + $0x270] ss:$8 sps:$4 sm:$0xff]  }
0x14dd   : > { %16906 = vmatprep.subr.bf16.mxu0 %v24981_v58  ;;  %17107 = vmatprep.subr.bf16.mxu1 %v25029_v48  ;;  %v25080_v58 = vld [vmem:[#allocation29 + $0x284] ss:$8 sps:$4 sm:$0xff]   ;;  %v25078_v48 = vld [vmem:[#allocation29 + $0x280] ss:$8 sps:$4 sm:$0xff]  }
0x14e0   : > { %16907 = vmatpush1.bf16.msra.mxu0 %v24979_v60  ;;  %17108 = vmatpush1.bf16.msra.mxu1 %v25027_v46  ;;  %v25083_v60 = vld [vmem:[#allocation29 + $0x294] ss:$8 sps:$4 sm:$0xff]   ;;  %v25081_v46 = vld [vmem:[#allocation29 + $0x290] ss:$8 sps:$4 sm:$0xff]  }
0x14e1   : > { %16908 = vmatprep.subr.bf16.mxu0 %v24984_v16  ;;  %17109 = vmatprep.subr.bf16.mxu1 %v25032_v61  ;;  %v25086_v16 = vld [vmem:[#allocation29 + $0x2a4] ss:$8 sps:$4 sm:$0xff]   ;;  %v25084_v61 = vld [vmem:[#allocation29 + $0x2a0] ss:$8 sps:$4 sm:$0xff]  }
0x14e4   : > { %16909 = vmatpush1.bf16.msra.mxu0 %v24982_v31  ;;  %17110 = vmatpush1.bf16.msra.mxu1 %v25030_v17  ;;  %v25089_v31 = vld [vmem:[#allocation29 + $0x2b4] ss:$8 sps:$4 sm:$0xff]   ;;  %v25087_v17 = vld [vmem:[#allocation29 + $0x2b0] ss:$8 sps:$4 sm:$0xff]  }
0x14e5   : > { %16910 = vmatprep.subr.bf16.mxu0 %v24987_v36  ;;  %17111 = vmatprep.subr.bf16.mxu1 %v25035_v30  ;;  %v25092_v36 = vld [vmem:[#allocation29 + $0x2c4] ss:$8 sps:$4 sm:$0xff]   ;;  %v25090_v30 = vld [vmem:[#allocation29 + $0x2c0] ss:$8 sps:$4 sm:$0xff]  }
0x14e8   : > { %16911 = vmatpush1.bf16.msra.mxu0 %v24985_v40  ;;  %17112 = vmatpush1.bf16.msra.mxu1 %v25033_v6  ;;  %v25095_v40 = vld [vmem:[#allocation29 + $0x2d4] ss:$8 sps:$4 sm:$0xff]   ;;  %v25093_v6 = vld [vmem:[#allocation29 + $0x2d0] ss:$8 sps:$4 sm:$0xff]  }
0x14e9   : > { %16912 = vmatprep.subr.bf16.mxu0 %v24990_v2  ;;  %17113 = vmatprep.subr.bf16.mxu1 %v25038_v33  ;;  %v25096_v2 = vld [vmem:[#allocation29 + $0x2e0] ss:$8 sps:$4 sm:$0xff]   ;;  %v25098_v33 = vld [vmem:[#allocation29 + $0x2e4] ss:$8 sps:$4 sm:$0xff]  }
0x14ec   : > { %16913 = vmatpush1.bf16.msra.mxu0 %v24988_v50  ;;  %17114 = vmatpush1.bf16.msra.mxu1 %v25036_v26  ;;  %v25101_v50 = vld [vmem:[#allocation29 + $0x2f4] ss:$8 sps:$4 sm:$0xff]   ;;  %v25099_v26 = vld [vmem:[#allocation29 + $0x2f0] ss:$8 sps:$4 sm:$0xff]  }
0x14ed   : > { %16914 = vmatprep.subr.bf16.mxu0 %v24993_v29  ;;  %17115 = vmatprep.subr.bf16.mxu1 %v25041_v15 }
0x14f0   : > { %16915 = vmatpush1.bf16.msra.mxu0 %v24991_v38  ;;  %17116 = vmatpush1.bf16.msra.mxu1 %v25039_v45 }
0x14f1   : > { %16916 = vmatprep.subr.bf16.mxu0 %v24996_v18  ;;  %17117 = vmatprep.subr.bf16.mxu1 %v25044_v51 }
0x14f4   : > { %16917 = vmatpush1.bf16.msra.mxu0 %v24994_v3  ;;  %17118 = vmatpush1.bf16.msra.mxu1 %v25042_v8 }
0x14f5   : > { %16918 = vmatprep.subr.bf16.mxu0 %v24999_v11  ;;  %17119 = vmatprep.subr.bf16.mxu1 %v25047_v0 }
0x14f8   : > { %16919 = vmatpush1.bf16.msra.mxu0 %v24997_v24  ;;  %17120 = vmatpush1.bf16.msra.mxu1 %v25045_v39 }
0x14f9   : > { %16920 = vmatprep.subr.bf16.mxu0 %v25002_v37  ;;  %17121 = vmatprep.subr.bf16.mxu1 %v25050_v5 }
0x14fc   : > { %16921 = vmatpush1.bf16.msra.mxu0 %v25000_v59  ;;  %17122 = vmatpush1.bf16.msra.mxu1 %v25048_v54  ;;  %v17448_v59 = vld [vmem:[#allocation31] sm:$0x3] }
0x14fd   : > { %16922 = vmatprep.subr.bf16.mxu0 %v25005_v62  ;;  %17123 = vmatprep.subr.bf16.mxu1 %v25053_v14  ;;  %v17453_v54 = vrot.slane %v17448_v59, %v27020_v44  ;;  %v17540_v44 = vld [vmem:[#allocation32 + $0x4] sm:$0xf] }
0x1500   : > { %16923 = vmatpush1.bf16.msra.mxu0 %v25003_v42  ;;  %17124 = vmatpush1.bf16.msra.mxu1 %v25051_v4  ;;  %v17457_v42 = vrot.slane %v17448_v59, %v27028_v53  ;;  %v25103_v53 = vld [vmem:[#allocation34] sm:$0xff]  }
0x1501   : > { %17139 = vmatprep.subr.mxu0 %v27777_v35  ;;  %17405 = vmatprep.subr.bf16.mxu1 %v25056_v56  ;;  %v25057_v35 = vld [vmem:[#allocation29 + $0x210] ss:$8 sps:$4 sm:$0xff]  }
0x1595   : > { %v16582_v57 = vpop.f32.mrb[150].mxu0  ;;  %v16692_v34 = vpop.f32.mrb[150].mxu1 }
0x1596   : > { %v16587_v1 = vpack.c.bf16 %v16582_v57, %v16582_v57  ;;  %v16584_v27 = vpop.f32.mrb[151].mxu0  ;;  %v16694_v9 = vpop.f32.mrb[151].mxu1  ;;  %v16697_v7 = vpack.c.bf16 %v16692_v34, %v16692_v34 }
0x1597   : > { %v16588_v32 = vpack.c.bf16 %v16584_v27, %v16584_v27  ;;  %v16698_v22 = vpack.c.bf16 %v16694_v9, %v16694_v9 }
0x1599   : > { %16924 = vmatprep.mubr.bf16.mxu0 %v16698_v22  ;;  %17125 = vmatprep.mubr.bf16.mxu1 %v16588_v32  ;;  %v17464_v22 = vld [vmem:[#allocation32] sm:$0xf] }
0x159a   : > { %16925 = vmatmul.mubr.bf16.vlgmr.msra.gmra.mrb[156].mxu0 %v16697_v7  ;;  %17126 = vmatmul.mubr.bf16.vlgmr.msra.gmra.mrb[156].mxu1 %v16587_v1  ;;  %v25102_v7 = vld [vmem:[#allocation34 + $0x40] sm:$0xff]  }
0x159b   : > { %17140 = vmatpush1.msra.mxu0 %v27775_v43  ;;  %17203 = vmatprep.mubr.f32.mxu0 %v26127_v20  ;;  %v25066_v43 = vld [vmem:[#allocation29 + $0x240] ss:$8 sps:$4 sm:$0xff]  }
0x159c   : > { %17406 = vmatpush1.bf16.msra.mxu1 %v25054_v28  ;;  %v25104_v28 = vld [vmem:[#allocation34 + $0x48] sm:$0xff]  }
0x159d   : > { %17407 = vmatprep.subr.bf16.mxu1 %v25059_v63  ;;  %v25105_v63 = vld [vmem:[#allocation34 + $0x8] sm:$0xff]  }
0x15a0   : > { %17408 = vmatpush1.bf16.msra.mxu1 %v25057_v35  ;;  %v25106_v35 = vld [vmem:[#allocation34 + $0x50] sm:$0xff]  }
0x15a1   : > { %17409 = vmatprep.subr.bf16.mxu1 %v25062_v23  ;;  %v25107_v23 = vld [vmem:[#allocation34 + $0x10] sm:$0xff]  }
0x15a2   : > { %21280 = vmatmul.mubr.msk.f32.vlgmr.msra.gmra.mrb[160].mxu0 %vm16512_vm3, %v17135_v19  ;;  %v25108_v19 = vld [vmem:[#allocation34 + $0x58] sm:$0xff]  }
0x15a3   : > { %17532 = vmatprep.mubr.f32.mxu0 %v26127_v20 }
0x15a4   : > { %17410 = vmatpush1.bf16.msra.mxu1 %v25060_v13  ;;  %v25109_v13 = vld [vmem:[#allocation34 + $0x18] sm:$0xff]  }
0x15a5   : > { %17411 = vmatprep.subr.bf16.mxu1 %v25065_v10  ;;  %v25110_v10 = vld [vmem:[#allocation34 + $0x60] sm:$0xff]  }
0x15a8   : > { %17412 = vmatpush1.bf16.msra.mxu1 %v25063_v12  ;;  %v25111_v12 = vld [vmem:[#allocation34 + $0x20] sm:$0xff]  }
0x15a9   : > { %17413 = vmatprep.subr.bf16.mxu1 %v25068_v47  ;;  %v25112_v47 = vld [vmem:[#allocation34 + $0x68] sm:$0xff]  }
0x15ac   : > { %17414 = vmatpush1.bf16.msra.mxu1 %v25066_v43  ;;  %v25113_v43 = vld [vmem:[#allocation34 + $0x28] sm:$0xff]  }
0x15ad   : > { %17415 = vmatprep.subr.bf16.mxu1 %v25071_v25  ;;  %v25114_v25 = vld [vmem:[#allocation34 + $0x70] sm:$0xff]  }
0x15b0   : > { %17416 = vmatpush1.bf16.msra.mxu1 %v25069_v21  ;;  %v25115_v21 = vld [vmem:[#allocation34 + $0x30] sm:$0xff]  }
0x15b1   : > { %17417 = vmatprep.subr.bf16.mxu1 %v25074_v52  ;;  %v25116_v52 = vld [vmem:[#allocation34 + $0x78] sm:$0xff]  }
0x15b4   : > { %17418 = vmatpush1.bf16.msra.mxu1 %v25072_v41  ;;  %v25117_v41 = vld [vmem:[#allocation34 + $0x38] sm:$0xff]  }
0x15b5   : > { %17419 = vmatprep.subr.bf16.mxu1 %v25077_v55  ;;  %v25118_v55 = vld [vmem:[#allocation34 + $0xc0] sm:$0xff]  }
0x15b8   : > { %17420 = vmatpush1.bf16.msra.mxu1 %v25075_v49 }
0x15b9   : > { %17421 = vmatprep.subr.bf16.mxu1 %v25080_v58 }
0x15bc   : > { %17422 = vmatpush1.bf16.msra.mxu1 %v25078_v48 }
0x15bd   : > { %17423 = vmatprep.subr.bf16.mxu1 %v25083_v60 }
0x15c0   : > { %17424 = vmatpush1.bf16.msra.mxu1 %v25081_v46 }
0x15c1   : > { %17425 = vmatprep.subr.bf16.mxu1 %v25086_v16 }
0x15c4   : > { %17426 = vmatpush1.bf16.msra.mxu1 %v25084_v61 }
0x15c5   : > { %17427 = vmatprep.subr.bf16.mxu1 %v25089_v31  ;;  %v25119_v31 = vld [vmem:[#allocation34 + $0x80] sm:$0xff]  }
0x15c8   : > { %17428 = vmatpush1.bf16.msra.mxu1 %v25087_v17 }
0x15c9   : > { %17429 = vmatprep.subr.bf16.mxu1 %v25092_v36  ;;  %v25120_v36 = vld [vmem:[#allocation34 + $0xc8] sm:$0xff]  }
0x15cc   : > { %17430 = vmatpush1.bf16.msra.mxu1 %v25090_v30  ;;  %v25121_v30 = vld [vmem:[#allocation34 + $0x88] sm:$0xff]  }
0x15cd   : > { %17431 = vmatprep.subr.bf16.mxu1 %v25095_v40  ;;  %v25122_v40 = vld [vmem:[#allocation34 + $0xd0] sm:$0xff]  }
0x15d0   : > { %17432 = vmatpush1.bf16.msra.mxu1 %v25093_v6  ;;  %v25123_v6 = vld [vmem:[#allocation34 + $0x90] sm:$0xff]  }
0x15d1   : > { %17433 = vmatprep.subr.bf16.mxu1 %v25098_v33  ;;  %v25125_v33 = vld [vmem:[#allocation34 + $0x98] sm:$0xff]  }
0x15d4   : > { %17434 = vmatpush1.bf16.msra.mxu1 %v25096_v2  ;;  %v25124_v2 = vld [vmem:[#allocation34 + $0xd8] sm:$0xff]  }
0x15d5   : > { %17435 = vmatprep.subr.bf16.mxu1 %v25101_v50  ;;  %v25126_v50 = vld [vmem:[#allocation34 + $0xe0] sm:$0xff]  }
0x15d8   : > { %17436 = vmatpush1.bf16.msra.mxu1 %v25099_v26  ;;  %v25127_v26 = vld [vmem:[#allocation34 + $0xa0] sm:$0xff]  }
0x15d9   : > { %21757 = vmatprep.subr.mxu1 %v26127_v20 }
0x166d   : > { %v16926_v29 = vpop.f32.mrb[156].mxu0  ;;  %v17127_v15 = vpop.f32.mrb[156].mxu1 }
0x166e   : > { %v17128_v38 = vadd.f32 %v17127_v15, %v16926_v29  ;;  %v16928_v45 = vpop.f32.mrb[157].mxu0  ;;  %v17129_v18 = vpop.f32.mrb[157].mxu1  ;;  %v25128_v29 = vld [vmem:[#allocation34 + $0xe8] sm:$0xff]  }
0x166f   : > { %v17130_v51 = vadd.f32 %v17129_v18, %v16928_v45  ;;  %v16930_v3 = vpop.f32.mrb[158].mxu0  ;;  %v17131_v8 = vpop.f32.mrb[158].mxu1  ;;  %v25129_v15 = vld [vmem:[#allocation34 + $0xa8] sm:$0xff]   ;;  %v25131_v45 = vld [vmem:[#allocation34 + $0xb0] sm:$0xff]   ;;  %v25132_v18 = vld [vmem:[#allocation34 + $0xf8] sm:$0xff]  }
0x1670   : > { %v16931_v11 = vpop.f32.mrb[159].mxu0  ;;  %v17132_v0 = vpop.f32.mrb[159].mxu1  ;;  %v25134_v3 = vld [vmem:[#allocation37] sm:$0xff]   ;;  %v25136_v8 = vld [vmem:[#allocation37 + $0x8] sm:$0xff]  }
0x1671   : > { %v25138_v11 = vld [vmem:[#allocation37 + $0x10] sm:$0xff]   ;;  %v25140_v0 = vld [vmem:[#allocation37 + $0x18] sm:$0xff]  }
0x1675   : > { %v17205_v24 = vpop.f32.mrb[160].mxu0 }
0x1676   : > { %v17207_v39 = vpop.f32.mrb[161].mxu0  ;;  %v17210_v5 = vpack.c.bf16 %v17205_v24, %v17205_v24  ;;  %v25142_v24 = vld [vmem:[#allocation37 + $0x20] sm:$0xff]  }
0x1677   : > { %v17211_v37 = vpack.c.bf16 %v17207_v39, %v17207_v39  ;;  %v25144_v39 = vld [vmem:[#allocation37 + $0x28] sm:$0xff]  }
0x1679   : > { %17437 = vmatprep.mubr.bf16.mxu1 %v17211_v37  ;;  %v25146_v37 = vld [vmem:[#allocation37 + $0x30] sm:$0xff]  }
0x167a   : > { %17438 = vmatmul.mubr.bf16.vlgmr.msra.gmra.mrb[160].mxu1 %v17210_v5 }
0x167b   : > { %21759 = vmatprep.mubr.msk.f32.mxu1 %vm26128_vm4, %v26127_v20 }
0x174d   : > { %v17439_v62 = vpop.f32.mrb[160].mxu1 }
0x174e   : > { %v17446_v14 = vadd.f32 %v17439_v62, %v17128_v38  ;;  %v17441_v4 = vpop.f32.mrb[161].mxu1  ;;  %v25130_v38 = vld [vmem:[#allocation34 + $0xf0] sm:$0xff]  }
0x174f   : > { %v17447_v56 = vadd.f32 %v17441_v4, %v17130_v51  ;;  %v17443_v57 = vpop.f32.mrb[162].mxu1  ;;  %v25133_v51 = vld [vmem:[#allocation34 + $0xb8] sm:$0xff]  }
0x1750   : > { %v17460_v34 = vadd.f32 %v17453_v54, %v17446_v14  ;;  %v17444_v1 = vpop.f32.mrb[163].mxu1 }
0x1751   : > { %v17461_v27 = vadd.f32 %v17457_v42, %v17447_v56 }
0x1752   : > { %v17462_v32 = vmax.f32 %v17460_v34, 0.0 }
0x1753   : > { %v17463_v9 = vmax.f32 %v17461_v27, 0.0  ;;  %v17957_v27 = vld [vmem:[#allocation35] sm:$0xf] }
0x1755   : > { %17468 = vmatprep.subr.mxu0 %v17463_v9 }
0x1756   : > { %17469 = vmatpush1.msra.mxu0 %v17462_v32 }
0x1757   : > { %21313 = vmatmul.mubr.msk.f32.vlgmr.msra.gmra.mrb[162].mxu0 %vm16512_vm3, %v17464_v22  ;;  %17544 = vmatprep.subr.mxu0 %v17463_v9  ;;  %v18054_v9 = vld [vmem:[#allocation35 + $0x4] sm:$0xf]  ;;  %v25137_v22 = vld [vmem:[#allocation37 + $0x48] sm:$0xff]  }
0x1758   : > { %17545 = vmatpush1.msra.mxu0 %v17462_v32  ;;  %17608 = vmatprep.mubr.f32.mxu0 %v26127_v20  ;;  %v25135_v32 = vld [vmem:[#allocation37 + $0x40] sm:$0xff]  }
0x1759   : > { %21512 = vmatprep.subr.bf16.mxu0 %v25102_v7  ;;  %v25139_v7 = vld [vmem:[#allocation37 + $0x50] sm:$0xff]  }
0x175b   : > { %21314 = vmatmul.mubr.msk.f32.vlgmr.msra.gmra.mrb[164].mxu0 %vm16512_vm3, %v17540_v44  ;;  %v25141_v44 = vld [vmem:[#allocation37 + $0x58] sm:$0xff]  }
0x175c   : > { %21513 = vmatpush3.bf16.msra.mxu0 %v25103_v53  ;;  %v25143_v53 = vld [vmem:[#allocation37 + $0x60] sm:$0xff]  }
0x175d   : > { %21514 = vmatprep.subr.bf16.mxu0 %v25104_v28  ;;  %v25145_v28 = vld [vmem:[#allocation37 + $0x68] sm:$0xff]  }
0x1760   : > { %21515 = vmatpush3.bf16.msra.mxu0 %v25105_v63  ;;  %v25147_v63 = vld [vmem:[#allocation37 + $0x70] sm:$0xff]  }
0x1761   : > { %21516 = vmatprep.subr.bf16.mxu0 %v25106_v35  ;;  %v25148_v35 = vld [vmem:[#allocation37 + $0x38] sm:$0xff]  }
0x1764   : > { %21517 = vmatpush3.bf16.msra.mxu0 %v25107_v23  ;;  %v25149_v23 = vld [vmem:[#allocation37 + $0x78] sm:$0xff]  }
0x1765   : > { %21518 = vmatprep.subr.bf16.mxu0 %v25108_v19 }
0x1768   : > { %21519 = vmatpush3.bf16.msra.mxu0 %v25109_v13  ;;  %v25150_v13 = vld [vmem:[#allocation37 + $0x80] sm:$0xff]  }
0x1769   : > { %21520 = vmatprep.subr.bf16.mxu0 %v25110_v10 }
0x176c   : > { %21521 = vmatpush3.bf16.msra.mxu0 %v25111_v12 }
0x176d   : > { %21522 = vmatprep.subr.bf16.mxu0 %v25112_v47 }
0x1770   : > { %21523 = vmatpush3.bf16.msra.mxu0 %v25113_v43 }
0x1771   : > { %21524 = vmatprep.subr.bf16.mxu0 %v25114_v25 }
0x1774   : > { %21525 = vmatpush3.bf16.msra.mxu0 %v25115_v21  ;;  %v25151_v21 = vld [vmem:[#allocation37 + $0x88] sm:$0xff]  }
0x1775   : > { %21526 = vmatprep.subr.bf16.mxu0 %v25116_v52  ;;  %v25152_v52 = vld [vmem:[#allocation37 + $0x90] sm:$0xff]  }
0x1778   : > { %21527 = vmatpush3.bf16.msra.mxu0 %v25117_v41  ;;  %v18323_v41 = vld [vmem:[#allocation35 + $0x8] sm:$0xf] }
0x1779   : > { %21534 = vmatprep.subr.bf16.mxu0 %v25118_v55  ;;  %v25153_v55 = vld [vmem:[#allocation37 + $0x98] sm:$0xff]  }
0x182a   : > { %v17534_v49 = vpop.f32.mrb[162].mxu0 }
0x182b   : > { %v17536_v58 = vpop.f32.mrb[163].mxu0 }
0x182e   : > { %v17610_v48 = vpop.f32.mrb[164].mxu0 }
0x182f   : > { %v17615_v60 = vmax.f32 %v17534_v49, %v17610_v48  ;;  %v17612_v46 = vpop.f32.mrb[165].mxu0  ;;  %v25154_v49 = vld [vmem:[#allocation37 + $0xa0] sm:$0xff]   ;;  %v25156_v48 = vld [vmem:[#allocation37 + $0xb0] sm:$0xff]  }
0x1830   : > { %v17616_v16 = vmax.f32 %v17536_v58, %v17612_v46  ;;  %v25155_v58 = vld [vmem:[#allocation37 + $0xa8] sm:$0xff]  }
0x1831   : > { %v17617_v17 = vpack.c.bf16 %v17615_v60, %v17615_v60  ;;  %v25157_v60 = vld [vmem:[#allocation37 + $0xb8] sm:$0xff]  }
0x1832   : > { %v17618_v61 = vpack.c.bf16 %v17616_v16, %v17616_v16 }
0x1834   : > { %17779 = vmatprep.mubr.bf16.mxu0 %v17618_v61 }
0x1835   : > { %17780 = vmatmul.mubr.bf16.vlgmr.msra.gmra.mrb[168].mxu0 %v17617_v17 }
0x1836   : > { %21535 = vmatpush3.bf16.msra.mxu0 %v25119_v31  ;;  %17948 = vmatprep.mubr.bf16.mxu0 %v17618_v61 }
0x1837   : > { %21536 = vmatprep.subr.bf16.mxu0 %v25120_v36 }
0x183a   : > { %21537 = vmatpush3.bf16.msra.mxu0 %v25121_v30 }
0x183b   : > { %21538 = vmatprep.subr.bf16.mxu0 %v25122_v40 }
0x183e   : > { %21539 = vmatpush3.bf16.msra.mxu0 %v25123_v6 }
0x183f   : > { %21540 = vmatprep.subr.bf16.mxu0 %v25124_v2 }
0x1842   : > { %21541 = vmatpush3.bf16.msra.mxu0 %v25125_v33 }
0x1843   : > { %21542 = vmatprep.subr.bf16.mxu0 %v25126_v50 }
0x1846   : > { %21543 = vmatpush3.bf16.msra.mxu0 %v25127_v26  ;;  %v25159_v26 = vld [vmem:[%s28097_s14 + $0x40] sm:$0xff]  }
0x1847   : > { %21544 = vmatprep.subr.bf16.mxu0 %v25128_v29  ;;  %v25161_v29 = vld [vmem:[%s28097_s14 + $0x48] sm:$0xff]  }
0x184a   : > { %21545 = vmatpush3.bf16.msra.mxu0 %v25129_v15  ;;  %v25163_v15 = vld [vmem:[%s28097_s14 + $0x50] sm:$0xff]  }
0x184b   : > { %21546 = vmatprep.subr.bf16.mxu0 %v25130_v38  ;;  %v25165_v38 = vld [vmem:[%s28097_s14 + $0x58] sm:$0xff]  }
0x184e   : > { %21547 = vmatpush3.bf16.msra.mxu0 %v25131_v45  ;;  %v25167_v45 = vld [vmem:[%s28097_s14 + $0x60] sm:$0xff]  }
0x184f   : > { %21548 = vmatprep.subr.bf16.mxu0 %v25132_v18  ;;  %v25169_v18 = vld [vmem:[%s28097_s14 + $0x68] sm:$0xff]  }
0x1852   : > { %21549 = vmatpush3.bf16.msra.mxu0 %v25133_v51 }
0x1853   : > { %21787 = vmatprep.subr.bf16.mxu0 %v26127_v20 }
0x1855   : > { %17949 = vmatmul.mubr.bf16.vlgmr.msra.gmra.mrb[172].mxu0 %v17617_v17 }
0x1856   : > { %21803 = vmatprep.mubr.msk.bf16.mxu0 %vm26128_vm4, %v26127_v20  ;;  %21788 = vmatpush3.bf16.msra.mxu0 %v25134_v3  ;;  %v21377_v3 = vld [vmem:[#allocation38] ss:$0 sm:$0xff] }
0x1857   : > { %21789 = vmatprep.subr.bf16.mxu0 %v26127_v20 }
0x185a   : > { %21790 = vmatpush3.bf16.msra.mxu0 %v25136_v8 }
0x185b   : > { %21791 = vmatprep.subr.bf16.mxu0 %v26127_v20 }
0x185e   : > { %21792 = vmatpush3.bf16.msra.mxu0 %v25138_v11 }
0x185f   : > { %21793 = vmatprep.subr.bf16.mxu0 %v26127_v20 }
0x1862   : > { %21794 = vmatpush3.bf16.msra.mxu0 %v25140_v0 }
0x1863   : > { %21795 = vmatprep.subr.bf16.mxu0 %v26127_v20 }
0x1866   : > { %21796 = vmatpush3.bf16.msra.mxu0 %v25142_v24 }
0x1867   : > { %21797 = vmatprep.subr.bf16.mxu0 %v26127_v20 }
0x186a   : > { %21798 = vmatpush3.bf16.msra.mxu0 %v25144_v39 }
0x186b   : > { %21799 = vmatprep.subr.bf16.mxu0 %v26127_v20 }
0x186e   : > { %21800 = vmatpush3.bf16.msra.mxu0 %v25146_v37 }
0x186f   : > { %21801 = vmatprep.subr.bf16.mxu0 %v26127_v20 }
0x1872   : > { %21802 = vmatpush3.bf16.msra.mxu0 %v25148_v35  ;;  %v18878_v35 = vld [vmem:[#allocation41] sm:$0x1] }
0x1873   : > { %21812 = vmatprep.subr.bf16.mxu0 %v26127_v20 }
0x1908   : > { %v21528_v5 = vpop.f32.mrb[168].mxu0 }
0x1909   : > { %v21529_v59 = vpop.f32.mrb[169].mxu0 }
0x190a   : > { %v21530_v54 = vadd.f32 %v21529_v59, %v21528_v5  ;;  %v21531_v62 = vpop.f32.mrb[170].mxu0  ;;  %v18513_v5 = vld [vmem:[#allocation40] sm:$0x3]  ;;  %v18591_v59 = vld [vmem:[#allocation40 + $0x2] sm:$0x3] }
0x190b   : > { %v21532_v42 = vpop.f32.mrb[171].mxu0  ;;  %v25160_v62 = vld [vmem:[%s28097_s14 + $0x8] sm:$0xff]  }
0x190c   : > { %v25162_v42 = vld [vmem:[%s28097_s14 + $0x10] sm:$0xff]  }
0x1928   : > { %v21550_v14 = vpop.f32.mrb[172].mxu0 }
0x1929   : > { %v21551_v4 = vpop.f32.mrb[173].mxu0 }
0x192a   : > { %v21552_v56 = vadd.f32 %v21551_v4, %v21550_v14  ;;  %v21553_v57 = vpop.f32.mrb[174].mxu0  ;;  %v25164_v14 = vld [vmem:[%s28097_s14 + $0x18] sm:$0xff]   ;;  %v25166_v4 = vld [vmem:[%s28097_s14 + $0x20] sm:$0xff]  }
0x192b   : > { %v21554_v34 = vpop.f32.mrb[175].mxu0  ;;  %v25170_v57 = vld [vmem:[%s28097_s14 + $0x30] sm:$0xff]  }
0x192c   : > { %v17956_v1 = vmax.f32 %v21530_v54, %v21552_v56  ;;  %v25158_v54 = vld [vmem:[%s28097_s14] sm:$0xff]   ;;  %v25168_v56 = vld [vmem:[%s28097_s14 + $0x28] sm:$0xff]   ;;  %v25171_v34 = vld [vmem:[%s28097_s14 + $0x70] sm:$0xff]  }
0x192e   : > { %21758 = vmatpush3.msk.msra.mxu1 %vm17962_vm5, %v17956_v1 }
0x192f   : > { %21760 = vmatmul.mubr.msk.f32.vlgmr.msra.gmra.mrb[164].mxu1 %vm17958_vm6, %v17957_v27  ;;  %21762 = vmatprep.subr.mxu1 %v26127_v20  ;;  %v25173_v27 = vld [vmem:[%s28097_s14 + $0x78] sm:$0xff]  }
0x1930   : > { %21763 = vmatpush3.msk.msra.mxu1 %vm17962_vm5, %v17956_v1  ;;  %21764 = vmatprep.mubr.msk.f32.mxu1 %vm26128_vm4, %v26127_v20 }
0x1931   : > { %21767 = vmatprep.subr.bf16.mxu1 %v26127_v20 }
0x1933   : > { %21765 = vmatmul.mubr.msk.f32.vlgmr.msra.gmra.mrb[166].mxu1 %vm17958_vm6, %v18054_v9 }
0x1934   : > { %21768 = vmatpush3.bf16.msra.mxu1 %v25135_v32  ;;  %21783 = vmatprep.mubr.msk.bf16.mxu1 %vm26128_vm4, %v26127_v20 }
0x1935   : > { %21769 = vmatprep.subr.bf16.mxu1 %v26127_v20 }
0x1938   : > { %21770 = vmatpush3.bf16.msra.mxu1 %v25137_v22 }
0x1939   : > { %21771 = vmatprep.subr.bf16.mxu1 %v26127_v20 }
0x193c   : > { %21772 = vmatpush3.bf16.msra.mxu1 %v25139_v7 }
0x193d   : > { %21773 = vmatprep.subr.bf16.mxu1 %v26127_v20 }
0x1940   : > { %21774 = vmatpush3.bf16.msra.mxu1 %v25141_v44 }
0x1941   : > { %21775 = vmatprep.subr.bf16.mxu1 %v26127_v20 }
0x1944   : > { %21776 = vmatpush3.bf16.msra.mxu1 %v25143_v53 }
0x1945   : > { %21777 = vmatprep.subr.bf16.mxu1 %v26127_v20 }
0x1948   : > { %21778 = vmatpush3.bf16.msra.mxu1 %v25145_v28 }
0x1949   : > { %21779 = vmatprep.subr.bf16.mxu1 %v26127_v20 }
0x194c   : > { %21780 = vmatpush3.bf16.msra.mxu1 %v25147_v63 }
0x194d   : > { %21781 = vmatprep.subr.bf16.mxu1 %v26127_v20 }
0x1950   : > { %21782 = vmatpush3.bf16.msra.mxu1 %v25149_v23 }
0x1951   : > { %21807 = vmatprep.subr.mxu1 %v26127_v20 }
0x1a02   : > { %v18032_v19 = vpop.f32.mrb[164].mxu1 }
0x1a03   : > { %v18036_v10 = vpack.c.bf16 %v18032_v19, %v18032_v19  ;;  %v21761_v12 = vpop.f32.mrb[165].mxu1 }
0x1a05   : > { %21804 = vmatmul.mubr.bf16.vlgmr.msra.gmra.mrb[176].mxu0 %v18036_v10  ;;  %v19035_v10 = vld [vmem:[#allocation41 + $0x1] sm:$0x1] }
0x1a06   : > { %v18124_v47 = vpop.f32.mrb[166].mxu1  ;;  %21813 = vmatpush3.bf16.msra.mxu0 %v25150_v13  ;;  %21828 = vmatprep.mubr.msk.bf16.mxu0 %vm26128_vm4, %v26127_v20 }
0x1a07   : > { %v18128_v43 = vpack.c.bf16 %v18124_v47, %v18124_v47  ;;  %v21766_v25 = vpop.f32.mrb[167].mxu1  ;;  %21814 = vmatprep.subr.bf16.mxu0 %v26127_v20 }
0x1a09   : > { %21784 = vmatmul.mubr.bf16.vlgmr.msra.gmra.mrb[168].mxu1 %v18128_v43  ;;  %v25174_v43 = vld [vmem:[%s28098_s19] sm:$0xff]  }
0x1a0a   : > { %21808 = vmatpush3.msk.msra.mxu1 %vm17962_vm5, %v17956_v1  ;;  %21809 = vmatprep.mubr.msk.f32.mxu1 %vm26128_vm4, %v26127_v20  ;;  %v25172_v1 = vld [vmem:[%s28097_s14 + $0x38] sm:$0xff]  }
0x1a0b   : > { %21815 = vmatpush3.bf16.msra.mxu0 %v25151_v21  ;;  %21832 = vmatprep.subr.mxu1 %v26127_v20 }
0x1a0c   : > { %21816 = vmatprep.subr.bf16.mxu0 %v26127_v20 }
0x1a0f   : > { %21817 = vmatpush3.bf16.msra.mxu0 %v25152_v52  ;;  %v25175_v52 = vld [vmem:[%s28098_s19 + $0x8] sm:$0xff]  }
0x1a10   : > { %21818 = vmatprep.subr.bf16.mxu0 %v26127_v20 }
0x1a11   : > { %21810 = vmatmul.mubr.msk.f32.vlgmr.msra.gmra.mrb[172].mxu1 %vm17958_vm6, %v18323_v41  ;;  %v25176_v41 = vld [vmem:[%s28098_s19 + $0x10] sm:$0xff]  }
0x1a12   : > { %21834 = vmatprep.mubr.msk.f32.mxu1 %vm26128_vm4, %v26127_v20 }
0x1a13   : > { %21819 = vmatpush3.bf16.msra.mxu0 %v25153_v55  ;;  %v25177_v55 = vld [vmem:[%s28098_s19 + $0x18] sm:$0xff]  }
0x1a14   : > { %21820 = vmatprep.subr.bf16.mxu0 %v26127_v20 }
0x1a17   : > { %21821 = vmatpush3.bf16.msra.mxu0 %v25154_v49 }
0x1a18   : > { %21822 = vmatprep.subr.bf16.mxu0 %v26127_v20 }
0x1a1b   : > { %21823 = vmatpush3.bf16.msra.mxu0 %v25155_v58  ;;  %v25178_v58 = vld [vmem:[%s28098_s19 + $0x20] sm:$0xff]  }
0x1a1c   : > { %21824 = vmatprep.subr.bf16.mxu0 %v26127_v20 }
0x1a1f   : > { %21825 = vmatpush3.bf16.msra.mxu0 %v25156_v48 }
0x1a20   : > { %21826 = vmatprep.subr.bf16.mxu0 %v26127_v20 }
0x1a23   : > { %21827 = vmatpush3.bf16.msra.mxu0 %v25157_v60 }
0x1a24   : > { %21862 = vmatprep.subr.bf16.mxu0 %v26127_v20 }
0x1ad8   : > { %v18316_v46 = vpop.f32.mrb[176].mxu0 }
0x1ad9   : > { %v21805_v16 = vpop.f32.mrb[177].mxu0 }
0x1ada   : > { %v18319_v61 = vpop.f32.mrb[178].mxu0 }
0x1adb   : > { %v21806_v31 = vpop.f32.mrb[179].mxu0  ;;  %v25179_v61 = vld [vmem:[%s28098_s19 + $0x28] sm:$0xff]  }
0x1adc   : > { %v18228_v17 = vpop.f32.mrb[168].mxu1  ;;  %v25180_v31 = vld [vmem:[%s28098_s19 + $0x30] sm:$0xff]  }
0x1add   : > { %v18317_v36 = vadd.f32 %v18316_v46, %v18228_v17  ;;  %v21785_v30 = vpop.f32.mrb[169].mxu1  ;;  %v25181_v17 = vld [vmem:[%s28098_s19 + $0x38] sm:$0xff]  }
0x1ade   : > { %v18231_v40 = vpop.f32.mrb[170].mxu1  ;;  %v18877_v30 = vld [vmem:[#allocation43] sm:$0x1] }
0x1adf   : > { %v21786_v6 = vpop.f32.mrb[171].mxu1 }
0x1ae4   : > { %v18393_v2 = vpop.f32.mrb[172].mxu1 }
0x1ae5   : > { %v18397_v33 = vpack.c.bf16 %v18393_v2, %v18393_v2  ;;  %v21811_v50 = vpop.f32.mrb[173].mxu1 }
0x1ae7   : > { %21829 = vmatmul.mubr.bf16.vlgmr.msra.gmra.mrb[180].mxu0 %v18397_v33 }
0x1ae8   : > { %21878 = vmatprep.mubr.msk.bf16.mxu0 %vm26128_vm4, %v26127_v20  ;;  %21863 = vmatpush3.bf16.msra.mxu0 %v25159_v26 }
0x1ae9   : > { %21864 = vmatprep.subr.bf16.mxu0 %v26127_v20 }
0x1aec   : > { %21865 = vmatpush3.bf16.msra.mxu0 %v25161_v29 }
0x1aed   : > { %21866 = vmatprep.subr.bf16.mxu0 %v26127_v20 }
0x1af0   : > { %21867 = vmatpush3.bf16.msra.mxu0 %v25163_v15 }
0x1af1   : > { %21868 = vmatprep.subr.bf16.mxu0 %v26127_v20 }
0x1af4   : > { %21869 = vmatpush3.bf16.msra.mxu0 %v25165_v38 }
0x1af5   : > { %21870 = vmatprep.subr.bf16.mxu0 %v26127_v20 }
0x1af8   : > { %21871 = vmatpush3.bf16.msra.mxu0 %v25167_v45 }
0x1af9   : > { %21872 = vmatprep.subr.bf16.mxu0 %v26127_v20 }
0x1afc   : > { %21873 = vmatpush3.bf16.msra.mxu0 %v25169_v18 }
0x1afd   : > { %21874 = vmatprep.subr.bf16.mxu0 %v26127_v20 }
0x1b00   : > { %21875 = vmatpush3.bf16.msra.mxu0 %v25171_v34 }
0x1b01   : > { %21876 = vmatprep.subr.bf16.mxu0 %v26127_v20 }
0x1b04   : > { %21877 = vmatpush3.bf16.msra.mxu0 %v25173_v27 }
0x1b05   : > { %21899 = vmatprep.subr.mxu0 %v26127_v20 }
0x1bba   : > { %v18497_v51 = vpop.f32.mrb[180].mxu0 }
0x1bbb   : > { %v18503_v8 = vadd.f32 %v18497_v51, %v18317_v36  ;;  %v21830_v11 = vpop.f32.mrb[181].mxu0 }
0x1bbc   : > { %v18500_v0 = vpop.f32.mrb[182].mxu0 }
0x1bbd   : > { %v18511_v24 = vadd.f32 %v21377_v3, %v18503_v8  ;;  %v21831_v39 = vpop.f32.mrb[183].mxu0 }
0x1bbf   : > { %v18512_v37 = vmax.f32 %v18511_v24, 0.0 }
0x1bc1   : > { %21833 = vmatpush3.msk.msra.mxu1 %vm17962_vm5, %v18512_v37 }
0x1bc2   : > { %21835 = vmatmul.mubr.msk.f32.vlgmr.msra.gmra.mrb[174].mxu1 %vm17958_vm6, %v18513_v5  ;;  %21837 = vmatprep.subr.mxu1 %v26127_v20 }
0x1bc3   : > { %21838 = vmatpush3.msk.msra.mxu1 %vm17962_vm5, %v18512_v37  ;;  %21839 = vmatprep.mubr.msk.f32.mxu1 %vm26128_vm4, %v26127_v20 }
0x1bc4   : > { %21842 = vmatprep.subr.bf16.mxu1 %v26127_v20 }
0x1bc6   : > { %21840 = vmatmul.mubr.msk.f32.vlgmr.msra.gmra.mrb[176].mxu1 %vm17958_vm6, %v18591_v59 }
0x1bc7   : > { %21843 = vmatpush3.bf16.msra.mxu1 %v25158_v54  ;;  %21858 = vmatprep.mubr.msk.bf16.mxu1 %vm26128_vm4, %v26127_v20 }
0x1bc8   : > { %21844 = vmatprep.subr.bf16.mxu1 %v26127_v20 }
0x1bcb   : > { %21845 = vmatpush3.bf16.msra.mxu1 %v25160_v62 }
0x1bcc   : > { %21846 = vmatprep.subr.bf16.mxu1 %v26127_v20 }
0x1bcf   : > { %21847 = vmatpush3.bf16.msra.mxu1 %v25162_v42 }
0x1bd0   : > { %21848 = vmatprep.subr.bf16.mxu1 %v26127_v20 }
0x1bd3   : > { %21849 = vmatpush3.bf16.msra.mxu1 %v25164_v14 }
0x1bd4   : > { %21850 = vmatprep.subr.bf16.mxu1 %v26127_v20 }
0x1bd7   : > { %21851 = vmatpush3.bf16.msra.mxu1 %v25166_v4 }
0x1bd8   : > { %21852 = vmatprep.subr.bf16.mxu1 %v26127_v20 }
0x1bdb   : > { %21853 = vmatpush3.bf16.msra.mxu1 %v25168_v56 }
0x1bdc   : > { %21854 = vmatprep.subr.bf16.mxu1 %v26127_v20 }
0x1bdf   : > { %21855 = vmatpush3.bf16.msra.mxu1 %v25170_v57 }
0x1be0   : > { %21856 = vmatprep.subr.bf16.mxu1 %v26127_v20 }
0x1be3   : > { %21857 = vmatpush3.bf16.msra.mxu1 %v25172_v1 }
0x1be4   : > { %21882 = vmatprep.subr.mxu1 %v26127_v20 }
0x1c95   : > { %v18586_v9 = vpop.f32.mrb[174].mxu1 }
0x1c96   : > { %v21836_v32 = vpop.f32.mrb[175].mxu1 }
0x1c99   : > { %v18661_v22 = vpop.f32.mrb[176].mxu1 }
0x1c9a   : > { %v18665_v7 = vmax.f32 %v18586_v9, %v18661_v22  ;;  %v21841_v44 = vpop.f32.mrb[177].mxu1 }
0x1c9c   : > { %v18666_v53 = vpack.c.bf16 %v18665_v7, %v18665_v7 }
0x1c9e   : > { %21859 = vmatmul.mubr.bf16.vlgmr.msra.gmra.mrb[180].mxu1 %v18666_v53  ;;  %21879 = vmatmul.mubr.bf16.vlgmr.msra.gmra.mrb[184].mxu0 %v18666_v53 }
0x1c9f   : > { %21884 = vmatprep.mubr.msk.f32.mxu1 %vm26128_vm4, %v26127_v20  ;;  %21901 = vmatprep.mubr.msk.f32.mxu0 %vm26128_vm4, %v26127_v20 }
0x1d71   : > { %v18765_v28 = vpop.f32.mrb[180].mxu1  ;;  %v18870_v63 = vpop.f32.mrb[184].mxu0 }
0x1d72   : > { %v18876_v23 = vmax.f32 %v18765_v28, %v18870_v63  ;;  %v21860_v19 = vpop.f32.mrb[181].mxu1  ;;  %v21880_v13 = vpop.f32.mrb[185].mxu0 }
0x1d73   : > { %v18768_v12 = vpop.f32.mrb[182].mxu1  ;;  %v18873_v47 = vpop.f32.mrb[186].mxu0 }
0x1d74   : > { %v21861_v25 = vpop.f32.mrb[183].mxu1  ;;  %v21881_v21 = vpop.f32.mrb[187].mxu0  ;;  %21883 = vmatpush3.msk.msra.mxu1 %vm18883_vm7, %v18876_v23  ;;  %21900 = vmatpush3.msk.msra.mxu0 %vm18883_vm7, %v18876_v23 }
0x1d75   : > { %21885 = vmatmul.mubr.msk.f32.vlgmr.msra.gmra.mrb[178].mxu1 %vm18879_vm8, %v18878_v35  ;;  %21902 = vmatmul.mubr.msk.f32.vlgmr.msra.gmra.mrb[166].mxu0 %vm18879_vm8, %v19035_v10 }
0x1d76   : > { %21887 = vmatprep.subr.bf16.mxu1 %v26127_v20  ;;  %21895 = vmatprep.mubr.msk.bf16.mxu1 %vm26128_vm4, %v26127_v20 }
0x1d77   : > { %21888 = vmatpush3.bf16.msra.mxu1 %v25174_v43 }
0x1d78   : > { %21889 = vmatprep.subr.bf16.mxu1 %v26127_v20 }
0x1d7b   : > { %21890 = vmatpush3.bf16.msra.mxu1 %v25175_v52 }
0x1d7c   : > { %21891 = vmatprep.subr.bf16.mxu1 %v26127_v20 }
0x1d7f   : > { %21892 = vmatpush3.bf16.msra.mxu1 %v25176_v41 }
0x1d80   : > { %21893 = vmatprep.subr.bf16.mxu1 %v26127_v20 }
0x1d83   : > { %21894 = vmatpush3.bf16.msra.mxu1 %v25177_v55 }
0x1d84   : > { %21904 = vmatprep.subr.bf16.mxu1 %v26127_v20 }
0x1e48   : > { %v18953_v49 = vpop.f32.mrb[178].mxu1  ;;  %v19105_v48 = vpop.f32.mrb[166].mxu0 }
0x1e49   : > { %v18957_v60 = vpack.c.bf16 %v18953_v49, %v18953_v49  ;;  %v21886_v46 = vpop.f32.mrb[179].mxu1  ;;  %v21903_v16 = vpop.f32.mrb[167].mxu0  ;;  %v19109_v36 = vpack.c.bf16 %v19105_v48, %v19105_v48 }
0x1e4b   : > { %21896 = vmatmul.mubr.msk.bf16.vlgmr.msra.gmra.mrb[184].mxu1 %vm3923_vm0, %v18957_v60 }
0x1e4c   : > { %21905 = vmatpush3.bf16.msra.mxu1 %v25178_v58  ;;  %21912 = vmatprep.mubr.msk.bf16.mxu1 %vm26128_vm4, %v26127_v20 }
0x1e4d   : > { %21906 = vmatprep.subr.bf16.mxu1 %v26127_v20 }
0x1e50   : > { %21907 = vmatpush3.bf16.msra.mxu1 %v25179_v61 }
0x1e51   : > { %21908 = vmatprep.subr.bf16.mxu1 %v26127_v20 }
0x1e54   : > { %21909 = vmatpush3.bf16.msra.mxu1 %v25180_v31 }
0x1e55   : > { %21910 = vmatprep.subr.bf16.mxu1 %v26127_v20 }
0x1e58   : > { %21911 = vmatpush3.bf16.msra.mxu1 %v25181_v17 }
0x1e5b   : > { %21913 = vmatmul.mubr.msk.bf16.vlgmr.msra.gmra.mrb[184].mxu1 %vm3923_vm0, %v19109_v36 }
0x1f2e   : > { %v19180_v40 = vpop.f32.mrb[184].mxu1 }
0x1f2f   : > { %v22252_v6 = vadd.f32 %v19180_v40, %v18877_v30  ;;  %v21914_v2 = vpop.f32.mrb[185].mxu1 }
0x1f30   : > { %v19183_v20 = vpop.f32.mrb[186].mxu1 }
0x1f31   : > { %v21915_v33 = vpop.f32.mrb[187].mxu1  ;;  %19188 = vst.msk [vmem:[%s1284_s1] sm:$0x1] %vm19187_vm9, %v22252_v6 }
0x1f32   : > { %25953 = shalt.err (!%p25950_p3)
}
0x1f33   : > { %s25954_s20 = scalar_lea.hbm %s27917_s15, 16  ;;  %s25958_s13 = scalar_lea.hbm %s28099_s22, 32 }
0x1f34   : > { %p25955_p11 = scmp.ne.s32.totalorder %s27917_s15, %s25954_s20  ;;  %p25959_p7 = scmp.lt.u32.totalorder %s27917_s15, %s28099_s22 }
0x1f35   : > { %p25960_p1 = scmp.lt.u32.totalorder %s25958_s13, %s25954_s20  ;;  %p25962_p13 = scmp.lt.u32.totalorder %s25954_s20, %s27917_s15 }
0x1f36   : > { %p25956_p12 = pnand %p25955_p11, %p28100_p6 }
0x1f37   : > { %p25961_p9 = por %p25960_p1, %p25959_p7 }
0x1f38   : > { %p25957_p5 = pneg %p25956_p12 }
0x1f39   : > { %p25963_p0 = por %p25962_p13, %p25961_p9 }
0x1f3b   : > { %p25964_p2 = pnand %p25963_p0, %p25957_p5 }
0x1f3d   : > { %25967 = shalt.err (!%p25964_p2)
}
0x1f3e   : > { %22699 = dma.vmem_to_hbm [thread:$0]  (%p28100_p6), %s27919_s17, 16, %s27917_s15, %s19190_s16  }
0x1f3f PF: > { %s19214_s5 = sand.u32 1, %s26046_s7   ;;  %p28101_p8 = scmp.ne.s32.totalorder %s28068_s28, 0 }
0x1f40   : > { %p28102_p4 = scmp.ge.s32.totalorder %s26058_s11, 2  ;;  %s19215_s2 = scalar_lea.sflag [#allocation4], %s19214_s5 }
0x1f42   : > { %p22785_p10 = pnand %p28102_p4, %p28101_p8 }
0x1f44   : > { %26041 = dma.done.wait (!%p22785_p10), %s19215_s2, 16  }
0x1f45   : > { %26043 = vsyncadd (!%p22785_p10), %s19215_s2, 4294967280  ;;  %p85_p3 = scmp.ge.s32.totalorder %s26677_s3, 4   ;;  %s28103_s7 = smov %s26050_s0 }
0x1f46   : > { %s28104_s0 = smov %s26054_s10  ;;  %s28105_s10 = smov %s26688_s23 }
0x1f47   : > { %s28106_s11 = smov %s26677_s3  ;;  %87 = sbr.rel (!%p85_p3) target bundleno = 75 (0x4b), region = 346 }
0x1f4e   :  { %19219 = vsyncpa [#allocation3], 1 }
0x1f4f   :  { %19221 = vsyncpa [#allocation3 + $0x1], 1 }
0x1f50   :  { %19222 = vsyncpa [#allocation6], 1 }
0x1f51   :  { %19223 = vsyncpa [#allocation9], 1 }
0x1f52   :  { %19224 = vsyncpa [#allocation12], 1 }
0x1f53   :  { %19225 = vsyncpa [#allocation15], 1 }
0x1f54   :  { %19226 = vsyncpa [#allocation18], 1 }
0x1f55   :  { %19227 = vsyncpa [#allocation21], 1 }
0x1f56   :  { %19228 = vsyncpa [#allocation24], 1 }
0x1f57   :  { %19229 = vsyncpa [#allocation27], 1 }
0x1f58   :  { %19230 = vsyncpa [#allocation30], 1 }
0x1f59   :  { %19231 = vsyncpa [#allocation33], 1 }
0x1f5a   :  { %19232 = vsyncpa [#allocation36], 1 }
0x1f5b   :  { %19233 = vsyncpa [#allocation39], 1 }
0x1f5c   :  { %19234 = vsyncpa [#allocation42], 1 }
0x1f5d   :  { %19235 = vsyncpa [#allocation4], 1 }
0x1f5e   :  { %19237 = vsyncpa [#allocation4 + $0x1], 1 }

</bundles_post_ra>
